<compile_context>
chip_gen: v6e
topology: v6e:2x2x1
jax: 0.10.0
libtpu: 0.0.40
codegen_flags: <defaults>
</compile_context>

<pallas_src>
import functools

import jax
import jax.numpy as jnp
from jax.experimental import pallas as pl
from jax.experimental.pallas import tpu as pltpu


# ---------------------------------------------------------------------------
# Pallas kernels
# ---------------------------------------------------------------------------
def _elu(x):
    # ELU(alpha=1). The clamp keeps exp() off large positives in the unselected
    # branch; difference vs expm1 (<1e-7) is far below bf16 operand noise.
    return jnp.where(x > 0.0, x, jnp.exp(jnp.minimum(x, 0.0)) - 1.0)


def _fused_encoder_kernel(*args, L, ksize, th, We, M, G, compute_dtype):
    """Fused 3-branch conv trunk + 1x1 linear epilogue for one (batch, row-tile) step.

    args = [x_ref, mask_ref, (w_ref, b_ref) * L, lin_w_ref, lin_b_ref, o_ref,
            xbuf, hbuf]

      x_ref    : (Hp*Wp + 2G, C0)  guarded, flattened, zero-padded NHWC input (per image)
      mask_ref : (M, 1)            1.0 where the extended-grid position is inside the image
      w_ref    : (k*k*Cin_l, Cout) fused (block-diagonal) conv weights, compute_dtype
      b_ref    : (1, Cout)         fused bias, f32
      o_ref    : (M, Cn)           raw per-tile output on the extended flat grid
      xbuf     : VMEM scratch (M + 2G, C0)    staged input slab for this tile
      hbuf     : VMEM scratch (M + 2G, 3*nu)  current hidden activation with G zero
                 guard rows on each side so every 3x3 tap is a static flat row offset.
    """
    x_ref = args[0]
    mask_ref = args[1]
    conv_refs = args[2:2 + 2 * L]
    wl_ref = args[2 + 2 * L]
    bl_ref = args[3 + 2 * L]
    o_ref = args[4 + 2 * L]
    xbuf = args[5 + 2 * L]
    hbuf = args[6 + 2 * L]

    p = ksize // 2
    t = pl.program_id(1)
    tile_elems = th * We
    tile_base = t * tile_elems                 # flat row offset of this tile's extended grid
    if tile_elems % 8 == 0:
        tile_base = pl.multiple_of(tile_base, 8)

    # Stage the per-tile input slab once (single dynamic-start VMEM->VMEM copy);
    # every conv tap below is then a *static* row-offset slice.
    xbuf[...] = x_ref[pl.ds(tile_base, M + 2 * G), :]

    # Guard rows only feed "don't-care" halo outputs, but keep them zero for hygiene.
    if G > 0:
        zero_guard = jnp.zeros((G, hbuf.shape[1]), hbuf.dtype)
        hbuf[0:G, :] = zero_guard
        hbuf[G + M:M + 2 * G, :] = zero_guard

    inside = mask_ref[...]                     # (M, 1) f32, precomputed host-side

    act = None
    for l in range(L):
        w_ref = conv_refs[2 * l]
        b_ref = conv_refs[2 * l + 1]
        cin = w_ref.shape[0] // (ksize * ksize)
        src = xbuf if l == 0 else hbuf

        # in-kernel im2col: accumulate one (M, Cin) @ (Cin, Cout) GEMM per tap,
        # where each tap's operand is a static row-shifted view of the VMEM slab.
        acc = None
        for ky in range(ksize):
            for kx in range(ksize):
                off = (ky - p) * We + (kx - p)
                patch = src[G + off:G + off + M, :]
                tap = ky * ksize + kx
                w_tap = w_ref[tap * cin:(tap + 1) * cin, :]
                d = jnp.dot(patch, w_tap, preferred_element_type=jnp.float32)
                acc = d if acc is None else acc + d

        act = _elu(acc + b_ref[...])                       # f32 epilogue
        if l < L - 1:
            # Zeros outside the image ARE the next conv layer's 'same' padding.
            act = act * inside
            hbuf[G:G + M, :] = act.astype(compute_dtype)

    # Fused 1x1 "linear" epilogue: one (M, 3*nu) @ (3*nu, Cn) GEMM for all branches.
    y = jnp.dot(act.astype(compute_dtype), wl_ref[...],
                preferred_element_type=jnp.float32) + bl_ref[...]
    o_ref[...] = _elu(y).astype(o_ref.dtype)


def _bn_stats_kernel(x_ref, sum_ref, sq_ref):
    """Pass 1: per-channel sum and sum-of-squares, accumulated across column tiles."""
    @pl.when(pl.program_id(0) == 0)
    def _init():
        sum_ref[...] = jnp.zeros_like(sum_ref)
        sq_ref[...] = jnp.zeros_like(sq_ref)

    x = x_ref[...]
    sum_ref[...] += jnp.sum(x, axis=1, keepdims=True)
    sq_ref[...] += jnp.sum(x * x, axis=1, keepdims=True)


def _bn_norm_sign_kernel(x_ref, sum_ref, sq_ref, o_ref, *, inv_count, eps, use_ste):
    """Pass 2: BatchNorm2d(affine=False, batch stats) + optional STE sign."""
    x = x_ref[...]
    mean = sum_ref[...] * inv_count
    var = sq_ref[...] * inv_count - mean * mean     # biased variance (torch BN, training)
    y = (x - mean) * jax.lax.rsqrt(var + eps)
    if use_ste:
        # torch.sign semantics (sign(0) == 0)
        y = jnp.where(y > 0.0, 1.0, jnp.where(y < 0.0, -1.0, 0.0))
    o_ref[...] = y.astype(o_ref.dtype)


# ---------------------------------------------------------------------------
# Host-side parameter fusion (block-diagonal branch fusion) and wrappers
# ---------------------------------------------------------------------------
def _block_diag(blocks):
    rows = sum(b.shape[0] for b in blocks)
    cols = sum(b.shape[1] for b in blocks)
    out = jnp.zeros((rows, cols), blocks[0].dtype)
    r = c = 0
    for blk in blocks:
        out = out.at[r:r + blk.shape[0], c:c + blk.shape[1]].set(blk)
        r += blk.shape[0]
        c += blk.shape[1]
    return out


def _fuse_params(params):
    """Fuse the three branches into block-diagonal weights (tap-major layout)."""
    w1s, w2s, w3s = params["cnn1_w"], params["cnn2_w"], params["cnn3_w"]
    b1s, b2s, b3s = params["cnn1_b"], params["cnn2_b"], params["cnn3_b"]
    L = len(w1s)
    nu = w1s[0].shape[-1]
    cin0 = w1s[0].shape[2]

    conv_ws, conv_bs = [], []
    for l in range(L):
        k = w1s[l].shape[0]
        taps = []
        for ky in range(k):
            for kx in range(k):
                if l == 0:
                    # input channels [0:cin0]   = (2u-1 | img)       -> branches 1 & 2
                    # input channels [cin0:...] = (interleaved | img)-> branch 3
                    top = jnp.concatenate(
                        [w1s[l][ky, kx], w2s[l][ky, kx],
                         jnp.zeros((cin0, nu), jnp.float32)], axis=1)
                    bot = jnp.concatenate(
                        [jnp.zeros((cin0, 2 * nu), jnp.float32), w3s[l][ky, kx]], axis=1)
                    taps.append(jnp.concatenate([top, bot], axis=0))
                else:
                    taps.append(_block_diag([w1s[l][ky, kx], w2s[l][ky, kx],
                                             w3s[l][ky, kx]]))
        conv_ws.append(jnp.concatenate(taps, axis=0))
        conv_bs.append(jnp.concatenate([b1s[l], b2s[l], b3s[l]], axis=0))

    # 1x1 "linear" convs (nu -> 1 per branch) fused into one (3*nu, 3) weight.
    lin_w = _block_diag([params["lin1_w"][0][0, 0], params["lin2_w"][0][0, 0],
                         params["lin3_w"][0][0, 0]])
    lin_b = jnp.concatenate([params["lin1_b"][0], params["lin2_b"][0],
                             params["lin3_b"][0]], axis=0)
    return conv_ws, conv_bs, lin_w, lin_b


def fused_encoder(x0, conv_ws, conv_bs, lin_w, lin_b, *, ksize,
                  row_tile=None, compute_dtype=jnp.bfloat16):
    """Run the fused conv trunk. x0: (B, H, W, 2*cin0) channels-last."""
    b, h, w, c0 = x0.shape
    L = len(conv_ws)
    p = ksize // 2
    P = L * p
    if row_tile is None:
        # target up to ~4K GEMM rows per tile; must divide H
        row_tile = max((d for d in range(1, h + 1)
                        if h % d == 0 and (d + 2 * P) * (w + 2 * P) <= 4096), default=h)
    th = row_tile
    assert h % th == 0, "row_tile must divide H"
    nt = h // th
    hp, wp = h + 2 * P, w + 2 * P
    we = wp
    m = (th + 2 * P) * we              # extended flat grid size per tile
    g = p * we + p                     # guard rows so every tap is a flat row offset
    cn = lin_w.shape[1]
    num_hidden = conv_ws[-1].shape[1]

    # Layout plumbing (host side): zero-pad, flatten spatially, add guard rows.
    x0p = jnp.pad(x0, ((0, 0), (P, P), (P, P), (0, 0)))
    x0f = jnp.pad(x0p.reshape(b, hp * wp, c0), ((0, 0), (g, g), (0, 0)))
    x0f = x0f.astype(compute_dtype)

    # Per-tile validity mask (inside the original image) -> no int div/mod in-kernel.
    rows = (jnp.arange(nt)[:, None, None] * th
            + jnp.arange(th + 2 * P)[None, :, None] - P)          # (nt, He, 1)
    cols = jnp.arange(we)[None, None, :] - P                       # (1, 1, We)
    inside = ((rows >= 0) & (rows < h) & (cols >= 0) & (cols < w))
    inside = inside.astype(jnp.float32).reshape(nt, m, 1)

    in_specs = [
        pl.BlockSpec((None, hp * wp + 2 * g, c0), lambda bi, ti: (bi, 0, 0)),
        pl.BlockSpec((None, m, 1), lambda bi, ti: (ti, 0, 0)),
    ]
    args = [x0f, inside]
    for cw, cb in zip(conv_ws, conv_bs):
        in_specs.append(pl.BlockSpec(cw.shape, lambda bi, ti: (0, 0)))
        in_specs.append(pl.BlockSpec((1, cb.shape[0]), lambda bi, ti: (0, 0)))
        args.append(cw.astype(compute_dtype))
        args.append(cb.reshape(1, -1).astype(jnp.float32))
    in_specs.append(pl.BlockSpec(lin_w.shape, lambda bi, ti: (0, 0)))
    in_specs.append(pl.BlockSpec((1, cn), lambda bi, ti: (0, 0)))
    args.append(lin_w.astype(compute_dtype))
    args.append(lin_b.reshape(1, -1).astype(jnp.float32))

    kern = functools.partial(_fused_encoder_kernel, L=L, ksize=ksize, th=th,
                             We=we, M=m, G=g, compute_dtype=compute_dtype)
    raw = pl.pallas_call(
        kern,
        out_shape=jax.ShapeDtypeStruct((b, nt, m, cn), jnp.float32),
        grid=(b, nt),
        in_specs=in_specs,
        out_specs=pl.BlockSpec((None, None, m, cn), lambda bi, ti: (bi, ti, 0, 0)),
        scratch_shapes=[pltpu.VMEM((m + 2 * g, c0), compute_dtype),
                        pltpu.VMEM((m + 2 * g, num_hidden), compute_dtype)],
        compiler_params=pltpu.CompilerParams(
            dimension_semantics=("parallel", "arbitrary"),
            vmem_limit_bytes=32 * 1024 * 1024),
    )(*args)

    # Crop the don't-care halo ring (layout plumbing only).
    y = raw.reshape(b, nt, th + 2 * P, we, cn)[:, :, P:P + th, P:P + w, :]
    return y.reshape(b, h, w, cn)


def bn_sign(x_cn, eps=1e-5, use_ste=True):
    """Two-pass tiled BatchNorm(affine=False, batch stats) + optional sign.

    x_cn: (C, N) channel-major layout so both passes are lane-dense.
    """
    cn, n = x_cn.shape
    tile = next((t for t in (2048, 1024, 512, 256, 128) if n % t == 0 and t < n), n)
    grid = (n // tile,)
    stat_spec = pl.BlockSpec((cn, 1), lambda i: (0, 0))

    sums, sqs = pl.pallas_call(
        _bn_stats_kernel,
        out_shape=(jax.ShapeDtypeStruct((cn, 1), jnp.float32),
                   jax.ShapeDtypeStruct((cn, 1), jnp.float32)),
        grid=grid,
        in_specs=[pl.BlockSpec((cn, tile), lambda i: (0, i))],
        out_specs=(stat_spec, stat_spec),
        compiler_params=pltpu.CompilerParams(dimension_semantics=("arbitrary",)),
    )(x_cn)

    kern = functools.partial(_bn_norm_sign_kernel, inv_count=1.0 / n, eps=eps,
                             use_ste=use_ste)
    return pl.pallas_call(
        kern,
        out_shape=jax.ShapeDtypeStruct((cn, n), jnp.float32),
        grid=grid,
        in_specs=[pl.BlockSpec((cn, tile), lambda i: (0, i)), stat_spec, stat_spec],
        out_specs=pl.BlockSpec((cn, tile), lambda i: (0, i)),
        compiler_params=pltpu.CompilerParams(dimension_semantics=("parallel",)),
    )(x_cn, sums, sqs)


def interleave_2d(x_nhwc, p_array):
    """out[b, i, c] = in[b, p[i], c] on the flattened H*W axis (Interleaver2D)."""
    b, h, w, c = x_nhwc.shape
    flat = x_nhwc.reshape(b, h * w, c)
    return jnp.take(flat, p_array, axis=1).reshape(b, h, w, c)


@functools.partial(jax.jit, static_argnames=("enc_kernel_size", "use_cce_ste",
                                             "compute_dtype", "row_tile"))
def cce_turbo_encoder_2d_img(params, u_message_nchw, real_nchw, p_array, *,
                             enc_kernel_size, use_cce_ste,
                             compute_dtype=jnp.bfloat16, row_tile=None):
    # PyTorch NCHW -> NHWC for the TPU kernels
    u = jnp.transpose(u_message_nchw, (0, 2, 3, 1)).astype(jnp.float32)
    img = jnp.transpose(real_nchw, (0, 2, 3, 1)).astype(jnp.float32)
    b, h, w, _ = u.shape

    inputs = 2.0 * u - 1.0
    inputs_img = jnp.concatenate([inputs, img], axis=-1)
    x_int = interleave_2d(inputs, p_array)
    inputs_int_img = jnp.concatenate([x_int, img], axis=-1)
    # Channels [0:cin0] feed branches 1&2, [cin0:2*cin0] feed the interleaved branch 3.
    x0 = jnp.concatenate([inputs_img, inputs_int_img], axis=-1)

    conv_ws, conv_bs, lin_w, lin_b = _fuse_params(params)
    x_tx = fused_encoder(x0, conv_ws, conv_bs, lin_w, lin_b,
                         ksize=enc_kernel_size, row_tile=row_tile,
                         compute_dtype=compute_dtype)          # (B, H, W, Cn) f32

    cn = x_tx.shape[-1]
    x_t = x_tx.reshape(b * h * w, cn).T                        # (Cn, N) lane-dense
    y_t = bn_sign(x_t, eps=1e-5, use_ste=use_cce_ste)          # (Cn, N)
    y = y_t.reshape(cn, b, h, w)
    return jnp.transpose(y, (1, 0, 2, 3))                      # back to NCHW


# ---------------------------------------------------------------------------
# Pure-JAX reference (correctness sanity check only)
# ---------------------------------------------------------------------------
def reference_forward(params, u_nchw, real_nchw, p_array, k, use_ste):
    def conv_stack(x, ws, bs, ksize):
        for wgt, bias in zip(ws, bs):
            w_oihw = jnp.transpose(wgt, (3, 2, 0, 1))
            p = ksize // 2
            x = jax.lax.conv_general_dilated(
                x, w_oihw, window_strides=(1, 1), padding=((p, p), (p, p)),
                dimension_numbers=("NCHW", "OIHW", "NCHW"),
                precision=jax.lax.Precision.HIGHEST)
            x = x + bias[None, :, None, None]
            x = jnp.where(x > 0.0, x, jnp.exp(jnp.minimum(x, 0.0)) - 1.0)
        return x

    inputs = 2.0 * u_nchw - 1.0
    inputs_img = jnp.concatenate([inputs, real_nchw], axis=1)
    x_sys = conv_stack(inputs_img, params["cnn1_w"], params["cnn1_b"], k)
    x_sys = conv_stack(x_sys, params["lin1_w"], params["lin1_b"], 1)
    x_p1 = conv_stack(inputs_img, params["cnn2_w"], params["cnn2_b"], k)
    x_p1 = conv_stack(x_p1, params["lin2_w"], params["lin2_b"], 1)
    b, c, h, w = inputs.shape
    x_int = jnp.take(inputs.reshape(b, c, h * w), p_array, axis=2).reshape(b, c, h, w)
    inputs_int_img = jnp.concatenate([x_int, real_nchw], axis=1)
    x_p2 = conv_stack(inputs_int_img, params["cnn3_w"], params["cnn3_b"], k)
    x_p2 = conv_stack(x_p2, params["lin3_w"], params["lin3_b"], 1)
    x_tx = jnp.concatenate([x_sys, x_p1, x_p2], axis=1)
    mean = jnp.mean(x_tx, axis=(0, 2, 3), keepdims=True)
    var = jnp.mean((x_tx - mean) ** 2, axis=(0, 2, 3), keepdims=True)
    y = (x_tx - mean) * jax.lax.rsqrt(var + 1e-5)
    if use_ste:
        y = jnp.where(y > 0.0, 1.0, jnp.where(y < 0.0, -1.0, 0.0))
    return y


# ---------------------------------------------------------------------------
# Deterministic parameter init (PyTorch Conv2d default uniform range)
# ---------------------------------------------------------------------------
def init_stack(key, ksize, cin, cout, num_layer):
    ws, bs = [], []
    c = cin
    for _ in range(num_layer):
        key, kw, kb = jax.random.split(key, 3)
        bound = 1.0 / float(ksize * ksize * c) ** 0.5
        ws.append(jax.random.uniform(kw, (ksize, ksize, c, cout), jnp.float32, -bound, bound))
        bs.append(jax.random.uniform(kb, (cout,), jnp.float32, -bound, bound))
        c = cout
    return key, ws, bs


if __name__ == "__main__":
    # Small args consistent with the module
    code_rate_k = 1
    img_channels = 3
    code_rate_n = 3          # x_sys | x_p1 | x_p2
    cce_num_unit = 32
    cce_num_layer = 2
    enc_kernel_size = 3
    img_size = 16
    batch = 2
    use_cce_ste = True

    key = jax.random.PRNGKey(0)
    cin0 = code_rate_k + img_channels

    key, w1, b1 = init_stack(key, enc_kernel_size, cin0, cce_num_unit, cce_num_layer)
    key, l1w, l1b = init_stack(key, 1, cce_num_unit, 1, 1)
    key, w2, b2 = init_stack(key, enc_kernel_size, cin0, cce_num_unit, cce_num_layer)
    key, l2w, l2b = init_stack(key, 1, cce_num_unit, 1, 1)
    key, w3, b3 = init_stack(key, enc_kernel_size, cin0, cce_num_unit, cce_num_layer)
    key, l3w, l3b = init_stack(key, 1, cce_num_unit, 1, 1)
    params = dict(cnn1_w=w1, cnn1_b=b1, lin1_w=l1w, lin1_b=l1b,
                  cnn2_w=w2, cnn2_b=b2, lin2_w=l2w, lin2_b=l2b,
                  cnn3_w=w3, cnn3_b=b3, lin3_w=l3w, lin3_b=l3b)

    key, ku, ki, kp = jax.random.split(key, 4)
    u_message = jax.random.bernoulli(
        ku, 0.5, (batch, code_rate_k, img_size, img_size)).astype(jnp.float32)
    real_cpu = jax.random.normal(ki, (batch, img_channels, img_size, img_size), jnp.float32)
    p_array = jax.random.permutation(kp, img_size * img_size)

    ref_cont = jax.block_until_ready(
        reference_forward(params, u_message, real_cpu, p_array,
                          enc_kernel_size, use_ste=False))

    # 1) f32 compute path: tight check of the fused / tiled kernel structure
    #    (row_tile=8 -> 2 row tiles per image, exercising the halo handling).
    out_f32 = jax.block_until_ready(cce_turbo_encoder_2d_img(
        params, u_message, real_cpu, p_array,
        enc_kernel_size=enc_kernel_size, use_cce_ste=False,
        compute_dtype=jnp.float32, row_tile=8))
    assert out_f32.shape == (batch, code_rate_n, img_size, img_size)
    assert bool(jnp.allclose(out_f32, ref_cont, rtol=1e-3, atol=1e-3)), \
        "f32 mismatch vs reference"

    # 2) bf16 MXU-operand path (performance configuration); loose tolerance
    #    accounts for bf16 operand rounding through the fused conv chain.
    out_bf16 = jax.block_until_ready(cce_turbo_encoder_2d_img(
        params, u_message, real_cpu, p_array,
        enc_kernel_size=enc_kernel_size, use_cce_ste=False,
        compute_dtype=jnp.bfloat16, row_tile=8))
    assert bool(jnp.allclose(out_bf16, ref_cont, rtol=1e-1, atol=1e-1)), \
        "bf16 mismatch vs reference"

    # 3) full forward with STE sign quantization (module's use_cce_ste path).
    # TODO(synk): MyQuantize's custom straight-through backward has no forward-pass
    # equivalent; only the forward (sign) is implemented here.
    out = jax.block_until_ready(cce_turbo_encoder_2d_img(
        params, u_message, real_cpu, p_array,
        enc_kernel_size=enc_kernel_size, use_cce_ste=use_cce_ste,
        compute_dtype=jnp.bfloat16, row_tile=8))
    assert out.shape == (batch, code_rate_n, img_size, img_size)
    assert bool(jnp.all((out == 1.0) | (out == -1.0) | (out == 0.0)))
    print("KERNEL_OK")
</pallas_src>

<mosaic_0001>
module attributes {stable_mosaic.version = 11 : i64} {
  func.func @_fused_encoder_kernel(%arg0: i32, %arg1: i32, %arg2: memref<1x442x8xf32, #tpu.memory_space<vmem>>, %arg3: memref<1x240x1xf32, #tpu.memory_space<vmem>>, %arg4: memref<72x96xf32, #tpu.memory_space<vmem>>, %arg5: memref<1x96xf32, #tpu.memory_space<vmem>>, %arg6: memref<864x96xf32, #tpu.memory_space<vmem>>, %arg7: memref<1x96xf32, #tpu.memory_space<vmem>>, %arg8: memref<96x3xf32, #tpu.memory_space<vmem>>, %arg9: memref<1x3xf32, #tpu.memory_space<vmem>>, %arg10: memref<1x1x240x3xf32, #tpu.memory_space<vmem>>, %arg11: memref<282x8xf32, #tpu.memory_space<vmem>>, %arg12: memref<282x96xf32, #tpu.memory_space<vmem>>) attributes {dimension_semantics = [#tpu.dimension_semantics<parallel>, #tpu.dimension_semantics<arbitrary>], iteration_bounds = array<i64: 2, 2>, scalar_prefetch = 0 : i64, scratch_operands = 2 : i64, tpu.core_type = #tpu.core_type<tc>, window_params = [{transform_indices = @transform_0, window_bounds = array<i64: 1, 442, 8>}, {transform_indices = @transform_1, window_bounds = array<i64: 1, 240, 1>}, {pipeline_mode = #tpu.pipeline_mode<synchronous>, transform_indices = @transform_2, window_bounds = array<i64: 72, 96>}, {pipeline_mode = #tpu.pipeline_mode<synchronous>, transform_indices = @transform_3, window_bounds = array<i64: 1, 96>}, {pipeline_mode = #tpu.pipeline_mode<synchronous>, transform_indices = @transform_4, window_bounds = array<i64: 864, 96>}, {pipeline_mode = #tpu.pipeline_mode<synchronous>, transform_indices = @transform_5, window_bounds = array<i64: 1, 96>}, {pipeline_mode = #tpu.pipeline_mode<synchronous>, transform_indices = @transform_6, window_bounds = array<i64: 96, 3>}, {pipeline_mode = #tpu.pipeline_mode<synchronous>, transform_indices = @transform_7, window_bounds = array<i64: 1, 3>}, {transform_indices = @transform_8, window_bounds = array<i64: 1, 1, 240, 3>}]} {
    %c160_i32 = arith.constant 160 : i32
    %0 = arith.muli %arg1, %c160_i32 : i32
    %1 = tpu.assume_multiple %0, 8 : i32
    %c0 = arith.constant 0 : index
    %2 = arith.index_cast %1 : i32 to index
    %c0_0 = arith.constant 0 : index
    %3 = vector.load %arg2[%c0, %2, %c0_0] : memref<1x442x8xf32, #tpu.memory_space<vmem>>, vector<1x282x8xf32>
    %4 = vector.shape_cast %3 : vector<1x282x8xf32> to vector<282x8xf32>
    %c0_1 = arith.constant 0 : index
    %c0_2 = arith.constant 0 : index
    %5 = vector.load %arg11[%c0_1, %c0_2] : memref<282x8xf32, #tpu.memory_space<vmem>>, vector<282x8xf32>
    tpu.vector_store %arg11[%c0_1, %c0_2], %4 {strides = array<i32>} : memref<282x8xf32, #tpu.memory_space<vmem>>, vector<282x8xf32>,
    %cst = arith.constant 0.000000e+00 : f32
    %6 = vector.broadcast %cst : f32 to vector<21x96xf32>
    %c0_3 = arith.constant 0 : index
    %c0_4 = arith.constant 0 : index
    %7 = vector.load %arg12[%c0_3, %c0_4] : memref<282x96xf32, #tpu.memory_space<vmem>>, vector<21x96xf32>
    tpu.vector_store %arg12[%c0_3, %c0_4], %6 {strides = array<i32>} : memref<282x96xf32, #tpu.memory_space<vmem>>, vector<21x96xf32>,
    %c261 = arith.constant 261 : index
    %c0_5 = arith.constant 0 : index
    %8 = vector.load %arg12[%c261, %c0_5] : memref<282x96xf32, #tpu.memory_space<vmem>>, vector<21x96xf32>
    tpu.vector_store %arg12[%c261, %c0_5], %6 {strides = array<i32>} : memref<282x96xf32, #tpu.memory_space<vmem>>, vector<21x96xf32>,
    %c0_6 = arith.constant 0 : index
    %c0_7 = arith.constant 0 : index
    %c0_8 = arith.constant 0 : index
    %9 = vector.load %arg3[%c0_6, %c0_7, %c0_8] : memref<1x240x1xf32, #tpu.memory_space<vmem>>, vector<1x240x1xf32>
    %10 = vector.shape_cast %9 : vector<1x240x1xf32> to vector<240x1xf32>
    %c0_9 = arith.constant 0 : index
    %c0_10 = arith.constant 0 : index
    %11 = vector.load %arg11[%c0_9, %c0_10] : memref<282x8xf32, #tpu.memory_space<vmem>>, vector<240x8xf32>
    %c0_11 = arith.constant 0 : index
    %c0_12 = arith.constant 0 : index
    %12 = vector.load %arg4[%c0_11, %c0_12] : memref<72x96xf32, #tpu.memory_space<vmem>>, vector<8x96xf32>
    %cst_13 = arith.constant dense<0.000000e+00> : vector<240x96xf32>
    %13 = tpu.matmul %11, %12, %cst_13 {dimension_numbers = #tpu.dot_dimension_numbers<[1], [0], [0], [1], [0, 0, 1, 1], [], []>} : vector<240x8xf32>, vector<8x96xf32>, vector<240x96xf32> -> vector<240x96xf32>
    %c1 = arith.constant 1 : index
    %c0_14 = arith.constant 0 : index
    %14 = vector.load %arg11[%c1, %c0_14] : memref<282x8xf32, #tpu.memory_space<vmem>>, vector<240x8xf32>
    %c8 = arith.constant 8 : index
    %c0_15 = arith.constant 0 : index
    %15 = vector.load %arg4[%c8, %c0_15] : memref<72x96xf32, #tpu.memory_space<vmem>>, vector<8x96xf32>
    %cst_16 = arith.constant dense<0.000000e+00> : vector<240x96xf32>
    %16 = tpu.matmul %14, %15, %cst_16 {dimension_numbers = #tpu.dot_dimension_numbers<[1], [0], [0], [1], [0, 0, 1, 1], [], []>} : vector<240x8xf32>, vector<8x96xf32>, vector<240x96xf32> -> vector<240x96xf32>
    %17 = arith.addf %13, %16 : vector<240x96xf32>
    %c2 = arith.constant 2 : index
    %c0_17 = arith.constant 0 : index
    %18 = vector.load %arg11[%c2, %c0_17] : memref<282x8xf32, #tpu.memory_space<vmem>>, vector<240x8xf32>
    %c16 = arith.constant 16 : index
    %c0_18 = arith.constant 0 : index
    %19 = vector.load %arg4[%c16, %c0_18] : memref<72x96xf32, #tpu.memory_space<vmem>>, vector<8x96xf32>
    %cst_19 = arith.constant dense<0.000000e+00> : vector<240x96xf32>
    %20 = tpu.matmul %18, %19, %cst_19 {dimension_numbers = #tpu.dot_dimension_numbers<[1], [0], [0], [1], [0, 0, 1, 1], [], []>} : vector<240x8xf32>, vector<8x96xf32>, vector<240x96xf32> -> vector<240x96xf32>
    %21 = arith.addf %17, %20 : vector<240x96xf32>
    %c20 = arith.constant 20 : index
    %c0_20 = arith.constant 0 : index
    %22 = vector.load %arg11[%c20, %c0_20] : memref<282x8xf32, #tpu.memory_space<vmem>>, vector<240x8xf32>
    %c24 = arith.constant 24 : index
    %c0_21 = arith.constant 0 : index
    %23 = vector.load %arg4[%c24, %c0_21] : memref<72x96xf32, #tpu.memory_space<vmem>>, vector<8x96xf32>
    %cst_22 = arith.constant dense<0.000000e+00> : vector<240x96xf32>
    %24 = tpu.matmul %22, %23, %cst_22 {dimension_numbers = #tpu.dot_dimension_numbers<[1], [0], [0], [1], [0, 0, 1, 1], [], []>} : vector<240x8xf32>, vector<8x96xf32>, vector<240x96xf32> -> vector<240x96xf32>
    %25 = arith.addf %21, %24 : vector<240x96xf32>
    %c21 = arith.constant 21 : index
    %c0_23 = arith.constant 0 : index
    %26 = vector.load %arg11[%c21, %c0_23] : memref<282x8xf32, #tpu.memory_space<vmem>>, vector<240x8xf32>
    %c32 = arith.constant 32 : index
    %c0_24 = arith.constant 0 : index
    %27 = vector.load %arg4[%c32, %c0_24] : memref<72x96xf32, #tpu.memory_space<vmem>>, vector<8x96xf32>
    %cst_25 = arith.constant dense<0.000000e+00> : vector<240x96xf32>
    %28 = tpu.matmul %26, %27, %cst_25 {dimension_numbers = #tpu.dot_dimension_numbers<[1], [0], [0], [1], [0, 0, 1, 1], [], []>} : vector<240x8xf32>, vector<8x96xf32>, vector<240x96xf32> -> vector<240x96xf32>
    %29 = arith.addf %25, %28 : vector<240x96xf32>
    %c22 = arith.constant 22 : index
    %c0_26 = arith.constant 0 : index
    %30 = vector.load %arg11[%c22, %c0_26] : memref<282x8xf32, #tpu.memory_space<vmem>>, vector<240x8xf32>
    %c40 = arith.constant 40 : index
    %c0_27 = arith.constant 0 : index
    %31 = vector.load %arg4[%c40, %c0_27] : memref<72x96xf32, #tpu.memory_space<vmem>>, vector<8x96xf32>
    %cst_28 = arith.constant dense<0.000000e+00> : vector<240x96xf32>
    %32 = tpu.matmul %30, %31, %cst_28 {dimension_numbers = #tpu.dot_dimension_numbers<[1], [0], [0], [1], [0, 0, 1, 1], [], []>} : vector<240x8xf32>, vector<8x96xf32>, vector<240x96xf32> -> vector<240x96xf32>
    %33 = arith.addf %29, %32 : vector<240x96xf32>
    %c40_29 = arith.constant 40 : index
    %c0_30 = arith.constant 0 : index
    %34 = vector.load %arg11[%c40_29, %c0_30] : memref<282x8xf32, #tpu.memory_space<vmem>>, vector<240x8xf32>
    %c48 = arith.constant 48 : index
    %c0_31 = arith.constant 0 : index
    %35 = vector.load %arg4[%c48, %c0_31] : memref<72x96xf32, #tpu.memory_space<vmem>>, vector<8x96xf32>
    %cst_32 = arith.constant dense<0.000000e+00> : vector<240x96xf32>
    %36 = tpu.matmul %34, %35, %cst_32 {dimension_numbers = #tpu.dot_dimension_numbers<[1], [0], [0], [1], [0, 0, 1, 1], [], []>} : vector<240x8xf32>, vector<8x96xf32>, vector<240x96xf32> -> vector<240x96xf32>
    %37 = arith.addf %33, %36 : vector<240x96xf32>
    %c41 = arith.constant 41 : index
    %c0_33 = arith.constant 0 : index
    %38 = vector.load %arg11[%c41, %c0_33] : memref<282x8xf32, #tpu.memory_space<vmem>>, vector<240x8xf32>
    %c56 = arith.constant 56 : index
    %c0_34 = arith.constant 0 : index
    %39 = vector.load %arg4[%c56, %c0_34] : memref<72x96xf32, #tpu.memory_space<vmem>>, vector<8x96xf32>
    %cst_35 = arith.constant dense<0.000000e+00> : vector<240x96xf32>
    %40 = tpu.matmul %38, %39, %cst_35 {dimension_numbers = #tpu.dot_dimension_numbers<[1], [0], [0], [1], [0, 0, 1, 1], [], []>} : vector<240x8xf32>, vector<8x96xf32>, vector<240x96xf32> -> vector<240x96xf32>
    %41 = arith.addf %37, %40 : vector<240x96xf32>
    %c42 = arith.constant 42 : index
    %c0_36 = arith.constant 0 : index
    %42 = vector.load %arg11[%c42, %c0_36] : memref<282x8xf32, #tpu.memory_space<vmem>>, vector<240x8xf32>
    %c64 = arith.constant 64 : index
    %c0_37 = arith.constant 0 : index
    %43 = vector.load %arg4[%c64, %c0_37] : memref<72x96xf32, #tpu.memory_space<vmem>>, vector<8x96xf32>
    %cst_38 = arith.constant dense<0.000000e+00> : vector<240x96xf32>
    %44 = tpu.matmul %42, %43, %cst_38 {dimension_numbers = #tpu.dot_dimension_numbers<[1], [0], [0], [1], [0, 0, 1, 1], [], []>} : vector<240x8xf32>, vector<8x96xf32>, vector<240x96xf32> -> vector<240x96xf32>
    %45 = arith.addf %41, %44 : vector<240x96xf32>
    %c0_39 = arith.constant 0 : index
    %c0_40 = arith.constant 0 : index
    %46 = vector.load %arg5[%c0_39, %c0_40] : memref<1x96xf32, #tpu.memory_space<vmem>>, vector<1x96xf32>
    %47 = vector.broadcast %46 : vector<1x96xf32> to vector<240x96xf32>
    %48 = arith.addf %45, %47 : vector<240x96xf32>
    %cst_41 = arith.constant 0.000000e+00 : f32
    %49 = vector.broadcast %cst_41 : f32 to vector<240x96xf32>
    %50 = arith.cmpf ogt, %48, %49 : vector<240x96xf32>
    %cst_42 = arith.constant 0.000000e+00 : f32
    %51 = vector.broadcast %cst_42 : f32 to vector<240x96xf32>
    %52 = arith.minimumf %48, %51 : vector<240x96xf32>
    %53 = math.exp %52 : vector<240x96xf32>
    %cst_43 = arith.constant 1.000000e+00 : f32
    %54 = vector.broadcast %cst_43 : f32 to vector<240x96xf32>
    %55 = arith.subf %53, %54 : vector<240x96xf32>
    %56 = arith.select %50, %48, %55 : vector<240x96xi1>, vector<240x96xf32>
    %57 = vector.broadcast %10 : vector<240x1xf32> to vector<240x96xf32>
    %58 = arith.mulf %56, %57 : vector<240x96xf32>
    %c21_44 = arith.constant 21 : index
    %c0_45 = arith.constant 0 : index
    %59 = vector.load %arg12[%c21_44, %c0_45] : memref<282x96xf32, #tpu.memory_space<vmem>>, vector<240x96xf32>
    tpu.vector_store %arg12[%c21_44, %c0_45], %58 {strides = array<i32>} : memref<282x96xf32, #tpu.memory_space<vmem>>, vector<240x96xf32>,
    %c0_46 = arith.constant 0 : index
    %c0_47 = arith.constant 0 : index
    %60 = vector.load %arg12[%c0_46, %c0_47] : memref<282x96xf32, #tpu.memory_space<vmem>>, vector<240x96xf32>
    %c0_48 = arith.constant 0 : index
    %c0_49 = arith.constant 0 : index
    %61 = vector.load %arg6[%c0_48, %c0_49] : memref<864x96xf32, #tpu.memory_space<vmem>>, vector<96x96xf32>
    %cst_50 = arith.constant dense<0.000000e+00> : vector<240x96xf32>
    %62 = tpu.matmul %60, %61, %cst_50 {dimension_numbers = #tpu.dot_dimension_numbers<[1], [0], [0], [1], [0, 0, 1, 1], [], []>} : vector<240x96xf32>, vector<96x96xf32>, vector<240x96xf32> -> vector<240x96xf32>
    %c1_51 = arith.constant 1 : index
    %c0_52 = arith.constant 0 : index
    %63 = vector.load %arg12[%c1_51, %c0_52] : memref<282x96xf32, #tpu.memory_space<vmem>>, vector<240x96xf32>
    %c96 = arith.constant 96 : index
    %c0_53 = arith.constant 0 : index
    %64 = vector.load %arg6[%c96, %c0_53] : memref<864x96xf32, #tpu.memory_space<vmem>>, vector<96x96xf32>
    %cst_54 = arith.constant dense<0.000000e+00> : vector<240x96xf32>
    %65 = tpu.matmul %63, %64, %cst_54 {dimension_numbers = #tpu.dot_dimension_numbers<[1], [0], [0], [1], [0, 0, 1, 1], [], []>} : vector<240x96xf32>, vector<96x96xf32>, vector<240x96xf32> -> vector<240x96xf32>
    %66 = arith.addf %62, %65 : vector<240x96xf32>
    %c2_55 = arith.constant 2 : index
    %c0_56 = arith.constant 0 : index
    %67 = vector.load %arg12[%c2_55, %c0_56] : memref<282x96xf32, #tpu.memory_space<vmem>>, vector<240x96xf32>
    %c192 = arith.constant 192 : index
    %c0_57 = arith.constant 0 : index
    %68 = vector.load %arg6[%c192, %c0_57] : memref<864x96xf32, #tpu.memory_space<vmem>>, vector<96x96xf32>
    %cst_58 = arith.constant dense<0.000000e+00> : vector<240x96xf32>
    %69 = tpu.matmul %67, %68, %cst_58 {dimension_numbers = #tpu.dot_dimension_numbers<[1], [0], [0], [1], [0, 0, 1, 1], [], []>} : vector<240x96xf32>, vector<96x96xf32>, vector<240x96xf32> -> vector<240x96xf32>
    %70 = arith.addf %66, %69 : vector<240x96xf32>
    %c20_59 = arith.constant 20 : index
    %c0_60 = arith.constant 0 : index
    %71 = vector.load %arg12[%c20_59, %c0_60] : memref<282x96xf32, #tpu.memory_space<vmem>>, vector<240x96xf32>
    %c288 = arith.constant 288 : index
    %c0_61 = arith.constant 0 : index
    %72 = vector.load %arg6[%c288, %c0_61] : memref<864x96xf32, #tpu.memory_space<vmem>>, vector<96x96xf32>
    %cst_62 = arith.constant dense<0.000000e+00> : vector<240x96xf32>
    %73 = tpu.matmul %71, %72, %cst_62 {dimension_numbers = #tpu.dot_dimension_numbers<[1], [0], [0], [1], [0, 0, 1, 1], [], []>} : vector<240x96xf32>, vector<96x96xf32>, vector<240x96xf32> -> vector<240x96xf32>
    %74 = arith.addf %70, %73 : vector<240x96xf32>
    %c21_63 = arith.constant 21 : index
    %c0_64 = arith.constant 0 : index
    %75 = vector.load %arg12[%c21_63, %c0_64] : memref<282x96xf32, #tpu.memory_space<vmem>>, vector<240x96xf32>
    %c384 = arith.constant 384 : index
    %c0_65 = arith.constant 0 : index
    %76 = vector.load %arg6[%c384, %c0_65] : memref<864x96xf32, #tpu.memory_space<vmem>>, vector<96x96xf32>
    %cst_66 = arith.constant dense<0.000000e+00> : vector<240x96xf32>
    %77 = tpu.matmul %75, %76, %cst_66 {dimension_numbers = #tpu.dot_dimension_numbers<[1], [0], [0], [1], [0, 0, 1, 1], [], []>} : vector<240x96xf32>, vector<96x96xf32>, vector<240x96xf32> -> vector<240x96xf32>
    %78 = arith.addf %74, %77 : vector<240x96xf32>
    %c22_67 = arith.constant 22 : index
    %c0_68 = arith.constant 0 : index
    %79 = vector.load %arg12[%c22_67, %c0_68] : memref<282x96xf32, #tpu.memory_space<vmem>>, vector<240x96xf32>
    %c480 = arith.constant 480 : index
    %c0_69 = arith.constant 0 : index
    %80 = vector.load %arg6[%c480, %c0_69] : memref<864x96xf32, #tpu.memory_space<vmem>>, vector<96x96xf32>
    %cst_70 = arith.constant dense<0.000000e+00> : vector<240x96xf32>
    %81 = tpu.matmul %79, %80, %cst_70 {dimension_numbers = #tpu.dot_dimension_numbers<[1], [0], [0], [1], [0, 0, 1, 1], [], []>} : vector<240x96xf32>, vector<96x96xf32>, vector<240x96xf32> -> vector<240x96xf32>
    %82 = arith.addf %78, %81 : vector<240x96xf32>
    %c40_71 = arith.constant 40 : index
    %c0_72 = arith.constant 0 : index
    %83 = vector.load %arg12[%c40_71, %c0_72] : memref<282x96xf32, #tpu.memory_space<vmem>>, vector<240x96xf32>
    %c576 = arith.constant 576 : index
    %c0_73 = arith.constant 0 : index
    %84 = vector.load %arg6[%c576, %c0_73] : memref<864x96xf32, #tpu.memory_space<vmem>>, vector<96x96xf32>
    %cst_74 = arith.constant dense<0.000000e+00> : vector<240x96xf32>
    %85 = tpu.matmul %83, %84, %cst_74 {dimension_numbers = #tpu.dot_dimension_numbers<[1], [0], [0], [1], [0, 0, 1, 1], [], []>} : vector<240x96xf32>, vector<96x96xf32>, vector<240x96xf32> -> vector<240x96xf32>
    %86 = arith.addf %82, %85 : vector<240x96xf32>
    %c41_75 = arith.constant 41 : index
    %c0_76 = arith.constant 0 : index
    %87 = vector.load %arg12[%c41_75, %c0_76] : memref<282x96xf32, #tpu.memory_space<vmem>>, vector<240x96xf32>
    %c672 = arith.constant 672 : index
    %c0_77 = arith.constant 0 : index
    %88 = vector.load %arg6[%c672, %c0_77] : memref<864x96xf32, #tpu.memory_space<vmem>>, vector<96x96xf32>
    %cst_78 = arith.constant dense<0.000000e+00> : vector<240x96xf32>
    %89 = tpu.matmul %87, %88, %cst_78 {dimension_numbers = #tpu.dot_dimension_numbers<[1], [0], [0], [1], [0, 0, 1, 1], [], []>} : vector<240x96xf32>, vector<96x96xf32>, vector<240x96xf32> -> vector<240x96xf32>
    %90 = arith.addf %86, %89 : vector<240x96xf32>
    %c42_79 = arith.constant 42 : index
    %c0_80 = arith.constant 0 : index
    %91 = vector.load %arg12[%c42_79, %c0_80] : memref<282x96xf32, #tpu.memory_space<vmem>>, vector<240x96xf32>
    %c768 = arith.constant 768 : index
    %c0_81 = arith.constant 0 : index
    %92 = vector.load %arg6[%c768, %c0_81] : memref<864x96xf32, #tpu.memory_space<vmem>>, vector<96x96xf32>
    %cst_82 = arith.constant dense<0.000000e+00> : vector<240x96xf32>
    %93 = tpu.matmul %91, %92, %cst_82 {dimension_numbers = #tpu.dot_dimension_numbers<[1], [0], [0], [1], [0, 0, 1, 1], [], []>} : vector<240x96xf32>, vector<96x96xf32>, vector<240x96xf32> -> vector<240x96xf32>
    %94 = arith.addf %90, %93 : vector<240x96xf32>
    %c0_83 = arith.constant 0 : index
    %c0_84 = arith.constant 0 : index
    %95 = vector.load %arg7[%c0_83, %c0_84] : memref<1x96xf32, #tpu.memory_space<vmem>>, vector<1x96xf32>
    %96 = vector.broadcast %95 : vector<1x96xf32> to vector<240x96xf32>
    %97 = arith.addf %94, %96 : vector<240x96xf32>
    %cst_85 = arith.constant 0.000000e+00 : f32
    %98 = vector.broadcast %cst_85 : f32 to vector<240x96xf32>
    %99 = arith.cmpf ogt, %97, %98 : vector<240x96xf32>
    %cst_86 = arith.constant 0.000000e+00 : f32
    %100 = vector.broadcast %cst_86 : f32 to vector<240x96xf32>
    %101 = arith.minimumf %97, %100 : vector<240x96xf32>
    %102 = math.exp %101 : vector<240x96xf32>
    %cst_87 = arith.constant 1.000000e+00 : f32
    %103 = vector.broadcast %cst_87 : f32 to vector<240x96xf32>
    %104 = arith.subf %102, %103 : vector<240x96xf32>
    %105 = arith.select %99, %97, %104 : vector<240x96xi1>, vector<240x96xf32>
    %c0_88 = arith.constant 0 : index
    %c0_89 = arith.constant 0 : index
    %106 = vector.load %arg8[%c0_88, %c0_89] : memref<96x3xf32, #tpu.memory_space<vmem>>, vector<96x3xf32>
    %cst_90 = arith.constant dense<0.000000e+00> : vector<240x3xf32>
    %107 = tpu.matmul %105, %106, %cst_90 {dimension_numbers = #tpu.dot_dimension_numbers<[1], [0], [0], [1], [0, 0, 1, 1], [], []>} : vector<240x96xf32>, vector<96x3xf32>, vector<240x3xf32> -> vector<240x3xf32>
    %c0_91 = arith.constant 0 : index
    %c0_92 = arith.constant 0 : index
    %108 = vector.load %arg9[%c0_91, %c0_92] : memref<1x3xf32, #tpu.memory_space<vmem>>, vector<1x3xf32>
    %109 = vector.broadcast %108 : vector<1x3xf32> to vector<240x3xf32>
    %110 = arith.addf %107, %109 : vector<240x3xf32>
    %cst_93 = arith.constant 0.000000e+00 : f32
    %111 = vector.broadcast %cst_93 : f32 to vector<240x3xf32>
    %112 = arith.cmpf ogt, %110, %111 : vector<240x3xf32>
    %cst_94 = arith.constant 0.000000e+00 : f32
    %113 = vector.broadcast %cst_94 : f32 to vector<240x3xf32>
    %114 = arith.minimumf %110, %113 : vector<240x3xf32>
    %115 = math.exp %114 : vector<240x3xf32>
    %cst_95 = arith.constant 1.000000e+00 : f32
    %116 = vector.broadcast %cst_95 : f32 to vector<240x3xf32>
    %117 = arith.subf %115, %116 : vector<240x3xf32>
    %118 = arith.select %112, %110, %117 : vector<240x3xi1>, vector<240x3xf32>
    %c0_96 = arith.constant 0 : index
    %c0_97 = arith.constant 0 : index
    %c0_98 = arith.constant 0 : index
    %c0_99 = arith.constant 0 : index
    %119 = vector.load %arg10[%c0_96, %c0_97, %c0_98, %c0_99] : memref<1x1x240x3xf32, #tpu.memory_space<vmem>>, vector<1x1x240x3xf32>
    %120 = vector.shape_cast %119 : vector<1x1x240x3xf32> to vector<240x3xf32>
    %121 = vector.shape_cast %118 : vector<240x3xf32> to vector<1x1x240x3xf32>
    tpu.vector_store %arg10[%c0_96, %c0_97, %c0_98, %c0_99], %121 {strides = array<i32>} : memref<1x1x240x3xf32, #tpu.memory_space<vmem>>, vector<1x1x240x3xf32>,
    return
  }
  func.func @transform_0(%arg0: i32, %arg1: i32) -> (i32, i32, i32) {
    %c0_i32 = arith.constant 0 : i32
    %c0_i32_0 = arith.constant 0 : i32
    %c0_i32_1 = arith.constant 0 : i32
    return %arg0, %c0_i32, %c0_i32_0 : i32, i32, i32
  }
  func.func @transform_1(%arg0: i32, %arg1: i32) -> (i32, i32, i32) {
    %c0_i32 = arith.constant 0 : i32
    %c0_i32_0 = arith.constant 0 : i32
    %c0_i32_1 = arith.constant 0 : i32
    return %arg1, %c0_i32, %c0_i32_0 : i32, i32, i32
  }
  func.func @transform_2(%arg0: i32, %arg1: i32) -> (i32, i32) {
    %c0_i32 = arith.constant 0 : i32
    %c0_i32_0 = arith.constant 0 : i32
    %c0_i32_1 = arith.constant 0 : i32
    return %c0_i32, %c0_i32_0 : i32, i32
  }
  func.func @transform_3(%arg0: i32, %arg1: i32) -> (i32, i32) {
    %c0_i32 = arith.constant 0 : i32
    %c0_i32_0 = arith.constant 0 : i32
    %c0_i32_1 = arith.constant 0 : i32
    return %c0_i32, %c0_i32_0 : i32, i32
  }
  func.func @transform_4(%arg0: i32, %arg1: i32) -> (i32, i32) {
    %c0_i32 = arith.constant 0 : i32
    %c0_i32_0 = arith.constant 0 : i32
    %c0_i32_1 = arith.constant 0 : i32
    return %c0_i32, %c0_i32_0 : i32, i32
  }
  func.func @transform_5(%arg0: i32, %arg1: i32) -> (i32, i32) {
    %c0_i32 = arith.constant 0 : i32
    %c0_i32_0 = arith.constant 0 : i32
    %c0_i32_1 = arith.constant 0 : i32
    return %c0_i32, %c0_i32_0 : i32, i32
  }
  func.func @transform_6(%arg0: i32, %arg1: i32) -> (i32, i32) {
    %c0_i32 = arith.constant 0 : i32
    %c0_i32_0 = arith.constant 0 : i32
    %c0_i32_1 = arith.constant 0 : i32
    return %c0_i32, %c0_i32_0 : i32, i32
  }
  func.func @transform_7(%arg0: i32, %arg1: i32) -> (i32, i32) {
    %c0_i32 = arith.constant 0 : i32
    %c0_i32_0 = arith.constant 0 : i32
    %c0_i32_1 = arith.constant 0 : i32
    return %c0_i32, %c0_i32_0 : i32, i32
  }
  func.func @transform_8(%arg0: i32, %arg1: i32) -> (i32, i32, i32, i32) {
    %c0_i32 = arith.constant 0 : i32
    %c0_i32_0 = arith.constant 0 : i32
    %c0_i32_1 = arith.constant 0 : i32
    return %arg0, %arg1, %c0_i32, %c0_i32_0 : i32, i32, i32, i32
  }
}

module attributes {stable_mosaic.version = 11 : i64} {
  func.func @_bn_stats_kernel(%arg0: i32, %arg1: memref<3x256xf32, #tpu.memory_space<vmem>>, %arg2: memref<3x1xf32, #tpu.memory_space<vmem>>, %arg3: memref<3x1xf32, #tpu.memory_space<vmem>>) attributes {dimension_semantics = [#tpu.dimension_semantics<arbitrary>], iteration_bounds = array<i64: 2>, scalar_prefetch = 0 : i64, scratch_operands = 0 : i64, tpu.core_type = #tpu.core_type<tc>, window_params = [{transform_indices = @transform_0, window_bounds = array<i64: 3, 256>}, {pipeline_mode = #tpu.pipeline_mode<synchronous>, transform_indices = @transform_1, window_bounds = array<i64: 3, 1>}, {pipeline_mode = #tpu.pipeline_mode<synchronous>, transform_indices = @transform_2, window_bounds = array<i64: 3, 1>}]} {
    %c0_i32 = arith.constant 0 : i32
    %0 = arith.cmpi eq, %arg0, %c0_i32 : i32
    %1 = arith.extui %0 : i1 to i32
    %c0_i32_0 = arith.constant 0 : i32
    %2 = arith.cmpi ne, %1, %c0_i32_0 : i32
    scf.if %2 {
      %cst_11 = arith.constant 0.000000e+00 : f32
      %15 = vector.broadcast %cst_11 : f32 to vector<3x1xf32>
      %c0_12 = arith.constant 0 : index
      %c0_13 = arith.constant 0 : index
      %16 = vector.load %arg2[%c0_12, %c0_13] : memref<3x1xf32, #tpu.memory_space<vmem>>, vector<3x1xf32>
      tpu.vector_store %arg2[%c0_12, %c0_13], %15 {strides = array<i32>} : memref<3x1xf32, #tpu.memory_space<vmem>>, vector<3x1xf32>,
      %cst_14 = arith.constant 0.000000e+00 : f32
      %17 = vector.broadcast %cst_14 : f32 to vector<3x1xf32>
      %c0_15 = arith.constant 0 : index
      %c0_16 = arith.constant 0 : index
      %18 = vector.load %arg3[%c0_15, %c0_16] : memref<3x1xf32, #tpu.memory_space<vmem>>, vector<3x1xf32>
      tpu.vector_store %arg3[%c0_15, %c0_16], %17 {strides = array<i32>} : memref<3x1xf32, #tpu.memory_space<vmem>>, vector<3x1xf32>,
    } else {
    }
    %c0 = arith.constant 0 : index
    %c0_1 = arith.constant 0 : index
    %3 = vector.load %arg1[%c0, %c0_1] : memref<3x256xf32, #tpu.memory_space<vmem>>, vector<3x256xf32>
    %c0_2 = arith.constant 0 : index
    %c0_3 = arith.constant 0 : index
    %4 = vector.load %arg2[%c0_2, %c0_3] : memref<3x1xf32, #tpu.memory_space<vmem>>, vector<3x1xf32>
    %cst = arith.constant dense<0.000000e+00> : vector<3xf32>
    %5 = vector.multi_reduction <add>, %3, %cst [1] : vector<3x256xf32> to vector<3xf32>
    %6 = vector.shape_cast %5 : vector<3xf32> to vector<3x1xf32>
    %7 = arith.addf %4, %6 : vector<3x1xf32>
    %c0_4 = arith.constant 0 : index
    %c0_5 = arith.constant 0 : index
    %8 = vector.load %arg2[%c0_4, %c0_5] : memref<3x1xf32, #tpu.memory_space<vmem>>, vector<3x1xf32>
    tpu.vector_store %arg2[%c0_4, %c0_5], %7 {strides = array<i32>} : memref<3x1xf32, #tpu.memory_space<vmem>>, vector<3x1xf32>,
    %c0_6 = arith.constant 0 : index
    %c0_7 = arith.constant 0 : index
    %9 = vector.load %arg3[%c0_6, %c0_7] : memref<3x1xf32, #tpu.memory_space<vmem>>, vector<3x1xf32>
    %10 = arith.mulf %3, %3 : vector<3x256xf32>
    %cst_8 = arith.constant dense<0.000000e+00> : vector<3xf32>
    %11 = vector.multi_reduction <add>, %10, %cst_8 [1] : vector<3x256xf32> to vector<3xf32>
    %12 = vector.shape_cast %11 : vector<3xf32> to vector<3x1xf32>
    %13 = arith.addf %9, %12 : vector<3x1xf32>
    %c0_9 = arith.constant 0 : index
    %c0_10 = arith.constant 0 : index
    %14 = vector.load %arg3[%c0_9, %c0_10] : memref<3x1xf32, #tpu.memory_space<vmem>>, vector<3x1xf32>
    tpu.vector_store %arg3[%c0_9, %c0_10], %13 {strides = array<i32>} : memref<3x1xf32, #tpu.memory_space<vmem>>, vector<3x1xf32>,
    return
  }
  func.func @transform_0(%arg0: i32) -> (i32, i32) {
    %c0_i32 = arith.constant 0 : i32
    %c0_i32_0 = arith.constant 0 : i32
    return %c0_i32, %arg0 : i32, i32
  }
  func.func @transform_1(%arg0: i32) -> (i32, i32) {
    %c0_i32 = arith.constant 0 : i32
    %c0_i32_0 = arith.constant 0 : i32
    %c0_i32_1 = arith.constant 0 : i32
    return %c0_i32, %c0_i32_0 : i32, i32
  }
  func.func @transform_2(%arg0: i32) -> (i32, i32) {
    %c0_i32 = arith.constant 0 : i32
    %c0_i32_0 = arith.constant 0 : i32
    %c0_i32_1 = arith.constant 0 : i32
    return %c0_i32, %c0_i32_0 : i32, i32
  }
}

module attributes {stable_mosaic.version = 11 : i64} {
  func.func @_bn_norm_sign_kernel(%arg0: i32, %arg1: memref<3x256xf32, #tpu.memory_space<vmem>>, %arg2: memref<3x1xf32, #tpu.memory_space<vmem>>, %arg3: memref<3x1xf32, #tpu.memory_space<vmem>>, %arg4: memref<3x256xf32, #tpu.memory_space<vmem>>) attributes {dimension_semantics = [#tpu.dimension_semantics<parallel>], iteration_bounds = array<i64: 2>, scalar_prefetch = 0 : i64, scratch_operands = 0 : i64, tpu.core_type = #tpu.core_type<tc>, window_params = [{transform_indices = @transform_0, window_bounds = array<i64: 3, 256>}, {pipeline_mode = #tpu.pipeline_mode<synchronous>, transform_indices = @transform_1, window_bounds = array<i64: 3, 1>}, {pipeline_mode = #tpu.pipeline_mode<synchronous>, transform_indices = @transform_2, window_bounds = array<i64: 3, 1>}, {transform_indices = @transform_3, window_bounds = array<i64: 3, 256>}]} {
    %c0 = arith.constant 0 : index
    %c0_0 = arith.constant 0 : index
    %0 = vector.load %arg1[%c0, %c0_0] : memref<3x256xf32, #tpu.memory_space<vmem>>, vector<3x256xf32>
    %c0_1 = arith.constant 0 : index
    %c0_2 = arith.constant 0 : index
    %1 = vector.load %arg2[%c0_1, %c0_2] : memref<3x1xf32, #tpu.memory_space<vmem>>, vector<3x1xf32>
    %cst = arith.constant 0.001953125 : f32
    %2 = vector.broadcast %cst : f32 to vector<3x1xf32>
    %3 = arith.mulf %1, %2 : vector<3x1xf32>
    %c0_3 = arith.constant 0 : index
    %c0_4 = arith.constant 0 : index
    %4 = vector.load %arg3[%c0_3, %c0_4] : memref<3x1xf32, #tpu.memory_space<vmem>>, vector<3x1xf32>
    %cst_5 = arith.constant 0.001953125 : f32
    %5 = vector.broadcast %cst_5 : f32 to vector<3x1xf32>
    %6 = arith.mulf %4, %5 : vector<3x1xf32>
    %7 = arith.mulf %3, %3 : vector<3x1xf32>
    %8 = arith.subf %6, %7 : vector<3x1xf32>
    %9 = vector.broadcast %3 : vector<3x1xf32> to vector<3x256xf32>
    %10 = arith.subf %0, %9 : vector<3x256xf32>
    %cst_6 = arith.constant 9.99999974E-6 : f32
    %11 = vector.broadcast %cst_6 : f32 to vector<3x1xf32>
    %12 = arith.addf %8, %11 : vector<3x1xf32>
    %13 = math.rsqrt %12 : vector<3x1xf32>
    %14 = vector.broadcast %13 : vector<3x1xf32> to vector<3x256xf32>
    %15 = arith.mulf %10, %14 : vector<3x256xf32>
    %c0_7 = arith.constant 0 : index
    %c0_8 = arith.constant 0 : index
    %16 = vector.load %arg4[%c0_7, %c0_8] : memref<3x256xf32, #tpu.memory_space<vmem>>, vector<3x256xf32>
    tpu.vector_store %arg4[%c0_7, %c0_8], %15 {strides = array<i32>} : memref<3x256xf32, #tpu.memory_space<vmem>>, vector<3x256xf32>,
    return
  }
  func.func @transform_0(%arg0: i32) -> (i32, i32) {
    %c0_i32 = arith.constant 0 : i32
    %c0_i32_0 = arith.constant 0 : i32
    return %c0_i32, %arg0 : i32, i32
  }
  func.func @transform_1(%arg0: i32) -> (i32, i32) {
    %c0_i32 = arith.constant 0 : i32
    %c0_i32_0 = arith.constant 0 : i32
    %c0_i32_1 = arith.constant 0 : i32
    return %c0_i32, %c0_i32_0 : i32, i32
  }
  func.func @transform_2(%arg0: i32) -> (i32, i32) {
    %c0_i32 = arith.constant 0 : i32
    %c0_i32_0 = arith.constant 0 : i32
    %c0_i32_1 = arith.constant 0 : i32
    return %c0_i32, %c0_i32_0 : i32, i32
  }
  func.func @transform_3(%arg0: i32) -> (i32, i32) {
    %c0_i32 = arith.constant 0 : i32
    %c0_i32_0 = arith.constant 0 : i32
    return %c0_i32, %arg0 : i32, i32
  }
}

</mosaic_0001>

<bundles_post_ra>
// kernel: cce_turbo_encoder_2d_img.4
= control target key start
LH: loop header
LB: loop body
LE: loop exit
PB: predicated region body
PF: predicated region fallthrough
CT: control target
= control target key end

     0   :  { %s239_s9 = smov 0   ;;  %s271_s0 = inlined_call_operand.vmem [shape: f32[3,512], index: 0, kind: input, shape index: {}]   ;;  %s272_s1 = inlined_call_operand.vmem [shape: f32[3,1], index: 1, kind: output, shape index: {0}]   ;;  %s273_s2 = inlined_call_operand.vmem [shape: f32[3,1], index: 2, kind: output, shape index: {1}]  }
   0x1 LB: > { %s196_s10 = sadd.s32 4294967295, %s221_s9   ;;  %p199_p0 = scmp.ge.s32.totalorder %s221_s9, 1  ;;  %s221_s9 = sphi %s239_s9, %s13_s9  }
   0x2   : > { %p106_p1 = scmp.lt.s32.totalorder %s221_s9, 3 }
   0x4   : > { %p107_p2 = pnand %p199_p0, %p106_p1 }
   0x5   : > { %s200_s11 = sshll.u32 (!%p107_p2), %s196_s10, 1  ;;  %p202_p4 = scmp.ne.s32.totalorder (!%p107_p2), %s196_s10, 0 }
   0x6   : > { %110 = sbr.rel (%p107_p2) target bundleno = 169 (0xa9), region = 24  ;;  %p124_p3 = scmp.lt.s32.totalorder (!%p107_p2), %s200_s11, 3 }
   0xb   : > { %s275_s11 = smov (!%p124_p3, %s200_s11), 3  ;;  %132 = sbr.rel (%p202_p4) target bundleno = 18 (0x12), region = 28 }
   0xc   : > { %s201_s12 = sshll.u32 %s275_s11, 2 }
   0xd   : > { %s127_s15 = scalar_lea.vmem %s271_s0, %s201_s12 }
  0x10   : > { %vm133_vm0 = vcmask 2048   ;;  %v223_v0 = vmov 0.0  }
  0x11   : > { %134 = vst.msk [vmem:[%s272_s1] sm:$0x7] %vm133_vm0, %v223_v0  ;;  %135 = vst.msk [vmem:[%s273_s2] sm:$0x7] %vm133_vm0, %v223_v0 }
  0x12 PF: > { %v136_v1 = vld [vmem:[%s127_s15] sm:$0x77]  ;;  %vm141_vm1 = vcmask 1042432   ;;  %vm148_vm2 = vcmask 2048  }
  0x13   : > { %v139_v2 = vcombine.high %v136_v1, %v136_v1  ;;  %v142_v3 = vsel %vm141_vm1, %v136_v1, 0.0  ;;  %v151_v4 = vmul.f32 %v136_v1, %v136_v1 }
  0x15   : > { %v143_v5 = vsel %vm141_vm1, %v139_v2, 0.0  ;;  %v153_v6 = vcombine.high %v151_v4, %v151_v4  ;;  %v155_v7 = vsel %vm141_vm1, %v151_v4, 0.0 }
  0x16   : > { %v144_v8 = vadd.f32 %v143_v5, %v142_v3 }
  0x17   : > { %v156_v9 = vsel %vm141_vm1, %v153_v6, 0.0 }
  0x18   : > { %145 = vadd.xlane.f32.xlu0 %v144_v8  ;;  %v157_v10 = vadd.f32 %v156_v9, %v155_v7  ;;  %v137_v11 = vld [vmem:[%s272_s1] sm:$0x7] }
  0x19   : > { %v150_v14 = vld [vmem:[%s273_s2] sm:$0x7] }
  0x1c   : > { %158 = vadd.xlane.f32.xlu0 %v157_v10 }
  0xa1   : > { %v146_v12 = vpop.xlane.xlu0 %145 }
  0xa2   : > { %v147_v13 = vadd.f32 %v146_v12, %v137_v11 }
  0xa4   : > { %149 = vst.msk [vmem:[%s272_s1] sm:$0x7] %vm148_vm2, %v147_v13 }
  0xa5   : > { %v159_v15 = vpop.xlane.xlu0 %158 }
  0xa6   : > { %v160_v16 = vadd.f32 %v159_v15, %v150_v14 }
  0xa8   : > { %161 = vst.msk [vmem:[%s273_s2] sm:$0x7] %vm148_vm2, %v160_v16 }
  0xa9 PF: > { %s13_s9 = sadd.s32 1, %s221_s9  }
  0xaa   : > { %p10_p5 = scmp.ge.s32.totalorder %s13_s9, 4  }
  0xac   :  { %12 = sbr.rel (!%p10_p5) target bundleno = 1 (0x1), region = 62 }

// kernel: cce_turbo_encoder_2d_img.5
= control target key start
LH: loop header
LB: loop body
LE: loop exit
PB: predicated region body
PF: predicated region fallthrough
CT: control target
= control target key end

     0   :  { %s320_s12 = smov 0   ;;  %s343_s0 = inlined_call_operand.vmem [shape: f32[3,512], index: 0, kind: input, shape index: {}]   ;;  %s344_s1 = inlined_call_operand.vmem [shape: f32[3,1], index: 1, kind: input, shape index: {}]   ;;  %s345_s2 = inlined_call_operand.vmem [shape: f32[3,1], index: 2, kind: input, shape index: {}]   ;;  %s346_s3 = inlined_call_operand.vmem [shape: f32[3,512], index: 3, kind: output, shape index: {}]  }
   0x1 LB: > { %s266_s13 = sadd.s32 4294967295, %s296_s12   ;;  %p270_p0 = scmp.ge.s32.totalorder %s296_s12, 1  ;;  %s296_s12 = sphi %s320_s12, %s13_s12  }
   0x2   : > { %p138_p1 = scmp.lt.s32.totalorder %s296_s12, 3 }
   0x4   : > { %p139_p2 = pnand %p270_p0, %p138_p1 }
   0x5   : > { %s271_s18 = sshll.u32 (!%p139_p2), %s266_s13, 1 }
   0x6   : > { %142 = sbr.rel (%p139_p2) target bundleno = 163 (0xa3), region = 32  ;;  %p163_p3 = scmp.lt.s32.totalorder (!%p139_p2), %s271_s18, 3 }
   0xb   : > { %v175_v0 = vld [vmem:[%s344_s1] sm:$0x7]  ;;  %v298_v2 = vmov 0   ;;  %v299_v9 = vmov 839922192   ;;  %v188_v11 = vlaneseq  ;;  %s348_s18 = smov (!%p163_p3, %s271_s18), 3 }
   0xc   : > { %v177_v1 = vld [vmem:[%s345_s2] sm:$0x7]  ;;  %287 = vset.pattern.permute.xlu0 %v298_v2  ;;  %v176_v3 = vmul.f32 0.001953125, %v175_v0  ;;  %v186_v10 = vunpack.c.l.s4 %v299_v9  ;;  %s272_s19 = sshll.u32 %s348_s18, 2 }
   0xd   : > { %v178_v4 = vmul.f32 0.001953125, %v177_v1  ;;  %v189_v13 = vshrl.u32 %v188_v11, 7  ;;  %s166_s22 = scalar_lea.vmem %s343_s0, %s272_s19  ;;  %s172_s25 = scalar_lea.vmem %s346_s3, %s272_s19 }
   0xe   : > { %183 = vperm.xlu0 %287, %v176_v3   ;;  %v179_v5 = vmul.f32 %v176_v3, %v176_v3  ;;  %v187_v12 = vunpack.c.0.s8 %v186_v10  ;;  %v174_v17 = vld [vmem:[%s166_s22] sm:$0x77] }
  0x10   : > { %v180_v6 = vsub.f32 %v178_v4, %v179_v5  ;;  %v190_v14 = vsub.s32 %v187_v12, %v189_v13 }
  0x12   : > { %v194_v7 = vadd.f32 1e-05, %v180_v6 }
  0x14   : > { %288 = vrsqrt.f32 %v194_v7 }
  0x21   : > { %v289_v8 = vpop.eup %288 }
  0x22   : > { %198 = vperm.xlu0 %287, %v289_v8  }
  0x89   : > { %v184_v15 = vpop.permute.xlu0 %183 }
  0x8a   : > { %v191_v16 = vrot.slane %v184_v15, %v190_v14 }
  0x8c   : > { %v193_v19 = vsub.f32 %v174_v17, %v191_v16 }
  0x9d   : > { %v199_v18 = vpop.permute.xlu0 %198 }
  0x9e   : > { %v206_v20 = vrot.slane %v199_v18, %v190_v14 }
  0xa0   : > { %v208_v21 = vmul.f32 %v206_v20, %v193_v19 }
  0xa2   : > { %209 = vst [vmem:[%s172_s25] sm:$0x77] %v208_v21 }
  0xa3 PF: > { %s13_s12 = sadd.s32 1, %s296_s12  }
  0xa4   : > { %p10_p4 = scmp.ge.s32.totalorder %s13_s12, 4  }
  0xa6   :  { %12 = sbr.rel (!%p10_p4) target bundleno = 1 (0x1), region = 62 }

// kernel: cce_turbo_encoder_2d_img.3
= control target key start
LH: loop header
LB: loop body
LE: loop exit
PB: predicated region body
PF: predicated region fallthrough
CT: control target
= control target key end

     0   :  { %s11112_s27 = smov 0   ;;  %s11114_s28 = smov 0   ;;  %s14571_s0 = inlined_call_operand.vmem [shape: f32[2,442,8], index: 0, kind: input, shape index: {}]   ;;  %s14572_s1 = inlined_call_operand.vmem [shape: f32[2,240,1], index: 1, kind: input, shape index: {}]   ;;  %s14573_s2 = inlined_call_operand.vmem [shape: f32[72,96], index: 2, kind: input, shape index: {}]   ;;  %s14574_s3 = inlined_call_operand.vmem [shape: f32[1,96], index: 3, kind: input, shape index: {}]   ;;  %s14575_s4 = inlined_call_operand.vmem [shape: f32[864,96], index: 4, kind: input, shape index: {}]   ;;  %s14576_s5 = inlined_call_operand.vmem [shape: f32[1,96], index: 5, kind: input, shape index: {}]   ;;  %s14577_s6 = inlined_call_operand.vmem [shape: f32[96,3], index: 6, kind: input, shape index: {}]   ;;  %s14578_s7 = inlined_call_operand.vmem [shape: f32[1,3], index: 7, kind: input, shape index: {}]   ;;  %s14579_s8 = inlined_call_operand.vmem [shape: f32[2,2,240,3], index: 8, kind: output, shape index: {}]  }
   0x1   :  { %s11116_s29 = smov 0   ;;  %s11118_s30 = smov 0  }
   0x2   :  { %s11120_s9 = smov 0  }
   0x3 LB: > { %s27_s10 = sadd.s32 1, %s11055_s29  ;;  %s30_s11 = sadd.s32 1, %s11059_s30  ;;  %s11063_s9 = sphi %s11120_s9, %s18_s9   ;;  %s11059_s30 = sphi %s11118_s30, %s14850_s30   ;;  %s11055_s29 = sphi %s11116_s29, %s14849_s29   ;;  %s11051_s28 = sphi %s11114_s28, %s14848_s28   ;;  %s11047_s27 = sphi %s11112_s27, %s14847_s27  }
   0x4   : > { %p28_p0 = scmp.ge.s32.totalorder %s27_s10, 2  ;;  %p8312_p1 = scmp.ge.s32.totalorder %s11063_s9, 1 }
   0x5   : > { %p286_p2 = scmp.lt.s32.totalorder %s11063_s9, 5 }
   0x6   : > { %s14852_s10 = smov (%p28_p0, %s27_s10), 0  ;;  %s14854_s11 = smov (!%p28_p0, %s30_s11), %s11059_s30 }
   0x7   : > { %p287_p3 = pnand %p8312_p1, %p286_p2  ;;  %p32_p4 = scmp.ge.s32.totalorder %s14854_s11, 2 }
   0x9   : > { %s14856_s11 = smov (%p32_p4, %s14854_s11), 0  ;;  %290 = sbr.rel (%p287_p3) target bundleno = 1221 (0x4c5), region = 52 }
   0xe   : > { %v523_v0 = vld [vmem:[%s14573_s2 + $0x8] sm:$0xff]  ;;  %p329_p5 = scmp.lt.s32.totalorder %s11051_s28, 1  ;;  %v11150_v1 = vld [vmem:[%s14573_s2 + $0x10] sm:$0xff]  ;;  %v11155_v2 = vld [vmem:[%s14573_s2] sm:$0xff]  ;;  %s348_s18 = smul.u32 160, %s11047_s27  ;;  %vm386_vm0 = vcmask 64512  }
   0xf   : > { %9680 = vmatprep.subr.mxu0 %v523_v0  ;;  %10793 = vmatprep.subr.mxu1 %v523_v0  ;;  %v11226_v35 = vld [vmem:[%s14573_s2 + $0x18] sm:$0xff]  ;;  %v11233_v37 = vld [vmem:[%s14573_s2 + $0x20] sm:$0xff]  ;;  %p334_p6 = scmp.lt.s32.totalorder %s11047_s27, 1  ;;  %vm422_vm1 = vcmask 58368   ;;  %vm424_vm2 = vcmask 785408   ;;  %vm427_vm3 = vcmask 782336  }
  0x10   : > { %9681 = vmatpush3.msra.mxu0 %v523_v0  ;;  %10794 = vmatpush3.msra.mxu1 %v523_v0  ;;  %s14858_s28 = smov (!%p329_p5, %s11051_s28), 1 }
  0x11   : > { %9774 = vmatprep.subr.mxu0 %v11150_v1  ;;  %9727 = vmatprep.subr.mxu1 %v11155_v2  ;;  %s10795_s19 = smul.u32 448, %s14858_s28  ;;  %s14860_s27 = smov (!%p334_p6, %s11047_s27), 1 }
  0x12   : > { %s10796_s21 = smul.u32 240, %s14860_s27 }
  0x13   : > { %s333_s22 = scalar_lea.vmem %s14571_s0, %s10795_s19  ;;  %s10797_s20 = smul.u32 30, %s14860_s27 }
  0x14   : > { %s11166_s23 = scalar_lea.vmem %s333_s22, %s348_s18  ;;  %s11594_s25 = scalar_lea.vmem %s14572_s1, %s10796_s21 }
  0x15   : > { %v350_v3 = vld [vmem:[%s11166_s23] sm:$0xff]  ;;  %v351_v4 = vld [vmem:[%s11166_s23 + $0x8] sm:$0xff]  ;;  %v352_v7 = vld [vmem:[%s11166_s23 + $0x10] sm:$0xff]  ;;  %s10798_s21 = smul.u32 60, %s14858_s28 }
  0x16   : > { %v366_v5 = vld [vmem:[%s11166_s23 + $0x80] sm:$0xff]  ;;  %387 = vst.msk [vmem:[#allocation2] sm:$0xff] %vm386_vm0, %v350_v3  ;;  %388 = vst.msk [vmem:[#allocation2 + $0x8] sm:$0xff] %vm386_vm0, %v351_v4  ;;  %v367_v6 = vld [vmem:[%s11166_s23 + $0x88] sm:$0xff] }
  0x17   : > { %403 = vst.msk [vmem:[#allocation2 + $0x80] sm:$0xff] %vm386_vm0, %v366_v5  ;;  %v368_v8 = vld [vmem:[%s11166_s23 + $0x90] sm:$0xff]  ;;  %404 = vst.msk [vmem:[#allocation2 + $0x88] sm:$0xff] %vm386_vm0, %v367_v6  ;;  %v353_v9 = vld [vmem:[%s11166_s23 + $0x18] sm:$0xff]  ;;  %s345_s27 = sadd.s32 %s10798_s21, %s10797_s20 }
  0x18   : > { %389 = vst.msk [vmem:[#allocation2 + $0x10] sm:$0xff] %vm386_vm0, %v352_v7  ;;  %405 = vst.msk [vmem:[#allocation2 + $0x90] sm:$0xff] %vm386_vm0, %v368_v8  ;;  %v369_v10 = vld [vmem:[%s11166_s23 + $0x98] sm:$0xff]  ;;  %v354_v11 = vld [vmem:[%s11166_s23 + $0x20] sm:$0xff]  ;;  %s8315_s28 = sshll.u32 %s345_s27, 3 }
  0x19   : > { %390 = vst.msk [vmem:[#allocation2 + $0x18] sm:$0xff] %vm386_vm0, %v353_v9  ;;  %406 = vst.msk [vmem:[#allocation2 + $0x98] sm:$0xff] %vm386_vm0, %v369_v10  ;;  %v370_v12 = vld [vmem:[%s11166_s23 + $0xa0] sm:$0xff]  ;;  %v355_v13 = vld [vmem:[%s11166_s23 + $0x28] sm:$0xff] }
  0x1a   : > { %391 = vst.msk [vmem:[#allocation2 + $0x20] sm:$0xff] %vm386_vm0, %v354_v11  ;;  %v371_v14 = vld [vmem:[%s11166_s23 + $0xa8] sm:$0xff]  ;;  %407 = vst.msk [vmem:[#allocation2 + $0xa0] sm:$0xff] %vm386_vm0, %v370_v12  ;;  %v356_v15 = vld [vmem:[%s11166_s23 + $0x30] sm:$0xff] }
  0x1b   : > { %392 = vst.msk [vmem:[#allocation2 + $0x28] sm:$0xff] %vm386_vm0, %v355_v13  ;;  %408 = vst.msk [vmem:[#allocation2 + $0xa8] sm:$0xff] %vm386_vm0, %v371_v14  ;;  %v372_v16 = vld [vmem:[%s11166_s23 + $0xb0] sm:$0xff]  ;;  %v357_v17 = vld [vmem:[%s11166_s23 + $0x38] sm:$0xff] }
  0x1c   : > { %393 = vst.msk [vmem:[#allocation2 + $0x30] sm:$0xff] %vm386_vm0, %v356_v15  ;;  %409 = vst.msk [vmem:[#allocation2 + $0xb0] sm:$0xff] %vm386_vm0, %v372_v16  ;;  %v373_v18 = vld [vmem:[%s11166_s23 + $0xb8] sm:$0xff]  ;;  %v358_v19 = vld [vmem:[%s11166_s23 + $0x40] sm:$0xff] }
  0x1d   : > { %394 = vst.msk [vmem:[#allocation2 + $0x38] sm:$0xff] %vm386_vm0, %v357_v17  ;;  %v374_v20 = vld [vmem:[%s11166_s23 + $0xc0] sm:$0xff]  ;;  %410 = vst.msk [vmem:[#allocation2 + $0xb8] sm:$0xff] %vm386_vm0, %v373_v18  ;;  %v359_v21 = vld [vmem:[%s11166_s23 + $0x48] sm:$0xff] }
  0x1e   : > { %395 = vst.msk [vmem:[#allocation2 + $0x40] sm:$0xff] %vm386_vm0, %v358_v19  ;;  %411 = vst.msk [vmem:[#allocation2 + $0xc0] sm:$0xff] %vm386_vm0, %v374_v20  ;;  %v375_v22 = vld [vmem:[%s11166_s23 + $0xc8] sm:$0xff]  ;;  %v360_v23 = vld [vmem:[%s11166_s23 + $0x50] sm:$0xff] }
  0x1f   : > { %396 = vst.msk [vmem:[#allocation2 + $0x48] sm:$0xff] %vm386_vm0, %v359_v21  ;;  %412 = vst.msk [vmem:[#allocation2 + $0xc8] sm:$0xff] %vm386_vm0, %v375_v22  ;;  %v376_v24 = vld [vmem:[%s11166_s23 + $0xd0] sm:$0xff]  ;;  %v361_v25 = vld [vmem:[%s11166_s23 + $0x58] sm:$0xff] }
  0x20   : > { %397 = vst.msk [vmem:[#allocation2 + $0x50] sm:$0xff] %vm386_vm0, %v360_v23  ;;  %v377_v26 = vld [vmem:[%s11166_s23 + $0xd8] sm:$0xff]  ;;  %v493_v27 = vld [vmem:[#allocation2 + $0x1] sm:$0xff]  ;;  %413 = vst.msk [vmem:[#allocation2 + $0xd0] sm:$0xff] %vm386_vm0, %v376_v24 }
  0x21   : > { %398 = vst.msk [vmem:[#allocation2 + $0x58] sm:$0xff] %vm386_vm0, %v361_v25  ;;  %414 = vst.msk [vmem:[#allocation2 + $0xd8] sm:$0xff] %vm386_vm0, %v377_v26  ;;  %v362_v28 = vld [vmem:[%s11166_s23 + $0x60] sm:$0xff]  ;;  %9682 = vmatprep.mubr.msk.f32.mxu0 %vm386_vm0, %v493_v27  ;;  %v494_v31 = vld [vmem:[#allocation2 + $0x9] sm:$0xff] }
  0x22   : > { %v378_v29 = vld [vmem:[%s11166_s23 + $0xe0] sm:$0xff]  ;;  %v510_v32 = vld [vmem:[#allocation2 + $0x89] sm:$0xff]  ;;  %399 = vst.msk [vmem:[#allocation2 + $0x60] sm:$0xff] %vm386_vm0, %v362_v28  ;;  %9683 = vmatmul.mubr.msk.f32.vlgmr.msra.gmra.mxu0 %vm386_vm0, %v494_v31  ;;  %v495_v33 = vld [vmem:[#allocation2 + $0x11] sm:$0xff] }
  0x23   : > { %v509_v30 = vld [vmem:[#allocation2 + $0x81] sm:$0xff]  ;;  %415 = vst.msk [vmem:[#allocation2 + $0xe0] sm:$0xff] %vm386_vm0, %v378_v29  ;;  %v511_v34 = vld [vmem:[#allocation2 + $0x91] sm:$0xff]  ;;  %9775 = vmatpush3.msra.mxu0 %v11150_v1  ;;  %v496_v36 = vld [vmem:[#allocation2 + $0x19] sm:$0xff]  ;;  %9685 = vmatprep.mubr.msk.f32.mxu0 %vm386_vm0, %v495_v33 }
  0x24   : > { %9706 = vmatprep.mubr.msk.f32.mxu1 %vm386_vm0, %v509_v30  ;;  %v512_v38 = vld [vmem:[#allocation2 + $0x99] sm:$0xff]  ;;  %v497_v39 = vld [vmem:[#allocation2 + $0x21] sm:$0xff]  ;;  %9868 = vmatprep.subr.mxu0 %v11233_v37  ;;  %v11243_v41 = vld [vmem:[#allocation2 + $0x29] sm:$0xff] }
  0x25   : > { %9707 = vmatmul.mubr.msk.f32.vlgmr.msra.gmra.mxu1 %vm386_vm0, %v510_v32  ;;  %v513_v40 = vld [vmem:[#allocation2 + $0xa1] sm:$0xff]  ;;  %v514_v42 = vld [vmem:[#allocation2 + $0xa9] sm:$0xff]  ;;  %v11246_v43 = vld [vmem:[#allocation2 + $0x31] sm:$0xff] }
  0x26   : > { %9728 = vmatpush3.msra.mxu1 %v11155_v2  ;;  %9709 = vmatprep.mubr.msk.f32.mxu1 %vm386_vm0, %v511_v34  ;;  %v515_v44 = vld [vmem:[#allocation2 + $0xb1] sm:$0xff]  ;;  %v363_v45 = vld [vmem:[%s11166_s23 + $0x68] sm:$0xff]  ;;  %v11262_v50 = vld [vmem:[#allocation2 + $0x39] sm:$0xff] }
  0x27   : > { %9821 = vmatprep.subr.mxu1 %v11226_v35  ;;  %9686 = vmatmul.mubr.msk.f32.gmra.mxu0 %vm386_vm0, %v496_v36  ;;  %400 = vst.msk [vmem:[#allocation2 + $0x68] sm:$0xff] %vm386_vm0, %v363_v45  ;;  %v379_v46 = vld [vmem:[%s11166_s23 + $0xe8] sm:$0xff]  ;;  %v364_v47 = vld [vmem:[%s11166_s23 + $0x70] sm:$0xff]  ;;  %v365_v49 = vld [vmem:[%s11166_s23 + $0x78] sm:$0xff] }
  0x28   : > { %9688 = vmatprep.mubr.msk.f32.mxu0 %vm386_vm0, %v497_v39  ;;  %v380_v48 = vld [vmem:[%s11166_s23 + $0xf0] sm:$0xff]  ;;  %416 = vst.msk [vmem:[#allocation2 + $0xe8] sm:$0xff] %vm386_vm0, %v379_v46  ;;  %401 = vst.msk [vmem:[#allocation2 + $0x70] sm:$0xff] %vm386_vm0, %v364_v47  ;;  %v516_v51 = vld [vmem:[#allocation2 + $0xb9] sm:$0xff] }
  0x29   : > { %9710 = vmatmul.mubr.msk.f32.gmra.mxu1 %vm386_vm0, %v512_v38  ;;  %417 = vst.msk [vmem:[#allocation2 + $0xf0] sm:$0xff] %vm386_vm0, %v380_v48  ;;  %402 = vst.msk [vmem:[#allocation2 + $0x78] sm:$0xff] %vm386_vm0, %v365_v49  ;;  %v11266_v52 = vld [vmem:[#allocation2 + $0x41] sm:$0xff]  ;;  %v11273_v54 = vld [vmem:[#allocation2 + $0x49] sm:$0xff] }
  0x2a   : > { %9712 = vmatprep.mubr.msk.f32.mxu1 %vm386_vm0, %v513_v40  ;;  %v517_v53 = vld [vmem:[#allocation2 + $0xc1] sm:$0xff]  ;;  %v518_v55 = vld [vmem:[#allocation2 + $0xc9] sm:$0xff]  ;;  %v11276_v56 = vld [vmem:[#allocation2 + $0x51] sm:$0xff] }
  0x2b   : > { %9689 = vmatmul.mubr.msk.f32.gmra.mxu0 %vm386_vm0, %v11243_v41  ;;  %v519_v57 = vld [vmem:[#allocation2 + $0xd1] sm:$0xff]  ;;  %v11283_v58 = vld [vmem:[#allocation2 + $0x59] sm:$0xff]  ;;  %v463_v3 = vld [vmem:[#allocation2 + $0x8] sm:$0xff] }
  0x2c   : > { %9691 = vmatprep.mubr.msk.f32.mxu0 %vm386_vm0, %v11246_v43  ;;  %v520_v59 = vld [vmem:[#allocation2 + $0xd9] sm:$0xff]  ;;  %v1134_v4 = vld [vmem:[#allocation2 + $0x2] sm:$0xff]  ;;  %v464_v5 = vld [vmem:[#allocation2 + $0x10] sm:$0xff] }
  0x2d   : > { %9713 = vmatmul.mubr.msk.f32.gmra.mxu1 %vm386_vm0, %v514_v42  ;;  %v462_v1 = vld [vmem:[#allocation2] sm:$0xff]  ;;  %v11311_v6 = vld [vmem:[%s14573_s2 + $0x28] sm:$0xff]  ;;  %v465_v8 = vld [vmem:[#allocation2 + $0x18] sm:$0xff] }
  0x2e   : > { %9715 = vmatprep.mubr.msk.f32.mxu1 %vm386_vm0, %v515_v44  ;;  %v11286_v60 = vld [vmem:[#allocation2 + $0x61] sm:$0xff]  ;;  %v1135_v7 = vld [vmem:[#allocation2 + $0xa] sm:$0xff]  ;;  %v1136_v10 = vld [vmem:[#allocation2 + $0x12] sm:$0xff] }
  0x2f   : > { %9692 = vmatmul.mubr.msk.f32.gmra.mxu0 %vm386_vm0, %v11262_v50  ;;  %v521_v61 = vld [vmem:[#allocation2 + $0xe1] sm:$0xff]  ;;  %v11293_v62 = vld [vmem:[#allocation2 + $0x69] sm:$0xff]  ;;  %v11341_v17 = vld [vmem:[#allocation2 + $0x38] sm:$0xff] }
  0x30   : > { %9694 = vmatprep.mubr.msk.f32.mxu0 %vm386_vm0, %v11266_v52  ;;  %v522_v63 = vld [vmem:[#allocation2 + $0xe9] sm:$0xff]  ;;  %v11296_v0 = vld [vmem:[#allocation2 + $0x71] sm:$0xff]  ;;  %v11303_v2 = vld [vmem:[#allocation2 + $0x79] sm:$0xff] }
  0x31   : > { %9716 = vmatmul.mubr.msk.f32.gmra.mxu1 %vm386_vm0, %v516_v51  ;;  %v466_v9 = vld [vmem:[#allocation2 + $0x20] sm:$0xff]  ;;  %v11322_v11 = vld [vmem:[%s14573_s2 + $0x30] sm:$0xff]  ;;  %v11328_v13 = vld [vmem:[#allocation2 + $0x28] sm:$0xff] }
  0x32   : > { %9718 = vmatprep.mubr.msk.f32.mxu1 %vm386_vm0, %v517_v53  ;;  %v1137_v12 = vld [vmem:[#allocation2 + $0x1a] sm:$0xff]  ;;  %v1138_v14 = vld [vmem:[#allocation2 + $0x22] sm:$0xff]  ;;  %v11330_v15 = vld [vmem:[#allocation2 + $0x30] sm:$0xff] }
  0x33   : > { %9695 = vmatmul.mubr.msk.f32.gmra.mxu0 %vm386_vm0, %v11273_v54  ;;  %v11337_v16 = vld [vmem:[#allocation2 + $0x2a] sm:$0xff]  ;;  %v11343_v18 = vld [vmem:[#allocation2 + $0x32] sm:$0xff]  ;;  %v11345_v19 = vld [vmem:[#allocation2 + $0x40] sm:$0xff] }
  0x34   : > { %9697 = vmatprep.mubr.msk.f32.mxu0 %vm386_vm0, %v11276_v56  ;;  %v11353_v20 = vld [vmem:[#allocation2 + $0x3a] sm:$0xff]  ;;  %v11357_v21 = vld [vmem:[#allocation2 + $0x48] sm:$0xff]  ;;  %v11361_v23 = vld [vmem:[#allocation2 + $0x50] sm:$0xff] }
  0x35   : > { %9719 = vmatmul.mubr.msk.f32.gmra.mxu1 %vm386_vm0, %v518_v55  ;;  %v11359_v22 = vld [vmem:[#allocation2 + $0x42] sm:$0xff]  ;;  %v11369_v24 = vld [vmem:[#allocation2 + $0x4a] sm:$0xff]  ;;  %v11373_v25 = vld [vmem:[#allocation2 + $0x58] sm:$0xff] }
  0x36   : > { %9721 = vmatprep.mubr.msk.f32.mxu1 %vm386_vm0, %v519_v57  ;;  %v11375_v26 = vld [vmem:[#allocation2 + $0x52] sm:$0xff]  ;;  %v11377_v27 = vld [vmem:[#allocation2 + $0x60] sm:$0xff]  ;;  %v11392_v31 = vld [vmem:[#allocation2 + $0x68] sm:$0xff] }
  0x37   : > { %9698 = vmatmul.mubr.msk.f32.gmra.mxu0 %vm386_vm0, %v11283_v58  ;;  %v381_v28 = vld [vmem:[%s11166_s23 + $0xf8] sm:$0xff]  ;;  %v382_v30 = vld [vmem:[%s11166_s23 + $0x100] sm:$0xff]  ;;  %v11397_v33 = vld [vmem:[#allocation2 + $0x70] sm:$0xff] }
  0x38   : > { %9700 = vmatprep.mubr.msk.f32.mxu0 %vm386_vm0, %v11286_v60  ;;  %v11386_v29 = vld [vmem:[#allocation2 + $0x5a] sm:$0xff]  ;;  %418 = vst.msk [vmem:[#allocation2 + $0xf8] sm:$0xff] %vm386_vm0, %v381_v28  ;;  %v11394_v32 = vld [vmem:[#allocation2 + $0x62] sm:$0xff]  ;;  %419 = vst.msk [vmem:[#allocation2 + $0x100] sm:$0xff] %vm386_vm0, %v382_v30 }
  0x39   : > { %9722 = vmatmul.mubr.msk.f32.gmra.mxu1 %vm386_vm0, %v520_v59  ;;  %v11405_v34 = vld [vmem:[#allocation2 + $0x6a] sm:$0xff]  ;;  %v11411_v36 = vld [vmem:[#allocation2 + $0x72] sm:$0xff]  ;;  %v11421_v38 = vld [vmem:[#allocation2 + $0x7a] sm:$0xff] }
  0x3a   : > { %9724 = vmatprep.mubr.msk.f32.mxu1 %vm386_vm0, %v521_v61  ;;  %v11425_v39 = vld [vmem:[#allocation2 + $0x88] sm:$0xff]  ;;  %v11429_v42 = vld [vmem:[#allocation2 + $0x90] sm:$0xff]  ;;  %v11441_v45 = vld [vmem:[#allocation2 + $0x98] sm:$0xff] }
  0x3b   : > { %9701 = vmatmul.mubr.msk.f32.gmra.mxu0 %vm386_vm0, %v11293_v62  ;;  %v11427_v40 = vld [vmem:[#allocation2 + $0x82] sm:$0xff]  ;;  %v11437_v44 = vld [vmem:[#allocation2 + $0x8a] sm:$0xff]  ;;  %v11443_v46 = vld [vmem:[#allocation2 + $0x92] sm:$0xff] }
  0x3c   : > { %9703 = vmatprep.mubr.msk.f32.mxu0 %vm386_vm0, %v11296_v0  ;;  %v11445_v47 = vld [vmem:[#allocation2 + $0xa0] sm:$0xff]  ;;  %v11457_v49 = vld [vmem:[#allocation2 + $0xa8] sm:$0xff]  ;;  %v11461_v53 = vld [vmem:[#allocation2 + $0xb0] sm:$0xff] }
  0x3d   : > { %9725 = vmatmul.mubr.msk.f32.gmra.mxu1 %vm386_vm0, %v522_v63  ;;  %v11453_v48 = vld [vmem:[#allocation2 + $0x9a] sm:$0xff]  ;;  %v11459_v51 = vld [vmem:[#allocation2 + $0xa2] sm:$0xff]  ;;  %v11469_v55 = vld [vmem:[#allocation2 + $0xaa] sm:$0xff] }
  0x3e   : > { %9729 = vmatprep.mubr.msk.f32.mxu1 %vm386_vm0, %v462_v1  ;;  %14591 = vst [vmem:[#allocation4_spill] sm:$0xff] %v11453_v48  ;;  %14592 = vst [vmem:[#allocation5_spill] sm:$0xff] %v11459_v51  ;;  %v11473_v57 = vld [vmem:[#allocation2 + $0xb8] sm:$0xff]  ;;  %v11477_v61 = vld [vmem:[#allocation2 + $0xc0] sm:$0xff] }
  0x3f   : > { %9704 = vmatmul.mubr.msk.f32.gmra.mxu0 %vm386_vm0, %v11303_v2  ;;  %14593 = vst [vmem:[#allocation6_spill] sm:$0xff] %v11469_v55  ;;  %v11475_v59 = vld [vmem:[#allocation2 + $0xb2] sm:$0xff]  ;;  %v383_v63 = vld [vmem:[%s11166_s23 + $0x108] sm:$0xff] }
  0x40   : > { %9776 = vmatprep.mubr.msk.f32.mxu0 %vm386_vm0, %v1134_v4  ;;  %14594 = vst [vmem:[#allocation7_spill] sm:$0xff] %v11475_v59  ;;  %420 = vst.msk [vmem:[#allocation2 + $0x108] sm:$0xff] %vm386_vm0, %v383_v63  ;;  %v384_v1 = vld [vmem:[%s11166_s23 + $0x110] sm:$0xff]  ;;  %v11493_v4 = vld [vmem:[#allocation2 + $0xc8] sm:$0xff] }
  0x41   : > { %9730 = vmatmul.mubr.msk.f32.vlgmr.msra.gmra.mxu1 %vm386_vm0, %v463_v3  ;;  %v11488_v3 = vld [vmem:[#allocation2 + $0xba] sm:$0xff]  ;;  %421 = vst.msk [vmem:[#allocation2 + $0x110] sm:$0xff] %vm386_vm0, %v384_v1  ;;  %v11525_v28 = vld [vmem:[#allocation2 + $0xe8] sm:$0xff] }
  0x42   : > { %9822 = vmatpush3.msra.mxu1 %v11226_v35  ;;  %9732 = vmatprep.mubr.msk.f32.mxu1 %vm386_vm0, %v464_v5  ;;  %v11409_v35 = vld [vmem:[#allocation2 + $0x78] sm:$0xff]  ;;  %14595 = vst [vmem:[#allocation8_spill] sm:$0xff] %v11488_v3  ;;  %v11495_v5 = vld [vmem:[#allocation2 + $0xc2] sm:$0xff]  ;;  %v11535_v1 = vld [vmem:[#allocation2 + $0xea] sm:$0xff] }
  0x43   : > { %9915 = vmatprep.subr.mxu1 %v11311_v6  ;;  %9777 = vmatmul.mubr.msk.f32.vlgmr.msra.gmra.mxu0 %vm386_vm0, %v1135_v7  ;;  %14596 = vst [vmem:[#allocation9_spill] sm:$0xff] %v11495_v5  ;;  %v11497_v7 = vld [vmem:[#allocation2 + $0xd0] sm:$0xff]  ;;  %v11527_v30 = vld [vmem:[#allocation2 + $0xe2] sm:$0xff]  ;;  %14601 = vst [vmem:[#allocation14_spill] sm:$0xff] %v11535_v1 }
  0x44   : > { %9869 = vmatpush3.msra.mxu0 %v11233_v37  ;;  %9779 = vmatprep.mubr.msk.f32.mxu0 %vm386_vm0, %v1136_v10  ;;  %v11413_v37 = vld [vmem:[#allocation2 + $0x80] sm:$0xff]  ;;  %v11511_v10 = vld [vmem:[#allocation2 + $0xd2] sm:$0xff]  ;;  %14600 = vst [vmem:[#allocation13_spill] sm:$0xff] %v11527_v30 }
  0x45   : > { %9733 = vmatmul.mubr.msk.f32.gmra.mxu1 %vm386_vm0, %v465_v8  ;;  %9962 = vmatprep.subr.mxu0 %v11322_v11  ;;  %v11505_v8 = vld [vmem:[#allocation2 + $0xca] sm:$0xff]  ;;  %14598 = vst [vmem:[#allocation11_spill] sm:$0xff] %v11511_v10  ;;  %v1500_v63 = vld [vmem:[#allocation2 + $0x14] sm:$0xff] }
  0x46   : > { %9735 = vmatprep.mubr.msk.f32.mxu1 %vm386_vm0, %v466_v9  ;;  %14597 = vst [vmem:[#allocation10_spill] sm:$0xff] %v11505_v8  ;;  %v11509_v9 = vld [vmem:[#allocation2 + $0xd8] sm:$0xff] }
  0x47   : > { %9780 = vmatmul.mubr.msk.f32.gmra.mxu0 %vm386_vm0, %v1137_v12  ;;  %v11513_v12 = vld [vmem:[#allocation2 + $0xe0] sm:$0xff] }
  0x48   : > { %9782 = vmatprep.mubr.msk.f32.mxu0 %vm386_vm0, %v1138_v14  ;;  %v11521_v14 = vld [vmem:[#allocation2 + $0xda] sm:$0xff] }
  0x49   : > { %9736 = vmatmul.mubr.msk.f32.gmra.mxu1 %vm386_vm0, %v11328_v13  ;;  %14599 = vst [vmem:[#allocation12_spill] sm:$0xff] %v11521_v14 }
  0x4a   : > { %9738 = vmatprep.mubr.msk.f32.mxu1 %vm386_vm0, %v11330_v15 }
  0x4b   : > { %9783 = vmatmul.mubr.msk.f32.gmra.mxu0 %vm386_vm0, %v11337_v16 }
  0x4c   : > { %9785 = vmatprep.mubr.msk.f32.mxu0 %vm386_vm0, %v11343_v18 }
  0x4d   : > { %9739 = vmatmul.mubr.msk.f32.gmra.mxu1 %vm386_vm0, %v11341_v17 }
  0x4e   : > { %9741 = vmatprep.mubr.msk.f32.mxu1 %vm386_vm0, %v11345_v19 }
  0x4f   : > { %9786 = vmatmul.mubr.msk.f32.gmra.mxu0 %vm386_vm0, %v11353_v20 }
  0x50   : > { %9788 = vmatprep.mubr.msk.f32.mxu0 %vm386_vm0, %v11359_v22 }
  0x51   : > { %9742 = vmatmul.mubr.msk.f32.gmra.mxu1 %vm386_vm0, %v11357_v21 }
  0x52   : > { %9744 = vmatprep.mubr.msk.f32.mxu1 %vm386_vm0, %v11361_v23 }
  0x53   : > { %9789 = vmatmul.mubr.msk.f32.gmra.mxu0 %vm386_vm0, %v11369_v24 }
  0x54   : > { %9791 = vmatprep.mubr.msk.f32.mxu0 %vm386_vm0, %v11375_v26 }
  0x55   : > { %9745 = vmatmul.mubr.msk.f32.gmra.mxu1 %vm386_vm0, %v11373_v25 }
  0x56   : > { %9747 = vmatprep.mubr.msk.f32.mxu1 %vm386_vm0, %v11377_v27 }
  0x57   : > { %9792 = vmatmul.mubr.msk.f32.gmra.mxu0 %vm386_vm0, %v11386_v29 }
  0x58   : > { %9794 = vmatprep.mubr.msk.f32.mxu0 %vm386_vm0, %v11394_v32 }
  0x59   : > { %9748 = vmatmul.mubr.msk.f32.gmra.mxu1 %vm386_vm0, %v11392_v31 }
  0x5a   : > { %9750 = vmatprep.mubr.msk.f32.mxu1 %vm386_vm0, %v11397_v33 }
  0x5b   : > { %9795 = vmatmul.mubr.msk.f32.gmra.mxu0 %vm386_vm0, %v11405_v34 }
  0x5c   : > { %9797 = vmatprep.mubr.msk.f32.mxu0 %vm386_vm0, %v11411_v36 }
  0x5d   : > { %9751 = vmatmul.mubr.msk.f32.gmra.mxu1 %vm386_vm0, %v11409_v35 }
  0x5e   : > { %9753 = vmatprep.mubr.msk.f32.mxu1 %vm386_vm0, %v11413_v37 }
  0x5f   : > { %9798 = vmatmul.mubr.msk.f32.gmra.mxu0 %vm386_vm0, %v11421_v38 }
  0x60   : > { %9800 = vmatprep.mubr.msk.f32.mxu0 %vm386_vm0, %v11427_v40 }
  0x61   : > { %9754 = vmatmul.mubr.msk.f32.gmra.mxu1 %vm386_vm0, %v11425_v39 }
  0x62   : > { %9756 = vmatprep.mubr.msk.f32.mxu1 %vm386_vm0, %v11429_v42 }
  0x63   : > { %9801 = vmatmul.mubr.msk.f32.gmra.mxu0 %vm386_vm0, %v11437_v44 }
  0x64   : > { %9803 = vmatprep.mubr.msk.f32.mxu0 %vm386_vm0, %v11443_v46 }
  0x65   : > { %9757 = vmatmul.mubr.msk.f32.gmra.mxu1 %vm386_vm0, %v11441_v45 }
  0x66   : > { %9759 = vmatprep.mubr.msk.f32.mxu1 %vm386_vm0, %v11445_v47 }
  0x67   : > { %9804 = vmatmul.mubr.msk.f32.gmra.mxu0 %vm386_vm0, %v11453_v48  ;;  %v1522_v48 = vld [vmem:[#allocation2 + $0xc4] sm:$0xff] }
  0x68   : > { %9806 = vmatprep.mubr.msk.f32.mxu0 %vm386_vm0, %v11459_v51  ;;  %v1886_v51 = vld [vmem:[#allocation2 + $0xb5] sm:$0xff] }
  0x69   : > { %9760 = vmatmul.mubr.msk.f32.gmra.mxu1 %vm386_vm0, %v11457_v49 }
  0x6a   : > { %9762 = vmatprep.mubr.msk.f32.mxu1 %vm386_vm0, %v11461_v53 }
  0x6b   : > { %9807 = vmatmul.mubr.msk.f32.gmra.mxu0 %vm386_vm0, %v11469_v55  ;;  %v1508_v55 = vld [vmem:[#allocation2 + $0x54] sm:$0xff] }
  0x6c   : > { %9809 = vmatprep.mubr.msk.f32.mxu0 %vm386_vm0, %v11475_v59  ;;  %v1868_v59 = vld [vmem:[#allocation2 + $0x25] sm:$0xff] }
  0x6d   : > { %9763 = vmatmul.mubr.msk.f32.gmra.mxu1 %vm386_vm0, %v11473_v57 }
  0x6e   : > { %9765 = vmatprep.mubr.msk.f32.mxu1 %vm386_vm0, %v11477_v61 }
  0x6f   : > { %9810 = vmatmul.mubr.msk.f32.gmra.mxu0 %vm386_vm0, %v11488_v3  ;;  %v1504_v3 = vld [vmem:[#allocation2 + $0x34] sm:$0xff] }
  0x70   : > { %9812 = vmatprep.mubr.msk.f32.mxu0 %vm386_vm0, %v11495_v5  ;;  %v1502_v5 = vld [vmem:[#allocation2 + $0x24] sm:$0xff] }
  0x71   : > { %9766 = vmatmul.mubr.msk.f32.gmra.mxu1 %vm386_vm0, %v11493_v4 }
  0x72   : > { %9768 = vmatprep.mubr.msk.f32.mxu1 %vm386_vm0, %v11497_v7 }
  0x73   : > { %9813 = vmatmul.mubr.msk.f32.gmra.mxu0 %vm386_vm0, %v11505_v8  ;;  %v1866_v8 = vld [vmem:[#allocation2 + $0x15] sm:$0xff] }
  0x74   : > { %9815 = vmatprep.mubr.msk.f32.mxu0 %vm386_vm0, %v11511_v10  ;;  %v1501_v10 = vld [vmem:[#allocation2 + $0x1c] sm:$0xff] }
  0x75   : > { %9769 = vmatmul.mubr.msk.f32.gmra.mxu1 %vm386_vm0, %v11509_v9 }
  0x76   : > { %9771 = vmatprep.mubr.msk.f32.mxu1 %vm386_vm0, %v11513_v12 }
  0x77   : > { %9816 = vmatmul.mubr.msk.f32.gmra.mxu0 %vm386_vm0, %v11521_v14  ;;  %v11543_v14 = vld [vmem:[%s14573_s2 + $0x38] sm:$0xff] }
  0x78   : > { %9818 = vmatprep.mubr.msk.f32.mxu0 %vm386_vm0, %v11527_v30  ;;  %v1867_v30 = vld [vmem:[#allocation2 + $0x1d] sm:$0xff] }
  0x79   : > { %9772 = vmatmul.mubr.msk.f32.gmra.mxu1 %vm386_vm0, %v11525_v28 }
  0x7a   : > { %9823 = vmatprep.mubr.msk.f32.mxu1 %vm386_vm0, %v1500_v63  ;;  %v1503_v63 = vld [vmem:[#allocation2 + $0x2c] sm:$0xff] }
  0x7b   : > { %9819 = vmatmul.mubr.msk.f32.gmra.mxu0 %vm386_vm0, %v11535_v1  ;;  %v11554_v1 = vld [vmem:[%s14573_s2 + $0x40] sm:$0xff] }
  0x7c   : > { %9870 = vmatprep.mubr.msk.f32.mxu0 %vm386_vm0, %v1866_v8  ;;  %v1869_v8 = vld [vmem:[#allocation2 + $0x2d] sm:$0xff] }
  0x7d   : > { %9824 = vmatmul.mubr.msk.f32.vlgmr.msra.gmra.mxu1 %vm386_vm0, %v1501_v10  ;;  %v1506_v10 = vld [vmem:[#allocation2 + $0x44] sm:$0xff] }
  0x7e   : > { %9916 = vmatpush3.msra.mxu1 %v11311_v6  ;;  %9826 = vmatprep.mubr.msk.f32.mxu1 %vm386_vm0, %v1502_v5  ;;  %v1505_v6 = vld [vmem:[#allocation2 + $0x3c] sm:$0xff] }
  0x7f   : > { %10009 = vmatprep.subr.mxu1 %v11543_v14  ;;  %9871 = vmatmul.mubr.msk.f32.vlgmr.msra.gmra.mxu0 %vm386_vm0, %v1867_v30  ;;  %v1870_v5 = vld [vmem:[#allocation2 + $0x35] sm:$0xff]  ;;  %v1871_v30 = vld [vmem:[#allocation2 + $0x3d] sm:$0xff] }
  0x80   : > { %9963 = vmatpush3.msra.mxu0 %v11322_v11  ;;  %9873 = vmatprep.mubr.msk.f32.mxu0 %vm386_vm0, %v1868_v59  ;;  %v1507_v11 = vld [vmem:[#allocation2 + $0x4c] sm:$0xff] }
  0x81   : > { %9827 = vmatmul.mubr.msk.f32.gmra.mxu1 %vm386_vm0, %v1503_v63  ;;  %10056 = vmatprep.subr.mxu0 %v11554_v1  ;;  %v1872_v63 = vld [vmem:[#allocation2 + $0x45] sm:$0xff]  ;;  %v1873_v59 = vld [vmem:[#allocation2 + $0x4d] sm:$0xff] }
  0x82   : > { %9829 = vmatprep.mubr.msk.f32.mxu1 %vm386_vm0, %v1504_v3  ;;  %v1509_v3 = vld [vmem:[#allocation2 + $0x5c] sm:$0xff] }
  0x83   : > { %9874 = vmatmul.mubr.msk.f32.gmra.mxu0 %vm386_vm0, %v1869_v8  ;;  %v1874_v8 = vld [vmem:[#allocation2 + $0x55] sm:$0xff] }
  0x84   : > { %9876 = vmatprep.mubr.msk.f32.mxu0 %vm386_vm0, %v1870_v5  ;;  %v1875_v5 = vld [vmem:[#allocation2 + $0x5d] sm:$0xff] }
  0x85   : > { %9830 = vmatmul.mubr.msk.f32.gmra.mxu1 %vm386_vm0, %v1505_v6  ;;  %v1510_v6 = vld [vmem:[#allocation2 + $0x64] sm:$0xff] }
  0x86   : > { %9832 = vmatprep.mubr.msk.f32.mxu1 %vm386_vm0, %v1506_v10  ;;  %v1511_v10 = vld [vmem:[#allocation2 + $0x6c] sm:$0xff] }
  0x87   : > { %9877 = vmatmul.mubr.msk.f32.gmra.mxu0 %vm386_vm0, %v1871_v30  ;;  %v1876_v30 = vld [vmem:[#allocation2 + $0x65] sm:$0xff] }
  0x88   : > { %9879 = vmatprep.mubr.msk.f32.mxu0 %vm386_vm0, %v1872_v63  ;;  %v1513_v63 = vld [vmem:[#allocation2 + $0x7c] sm:$0xff] }
  0x89   : > { %9833 = vmatmul.mubr.msk.f32.gmra.mxu1 %vm386_vm0, %v1507_v11  ;;  %v1512_v11 = vld [vmem:[#allocation2 + $0x74] sm:$0xff] }
  0x8a   : > { %9835 = vmatprep.mubr.msk.f32.mxu1 %vm386_vm0, %v1508_v55  ;;  %v1877_v55 = vld [vmem:[#allocation2 + $0x6d] sm:$0xff] }
  0x8b   : > { %9880 = vmatmul.mubr.msk.f32.gmra.mxu0 %vm386_vm0, %v1873_v59  ;;  %v1878_v59 = vld [vmem:[#allocation2 + $0x75] sm:$0xff] }
  0x8c   : > { %9882 = vmatprep.mubr.msk.f32.mxu0 %vm386_vm0, %v1874_v8  ;;  %v1879_v8 = vld [vmem:[#allocation2 + $0x7d] sm:$0xff] }
  0x8d   : > { %9836 = vmatmul.mubr.msk.f32.gmra.mxu1 %vm386_vm0, %v1509_v3  ;;  %v1514_v3 = vld [vmem:[#allocation2 + $0x84] sm:$0xff] }
  0x8e   : > { %9838 = vmatprep.mubr.msk.f32.mxu1 %vm386_vm0, %v1510_v6  ;;  %v1515_v6 = vld [vmem:[#allocation2 + $0x8c] sm:$0xff] }
  0x8f   : > { %9883 = vmatmul.mubr.msk.f32.gmra.mxu0 %vm386_vm0, %v1875_v5  ;;  %v1880_v5 = vld [vmem:[#allocation2 + $0x85] sm:$0xff] }
  0x90   : > { %9885 = vmatprep.mubr.msk.f32.mxu0 %vm386_vm0, %v1876_v30  ;;  %v1881_v30 = vld [vmem:[#allocation2 + $0x8d] sm:$0xff] }
  0x91   : > { %9839 = vmatmul.mubr.msk.f32.gmra.mxu1 %vm386_vm0, %v1511_v10  ;;  %v1516_v10 = vld [vmem:[#allocation2 + $0x94] sm:$0xff] }
  0x92   : > { %9841 = vmatprep.mubr.msk.f32.mxu1 %vm386_vm0, %v1512_v11  ;;  %v1517_v11 = vld [vmem:[#allocation2 + $0x9c] sm:$0xff] }
  0x93   : > { %9886 = vmatmul.mubr.msk.f32.gmra.mxu0 %vm386_vm0, %v1877_v55  ;;  %v1882_v55 = vld [vmem:[#allocation2 + $0x95] sm:$0xff] }
  0x94   : > { %9888 = vmatprep.mubr.msk.f32.mxu0 %vm386_vm0, %v1878_v59  ;;  %v1883_v59 = vld [vmem:[#allocation2 + $0x9d] sm:$0xff] }
  0x95   : > { %9842 = vmatmul.mubr.msk.f32.gmra.mxu1 %vm386_vm0, %v1513_v63  ;;  %v1518_v63 = vld [vmem:[#allocation2 + $0xa4] sm:$0xff] }
  0x96   : > { %9844 = vmatprep.mubr.msk.f32.mxu1 %vm386_vm0, %v1514_v3  ;;  %v432_v3 = vld [vmem:[%s11594_s25] sm:$0xff] }
  0x97   : > { %9889 = vmatmul.mubr.msk.f32.gmra.mxu0 %vm386_vm0, %v1879_v8  ;;  %v1519_v8 = vld [vmem:[#allocation2 + $0xac] sm:$0xff] }
  0x98   : > { %9891 = vmatprep.mubr.msk.f32.mxu0 %vm386_vm0, %v1880_v5  ;;  %v11065_v5 = vmov 0  }
  0x99   : > { %9845 = vmatmul.mubr.msk.f32.gmra.mxu1 %vm386_vm0, %v1515_v6  ;;  %v1884_v6 = vld [vmem:[#allocation2 + $0xa5] sm:$0xff]  ;;  %10841 = vset.pattern.permute.xlu0 %v11065_v5 }
  0x9a   : > { %9847 = vmatprep.mubr.msk.f32.mxu1 %vm386_vm0, %v1516_v10  ;;  %v1520_v10 = vld [vmem:[#allocation2 + $0xb4] sm:$0xff]  ;;  %3915 = vperm.xlu0 %10841, %v432_v3  }
  0x9b   : > { %9892 = vmatmul.mubr.msk.f32.gmra.mxu0 %vm386_vm0, %v1881_v30  ;;  %10842 = vset.pattern.permute.xlu1 %v11065_v5  ;;  %v1885_v30 = vld [vmem:[#allocation2 + $0xad] sm:$0xff]  ;;  %v385_v3 = vld [vmem:[%s11166_s23 + $0x118] sm:$0x3] }
  0x9c   : > { %9894 = vmatprep.mubr.msk.f32.mxu0 %vm386_vm0, %v1882_v55  ;;  %v433_v55 = vld [vmem:[%s11594_s25 + $0x8] sm:$0xff]  ;;  %423 = vst.msk [vmem:[#allocation2 + $0x118] sm:$0x3] %vm422_vm1, %v385_v3 }
  0x9d   : > { %9848 = vmatmul.mubr.msk.f32.gmra.mxu1 %vm386_vm0, %v1517_v11  ;;  %v434_v11 = vld [vmem:[%s11594_s25 + $0x10] sm:$0xff]  ;;  %v1526_v3 = vld [vmem:[#allocation2 + $0xe4] sm:$0xff] }
  0x9e   : > { %9850 = vmatprep.mubr.msk.f32.mxu1 %vm386_vm0, %v1518_v63  ;;  %v1521_v63 = vld [vmem:[#allocation2 + $0xbc] sm:$0xff]  ;;  %3925 = vperm.xlu1 %10842, %v434_v11   ;;  %v1523_v5 = vld [vmem:[#allocation2 + $0xcc] sm:$0xff]  ;;  %v1524_v11 = vld [vmem:[#allocation2 + $0xd4] sm:$0xff] }
  0x9f   : > { %9895 = vmatmul.mubr.msk.f32.gmra.mxu0 %vm386_vm0, %v1883_v59  ;;  %3920 = vperm.xlu0 %10841, %v433_v55   ;;  %v1887_v59 = vld [vmem:[#allocation2 + $0xbd] sm:$0xff]  ;;  %v438_v55 = vld [vmem:[%s11594_s25 + $0x30] sm:$0xff] }
  0xa0   : > { %9897 = vmatprep.mubr.msk.f32.mxu0 %vm386_vm0, %v1884_v6  ;;  %v436_v6 = vld [vmem:[%s11594_s25 + $0x20] sm:$0xff] }
  0xa1   : > { %9851 = vmatmul.mubr.msk.f32.gmra.mxu1 %vm386_vm0, %v1519_v8  ;;  %v435_v8 = vld [vmem:[%s11594_s25 + $0x18] sm:$0xff] }
  0xa2   : > { %9853 = vmatprep.mubr.msk.f32.mxu1 %vm386_vm0, %v1520_v10  ;;  %v1888_v10 = vld [vmem:[#allocation2 + $0xc5] sm:$0xff]  ;;  %3930 = vperm.xlu1 %10842, %v435_v8   ;;  %v439_v8 = vld [vmem:[%s11594_s25 + $0x38] sm:$0xff] }
  0xa3   : > { %9898 = vmatmul.mubr.msk.f32.gmra.mxu0 %vm386_vm0, %v1885_v30  ;;  %3935 = vperm.xlu0 %10841, %v436_v6   ;;  %v437_v30 = vld [vmem:[%s11594_s25 + $0x28] sm:$0xff]  ;;  %v440_v6 = vld [vmem:[%s11594_s25 + $0x40] sm:$0xff] }
  0xa4   : > { %9900 = vmatprep.mubr.msk.f32.mxu0 %vm386_vm0, %v1886_v51  ;;  %v1889_v51 = vld [vmem:[#allocation2 + $0xcd] sm:$0xff] }
  0xa5   : > { %9854 = vmatmul.mubr.msk.f32.gmra.mxu1 %vm386_vm0, %v1521_v63  ;;  %v1525_v63 = vld [vmem:[#allocation2 + $0xdc] sm:$0xff] }
  0xa6   : > { %9856 = vmatprep.mubr.msk.f32.mxu1 %vm386_vm0, %v1522_v48  ;;  %v1890_v48 = vld [vmem:[#allocation2 + $0xd5] sm:$0xff]  ;;  %3940 = vperm.xlu1 %10842, %v437_v30   ;;  %v441_v30 = vld [vmem:[%s11594_s25 + $0x48] sm:$0xff] }
  0xa7   : > { %9901 = vmatmul.mubr.msk.f32.gmra.mxu0 %vm386_vm0, %v1887_v59  ;;  %3945 = vperm.xlu0 %10841, %v438_v55   ;;  %v1891_v59 = vld [vmem:[#allocation2 + $0xdd] sm:$0xff]  ;;  %v442_v55 = vld [vmem:[%s11594_s25 + $0x50] sm:$0xff] }
  0xa8   : > { %9903 = vmatprep.mubr.msk.f32.mxu0 %vm386_vm0, %v1888_v10  ;;  %v1892_v10 = vld [vmem:[#allocation2 + $0xe5] sm:$0xff] }
  0xa9   : > { %9857 = vmatmul.mubr.msk.f32.gmra.mxu1 %vm386_vm0, %v1523_v5  ;;  %v1527_v5 = vld [vmem:[#allocation2 + $0xec] sm:$0xff] }
  0xaa   : > { %9859 = vmatprep.mubr.msk.f32.mxu1 %vm386_vm0, %v1524_v11  ;;  %3950 = vperm.xlu1 %10842, %v439_v8   ;;  %v1528_v11 = vld [vmem:[#allocation2 + $0xf4] sm:$0xff] }
  0xab   : > { %9904 = vmatmul.mubr.msk.f32.gmra.mxu0 %vm386_vm0, %v1889_v51  ;;  %3955 = vperm.xlu0 %10841, %v440_v6   ;;  %v1893_v51 = vld [vmem:[#allocation2 + $0xed] sm:$0xff]  ;;  %v443_v8 = vld [vmem:[%s11594_s25 + $0x58] sm:$0xff]  ;;  %v444_v6 = vld [vmem:[%s11594_s25 + $0x60] sm:$0xff] }
  0xac   : > { %9906 = vmatprep.mubr.msk.f32.mxu0 %vm386_vm0, %v1890_v48  ;;  %v1894_v48 = vld [vmem:[#allocation2 + $0xf5] sm:$0xff] }
  0xad   : > { %9860 = vmatmul.mubr.msk.f32.gmra.mxu1 %vm386_vm0, %v1525_v63  ;;  %v1529_v63 = vld [vmem:[#allocation2 + $0xfc] sm:$0xff] }
  0xae   : > { %9862 = vmatprep.mubr.msk.f32.mxu1 %vm386_vm0, %v1526_v3  ;;  %3960 = vperm.xlu1 %10842, %v441_v30   ;;  %v2232_v3 = vld [vmem:[#allocation2 + $0x16] sm:$0xff]  ;;  %v2235_v30 = vld [vmem:[#allocation2 + $0x2e] sm:$0xff] }
  0xaf   : > { %9907 = vmatmul.mubr.msk.f32.gmra.mxu0 %vm386_vm0, %v1891_v59  ;;  %3965 = vperm.xlu0 %10841, %v442_v55   ;;  %v1895_v59 = vld [vmem:[#allocation2 + $0xfd] sm:$0xff] }
  0xb0   : > { %9909 = vmatprep.mubr.msk.f32.mxu0 %vm386_vm0, %v1892_v10  ;;  %v2234_v10 = vld [vmem:[#allocation2 + $0x26] sm:$0xff]  ;;  %v2236_v55 = vld [vmem:[#allocation2 + $0x36] sm:$0xff] }
  0xb1   : > { %9863 = vmatmul.mubr.msk.f32.gmra.mxu1 %vm386_vm0, %v1527_v5  ;;  %v2233_v5 = vld [vmem:[#allocation2 + $0x1e] sm:$0xff] }
  0xb2   : > { %9865 = vmatprep.mubr.msk.f32.mxu1 %vm386_vm0, %v1528_v11  ;;  %3970 = vperm.xlu1 %10842, %v443_v8   ;;  %v445_v11 = vld [vmem:[%s11594_s25 + $0x68] sm:$0xff] }
  0xb3   : > { %9910 = vmatmul.mubr.msk.f32.gmra.mxu0 %vm386_vm0, %v1893_v51  ;;  %3975 = vperm.xlu0 %10841, %v444_v6   ;;  %v446_v51 = vld [vmem:[%s11594_s25 + $0x70] sm:$0xff]  ;;  %v2242_v8 = vld [vmem:[#allocation2 + $0x66] sm:$0xff] }
  0xb4   : > { %9912 = vmatprep.mubr.msk.f32.mxu0 %vm386_vm0, %v1894_v48  ;;  %v2238_v48 = vld [vmem:[#allocation2 + $0x46] sm:$0xff]  ;;  %v2243_v6 = vld [vmem:[#allocation2 + $0x6e] sm:$0xff] }
  0xb5   : > { %9866 = vmatmul.mubr.msk.f32.gmra.mxu1 %vm386_vm0, %v1529_v63  ;;  %v448_v63 = vld [vmem:[%s11594_s25 + $0x80] sm:$0xff] }
  0xb6   : > { %9917 = vmatprep.mubr.msk.f32.mxu1 %vm386_vm0, %v2232_v3  ;;  %3980 = vperm.xlu1 %10842, %v445_v11   ;;  %v2239_v3 = vld [vmem:[#allocation2 + $0x4e] sm:$0xff]  ;;  %v2246_v11 = vld [vmem:[#allocation2 + $0x86] sm:$0xff] }
  0xb7   : > { %9913 = vmatmul.mubr.msk.f32.gmra.mxu0 %vm386_vm0, %v1895_v59  ;;  %3985 = vperm.xlu0 %10841, %v446_v51   ;;  %v2241_v59 = vld [vmem:[#allocation2 + $0x5e] sm:$0xff]  ;;  %v2247_v51 = vld [vmem:[#allocation2 + $0x8e] sm:$0xff] }
  0xb8   : > { %9964 = vmatprep.mubr.msk.f32.mxu0 %vm386_vm0, %v11328_v13  ;;  %v447_v13 = vld [vmem:[%s11594_s25 + $0x78] sm:$0xff] }
  0xb9   : > { %9918 = vmatmul.mubr.msk.f32.vlgmr.msra.gmra.mxu1 %vm386_vm0, %v2233_v5  ;;  %v2244_v5 = vld [vmem:[#allocation2 + $0x76] sm:$0xff] }
  0xba   : > { %10010 = vmatpush3.msra.mxu1 %v11543_v14  ;;  %9920 = vmatprep.mubr.msk.f32.mxu1 %vm386_vm0, %v2234_v10  ;;  %v2237_v14 = vld [vmem:[#allocation2 + $0x3e] sm:$0xff] }
  0xbb   : > { %9965 = vmatmul.mubr.msk.f32.vlgmr.msra.gmra.mxu0 %vm386_vm0, %v11330_v15  ;;  %3990 = vperm.xlu1 %10842, %v447_v13   ;;  %v449_v15 = vld [vmem:[%s11594_s25 + $0x88] sm:$0xff]  ;;  %v2245_v10 = vld [vmem:[#allocation2 + $0x7e] sm:$0xff] }
  0xbc   : > { %10057 = vmatpush3.msra.mxu0 %v11554_v1  ;;  %9967 = vmatprep.mubr.msk.f32.mxu0 %vm386_vm0, %v11341_v17  ;;  %v450_v1 = vld [vmem:[%s11594_s25 + $0x90] sm:$0xff]  ;;  %v2250_v13 = vld [vmem:[#allocation2 + $0xa6] sm:$0xff] }
  0xbd   : > { %9921 = vmatmul.mubr.msk.f32.gmra.mxu1 %vm386_vm0, %v2235_v30  ;;  %3995 = vperm.xlu0 %10841, %v448_v63   ;;  %v2240_v17 = vld [vmem:[#allocation2 + $0x56] sm:$0xff] }
  0xbe   : > { %9923 = vmatprep.mubr.msk.f32.mxu1 %vm386_vm0, %v2236_v55  ;;  %v2248_v30 = vld [vmem:[#allocation2 + $0x96] sm:$0xff]  ;;  %v460_v55 = vld [vmem:[%s11594_s25 + $0xe0] sm:$0xff] }
  0xbf   : > { %9968 = vmatmul.mubr.msk.f32.gmra.mxu0 %vm386_vm0, %v11345_v19  ;;  %4000 = vperm.xlu1 %10842, %v449_v15   ;;  %v451_v19 = vld [vmem:[%s11594_s25 + $0x98] sm:$0xff] }
  0xc0   : > { %9970 = vmatprep.mubr.msk.f32.mxu0 %vm386_vm0, %v11357_v21  ;;  %v452_v21 = vld [vmem:[%s11594_s25 + $0xa0] sm:$0xff]  ;;  %v2252_v63 = vld [vmem:[#allocation2 + $0xb6] sm:$0xff] }
  0xc1   : > { %9924 = vmatmul.mubr.msk.f32.gmra.mxu1 %vm386_vm0, %v2237_v14  ;;  %4005 = vperm.xlu0 %10841, %v450_v1   ;;  %v2254_v14 = vld [vmem:[#allocation2 + $0xc6] sm:$0xff] }
  0xc2   : > { %9926 = vmatprep.mubr.msk.f32.mxu1 %vm386_vm0, %v2238_v48  ;;  %v2258_v1 = vld [vmem:[#allocation2 + $0xe6] sm:$0xff] }
  0xc3   : > { %9971 = vmatmul.mubr.msk.f32.gmra.mxu0 %vm386_vm0, %v11361_v23  ;;  %4010 = vperm.xlu1 %10842, %v451_v19   ;;  %v453_v23 = vld [vmem:[%s11594_s25 + $0xa8] sm:$0xff] }
  0xc4   : > { %9973 = vmatprep.mubr.msk.f32.mxu0 %vm386_vm0, %v11373_v25  ;;  %v454_v25 = vld [vmem:[%s11594_s25 + $0xb0] sm:$0xff] }
  0xc5   : > { %9927 = vmatmul.mubr.msk.f32.gmra.mxu1 %vm386_vm0, %v2239_v3  ;;  %4015 = vperm.xlu0 %10841, %v452_v21   ;;  %v2259_v19 = vld [vmem:[#allocation2 + $0xee] sm:$0xff]  ;;  %v2624_v21 = vld [vmem:[#allocation2 + $0xf8] sm:$0xff] }
  0xc6   : > { %9929 = vmatprep.mubr.msk.f32.mxu1 %vm386_vm0, %v2240_v17 }
  0xc7   : > { %9974 = vmatmul.mubr.msk.f32.gmra.mxu0 %vm386_vm0, %v11377_v27  ;;  %4020 = vperm.xlu1 %10842, %v453_v23   ;;  %v455_v27 = vld [vmem:[%s11594_s25 + $0xb8] sm:$0xff] }
  0xc8   : > { %9976 = vmatprep.mubr.msk.f32.mxu0 %vm386_vm0, %v11392_v31  ;;  %v456_v31 = vld [vmem:[%s11594_s25 + $0xc0] sm:$0xff] }
  0xc9   : > { %9930 = vmatmul.mubr.msk.f32.gmra.mxu1 %vm386_vm0, %v2241_v59  ;;  %4025 = vperm.xlu0 %10841, %v454_v25  }
  0xca   : > { %9932 = vmatprep.mubr.msk.f32.mxu1 %vm386_vm0, %v2242_v8  ;;  %v2260_v8 = vld [vmem:[#allocation2 + $0xf6] sm:$0xff] }
  0xcb   : > { %9977 = vmatmul.mubr.msk.f32.gmra.mxu0 %vm386_vm0, %v11397_v33  ;;  %4030 = vperm.xlu1 %10842, %v455_v27   ;;  %v457_v33 = vld [vmem:[%s11594_s25 + $0xc8] sm:$0xff] }
  0xcc   : > { %9979 = vmatprep.mubr.msk.f32.mxu0 %vm386_vm0, %v11409_v35  ;;  %v458_v35 = vld [vmem:[%s11594_s25 + $0xd0] sm:$0xff] }
  0xcd   : > { %9933 = vmatmul.mubr.msk.f32.gmra.mxu1 %vm386_vm0, %v2243_v6  ;;  %4035 = vperm.xlu0 %10841, %v456_v31   ;;  %v2261_v6 = vld [vmem:[#allocation2 + $0xfe] sm:$0xff] }
  0xce   : > { %9935 = vmatprep.mubr.msk.f32.mxu1 %vm386_vm0, %v2244_v5  ;;  %v2626_v5 = vld [vmem:[#allocation2 + $0x108] sm:$0xff] }
  0xcf   : > { %9980 = vmatmul.mubr.msk.f32.gmra.mxu0 %vm386_vm0, %v11413_v37  ;;  %4040 = vperm.xlu1 %10842, %v457_v33   ;;  %v459_v37 = vld [vmem:[%s11594_s25 + $0xd8] sm:$0xff] }
  0xd0   : > { %9982 = vmatprep.mubr.msk.f32.mxu0 %vm386_vm0, %v11425_v39  ;;  %v2249_v39 = vld [vmem:[#allocation2 + $0x9e] sm:$0xff] }
  0xd1   : > { %9936 = vmatmul.mubr.msk.f32.gmra.mxu1 %vm386_vm0, %v2245_v10  ;;  %4045 = vperm.xlu0 %10841, %v458_v35  }
  0xd2   : > { %9938 = vmatprep.mubr.msk.f32.mxu1 %vm386_vm0, %v2246_v11  ;;  %v2627_v11 = vld [vmem:[#allocation2 + $0x110] sm:$0xff] }
  0xd3   : > { %9983 = vmatmul.mubr.msk.f32.gmra.mxu0 %vm386_vm0, %v11429_v42  ;;  %4050 = vperm.xlu1 %10842, %v459_v37   ;;  %v461_v42 = vld [vmem:[%s11594_s25 + $0xe8] sm:$0xff]  ;;  %s14355_s25 = scalar_lea.vmem %s14579_s8, %s8315_s28 }
  0xd4   : > { %9985 = vmatprep.mubr.msk.f32.mxu0 %vm386_vm0, %v11441_v45  ;;  %v2251_v45 = vld [vmem:[#allocation2 + $0xae] sm:$0xff] }
  0xd5   : > { %9939 = vmatmul.mubr.msk.f32.gmra.mxu1 %vm386_vm0, %v2247_v51  ;;  %4055 = vperm.xlu0 %10841, %v460_v55  }
  0xd6   : > { %9941 = vmatprep.mubr.msk.f32.mxu1 %vm386_vm0, %v2248_v30 }
  0xd7   : > { %9986 = vmatmul.mubr.msk.f32.gmra.mxu0 %vm386_vm0, %v11445_v47  ;;  %4060 = vperm.xlu1 %10842, %v461_v42   ;;  %v2253_v47 = vld [vmem:[#allocation2 + $0xbe] sm:$0xff] }
  0xd8   : > { %9988 = vmatprep.mubr.msk.f32.mxu0 %vm386_vm0, %v11457_v49  ;;  %v2255_v49 = vld [vmem:[#allocation2 + $0xce] sm:$0xff] }
  0xd9   : > { %9942 = vmatmul.mubr.msk.f32.gmra.mxu1 %vm386_vm0, %v2249_v39 }
  0xda   : > { %9944 = vmatprep.mubr.msk.f32.mxu1 %vm386_vm0, %v2250_v13 }
  0xdb   : > { %9989 = vmatmul.mubr.msk.f32.gmra.mxu0 %vm386_vm0, %v11461_v53  ;;  %v2256_v53 = vld [vmem:[#allocation2 + $0xd6] sm:$0xff] }
  0xdc   : > { %9991 = vmatprep.mubr.msk.f32.mxu0 %vm386_vm0, %v11473_v57 }
  0xdd   : > { %9945 = vmatmul.mubr.msk.f32.gmra.mxu1 %vm386_vm0, %v2251_v45 }
  0xde   : > { %9947 = vmatprep.mubr.msk.f32.mxu1 %vm386_vm0, %v2252_v63 }
  0xdf   : > { %9992 = vmatmul.mubr.msk.f32.gmra.mxu0 %vm386_vm0, %v11477_v61 }
  0xe0   : > { %9994 = vmatprep.mubr.msk.f32.mxu0 %vm386_vm0, %v11493_v4  ;;  %v2257_v4 = vld [vmem:[#allocation2 + $0xde] sm:$0xff] }
  0xe1   : > { %9948 = vmatmul.mubr.msk.f32.gmra.mxu1 %vm386_vm0, %v2253_v47 }
  0xe2   : > { %9950 = vmatprep.mubr.msk.f32.mxu1 %vm386_vm0, %v2254_v14  ;;  %v11721_v48 = vpop.f32.mrf.mxu0 }
  0xe3   : > { %9995 = vmatmul.mubr.msk.f32.gmra.mxu0 %vm386_vm0, %v11497_v7 }
  0xe4   : > { %9997 = vmatprep.mubr.msk.f32.mxu0 %vm386_vm0, %v11509_v9  ;;  %v11730_v61 = vpop.f32.mrf.mxu0  ;;  %v2623_v9 = vld [vmem:[#allocation2 + $0xf0] sm:$0xff] }
  0xe5   : > { %v11725_v57 = vpop.f32.mrf.mxu1  ;;  %9951 = vmatmul.mubr.msk.f32.gmra.mxu1 %vm386_vm0, %v2255_v49 }
  0xe6   : > { %9953 = vmatprep.mubr.msk.f32.mxu1 %vm386_vm0, %v2256_v53 }
  0xe7   : > { %v11733_v15 = vpop.f32.mrf.mxu1  ;;  %v11735_v3 = vpop.f32.mrf.mxu0  ;;  %9998 = vmatmul.mubr.msk.f32.gmra.mxu0 %vm386_vm0, %v11513_v12 }
  0xe8   : > { %10000 = vmatprep.mubr.msk.f32.mxu0 %vm386_vm0, %v11525_v28  ;;  %v2625_v28 = vld [vmem:[#allocation2 + $0x100] sm:$0xff] }
  0xe9   : > { %v11739_v7 = vpop.f32.mrf.mxu1  ;;  %9954 = vmatmul.mubr.msk.f32.gmra.mxu1 %vm386_vm0, %v2257_v4  ;;  %v11744_v17 = vpop.f32.mrf.mxu0 }
  0xea   : > { %9956 = vmatprep.mubr.msk.f32.mxu1 %vm386_vm0, %v2258_v1  ;;  %v2978_v1 = vld [vmem:[#allocation2 + $0x99] sm:$0xff] }
  0xeb   : > { %v11747_v59 = vpop.f32.mrf.mxu1  ;;  %v11749_v23 = vpop.f32.mrf.mxu0  ;;  %10001 = vmatmul.mubr.msk.f32.gmra.mxu0 %vm386_vm0, %v2623_v9 }
  0xec   : > { %10003 = vmatprep.mubr.msk.f32.mxu0 %vm386_vm0, %v2624_v21  ;;  %v2979_v21 = vld [vmem:[#allocation2 + $0xa1] sm:$0xff] }
  0xed   : > { %v11752_v12 = vpop.f32.mrf.mxu1  ;;  %9957 = vmatmul.mubr.msk.f32.gmra.mxu1 %vm386_vm0, %v2259_v19  ;;  %v11756_v25 = vpop.f32.mrf.mxu0 }
  0xee   : > { %9959 = vmatprep.mubr.msk.f32.mxu1 %vm386_vm0, %v2260_v8 }
  0xef   : > { %v11759_v27 = vpop.f32.mrf.mxu1  ;;  %v11761_v31 = vpop.f32.mrf.mxu0  ;;  %10004 = vmatmul.mubr.msk.f32.gmra.mxu0 %vm386_vm0, %v2625_v28  ;;  %v2980_v28 = vld [vmem:[#allocation2 + $0xa9] sm:$0xff] }
  0xf0   : > { %10006 = vmatprep.mubr.msk.f32.mxu0 %vm386_vm0, %v2626_v5 }
  0xf1   : > { %v11764_v10 = vpop.f32.mrf.mxu1  ;;  %9960 = vmatmul.mubr.msk.f32.gmra.mxu1 %vm386_vm0, %v2261_v6  ;;  %v11768_v33 = vpop.f32.mrf.mxu0 }
  0xf2   : > { %10011 = vmatprep.mubr.msk.f32.mxu1 %vm386_vm0, %v11243_v41 }
  0xf3   : > { %v11772_v35 = vpop.f32.mrf.mxu1  ;;  %v11774_v51 = vpop.f32.mrf.mxu0  ;;  %10007 = vmatmul.mubr.msk.f32.gmra.mxu0 %vm386_vm0, %v2627_v11 }
  0xf4   : > { %10058 = vmatprep.mubr.msk.f32.mxu0 %vm386_vm0, %v11337_v16 }
  0xf5   : > { %v11777_v30 = vpop.f32.mrf.mxu1  ;;  %10012 = vmatmul.mubr.msk.f32.vlgmr.msra.gmra.mxu1 %vm386_vm0, %v11246_v43  ;;  %v11783_v37 = vpop.f32.mrf.mxu0 }
  0xf6   : > { %10014 = vmatprep.mubr.msk.f32.mxu1 %vm386_vm0, %v11262_v50 }
  0xf7   : > { %v11787_v41 = vpop.f32.mrf.mxu1  ;;  %v11789_v55 = vpop.f32.mrf.mxu0  ;;  %10059 = vmatmul.mubr.msk.f32.vlgmr.msra.gmra.mxu0 %vm386_vm0, %v11343_v18 }
  0xf8   : > { %10061 = vmatprep.mubr.msk.f32.mxu0 %vm386_vm0, %v11353_v20 }
  0xf9   : > { %v11793_v39 = vpop.f32.mrf.mxu1  ;;  %10015 = vmatmul.mubr.msk.f32.gmra.mxu1 %vm386_vm0, %v11266_v52  ;;  %v11799_v43 = vpop.f32.mrf.mxu0 }
  0xfa   : > { %10017 = vmatprep.mubr.msk.f32.mxu1 %vm386_vm0, %v11273_v54 }
  0xfb   : > { %v11803_v50 = vpop.f32.mrf.mxu1  ;;  %v11805_v16 = vpop.f32.mrf.mxu0  ;;  %10062 = vmatmul.mubr.msk.f32.gmra.mxu0 %vm386_vm0, %v11359_v22 }
  0xfc   : > { %10064 = vmatprep.mubr.msk.f32.mxu0 %vm386_vm0, %v11369_v24 }
  0xfd   : > { %v11809_v18 = vpop.f32.mrf.mxu1  ;;  %10018 = vmatmul.mubr.msk.f32.gmra.mxu1 %vm386_vm0, %v11276_v56  ;;  %v11815_v52 = vpop.f32.mrf.mxu0 }
  0xfe   : > { %10020 = vmatprep.mubr.msk.f32.mxu1 %vm386_vm0, %v11283_v58 }
  0xff   : > { %v11819_v54 = vpop.f32.mrf.mxu1  ;;  %v11821_v20 = vpop.f32.mrf.mxu0  ;;  %10065 = vmatmul.mubr.msk.f32.gmra.mxu0 %vm386_vm0, %v11375_v26 }
 0x100   : > { %10067 = vmatprep.mubr.msk.f32.mxu0 %vm386_vm0, %v11386_v29 }
 0x101   : > { %v9731_v22 = vpop.f32.mrf.mxu1  ;;  %10021 = vmatmul.mubr.msk.f32.gmra.mxu1 %vm386_vm0, %v11286_v60  ;;  %v11830_v24 = vpop.f32.mrf.mxu0 }
 0x102   : > { %v991_v56 = vadd.f32 %v9731_v22, %v11721_v48  ;;  %10023 = vmatprep.mubr.msk.f32.mxu1 %vm386_vm0, %v11293_v62  ;;  %v2975_v62 = vld [vmem:[#allocation2 + $0x81] sm:$0xff]  ;;  %v2977_v48 = vld [vmem:[#allocation2 + $0x91] sm:$0xff] }
 0x103   : > { %v985_v58 = vpop.f32.mrf.mxu1  ;;  %v9778_v42 = vpop.f32.mrf.mxu0  ;;  %10068 = vmatmul.mubr.msk.f32.gmra.mxu0 %vm386_vm0, %v11394_v32  ;;  %v2976_v32 = vld [vmem:[#allocation2 + $0x89] sm:$0xff]  ;;  %v2981_v22 = vld [vmem:[#allocation2 + $0xb1] sm:$0xff] }
 0x104   : > { %v986_v13 = vadd.f32 %v985_v58, %v11730_v61  ;;  %v11837_v45 = vadd.f32 %v9778_v42, %v991_v56  ;;  %10070 = vmatprep.mubr.msk.f32.mxu0 %vm386_vm0, %v11405_v34  ;;  %v2982_v58 = vld [vmem:[#allocation2 + $0xb9] sm:$0xff] }
 0x105   : > { %v9734_v26 = vpop.f32.mrf.mxu1  ;;  %10024 = vmatmul.mubr.msk.f32.gmra.mxu1 %vm386_vm0, %v11296_v0  ;;  %v1321_v29 = vpop.f32.mrf.mxu0 }
 0x106   : > { %v1001_v60 = vadd.f32 %v9734_v26, %v11735_v3  ;;  %10026 = vmatprep.mubr.msk.f32.mxu1 %vm386_vm0, %v11303_v2  ;;  %v11846_v47 = vadd.f32 %v1321_v29, %v986_v13  ;;  %v14603_v13 = vld [vmem:[#allocation5_spill] sm:$0xff] }
 0x107   : > { %v995_v63 = vpop.f32.mrf.mxu1  ;;  %v9781_v49 = vpop.f32.mrf.mxu0  ;;  %10071 = vmatmul.mubr.msk.f32.gmra.mxu0 %vm386_vm0, %v11411_v36 }
 0x108   : > { %v996_v14 = vadd.f32 %v995_v63, %v11744_v17  ;;  %v11851_v53 = vadd.f32 %v9781_v49, %v1001_v60  ;;  %10073 = vmatprep.mubr.msk.f32.mxu0 %vm386_vm0, %v11421_v38  ;;  %v14604_v60 = vld [vmem:[#allocation6_spill] sm:$0xff]  ;;  %v14605_v49 = vld [vmem:[#allocation7_spill] sm:$0xff] }
 0x109   : > { %v9737_v0 = vpop.f32.mrf.mxu1  ;;  %10027 = vmatmul.mubr.msk.f32.gmra.mxu1 %vm386_vm0, %v2975_v62  ;;  %v1331_v34 = vpop.f32.mrf.mxu0  ;;  %v2983_v62 = vld [vmem:[#allocation2 + $0xc1] sm:$0xff] }
 0x10a   : > { %v1011_v2 = vadd.f32 %v9737_v0, %v11749_v23  ;;  %10029 = vmatprep.mubr.msk.f32.mxu1 %vm386_vm0, %v2976_v32  ;;  %v11858_v4 = vadd.f32 %v1331_v34, %v996_v14  ;;  %v2984_v32 = vld [vmem:[#allocation2 + $0xc9] sm:$0xff]  ;;  %v14606_v34 = vld [vmem:[#allocation8_spill] sm:$0xff] }
 0x10b   : > { %v1005_v61 = vpop.f32.mrf.mxu1  ;;  %v9784_v3 = vpop.f32.mrf.mxu0  ;;  %10074 = vmatmul.mubr.msk.f32.gmra.mxu0 %vm386_vm0, %v11427_v40 }
 0x10c   : > { %v1006_v36 = vadd.f32 %v1005_v61, %v11756_v25  ;;  %v11863_v17 = vadd.f32 %v9784_v3, %v1011_v2  ;;  %10076 = vmatprep.mubr.msk.f32.mxu0 %vm386_vm0, %v11437_v44  ;;  %v14602_v44 = vld [vmem:[#allocation4_spill] sm:$0xff]  ;;  %v2985_v61 = vld [vmem:[#allocation2 + $0xd1] sm:$0xff] }
 0x10d   : > { %v9740_v9 = vpop.f32.mrf.mxu1  ;;  %10030 = vmatmul.mubr.msk.f32.gmra.mxu1 %vm386_vm0, %v2977_v48  ;;  %v1341_v19 = vpop.f32.mrf.mxu0 }
 0x10e   : > { %v1021_v38 = vadd.f32 %v9740_v9, %v11761_v31  ;;  %10032 = vmatprep.mubr.msk.f32.mxu1 %vm386_vm0, %v2978_v1  ;;  %v11870_v23 = vadd.f32 %v1341_v19, %v1006_v36  ;;  %v2986_v36 = vld [vmem:[#allocation2 + $0xd9] sm:$0xff]  ;;  %v14607_v9 = vld [vmem:[#allocation9_spill] sm:$0xff] }
 0x10f   : > { %v1015_v8 = vpop.f32.mrf.mxu1  ;;  %v9787_v25 = vpop.f32.mrf.mxu0  ;;  %10077 = vmatmul.mubr.msk.f32.gmra.mxu0 %vm386_vm0, %v11443_v46 }
 0x110   : > { %v1016_v40 = vadd.f32 %v1015_v8, %v11768_v33  ;;  %v11875_v5 = vadd.f32 %v9787_v25, %v1021_v38  ;;  %10079 = vmatprep.mubr.msk.f32.mxu0 %vm386_vm0, %v14602_v44  ;;  %v2988_v25 = vld [vmem:[#allocation2 + $0xe9] sm:$0xff]  ;;  %v14609_v44 = vld [vmem:[#allocation11_spill] sm:$0xff] }
 0x111   : > { %v9743_v6 = vpop.f32.mrf.mxu1  ;;  %10033 = vmatmul.mubr.msk.f32.gmra.mxu1 %vm386_vm0, %v2979_v21  ;;  %v1351_v11 = vpop.f32.mrf.mxu0  ;;  %v14608_v21 = vld [vmem:[#allocation10_spill] sm:$0xff] }
 0x112   : > { %v1031_v31 = vadd.f32 %v9743_v6, %v11774_v51  ;;  %10035 = vmatprep.mubr.msk.f32.mxu1 %vm386_vm0, %v2980_v28  ;;  %v11884_v33 = vadd.f32 %v1351_v11, %v1016_v40  ;;  %v2987_v28 = vld [vmem:[#allocation2 + $0xe1] sm:$0xff] }
 0x113   : > { %v11882_v56 = vpop.f32.mrf.mxu1  ;;  %v9790_v46 = vpop.f32.mrf.mxu0  ;;  %10080 = vmatmul.mubr.msk.f32.gmra.mxu0 %vm386_vm0, %v14603_v13  ;;  %v2989_v13 = vld [vmem:[#allocation2 + $0xf1] sm:$0xff] }
 0x114   : > { %v11888_v26 = vadd.f32 %v9790_v46, %v1031_v31  ;;  %10082 = vmatprep.mubr.msk.f32.mxu0 %vm386_vm0, %v14604_v60  ;;  %v4206_v31 = vld [vmem:[%s14575_s4 + $0xb8] sm:$0xff] }
 0x115   : > { %v9746_v42 = vpop.f32.mrf.mxu1  ;;  %10036 = vmatmul.mubr.msk.f32.gmra.mxu1 %vm386_vm0, %v2981_v22  ;;  %v11894_v29 = vpop.f32.mrf.mxu0  ;;  %10103 = vmatprep.subr.mxu1 %v4206_v31  ;;  %v2990_v60 = vld [vmem:[#allocation2 + $0xf9] sm:$0xff] }
 0x116   : > { %v1041_v51 = vadd.f32 %v9746_v42, %v11789_v55  ;;  %10038 = vmatprep.mubr.msk.f32.mxu1 %vm386_vm0, %v2982_v58  ;;  %10104 = vmatpush3.msra.mxu1 %v4206_v31  ;;  %v4204_v31 = vld [vmem:[%s14575_s4 + $0xa8] sm:$0xff] }
 0x117   : > { %v11897_v63 = vpop.f32.mrf.mxu1  ;;  %v9793_v14 = vpop.f32.mrf.mxu0  ;;  %10083 = vmatmul.mubr.msk.f32.gmra.mxu0 %vm386_vm0, %v14605_v49  ;;  %v14612_v49 = vld [vmem:[#allocation14_spill] sm:$0xff] }
 0x118   : > { %v11901_v2 = vadd.f32 %v9793_v14, %v1041_v51  ;;  %10085 = vmatprep.mubr.msk.f32.mxu0 %vm386_vm0, %v14606_v34 }
 0x119   : > { %v9749_v0 = vpop.f32.mrf.mxu1  ;;  %10039 = vmatmul.mubr.msk.f32.gmra.mxu1 %vm386_vm0, %v2983_v62  ;;  %v11907_v48 = vpop.f32.mrf.mxu0  ;;  %v14611_v62 = vld [vmem:[#allocation13_spill] sm:$0xff] }
 0x11a   : > { %v1051_v55 = vadd.f32 %v9749_v0, %v11805_v16  ;;  %10041 = vmatprep.mubr.msk.f32.mxu1 %vm386_vm0, %v2984_v32  ;;  %v4205_v32 = vld [vmem:[%s14575_s4 + $0xb0] sm:$0xff] }
 0x11b   : > { %v11910_v1 = vpop.f32.mrf.mxu1  ;;  %v9796_v3 = vpop.f32.mrf.mxu0  ;;  %10086 = vmatmul.mubr.msk.f32.gmra.mxu0 %vm386_vm0, %v14607_v9  ;;  %v3355_v0 = vld [vmem:[#allocation2 + $0xf2] sm:$0xff]  ;;  %10105 = vmatprep.subr.mxu1 %v4205_v32  ;;  %v2992_v9 = vld [vmem:[#allocation2 + $0x109] sm:$0xff] }
 0x11c   : > { %v11914_v19 = vadd.f32 %v9796_v3, %v1051_v55  ;;  %10088 = vmatprep.mubr.msk.f32.mxu0 %vm386_vm0, %v14608_v21  ;;  %10106 = vmatpush3.msra.mxu1 %v4205_v32 }
 0x11d   : > { %v9752_v38 = vpop.f32.mrf.mxu1  ;;  %10042 = vmatmul.mubr.msk.f32.gmra.mxu1 %vm386_vm0, %v2985_v61  ;;  %v11920_v8 = vpop.f32.mrf.mxu0  ;;  %v2991_v61 = vld [vmem:[#allocation2 + $0x101] sm:$0xff]  ;;  %10107 = vmatprep.subr.mxu1 %v4204_v31 }
 0x11e   : > { %v1061_v16 = vadd.f32 %v9752_v38, %v11821_v20  ;;  %10044 = vmatprep.mubr.msk.f32.mxu1 %vm386_vm0, %v2986_v36  ;;  %v14610_v20 = vld [vmem:[#allocation12_spill] sm:$0xff]  ;;  %10108 = vmatpush3.msra.mxu1 %v4204_v31 }
 0x11f   : > { %v11923_v40 = vpop.f32.mrf.mxu1  ;;  %v9799_v6 = vpop.f32.mrf.mxu0  ;;  %10089 = vmatmul.mubr.msk.f32.gmra.mxu0 %vm386_vm0, %v14609_v44  ;;  %v3356_v36 = vld [vmem:[#allocation2 + $0xfa] sm:$0xff]  ;;  %v3358_v44 = vld [vmem:[#allocation2 + $0x10a] sm:$0xff] }
 0x120   : > { %v11930_v22 = vadd.f32 %v9799_v6, %v1061_v16  ;;  %10091 = vmatprep.mubr.msk.f32.mxu0 %vm386_vm0, %v14610_v20  ;;  %v2993_v6 = vld [vmem:[#allocation2 + $0x111] sm:$0xff] }
 0x121   : > { %v9755_v11 = vpop.f32.mrf.mxu1  ;;  %10045 = vmatmul.mubr.msk.f32.gmra.mxu1 %vm386_vm0, %v2987_v28  ;;  %v11936_v46 = vpop.f32.mrf.mxu0 }
 0x122   : > { %v1071_v58 = vadd.f32 %v9755_v11, %v11725_v57  ;;  %10047 = vmatprep.mubr.msk.f32.mxu1 %vm386_vm0, %v2988_v25 }
 0x123   : > { %v11939_v42 = vpop.f32.mrf.mxu1  ;;  %v9802_v51 = vpop.f32.mrf.mxu0  ;;  %10092 = vmatmul.mubr.msk.f32.gmra.mxu0 %vm386_vm0, %v14611_v62  ;;  %v4203_v62 = vld [vmem:[%s14575_s4 + $0xa0] sm:$0xff] }
 0x124   : > { %v11946_v57 = vadd.f32 %v9802_v51, %v1071_v58  ;;  %10094 = vmatprep.mubr.msk.f32.mxu0 %vm386_vm0, %v14612_v49  ;;  %10109 = vmatprep.subr.mxu1 %v4203_v62 }
 0x125   : > { %v9758_v14 = vpop.f32.mrf.mxu1  ;;  %10048 = vmatmul.mubr.msk.f32.gmra.mxu1 %vm386_vm0, %v2989_v13  ;;  %v11952_v55 = vpop.f32.mrf.mxu0 }
 0x126   : > { %v1081_v34 = vadd.f32 %v9758_v14, %v11739_v7  ;;  %10050 = vmatprep.mubr.msk.f32.mxu1 %vm386_vm0, %v2990_v60  ;;  %v3357_v7 = vld [vmem:[#allocation2 + $0x102] sm:$0xff]  ;;  %10110 = vmatpush3.msra.mxu1 %v4203_v62 }
 0x127   : > { %v11955_v3 = vpop.f32.mrf.mxu1  ;;  %v9805_v38 = vpop.f32.mrf.mxu0  ;;  %10095 = vmatmul.mubr.msk.f32.gmra.mxu0 %vm386_vm0, %v3355_v0 }
 0x128   : > { %v11958_v16 = vadd.f32 %v9805_v38, %v1081_v34  ;;  %10097 = vmatprep.mubr.msk.f32.mxu0 %vm386_vm0, %v3356_v36 }
 0x129   : > { %v9761_v21 = vpop.f32.mrf.mxu1  ;;  %10051 = vmatmul.mubr.msk.f32.gmra.mxu1 %vm386_vm0, %v2991_v61  ;;  %v11963_v25 = vpop.f32.mrf.mxu0 }
 0x12a   : > { %v1091_v28 = vadd.f32 %v9761_v21, %v11752_v12  ;;  %10053 = vmatprep.mubr.msk.f32.mxu1 %vm386_vm0, %v2992_v9  ;;  %v3359_v12 = vld [vmem:[#allocation2 + $0x112] sm:$0xff] }
 0x12b   : > { %v11969_v11 = vpop.f32.mrf.mxu1  ;;  %v9808_v20 = vpop.f32.mrf.mxu0  ;;  %10098 = vmatmul.mubr.msk.f32.gmra.mxu0 %vm386_vm0, %v3357_v7  ;;  %v4202_v9 = vld [vmem:[%s14575_s4 + $0x98] sm:$0xff] }
 0x12c   : > { %v11972_v13 = vadd.f32 %v9808_v20, %v1091_v28  ;;  %10100 = vmatprep.mubr.msk.f32.mxu0 %vm386_vm0, %v3358_v44  ;;  %10111 = vmatprep.subr.mxu1 %v4202_v9  ;;  %v4201_v44 = vld [vmem:[%s14575_s4 + $0x90] sm:$0xff] }
 0x12d   : > { %v9764_v58 = vpop.f32.mrf.mxu1  ;;  %10054 = vmatmul.mubr.msk.f32.gmra.mxu1 %vm386_vm0, %v2993_v6  ;;  %v11977_v51 = vpop.f32.mrf.mxu0 }
 0x12e   : > { %v1101_v60 = vadd.f32 %v9764_v58, %v11764_v10  ;;  %10112 = vmatpush3.msra.mxu1 %v4202_v9 }
 0x12f   : > { %v11982_v32 = vpop.f32.mrf.mxu1  ;;  %v9811_v14 = vpop.f32.mrf.mxu0  ;;  %10101 = vmatmul.mubr.msk.f32.gmra.mxu0 %vm386_vm0, %v3359_v12  ;;  %10113 = vmatprep.subr.mxu1 %v4201_v44 }
 0x130   : > { %v11985_v0 = vadd.f32 %v9811_v14, %v1101_v60  ;;  %10114 = vmatpush3.msra.mxu1 %v4201_v44 }
 0x131   : > { %v9767_v49 = vpop.f32.mrf.mxu1  ;;  %v11988_v61 = vpop.f32.mrf.mxu0 }
 0x132   : > { %v1111_v34 = vadd.f32 %v9767_v49, %v11777_v30 }
 0x133   : > { %v11990_v10 = vpop.f32.mrf.mxu1  ;;  %v9814_v36 = vpop.f32.mrf.mxu0 }
 0x134   : > { %v11995_v21 = vadd.f32 %v9814_v36, %v1111_v34 }
 0x135   : > { %v9770_v38 = vpop.f32.mrf.mxu1  ;;  %v11998_v28 = vpop.f32.mrf.mxu0 }
 0x136   : > { %v1121_v7 = vadd.f32 %v9770_v38, %v11793_v39 }
 0x137   : > { %v12000_v6 = vpop.f32.mrf.mxu1  ;;  %v9817_v30 = vpop.f32.mrf.mxu0 }
 0x138   : > { %v12005_v20 = vadd.f32 %v9817_v30, %v1121_v7 }
 0x139   : > { %v9773_v31 = vpop.f32.mrf.mxu1  ;;  %v12008_v12 = vpop.f32.mrf.mxu0 }
 0x13a   : > { %v1131_v58 = vadd.f32 %v9773_v31, %v11809_v18  ;;  %v4164_v18 = vld [vmem:[%s14575_s4 + $0x58] sm:$0xff] }
 0x13b   : > { %v12010_v39 = vpop.f32.mrf.mxu1  ;;  %v9820_v60 = vpop.f32.mrf.mxu0  ;;  %10172 = vmatprep.subr.mxu0 %v4164_v18 }
 0x13c   : > { %v12012_v62 = vadd.f32 %v9820_v60, %v1131_v58  ;;  %10173 = vmatpush3.msra.mxu0 %v4164_v18  ;;  %v4161_v18 = vld [vmem:[%s14575_s4 + $0x40] sm:$0xff] }
 0x13d   : > { %v9825_v14 = vpop.f32.mrf.mxu1  ;;  %v12015_v34 = vpop.f32.mrf.mxu0 }
 0x13e   : > { %v1837_v49 = vadd.f32 %v9825_v14, %v11837_v45  ;;  %v4163_v45 = vld [vmem:[%s14575_s4 + $0x50] sm:$0xff] }
 0x13f   : > { %v12017_v36 = vpop.f32.mrf.mxu1  ;;  %v9872_v9 = vpop.f32.mrf.mxu0  ;;  %10174 = vmatprep.subr.mxu0 %v4163_v45 }
 0x140   : > { %v12019_v7 = vadd.f32 %v9872_v9, %v1837_v49  ;;  %10175 = vmatpush3.msra.mxu0 %v4163_v45 }
 0x141   : > { %v9828_v38 = vpop.f32.mrf.mxu1  ;;  %v12025_v44 = vpop.f32.mrf.mxu0 }
 0x142   : > { %14613 = vst [vmem:[#allocation4_spill] sm:$0xff] %v12019_v7  ;;  %v1839_v30 = vadd.f32 %v9828_v38, %v11851_v53  ;;  %v4162_v53 = vld [vmem:[%s14575_s4 + $0x48] sm:$0xff] }
 0x143   : > { %v12027_v31 = vpop.f32.mrf.mxu1  ;;  %v9875_v58 = vpop.f32.mrf.mxu0  ;;  %10176 = vmatprep.subr.mxu0 %v4162_v53 }
 0x144   : > { %v12032_v14 = vadd.f32 %v9875_v58, %v1839_v30  ;;  %10177 = vmatpush3.msra.mxu0 %v4162_v53 }
 0x145   : > { %v9831_v60 = vpop.f32.mrf.mxu1  ;;  %v12038_v9 = vpop.f32.mrf.mxu0  ;;  %10178 = vmatprep.subr.mxu0 %v4161_v18 }
 0x146   : > { %14614 = vst [vmem:[#allocation5_spill] sm:$0xff] %v12032_v14  ;;  %v1841_v49 = vadd.f32 %v9831_v60, %v11863_v17  ;;  %14615 = vst [vmem:[#allocation6_spill] sm:$0xff] %v12038_v9  ;;  %10179 = vmatpush3.msra.mxu0 %v4161_v18  ;;  %v4160_v17 = vld [vmem:[%s14575_s4 + $0x38] sm:$0xff]  ;;  %v4159_v14 = vld [vmem:[%s14575_s4 + $0x30] sm:$0xff] }
 0x147   : > { %v12040_v38 = vpop.f32.mrf.mxu1  ;;  %v9878_v7 = vpop.f32.mrf.mxu0  ;;  %10180 = vmatprep.subr.mxu0 %v4160_v17  ;;  %v4200_v18 = vld [vmem:[%s14575_s4 + $0x88] sm:$0xff] }
 0x148   : > { %v12045_v45 = vadd.f32 %v9878_v7, %v1841_v49  ;;  %10181 = vmatpush3.msra.mxu0 %v4160_v17  ;;  %10115 = vmatprep.subr.mxu1 %v4200_v18 }
 0x149   : > { %v9834_v30 = vpop.f32.mrf.mxu1  ;;  %v12051_v60 = vpop.f32.mrf.mxu0  ;;  %10182 = vmatprep.subr.mxu0 %v4159_v14  ;;  %10116 = vmatpush3.msra.mxu1 %v4200_v18  ;;  %v4198_v18 = vld [vmem:[%s14575_s4 + $0x78] sm:$0xff] }
 0x14a   : > { %14616 = vst [vmem:[#allocation7_spill] sm:$0xff] %v12045_v45  ;;  %v1843_v58 = vadd.f32 %v9834_v30, %v11875_v5  ;;  %10183 = vmatpush3.msra.mxu0 %v4159_v14  ;;  %v4158_v5 = vld [vmem:[%s14575_s4 + $0x28] sm:$0xff]  ;;  %v4157_v14 = vld [vmem:[%s14575_s4 + $0x20] sm:$0xff] }
 0x14b   : > { %v12053_v53 = vpop.f32.mrf.mxu1  ;;  %v9881_v9 = vpop.f32.mrf.mxu0  ;;  %10184 = vmatprep.subr.mxu0 %v4158_v5 }
 0x14c   : > { %v12058_v49 = vadd.f32 %v9881_v9, %v1843_v58  ;;  %v4199_v9 = vld [vmem:[%s14575_s4 + $0x80] sm:$0xff]  ;;  %10185 = vmatpush3.msra.mxu0 %v4158_v5 }
 0x14d   : > { %v9837_v7 = vpop.f32.mrf.mxu1  ;;  %v12067_v17 = vpop.f32.mrf.mxu0  ;;  %10117 = vmatprep.subr.mxu1 %v4199_v9  ;;  %10186 = vmatprep.subr.mxu0 %v4157_v14 }
 0x14e   : > { %14617 = vst [vmem:[#allocation8_spill] sm:$0xff] %v12058_v49  ;;  %v1845_v30 = vadd.f32 %v9837_v7, %v11888_v26  ;;  %14618 = vst [vmem:[#allocation9_spill] sm:$0xff] %v12067_v17  ;;  %10118 = vmatpush3.msra.mxu1 %v4199_v9  ;;  %10187 = vmatpush3.msra.mxu0 %v4157_v14  ;;  %v4156_v9 = vld [vmem:[%s14575_s4 + $0x18] sm:$0xff] }
 0x14f   : > { %v12069_v45 = vpop.f32.mrf.mxu1  ;;  %v9884_v58 = vpop.f32.mrf.mxu0  ;;  %10119 = vmatprep.subr.mxu1 %v4198_v18  ;;  %10188 = vmatprep.subr.mxu0 %v4156_v9 }
 0x150   : > { %14619 = vst [vmem:[#allocation10_spill] sm:$0xff] %v12069_v45  ;;  %v12077_v7 = vadd.f32 %v9884_v58, %v1845_v30  ;;  %10120 = vmatpush3.msra.mxu1 %v4198_v18  ;;  %v4197_v45 = vld [vmem:[%s14575_s4 + $0x70] sm:$0xff]  ;;  %10189 = vmatpush3.msra.mxu0 %v4156_v9 }
 0x151   : > { %v9840_v26 = vpop.f32.mrf.mxu1  ;;  %v12083_v17 = vpop.f32.mrf.mxu0  ;;  %10121 = vmatprep.subr.mxu1 %v4197_v45  ;;  %v4155_v18 = vld [vmem:[%s14575_s4 + $0x10] sm:$0xff] }
 0x152   : > { %14620 = vst [vmem:[#allocation11_spill] sm:$0xff] %v12077_v7  ;;  %v1847_v49 = vadd.f32 %v9840_v26, %v11901_v2  ;;  %14621 = vst [vmem:[#allocation12_spill] sm:$0xff] %v12083_v17  ;;  %10122 = vmatpush3.msra.mxu1 %v4197_v45  ;;  %10190 = vmatprep.subr.mxu0 %v4155_v18  ;;  %v11066_v17 = vmov 0.0   ;;  %v4196_v45 = vld [vmem:[%s14575_s4 + $0x68] sm:$0xff] }
 0x153   : > { %v12085_v5 = vpop.f32.mrf.mxu1  ;;  %v9887_v30 = vpop.f32.mrf.mxu0  ;;  %425 = vst.msk [vmem:[#allocation3] sm:$0xff] %vm424_vm2, %v11066_v17  ;;  %426 = vst.msk [vmem:[#allocation3 + $0x8] sm:$0xff] %vm424_vm2, %v11066_v17  ;;  %10191 = vmatpush3.msra.mxu0 %v4155_v18  ;;  %10123 = vmatprep.subr.mxu1 %v4196_v45  ;;  %v4195_v18 = vld [vmem:[%s14575_s4 + $0x60] sm:$0xff] }
 0x154   : > { %14622 = vst [vmem:[#allocation13_spill] sm:$0xff] %v12085_v5  ;;  %v12093_v58 = vadd.f32 %v9887_v30, %v1847_v49  ;;  %429 = vst.msk [vmem:[#allocation3 + $0x105] sm:$0xff] %vm424_vm2, %v11066_v17  ;;  %v4154_v49 = vld [vmem:[%s14575_s4 + $0x8] sm:$0xff]  ;;  %10124 = vmatpush3.msra.mxu1 %v4196_v45 }
 0x155   : > { %v9843_v14 = vpop.f32.mrf.mxu1  ;;  %v12096_v26 = vpop.f32.mrf.mxu0  ;;  %430 = vst.msk [vmem:[#allocation3 + $0x10d] sm:$0xff] %vm424_vm2, %v11066_v17  ;;  %10192 = vmatprep.subr.mxu0 %v4154_v49  ;;  %10125 = vmatprep.subr.mxu1 %v4195_v18 }
 0x156   : > { %14623 = vst [vmem:[#allocation14_spill] sm:$0xff] %v12093_v58  ;;  %v1849_v2 = vadd.f32 %v9843_v14, %v11914_v19  ;;  %14624 = vst [vmem:[#allocation15_spill] sm:$0xff] %v12096_v26  ;;  %10193 = vmatpush3.msra.mxu0 %v4154_v49  ;;  %10126 = vmatpush3.msra.mxu1 %v4195_v18 }
 0x157   : > { %v12101_v7 = vpop.f32.mrf.mxu1  ;;  %v9890_v19 = vpop.f32.mrf.mxu0  ;;  %428 = vst.msk [vmem:[#allocation3 + $0x10] sm:$0x1f] %vm427_vm3, %v11066_v17  ;;  %431 = vst.msk [vmem:[#allocation3 + $0x115] sm:$0x1f] %vm427_vm3, %v11066_v17  ;;  %v4153_v17 = vld [vmem:[%s14575_s4] sm:$0xff] }
 0x158   : > { %14625 = vst [vmem:[#allocation16_spill] sm:$0xff] %v12101_v7  ;;  %v12113_v9 = vadd.f32 %v9890_v19, %v1849_v2  ;;  %10194 = vmatprep.subr.mxu0 %v4153_v17 }
 0x159   : > { %v9846_v30 = vpop.f32.mrf.mxu1  ;;  %v12116_v58 = vpop.f32.mrf.mxu0  ;;  %10195 = vmatpush3.msra.mxu0 %v4153_v17 }
 0x15a   : > { %14626 = vst [vmem:[#allocation17_spill] sm:$0xff] %v12113_v9  ;;  %v1851_v14 = vadd.f32 %v9846_v30, %v11930_v22  ;;  %14627 = vst [vmem:[#allocation18_spill] sm:$0xff] %v12116_v58  ;;  %v4165_v30 = vld [vmem:[#allocation3 + $0x1] sm:$0xff] }
 0x15b   : > { %v12121_v26 = vpop.f32.mrf.mxu1  ;;  %v9893_v7 = vpop.f32.mrf.mxu0  ;;  %v4123_v49 = vld [vmem:[#allocation3] sm:$0xff]  ;;  %10127 = vmatprep.mubr.msk.f32.mxu1 %vm424_vm2, %v4165_v30  ;;  %v4124_v58 = vld [vmem:[#allocation3 + $0x8] sm:$0xff] }
 0x15c   : > { %14628 = vst [vmem:[#allocation19_spill] sm:$0xff] %v12121_v26  ;;  %v12126_v19 = vadd.f32 %v9893_v7, %v1851_v14  ;;  %10196 = vmatprep.mubr.msk.f32.mxu0 %vm424_vm2, %v4123_v49 }
 0x15d   : > { %v9849_v2 = vpop.f32.mrf.mxu1  ;;  %v12129_v45 = vpop.f32.mrf.mxu0  ;;  %10197 = vmatmul.mubr.msk.f32.vlgmr.msra.gmra.mxu0 %vm424_vm2, %v4124_v58 }
 0x15e   : > { %14629 = vst [vmem:[#allocation20_spill] sm:$0xff] %v12126_v19  ;;  %v1853_v22 = vadd.f32 %v9849_v2, %v11946_v57  ;;  %14630 = vst [vmem:[#allocation21_spill] sm:$0xff] %v12129_v45  ;;  %v4166_v18 = vld [vmem:[#allocation3 + $0x9] sm:$0xff] }
 0x15f   : > { %v12131_v9 = vpop.f32.mrf.mxu1  ;;  %v9896_v26 = vpop.f32.mrf.mxu0  ;;  %10128 = vmatmul.mubr.msk.f32.vlgmr.msra.gmra.mxu1 %vm424_vm2, %v4166_v18 }
 0x160   : > { %14631 = vst [vmem:[#allocation22_spill] sm:$0xff] %v12131_v9  ;;  %v12137_v57 = vadd.f32 %v9896_v26, %v1853_v22 }
 0x161   : > { %v9852_v7 = vpop.f32.mrf.mxu1  ;;  %v12140_v17 = vpop.f32.mrf.mxu0 }
 0x162   : > { %14632 = vst [vmem:[#allocation23_spill] sm:$0xff] %v12137_v57  ;;  %v1855_v14 = vadd.f32 %v9852_v7, %v11958_v16  ;;  %14633 = vst [vmem:[#allocation24_spill] sm:$0xff] %v12140_v17 }
 0x163   : > { %v12142_v2 = vpop.f32.mrf.mxu1  ;;  %v9899_v19 = vpop.f32.mrf.mxu0 }
 0x164   : > { %v12144_v45 = vadd.f32 %v9899_v19, %v1855_v14 }
 0x165   : > { %v9855_v30 = vpop.f32.mrf.mxu1  ;;  %v12147_v9 = vpop.f32.mrf.mxu0 }
 0x166   : > { %14634 = vst [vmem:[#allocation25_spill] sm:$0xff] %v12144_v45  ;;  %v1857_v49 = vadd.f32 %v9855_v30, %v11972_v13  ;;  %14635 = vst [vmem:[#allocation26_spill] sm:$0xff] %v12147_v9 }
 0x167   : > { %v12149_v18 = vpop.f32.mrf.mxu1  ;;  %v9902_v58 = vpop.f32.mrf.mxu0 }
 0x168   : > { %v12151_v26 = vadd.f32 %v9902_v58, %v1857_v49 }
 0x169   : > { %v9858_v5 = vpop.f32.mrf.mxu1  ;;  %v12154_v22 = vpop.f32.mrf.mxu0 }
 0x16a   : > { %v1859_v16 = vadd.f32 %v9858_v5, %v11985_v0  ;;  %14636 = vst [vmem:[#allocation27_spill] sm:$0xff] %v12154_v22 }
 0x16b   : > { %v12156_v7 = vpop.f32.mrf.mxu1  ;;  %v9905_v57 = vpop.f32.mrf.mxu0 }
 0x16c   : > { %14637 = vst [vmem:[#allocation28_spill] sm:$0xff] %v12156_v7  ;;  %v12158_v19 = vadd.f32 %v9905_v57, %v1859_v16 }
 0x16d   : > { %v9861_v17 = vpop.f32.mrf.mxu1  ;;  %v12161_v14 = vpop.f32.mrf.mxu0 }
 0x16e   : > { %14638 = vst [vmem:[#allocation29_spill] sm:$0xff] %v12158_v19  ;;  %v1861_v13 = vadd.f32 %v9861_v17, %v11995_v21 }
 0x16f   : > { %v12163_v30 = vpop.f32.mrf.mxu1  ;;  %v9908_v45 = vpop.f32.mrf.mxu0 }
 0x170   : > { %14639 = vst [vmem:[#allocation30_spill] sm:$0xff] %v12163_v30  ;;  %v12165_v49 = vadd.f32 %v9908_v45, %v1861_v13 }
 0x171   : > { %v9864_v9 = vpop.f32.mrf.mxu1  ;;  %v12168_v5 = vpop.f32.mrf.mxu0 }
 0x172   : > { %v1863_v0 = vadd.f32 %v9864_v9, %v12005_v20  ;;  %14640 = vst [vmem:[#allocation31_spill] sm:$0xff] %v12168_v5 }
 0x173   : > { %v12170_v58 = vpop.f32.mrf.mxu1  ;;  %v9911_v22 = vpop.f32.mrf.mxu0 }
 0x174   : > { %v12172_v57 = vadd.f32 %v9911_v22, %v1863_v0 }
 0x175   : > { %v9867_v7 = vpop.f32.mrf.mxu1  ;;  %v12175_v17 = vpop.f32.mrf.mxu0 }
 0x176   : > { %v1865_v21 = vadd.f32 %v9867_v7, %v12012_v62  ;;  %14641 = vst [vmem:[#allocation32_spill] sm:$0xff] %v12175_v17  ;;  %v4858_v62 = vld [vmem:[%s14575_s4 + $0x118] sm:$0xff] }
 0x177   : > { %v12177_v16 = vpop.f32.mrf.mxu1  ;;  %v9914_v19 = vpop.f32.mrf.mxu0  ;;  %10241 = vmatprep.subr.mxu1 %v4858_v62 }
 0x178   : > { %v12179_v30 = vadd.f32 %v9914_v19, %v1865_v21  ;;  %10242 = vmatpush3.msra.mxu1 %v4858_v62  ;;  %v4857_v21 = vld [vmem:[%s14575_s4 + $0x110] sm:$0xff]  ;;  %v4856_v62 = vld [vmem:[%s14575_s4 + $0x108] sm:$0xff] }
 0x179   : > { %v12181_v45 = vpop.f32.mrf.mxu1  ;;  %v12183_v20 = vpop.f32.mrf.mxu0  ;;  %10243 = vmatprep.subr.mxu1 %v4857_v21 }
 0x17a   : > { %14642 = vst [vmem:[#allocation33_spill] sm:$0xff] %v12179_v30  ;;  %14643 = vst [vmem:[#allocation34_spill] sm:$0xff] %v12183_v20  ;;  %10244 = vmatpush3.msra.mxu1 %v4857_v21  ;;  %v5235_v21 = vld [vmem:[%s14575_s4 + $0x178] sm:$0xff] }
 0x17b   : > { %v12185_v9 = vpop.f32.mrf.mxu1  ;;  %v12187_v13 = vpop.f32.mrf.mxu0  ;;  %10245 = vmatprep.subr.mxu1 %v4856_v62  ;;  %10310 = vmatprep.subr.mxu0 %v5235_v21 }
 0x17c   : > { %14644 = vst [vmem:[#allocation35_spill] sm:$0xff] %v12187_v13  ;;  %10246 = vmatpush3.msra.mxu1 %v4856_v62  ;;  %10311 = vmatpush3.msra.mxu0 %v5235_v21  ;;  %v4855_v62 = vld [vmem:[%s14575_s4 + $0x100] sm:$0xff] }
 0x17d   : > { %v12189_v5 = vpop.f32.mrf.mxu1  ;;  %v12191_v22 = vpop.f32.mrf.mxu0  ;;  %10247 = vmatprep.subr.mxu1 %v4855_v62 }
 0x17e   : > { %14645 = vst [vmem:[#allocation36_spill] sm:$0xff] %v12189_v5  ;;  %14646 = vst [vmem:[#allocation37_spill] sm:$0xff] %v12191_v22  ;;  %10248 = vmatpush3.msra.mxu1 %v4855_v62  ;;  %v5231_v62 = vld [vmem:[%s14575_s4 + $0x158] sm:$0xff] }
 0x17f   : > { %v12196_v7 = vpop.f32.mrf.mxu1  ;;  %v12198_v19 = vpop.f32.mrf.mxu0 }
 0x180   : > { %14647 = vst [vmem:[#allocation38_spill] sm:$0xff] %v12196_v7  ;;  %14648 = vst [vmem:[#allocation39_spill] sm:$0xff] %v12198_v19 }
 0x181   : > { %v12200_v0 = vpop.f32.mrf.mxu1  ;;  %v12205_v13 = vpop.f32.mrf.mxu0 }
 0x182   : > { %14649 = vst [vmem:[#allocation40_spill] sm:$0xff] %v12200_v0  ;;  %14650 = vst [vmem:[#allocation41_spill] sm:$0xff] %v12205_v13 }
 0x183   : > { %v12207_v22 = vpop.f32.mrf.mxu1  ;;  %v12209_v20 = vpop.f32.mrf.mxu0 }
 0x184   : > { %14651 = vst [vmem:[#allocation42_spill] sm:$0xff] %v12207_v22  ;;  %14652 = vst [vmem:[#allocation43_spill] sm:$0xff] %v12209_v20 }
 0x185   : > { %v12211_v17 = vpop.f32.mrf.mxu1  ;;  %v12213_v7 = vpop.f32.mrf.mxu0 }
 0x186   : > { %14653 = vst [vmem:[#allocation44_spill] sm:$0xff] %v12211_v17  ;;  %14654 = vst [vmem:[#allocation45_spill] sm:$0xff] %v12213_v7 }
 0x187   : > { %v12215_v19 = vpop.f32.mrf.mxu1  ;;  %v12220_v0 = vpop.f32.mrf.mxu0 }
 0x188   : > { %14655 = vst [vmem:[#allocation46_spill] sm:$0xff] %v12215_v19  ;;  %14656 = vst [vmem:[#allocation47_spill] sm:$0xff] %v12220_v0  ;;  %v5234_v0 = vld [vmem:[%s14575_s4 + $0x170] sm:$0xff] }
 0x189   : > { %v12222_v13 = vpop.f32.mrf.mxu1  ;;  %v12224_v22 = vpop.f32.mrf.mxu0  ;;  %10312 = vmatprep.subr.mxu0 %v5234_v0 }
 0x18a   : > { %14657 = vst [vmem:[#allocation48_spill] sm:$0xff] %v12222_v13  ;;  %14658 = vst [vmem:[#allocation49_spill] sm:$0xff] %v12224_v22  ;;  %10313 = vmatpush3.msra.mxu0 %v5234_v0 }
 0x18b   : > { %v12229_v20 = vpop.f32.mrf.mxu1  ;;  %v12231_v7 = vpop.f32.mrf.mxu0 }
 0x18c   : > { %14659 = vst [vmem:[#allocation50_spill] sm:$0xff] %v12229_v20  ;;  %14660 = vst [vmem:[#allocation51_spill] sm:$0xff] %v12231_v7  ;;  %v5233_v7 = vld [vmem:[%s14575_s4 + $0x168] sm:$0xff] }
 0x18d   : > { %v12236_v19 = vpop.f32.mrf.mxu1  ;;  %v12241_v22 = vpop.f32.mrf.mxu0  ;;  %10314 = vmatprep.subr.mxu0 %v5233_v7 }
 0x18e   : > { %14661 = vst [vmem:[#allocation52_spill] sm:$0xff] %v12236_v19  ;;  %14662 = vst [vmem:[#allocation53_spill] sm:$0xff] %v12241_v22  ;;  %v4854_v19 = vld [vmem:[%s14575_s4 + $0xf8] sm:$0xff]  ;;  %10315 = vmatpush3.msra.mxu0 %v5233_v7  ;;  %v5232_v22 = vld [vmem:[%s14575_s4 + $0x160] sm:$0xff] }
 0x18f   : > { %v12246_v21 = vpop.f32.mrf.mxu1  ;;  %v12248_v20 = vpop.f32.mrf.mxu0  ;;  %10249 = vmatprep.subr.mxu1 %v4854_v19  ;;  %10316 = vmatprep.subr.mxu0 %v5232_v22 }
 0x190   : > { %14663 = vst [vmem:[#allocation54_spill] sm:$0xff] %v12246_v21  ;;  %14664 = vst [vmem:[#allocation55_spill] sm:$0xff] %v12248_v20  ;;  %10250 = vmatpush3.msra.mxu1 %v4854_v19  ;;  %10317 = vmatpush3.msra.mxu0 %v5232_v22  ;;  %v4853_v21 = vld [vmem:[%s14575_s4 + $0xf0] sm:$0xff] }
 0x191   : > { %v12256_v0 = vpop.f32.mrf.mxu1  ;;  %v12258_v13 = vpop.f32.mrf.mxu0  ;;  %10318 = vmatprep.subr.mxu0 %v5231_v62  ;;  %10251 = vmatprep.subr.mxu1 %v4853_v21 }
 0x192   : > { %14665 = vst [vmem:[#allocation56_spill] sm:$0xff] %v12256_v0  ;;  %14666 = vst [vmem:[#allocation57_spill] sm:$0xff] %v12258_v13  ;;  %10319 = vmatpush3.msra.mxu0 %v5231_v62  ;;  %v5230_v13 = vld [vmem:[%s14575_s4 + $0x150] sm:$0xff]  ;;  %10252 = vmatpush3.msra.mxu1 %v4853_v21  ;;  %v5229_v62 = vld [vmem:[%s14575_s4 + $0x148] sm:$0xff] }
 0x193   : > { %v12263_v20 = vpop.f32.mrf.mxu1  ;;  %v12265_v7 = vpop.f32.mrf.mxu0  ;;  %10320 = vmatprep.subr.mxu0 %v5230_v13  ;;  %v4851_v21 = vld [vmem:[%s14575_s4 + $0xe0] sm:$0xff] }
 0x194   : > { %14667 = vst [vmem:[#allocation58_spill] sm:$0xff] %v12263_v20  ;;  %14668 = vst [vmem:[#allocation59_spill] sm:$0xff] %v12265_v7  ;;  %v4852_v7 = vld [vmem:[%s14575_s4 + $0xe8] sm:$0xff]  ;;  %10321 = vmatpush3.msra.mxu0 %v5230_v13  ;;  %v5228_v13 = vld [vmem:[%s14575_s4 + $0x140] sm:$0xff] }
 0x195   : > { %v12273_v19 = vpop.f32.mrf.mxu1  ;;  %v12275_v22 = vpop.f32.mrf.mxu0  ;;  %10253 = vmatprep.subr.mxu1 %v4852_v7  ;;  %10322 = vmatprep.subr.mxu0 %v5229_v62 }
 0x196   : > { %14669 = vst [vmem:[#allocation60_spill] sm:$0xff] %v12273_v19  ;;  %14670 = vst [vmem:[#allocation61_spill] sm:$0xff] %v12275_v22  ;;  %10254 = vmatpush3.msra.mxu1 %v4852_v7  ;;  %10323 = vmatpush3.msra.mxu0 %v5229_v62  ;;  %v4850_v7 = vld [vmem:[%s14575_s4 + $0xd8] sm:$0xff] }
 0x197   : > { %v12283_v20 = vpop.f32.mrf.mxu1  ;;  %v12285_v0 = vpop.f32.mrf.mxu0  ;;  %10255 = vmatprep.subr.mxu1 %v4851_v21  ;;  %10324 = vmatprep.subr.mxu0 %v5228_v13 }
 0x198   : > { %14671 = vst [vmem:[#allocation62_spill] sm:$0xff] %v12283_v20  ;;  %14672 = vst [vmem:[#allocation63_spill] sm:$0xff] %v12285_v0  ;;  %10256 = vmatpush3.msra.mxu1 %v4851_v21  ;;  %v4849_v0 = vld [vmem:[%s14575_s4 + $0xd0] sm:$0xff]  ;;  %10325 = vmatpush3.msra.mxu0 %v5228_v13  ;;  %v4848_v20 = vld [vmem:[%s14575_s4 + $0xc8] sm:$0xff] }
 0x199   : > { %v12293_v22 = vpop.f32.mrf.mxu1  ;;  %v12295_v19 = vpop.f32.mrf.mxu0  ;;  %10257 = vmatprep.subr.mxu1 %v4850_v7  ;;  %v5226_v21 = vld [vmem:[%s14575_s4 + $0x130] sm:$0xff] }
 0x19a   : > { %14673 = vst [vmem:[#allocation64_spill] sm:$0xff] %v12293_v22  ;;  %14674 = vst [vmem:[#allocation65_spill] sm:$0xff] %v12295_v19  ;;  %v5227_v22 = vld [vmem:[%s14575_s4 + $0x138] sm:$0xff]  ;;  %10258 = vmatpush3.msra.mxu1 %v4850_v7  ;;  %v4847_v7 = vld [vmem:[%s14575_s4 + $0xc0] sm:$0xff] }
 0x19b   : > { %v12303_v62 = vpop.f32.mrf.mxu1  ;;  %v12311_v19 = vpop.f32.mrf.mxu0  ;;  %10326 = vmatprep.subr.mxu0 %v5227_v22  ;;  %10259 = vmatprep.subr.mxu1 %v4849_v0 }
 0x19c   : > { %14675 = vst [vmem:[#allocation66_spill] sm:$0xff] %v12303_v62  ;;  %14676 = vst [vmem:[#allocation67_spill] sm:$0xff] %v12311_v19  ;;  %10327 = vmatpush3.msra.mxu0 %v5227_v22  ;;  %v5225_v62 = vld [vmem:[%s14575_s4 + $0x128] sm:$0xff]  ;;  %10260 = vmatpush3.msra.mxu1 %v4849_v0  ;;  %v5224_v22 = vld [vmem:[%s14575_s4 + $0x120] sm:$0xff] }
 0x19d   : > { %v12316_v13 = vpop.f32.mrf.mxu1  ;;  %v12321_v17 = vpop.f32.mrf.mxu0  ;;  %10328 = vmatprep.subr.mxu0 %v5226_v21  ;;  %10261 = vmatprep.subr.mxu1 %v4848_v20  ;;  %v5612_v0 = vld [vmem:[%s14575_s4 + $0x1d8] sm:$0xff] }
 0x19e   : > { %14677 = vst [vmem:[#allocation68_spill] sm:$0xff] %v12316_v13  ;;  %14678 = vst [vmem:[#allocation69_spill] sm:$0xff] %v12321_v17  ;;  %10329 = vmatpush3.msra.mxu0 %v5226_v21  ;;  %10262 = vmatpush3.msra.mxu1 %v4848_v20  ;;  %v1026_v20 = vadd.f32 %v11882_v56, %v11783_v37  ;;  %v1076_v37 = vadd.f32 %v11955_v3, %v11747_v59 }
 0x19f   : > { %v12326_v19 = vpop.f32.mrf.mxu1  ;;  %v12331_v13 = vpop.f32.mrf.mxu0  ;;  %10330 = vmatprep.subr.mxu0 %v5225_v62  ;;  %10263 = vmatprep.subr.mxu1 %v4847_v7 }
 0x1a0   : > { %14679 = vst [vmem:[#allocation70_spill] sm:$0xff] %v12326_v19  ;;  %14680 = vst [vmem:[#allocation71_spill] sm:$0xff] %v12331_v13  ;;  %10331 = vmatpush3.msra.mxu0 %v5225_v62  ;;  %10264 = vmatpush3.msra.mxu1 %v4847_v7  ;;  %v1036_v13 = vadd.f32 %v11897_v63, %v11799_v43  ;;  %v1046_v62 = vadd.f32 %v11910_v1, %v11815_v52 }
 0x1a1   : > { %v9949_v17 = vpop.f32.mrf.mxu1  ;;  %v12337_v19 = vpop.f32.mrf.mxu0  ;;  %10332 = vmatprep.subr.mxu0 %v5224_v22  ;;  %10379 = vmatprep.subr.mxu1 %v5612_v0  ;;  %v1478_v0 = vadd.f32 %v11894_v29, %v1026_v20  ;;  %v1086_v43 = vadd.f32 %v11969_v11, %v11759_v27  ;;  %v1096_v52 = vadd.f32 %v11982_v32, %v11772_v35 }
 0x1a2   : > { %v2589_v30 = vadd.f32 %v9949_v17, %v12151_v26  ;;  %10333 = vmatpush3.msra.mxu0 %v5224_v22  ;;  %v1056_v26 = vadd.f32 %v11923_v40, %v11830_v24  ;;  %v1066_v17 = vadd.f32 %v11939_v42, %v11733_v15  ;;  %v1480_v24 = vadd.f32 %v11907_v48, %v1036_v13 }
 0x1a3   : > { %v12339_v21 = vpop.f32.mrf.mxu1  ;;  %v9996_v5 = vpop.f32.mrf.mxu0  ;;  %v1482_v15 = vadd.f32 %v11920_v8, %v1046_v62  ;;  %v1488_v59 = vadd.f32 %v11963_v25, %v1076_v37  ;;  %v1490_v40 = vadd.f32 %v11977_v51, %v1086_v43  ;;  %v1106_v27 = vadd.f32 %v11990_v10, %v11787_v41  ;;  %v14688_v62 = vld [vmem:[#allocation28_spill] sm:$0xff] }
 0x1a4   : > { %v12353_v22 = vadd.f32 %v9996_v5, %v2589_v30  ;;  %v1484_v63 = vadd.f32 %v11936_v46, %v1056_v26  ;;  %v1486_v1 = vadd.f32 %v11952_v55, %v1066_v17  ;;  %v1492_v35 = vadd.f32 %v11988_v61, %v1096_v52  ;;  %v14689_v37 = vld [vmem:[#allocation12_spill] sm:$0xff]  ;;  %v14690_v52 = vld [vmem:[#allocation15_spill] sm:$0xff] }
 0x1a5   : > { %v12351_v7 = vpop.f32.mrf.mxu1  ;;  %v12362_v56 = vpop.f32.mrf.mxu0  ;;  %v1116_v48 = vadd.f32 %v12000_v6, %v11803_v50  ;;  %v1126_v8 = vadd.f32 %v12010_v39, %v11819_v54  ;;  %v1836_v46 = vadd.f32 %v12017_v36, %v11846_v47  ;;  %v1838_v55 = vadd.f32 %v12027_v31, %v11858_v4  ;;  %v14681_v4 = vld [vmem:[#allocation6_spill] sm:$0xff]  ;;  %v14683_v39 = vld [vmem:[#allocation9_spill] sm:$0xff] }
 0x1a6   : > { %v1494_v25 = vadd.f32 %v11998_v28, %v1106_v27  ;;  %v1840_v41 = vadd.f32 %v12040_v38, %v11870_v23  ;;  %v1842_v11 = vadd.f32 %v12053_v53, %v11884_v33  ;;  %v14682_v23 = vld [vmem:[#allocation10_spill] sm:$0xff]  ;;  %v14684_v36 = vld [vmem:[#allocation13_spill] sm:$0xff]  ;;  %v14685_v53 = vld [vmem:[#allocation16_spill] sm:$0xff]  ;;  %v1854_v20 = vadd.f32 %v12142_v2, %v1488_v59 }
 0x1a7   : > { %v12368_v29 = vpop.f32.mrf.mxu1  ;;  %v12375_v42 = vpop.f32.mrf.mxu0  ;;  %v1496_v54 = vadd.f32 %v12008_v12, %v1116_v48  ;;  %v1498_v47 = vadd.f32 %v12015_v34, %v1126_v8  ;;  %v2202_v32 = vadd.f32 %v12025_v44, %v1836_v46  ;;  %v2204_v61 = vadd.f32 %v14681_v4, %v1838_v55  ;;  %v14686_v12 = vld [vmem:[#allocation19_spill] sm:$0xff]  ;;  %v14687_v34 = vld [vmem:[#allocation22_spill] sm:$0xff]  ;;  %v14693_v8 = vld [vmem:[#allocation24_spill] sm:$0xff] }
 0x1a8   : > { %v2206_v28 = vadd.f32 %v12051_v60, %v1840_v41  ;;  %v1844_v6 = vadd.f32 %v14682_v23, %v1478_v0  ;;  %v2208_v33 = vadd.f32 %v14683_v39, %v1842_v11  ;;  %v1846_v31 = vadd.f32 %v14684_v36, %v1480_v24  ;;  %v14696_v55 = vld [vmem:[#allocation30_spill] sm:$0xff]  ;;  %v14697_v23 = vld [vmem:[#allocation4_spill] sm:$0xff]  ;;  %v14698_v36 = vld [vmem:[#allocation5_spill] sm:$0xff] }
 0x1a9   : > { %v9955_v3 = vpop.f32.mrf.mxu1  ;;  %v12391_v51 = vpop.f32.mrf.mxu0  ;;  %v1848_v30 = vadd.f32 %v14685_v53, %v1482_v15  ;;  %v1852_v5 = vadd.f32 %v14687_v34, %v1486_v1  ;;  %v1856_v60 = vadd.f32 %v12149_v18, %v1490_v40  ;;  %v1858_v26 = vadd.f32 %v14688_v62, %v1492_v35  ;;  %v14691_v15 = vld [vmem:[#allocation18_spill] sm:$0xff]  ;;  %v14692_v1 = vld [vmem:[#allocation21_spill] sm:$0xff]  ;;  %v14695_v40 = vld [vmem:[#allocation27_spill] sm:$0xff] }
 0x1aa   : > { %v2593_v50 = vadd.f32 %v9955_v3, %v12165_v49  ;;  %v1850_v49 = vadd.f32 %v14686_v12, %v1484_v63  ;;  %v2210_v43 = vadd.f32 %v14689_v37, %v1844_v6  ;;  %v2212_v24 = vadd.f32 %v14690_v52, %v1846_v31  ;;  %v14694_v18 = vld [vmem:[#allocation26_spill] sm:$0xff]  ;;  %v14699_v31 = vld [vmem:[#allocation36_spill] sm:$0xff] }
 0x1ab   : > { %v12397_v10 = vpop.f32.mrf.mxu1  ;;  %v10002_v38 = vpop.f32.mrf.mxu0  ;;  %v2214_v63 = vadd.f32 %v14691_v15, %v1848_v30  ;;  %v12421_v2 = vadd.f32 %v14693_v8, %v1852_v5  ;;  %v12424_v59 = vadd.f32 %v14694_v18, %v1854_v20  ;;  %v12430_v35 = vadd.f32 %v12161_v14, %v1858_v26  ;;  %v14700_v14 = vld [vmem:[#allocation33_spill] sm:$0xff]  ;;  %v14707_v20 = vld [vmem:[#allocation7_spill] sm:$0xff]  ;;  %v14710_v52 = vld [vmem:[#allocation42_spill] sm:$0xff] }
 0x1ac   : > { %v12406_v13 = vadd.f32 %v10002_v38, %v2593_v50  ;;  %v2216_v27 = vadd.f32 %v14692_v1, %v1850_v49  ;;  %v1860_v3 = vadd.f32 %v14696_v55, %v1494_v25  ;;  %v1862_v41 = vadd.f32 %v12170_v58, %v1496_v54  ;;  %v14701_v25 = vld [vmem:[#allocation31_spill] sm:$0xff]  ;;  %v14702_v58 = vld [vmem:[#allocation32_spill] sm:$0xff]  ;;  %v14703_v54 = vld [vmem:[#allocation34_spill] sm:$0xff] }
 0x1ad   : > { %v9958_v44 = vpop.f32.mrf.mxu1  ;;  %v12412_v0 = vpop.f32.mrf.mxu0  ;;  %v1864_v11 = vadd.f32 %v12177_v16, %v1498_v47  ;;  %v2569_v6 = vadd.f32 %v12181_v45, %v14697_v23  ;;  %v2568_v39 = vadd.f32 %v12185_v9, %v2202_v32  ;;  %v2571_v38 = vadd.f32 %v14699_v31, %v14698_v36  ;;  %v14704_v49 = vld [vmem:[#allocation38_spill] sm:$0xff]  ;;  %v14705_v9 = vld [vmem:[#allocation35_spill] sm:$0xff]  ;;  %v14706_v5 = vld [vmem:[#allocation37_spill] sm:$0xff] }
 0x1ae   : > { %v2595_v17 = vadd.f32 %v9958_v44, %v12172_v57  ;;  %v12427_v57 = vadd.f32 %v14695_v40, %v1856_v60  ;;  %v12446_v12 = vadd.f32 %v14701_v25, %v1860_v3  ;;  %v12449_v16 = vadd.f32 %v14702_v58, %v1862_v41  ;;  %v14708_v60 = vld [vmem:[#allocation40_spill] sm:$0xff]  ;;  %v14709_v26 = vld [vmem:[#allocation39_spill] sm:$0xff]  ;;  %v14711_v1 = vld [vmem:[#allocation41_spill] sm:$0xff] }
 0x1af   : > { %v12418_v48 = vpop.f32.mrf.mxu1  ;;  %v10005_v46 = vpop.f32.mrf.mxu0  ;;  %v12452_v47 = vadd.f32 %v14703_v54, %v1864_v11  ;;  %v2570_v45 = vadd.f32 %v14704_v49, %v2204_v61  ;;  %v2935_v32 = vadd.f32 %v14705_v9, %v2569_v6  ;;  %v2934_v44 = vadd.f32 %v14706_v5, %v2568_v39  ;;  %v14712_v18 = vld [vmem:[#allocation8_spill] sm:$0xff]  ;;  %v14714_v3 = vld [vmem:[#allocation43_spill] sm:$0xff]  ;;  %v14715_v11 = vld [vmem:[#allocation46_spill] sm:$0xff] }
 0x1b0   : > { %v12435_v4 = vadd.f32 %v10005_v46, %v2595_v17  ;;  %v2573_v62 = vadd.f32 %v14708_v60, %v14707_v20  ;;  %v2937_v17 = vadd.f32 %v14709_v26, %v2571_v38  ;;  %v2572_v15 = vadd.f32 %v14710_v52, %v2206_v28  ;;  %v14713_v40 = vld [vmem:[#allocation44_spill] sm:$0xff]  ;;  %v14716_v23 = vld [vmem:[#allocation11_spill] sm:$0xff]  ;;  %v14718_v36 = vld [vmem:[#allocation50_spill] sm:$0xff] }
 0x1b1   : > { %v9961_v50 = vpop.f32.mrf.mxu1  ;;  %v12443_v30 = vpop.f32.mrf.mxu0  ;;  %v2936_v8 = vadd.f32 %v14711_v1, %v2570_v45  ;;  %v2575_v46 = vadd.f32 %v14713_v40, %v14712_v18  ;;  %v14717_v6 = vld [vmem:[#allocation48_spill] sm:$0xff]  ;;  %v2576_v31 = vadd.f32 %v14718_v36, %v2210_v43  ;;  %v14719_v28 = vld [vmem:[#allocation45_spill] sm:$0xff]  ;;  %v14720_v25 = vld [vmem:[#allocation47_spill] sm:$0xff] }
 0x1b2   : > { %v2597_v53 = vadd.f32 %v9961_v50, %v14700_v14  ;;  %v2939_v41 = vadd.f32 %v14714_v3, %v2573_v62  ;;  %v2574_v50 = vadd.f32 %v14715_v11, %v2208_v33  ;;  %v2577_v39 = vadd.f32 %v14717_v6, %v14716_v23  ;;  %v14721_v54 = vld [vmem:[#allocation14_spill] sm:$0xff]  ;;  %v14723_v5 = vld [vmem:[#allocation49_spill] sm:$0xff]  ;;  %v14724_v33 = vld [vmem:[#allocation51_spill] sm:$0xff] }
 0x1b3   : > { %v12455_v34 = vpop.f32.mrf.mxu1  ;;  %v10008_v37 = vpop.f32.mrf.mxu0  ;;  %v2938_v14 = vadd.f32 %v14719_v28, %v2572_v15  ;;  %v12477_v58 = vadd.f32 %v14720_v25, %v2575_v46  ;;  %v14725_v62 = vld [vmem:[#allocation54_spill] sm:$0xff]  ;;  %v14726_v26 = vld [vmem:[#allocation53_spill] sm:$0xff]  ;;  %v12494_v15 = vld [vmem:[%s14574_s3] ss:$0 sm:$0xff] }
 0x1b4   : > { %v12466_v61 = vadd.f32 %v10008_v37, %v2597_v53  ;;  %v14722_v53 = vld [vmem:[#allocation52_spill] sm:$0xff]  ;;  %v12482_v20 = vadd.f32 %v14723_v5, %v2574_v50  ;;  %v12485_v60 = vadd.f32 %v14724_v33, %v2577_v39  ;;  %v2578_v43 = vadd.f32 %v14725_v62, %v2212_v24  ;;  %v14727_v1 = vld [vmem:[#allocation17_spill] sm:$0xff]  ;;  %v14729_v40 = vld [vmem:[#allocation55_spill] sm:$0xff] }
 0x1b5   : > { %v10013_v55 = vpop.f32.mrf.mxu1  ;;  %v12473_v38 = vpop.f32.mrf.mxu0  ;;  %v2579_v49 = vadd.f32 %v14722_v53, %v14721_v54  ;;  %v12489_v37 = vadd.f32 %v14726_v26, %v2576_v31  ;;  %v14730_v50 = vld [vmem:[#allocation58_spill] sm:$0xff]  ;;  %v14731_v23 = vld [vmem:[#allocation57_spill] sm:$0xff]  ;;  %v14732_v39 = vld [vmem:[#allocation20_spill] sm:$0xff] }
 0x1b6   : > { %v3301_v45 = vadd.f32 %v10013_v55, %v2935_v32  ;;  %v14728_v32 = vld [vmem:[#allocation56_spill] sm:$0xff]  ;;  %v2580_v24 = vadd.f32 %v14730_v50, %v2214_v63  ;;  %v12503_v6 = vadd.f32 %v14731_v23, %v2578_v43  ;;  %v14734_v28 = vld [vmem:[#allocation62_spill] sm:$0xff]  ;;  %v14735_v53 = vld [vmem:[#allocation59_spill] sm:$0xff] }
 0x1b7   : > { %v3151_v9 = vpop.f32.mrf.mxu1  ;;  %v10060_v52 = vpop.f32.mrf.mxu0  ;;  %v2581_v18 = vadd.f32 %v14728_v32, %v14727_v1  ;;  %v12499_v46 = vadd.f32 %v14729_v40, %v2579_v49  ;;  %v14733_v36 = vld [vmem:[#allocation60_spill] sm:$0xff]  ;;  %v2582_v25 = vadd.f32 %v14734_v28, %v2216_v27  ;;  %v14737_v62 = vld [vmem:[#allocation23_spill] sm:$0xff]  ;;  %v14740_v27 = vld [vmem:[#allocation65_spill] sm:$0xff] }
 0x1b8   : > { %v3300_v55 = vadd.f32 %v3151_v9, %v2934_v44  ;;  %v3667_v11 = vadd.f32 %v10060_v52, %v3301_v45  ;;  %v2583_v31 = vadd.f32 %v14733_v36, %v14732_v39  ;;  %v14736_v9 = vld [vmem:[#allocation61_spill] sm:$0xff]  ;;  %v14738_v43 = vld [vmem:[#allocation64_spill] sm:$0xff]  ;;  %v14739_v52 = vld [vmem:[#allocation63_spill] sm:$0xff] }
 0x1b9   : > { %v10016_v3 = vpop.f32.mrf.mxu1  ;;  %v3517_v54 = vpop.f32.mrf.mxu0  ;;  %v12509_v5 = vadd.f32 %v14735_v53, %v2581_v18  ;;  %v12515_v63 = vadd.f32 %v14736_v9, %v2580_v24  ;;  %v2585_v26 = vadd.f32 %v14738_v43, %v14737_v62  ;;  %v12523_v32 = vadd.f32 %v14740_v27, %v2582_v25  ;;  %v14742_v24 = vld [vmem:[#allocation25_spill] sm:$0xff]  ;;  %v14743_v23 = vld [vmem:[#allocation68_spill] sm:$0xff]  ;;  %v14744_v36 = vld [vmem:[#allocation67_spill] sm:$0xff] }
 0x1ba   : > { %v3303_v33 = vadd.f32 %v10016_v3, %v2937_v17  ;;  %v12512_v49 = vadd.f32 %v12494_v15, %v3667_v11  ;;  %v3666_v45 = vadd.f32 %v3517_v54, %v3300_v55  ;;  %v12520_v1 = vadd.f32 %v14739_v52, %v2583_v31  ;;  %v14741_v17 = vld [vmem:[#allocation66_spill] sm:$0xff]  ;;  %v14746_v9 = vld [vmem:[#allocation69_spill] sm:$0xff]  ;;  %v12545_v52 = vpop.permute.xlu1 %3925  ;;  %v14747_v27 = vld [vmem:[#allocation71_spill] sm:$0xff] }
 0x1bb   : > { %v3161_v44 = vpop.f32.mrf.mxu1  ;;  %v10063_v18 = vpop.f32.mrf.mxu0  ;;  %v2584_v40 = vadd.f32 %v14741_v17, %v12421_v2  ;;  %v2587_v39 = vadd.f32 %v14743_v23, %v14742_v24  ;;  %v12534_v31 = vadd.f32 %v14744_v36, %v2585_v26  ;;  %v14745_v28 = vld [vmem:[#allocation70_spill] sm:$0xff]  ;;  %v2588_v23 = vadd.f32 %v12339_v21, %v12427_v57  ;;  %v14748_v36 = vld [vmem:[#allocation29_spill] sm:$0xff] }
 0x1bc   : > { %v3764_v3 = vmin.f32 %v12512_v49, 0.0  ;;  %v12529_v55 = vadd.f32 %v12494_v15, %v3666_v45  ;;  %v3669_v50 = vadd.f32 %v10063_v18, %v3303_v33  ;;  %v2586_v25 = vadd.f32 %v14745_v28, %v12424_v59 }
 0x1bd   : > { %v10019_v11 = vpop.f32.mrf.mxu1  ;;  %v3302_v54 = vadd.f32 %v3161_v44, %v2936_v8  ;;  %v3527_v53 = vpop.f32.mrf.mxu0  ;;  %v12539_v2 = vadd.f32 %v14746_v9, %v2584_v40  ;;  %v12548_v26 = vadd.f32 %v14747_v27, %v2587_v39  ;;  %v2591_v39 = vadd.f32 %v12351_v7, %v14748_v36 }
 0x1be   : > { %v3795_v62 = vmul.f32 1.442695, %v3764_v3  ;;  %v3763_v45 = vmin.f32 %v12529_v55, 0.0  ;;  %v12543_v43 = vadd.f32 %v12494_v15, %v3669_v50  ;;  %v12551_v18 = vadd.f32 %v12337_v19, %v2586_v25  ;;  %v12554_v50 = vpop.permute.xlu0 %3915 }
 0x1bf   : > { %v3171_v33 = vpop.f32.mrf.mxu1  ;;  %v3305_v59 = vadd.f32 %v10019_v11, %v2939_v41  ;;  %v3668_v8 = vadd.f32 %v3527_v53, %v3302_v54  ;;  %v10066_v44 = vpop.f32.mrf.mxu0  ;;  %v2590_v53 = vadd.f32 %v12368_v29, %v12430_v35  ;;  %v12567_v9 = vadd.f32 %v12362_v56, %v2588_v23  ;;  %v5989_v29 = vld [vmem:[%s14575_s4 + $0x238] sm:$0xff] }
 0x1c0   : > { %10843 = vpow2.f32 %v3795_v62  ;;  %v3793_v17 = vmul.f32 1.442695, %v3763_v45  ;;  %v3766_v40 = vmin.f32 %v12543_v43, 0.0  ;;  %v3304_v3 = vadd.f32 %v3171_v33, %v2938_v14  ;;  %v12580_v56 = vpop.permute.xlu1 %3930  ;;  %10448 = vmatprep.subr.mxu0 %v5989_v29 }
 0x1c1   : > { %v10022_v24 = vpop.f32.mrf.mxu1  ;;  %v12561_v19 = vadd.f32 %v12494_v15, %v3668_v8  ;;  %v3671_v41 = vadd.f32 %v10066_v44, %v3305_v59  ;;  %v3537_v11 = vpop.f32.mrf.mxu0  ;;  %v12583_v35 = vadd.f32 %v12375_v42, %v2591_v39  ;;  %v2592_v27 = vadd.f32 %v12397_v10, %v12446_v12 }
 0x1c2   : > { %10845 = vpow2.f32 %v3793_v17  ;;  %v3799_v28 = vmul.f32 1.442695, %v3766_v40  ;;  %v3307_v25 = vadd.f32 %v10022_v24, %v12477_v58  ;;  %v3670_v14 = vadd.f32 %v3537_v11, %v3304_v3  ;;  %v3921_v42 = vpop.permute.xlu0 %3920 }
 0x1c3   : > { %v3181_v54 = vpop.f32.mrf.mxu1  ;;  %v3765_v21 = vmin.f32 %v12561_v19, 0.0  ;;  %v12571_v7 = vadd.f32 %v12494_v15, %v3671_v41  ;;  %v10069_v57 = vpop.f32.mrf.mxu0  ;;  %v12589_v44 = vadd.f32 %v12391_v51, %v2590_v53  ;;  %v12596_v23 = vadd.f32 %v12412_v0, %v2592_v27 }
 0x1c4   : > { %10847 = vpow2.f32 %v3799_v28  ;;  %v3306_v62 = vadd.f32 %v3181_v54, %v12482_v20  ;;  %v12575_v45 = vadd.f32 %v12494_v15, %v3670_v14  ;;  %v3673_v33 = vadd.f32 %v10069_v57, %v3307_v25 }
 0x1c5   : > { %v10025_v58 = vpop.f32.mrf.mxu1  ;;  %v3797_v59 = vmul.f32 1.442695, %v3765_v21  ;;  %v3768_v20 = vmin.f32 %v12571_v7, 0.0  ;;  %v3547_v8 = vpop.f32.mrf.mxu0  ;;  %v2594_v51 = vadd.f32 %v12418_v48, %v12449_v16  ;;  %v2596_v25 = vadd.f32 %v12455_v34, %v12452_v47 }
 0x1c6   : > { %v3767_v17 = vmin.f32 %v12575_v45, 0.0  ;;  %v12593_v40 = vadd.f32 %v12494_v15, %v3673_v33  ;;  %v3672_v24 = vadd.f32 %v3547_v8, %v3306_v62  ;;  %v3309_v12 = vadd.f32 %v10025_v58, %v12485_v60  ;;  %v12610_v21 = vpop.permute.xlu1 %3940 }
 0x1c7   : > { %v3191_v3 = vpop.f32.mrf.mxu1  ;;  %10849 = vpow2.f32 %v3797_v59  ;;  %v3803_v10 = vmul.f32 1.442695, %v3768_v20  ;;  %v10072_v36 = vpop.f32.mrf.mxu0  ;;  %v12613_v57 = vadd.f32 %v12443_v30, %v2594_v51  ;;  %v12616_v62 = vadd.f32 %v12473_v38, %v2596_v25 }
 0x1c8   : > { %v3801_v39 = vmul.f32 1.442695, %v3767_v17  ;;  %v3770_v41 = vmin.f32 %v12593_v40, 0.0  ;;  %v12603_v11 = vadd.f32 %v12494_v15, %v3672_v24  ;;  %v3308_v0 = vadd.f32 %v3191_v3, %v12489_v37  ;;  %v12622_v59 = vpop.permute.xlu0 %3935 }
 0x1c9   : > { %v10028_v28 = vpop.f32.mrf.mxu1  ;;  %10851 = vpow2.f32 %v3803_v10  ;;  %v3675_v54 = vadd.f32 %v10072_v36, %v3309_v12  ;;  %v3557_v14 = vpop.f32.mrf.mxu0  ;;  %vm3734_vm4 = vcmp.gt.f32.partialorder %v12512_v49, 0.0  ;;  %vm3733_vm5 = vcmp.gt.f32.partialorder %v12529_v55, 0.0 }
 0x1ca   : > { %10853 = vpow2.f32 %v3801_v39  ;;  %v3807_v60 = vmul.f32 1.442695, %v3770_v41  ;;  %v3769_v53 = vmin.f32 %v12603_v11, 0.0  ;;  %v3311_v48 = vadd.f32 %v10028_v28, %v12499_v46 }
 0x1cb   : > { %v3201_v16 = vpop.f32.mrf.mxu1  ;;  %v12619_v47 = vadd.f32 %v12494_v15, %v3675_v54  ;;  %v3674_v34 = vadd.f32 %v3557_v14, %v3308_v0  ;;  %v10075_v37 = vpop.f32.mrf.mxu0  ;;  %vm3736_vm6 = vcmp.gt.f32.partialorder %v12543_v43, 0.0  ;;  %vm3735_vm7 = vcmp.gt.f32.partialorder %v12561_v19, 0.0 }
 0x1cc   : > { %10855 = vpow2.f32 %v3807_v60  ;;  %v3805_v58 = vmul.f32 1.442695, %v3769_v53  ;;  %v3310_v33 = vadd.f32 %v3201_v16, %v12503_v6  ;;  %v3677_v46 = vadd.f32 %v10075_v37, %v3311_v48  ;;  %v12641_v0 = vpop.permute.xlu1 %3950 }
 0x1cd   : > { %v10031_v29 = vpop.f32.mrf.mxu1  ;;  %v10844_v27 = vpop.eup %10843  ;;  %v3772_v30 = vmin.f32 %v12619_v47, 0.0  ;;  %v12628_v38 = vadd.f32 %v12494_v15, %v3674_v34  ;;  %vm3738_vm8 = vcmp.gt.f32.partialorder %v12571_v7, 0.0  ;;  %vm3737_vm9 = vcmp.gt.f32.partialorder %v12575_v45, 0.0 }
 0x1ce   : > { %v3567_v20 = vpop.f32.mrf.mxu0  ;;  %v8588_v8 = vadd.f32 -1.0, %v10844_v27  ;;  %10857 = vpow2.f32 %v3805_v58  ;;  %v12631_v17 = vadd.f32 %v12494_v15, %v3677_v46  ;;  %v3313_v16 = vadd.f32 %v10031_v29, %v12509_v5  ;;  %v12650_v58 = vpop.permute.xlu0 %3945 }
 0x1cf   : > { %v3211_v6 = vpop.f32.mrf.mxu1  ;;  %v3676_v3 = vadd.f32 %v3567_v20, %v3310_v33  ;;  %v10846_v24 = vpop.eup %10845  ;;  %v3811_v10 = vmul.f32 1.442695, %v3772_v30  ;;  %v3771_v12 = vmin.f32 %v12628_v38, 0.0  ;;  %vm3740_vm10 = vcmp.gt.f32.partialorder %v12593_v40, 0.0 }
 0x1d0   : > { %v10078_v36 = vpop.f32.mrf.mxu0  ;;  %v3884_v51 = vsel %vm3734_vm4, %v12512_v49, %v8588_v8  ;;  %v8587_v39 = vadd.f32 -1.0, %v10846_v24  ;;  %v3774_v41 = vmin.f32 %v12631_v17, 0.0  ;;  %v3312_v33 = vadd.f32 %v3211_v6, %v12515_v63 }
 0x1d1   : > { %v10034_v28 = vpop.f32.mrf.mxu1  ;;  %v10848_v25 = vpop.eup %10847  ;;  %v4064_v54 = vmul.f32 %v3921_v42, %v3884_v51  ;;  %10859 = vpow2.f32 %v3811_v10  ;;  %v3809_v14 = vmul.f32 1.442695, %v3771_v12  ;;  %v12644_v60 = vadd.f32 %v12494_v15, %v3676_v3 }
 0x1d2   : > { %v3577_v53 = vpop.f32.mrf.mxu0  ;;  %v3883_v49 = vsel %vm3733_vm5, %v12529_v55, %v8587_v39  ;;  %v8590_v48 = vadd.f32 -1.0, %v10848_v25  ;;  %v3815_v34 = vmul.f32 1.442695, %v3774_v41  ;;  %v3315_v5 = vadd.f32 %v10034_v28, %v12520_v1  ;;  %v12667_v51 = vpop.permute.xlu1 %3960 }
 0x1d3   : > { %v3221_v37 = vpop.f32.mrf.mxu1  ;;  %4094 = vst.msk [vmem:[#allocation3 + $0x1d] sm:$0xff] %vm424_vm2, %v4064_v54  ;;  %v4063_v42 = vmul.f32 %v12554_v50, %v3883_v49  ;;  %10861 = vpow2.f32 %v3809_v14  ;;  %v3773_v46 = vmin.f32 %v12644_v60, 0.0  ;;  %v3679_v29 = vadd.f32 %v10078_v36, %v3313_v16  ;;  %v12679_v49 = vpop.permute.xlu0 %3955 }
 0x1d4   : > { %v10081_v27 = vpop.f32.mrf.mxu0  ;;  %v10850_v30 = vpop.eup %10849  ;;  %v3886_v55 = vsel %vm3736_vm6, %v12543_v43, %v8590_v48  ;;  %10863 = vpow2.f32 %v3815_v34  ;;  %v3678_v63 = vadd.f32 %v3577_v53, %v3312_v33  ;;  %v3314_v43 = vadd.f32 %v3221_v37, %v12523_v32 }
 0x1d5   : > { %v10037_v20 = vpop.f32.mrf.mxu1  ;;  %4093 = vst.msk [vmem:[#allocation3 + $0x15] sm:$0xff] %vm424_vm2, %v4063_v42  ;;  %v4066_v50 = vmul.f32 %v12580_v56, %v3886_v55  ;;  %v8589_v8 = vadd.f32 -1.0, %v10850_v30  ;;  %v3813_v3 = vmul.f32 1.442695, %v3773_v46  ;;  %v12664_v10 = vadd.f32 %v12494_v15, %v3679_v29 }
 0x1d6   : > { %v3587_v6 = vpop.f32.mrf.mxu0  ;;  %v10852_v24 = vpop.eup %10851  ;;  %v3681_v12 = vadd.f32 %v10081_v27, %v3315_v5  ;;  %v12674_v41 = vadd.f32 %v12494_v15, %v3678_v63  ;;  %vm3739_vm11 = vcmp.gt.f32.partialorder %v12603_v11, 0.0  ;;  %vm3742_vm12 = vcmp.gt.f32.partialorder %v12619_v47, 0.0 }
 0x1d7   : > { %v3231_v1 = vpop.f32.mrf.mxu1  ;;  %v10854_v36 = vpop.eup %10853  ;;  %4096 = vst.msk [vmem:[#allocation3 + $0x2d] sm:$0xff] %vm424_vm2, %v4066_v50  ;;  %v3885_v56 = vsel %vm3735_vm7, %v12561_v19, %v8589_v8  ;;  %v8592_v39 = vadd.f32 -1.0, %v10852_v24  ;;  %10865 = vpow2.f32 %v3813_v3  ;;  %v3776_v54 = vmin.f32 %v12664_v10, 0.0 }
 0x1d8   : > { %v10084_v28 = vpop.f32.mrf.mxu0  ;;  %v4065_v25 = vmul.f32 %v12545_v52, %v3885_v56  ;;  %v8591_v32 = vadd.f32 -1.0, %v10854_v36  ;;  %v3775_v48 = vmin.f32 %v12674_v41, 0.0  ;;  %v12686_v16 = vadd.f32 %v12494_v15, %v3681_v12 }
 0x1d9   : > { %v10040_v14 = vpop.f32.mrf.mxu1  ;;  %v10856_v53 = vpop.eup %10855  ;;  %v3888_v19 = vsel %vm3738_vm8, %v12571_v7, %v8592_v39  ;;  %v3680_v34 = vadd.f32 %v3587_v6, %v3314_v43  ;;  %v3819_v46 = vmul.f32 1.442695, %v3776_v54  ;;  %vm3741_vm13 = vcmp.gt.f32.partialorder %v12628_v38, 0.0 }
 0x1da   : > { %v3597_v52 = vpop.f32.mrf.mxu0  ;;  %4095 = vst.msk [vmem:[#allocation3 + $0x25] sm:$0xff] %vm424_vm2, %v4065_v25  ;;  %v4068_v37 = vmul.f32 %v12610_v21, %v3888_v19  ;;  %v3887_v42 = vsel %vm3737_vm9, %v12575_v45, %v8591_v32  ;;  %v8594_v33 = vadd.f32 -1.0, %v10856_v53  ;;  %v3817_v55 = vmul.f32 1.442695, %v3775_v48  ;;  %v12703_v6 = vpop.permute.xlu1 %3970 }
 0x1db   : > { %v3241_v27 = vpop.f32.mrf.mxu1  ;;  %v10858_v30 = vpop.eup %10857  ;;  %v4067_v7 = vmul.f32 %v12622_v59, %v3887_v42  ;;  %v3778_v5 = vmin.f32 %v12686_v16, 0.0  ;;  %10867 = vpow2.f32 %v3819_v46  ;;  %v3317_v45 = vadd.f32 %v10037_v20, %v12534_v31 }
 0x1dc   : > { %v10087_v29 = vpop.f32.mrf.mxu0  ;;  %4098 = vst.msk [vmem:[#allocation3 + $0x3d] sm:$0xff] %vm424_vm2, %v4068_v37  ;;  %v3890_v21 = vsel %vm3740_vm10, %v12593_v40, %v8594_v33  ;;  %v8593_v50 = vadd.f32 -1.0, %v10858_v30  ;;  %v4167_v3 = vld [vmem:[#allocation3 + $0x11] sm:$0xff]  ;;  %v4168_v63 = vld [vmem:[#allocation3 + $0x19] sm:$0xff]  ;;  %10869 = vpow2.f32 %v3817_v55  ;;  %v12708_v12 = vadd.f32 %v12494_v15, %v3680_v34  ;;  %v12720_v25 = vpop.permute.xlu0 %3965 }
 0x1dd   : > { %v12701_v8 = vpop.f32.mrf.mxu1  ;;  %v4125_v59 = vld [vmem:[#allocation3 + $0x10] sm:$0xff]  ;;  %4097 = vst.msk [vmem:[#allocation3 + $0x35] sm:$0xff] %vm424_vm2, %v4067_v7  ;;  %v4070_v24 = vmul.f32 %v12641_v0, %v3890_v21  ;;  %v3823_v43 = vmul.f32 1.442695, %v3778_v5  ;;  %10130 = vmatprep.mubr.msk.f32.mxu1 %vm424_vm2, %v4167_v3  ;;  %v4126_v31 = vld [vmem:[#allocation3 + $0x18] sm:$0xff]  ;;  %v3316_v0 = vadd.f32 %v3231_v1, %v12539_v2  ;;  %v3683_v56 = vadd.f32 %v10084_v28, %v3317_v45 }
 0x1de   : > { %v3607_v40 = vpop.f32.mrf.mxu0  ;;  %10199 = vmatprep.mubr.msk.f32.mxu0 %vm424_vm2, %v4125_v59  ;;  %v10860_v20 = vpop.eup %10859  ;;  %v3889_v36 = vsel %vm3739_vm11, %v12603_v11, %v8593_v50  ;;  %10131 = vmatmul.mubr.msk.f32.gmra.mxu1 %vm424_vm2, %v4168_v63  ;;  %v3319_v53 = vadd.f32 %v10040_v14, %v12548_v26  ;;  %v3777_v2 = vmin.f32 %v12708_v12, 0.0  ;;  %vm3744_vm14 = vcmp.gt.f32.partialorder %v12631_v17, 0.0 }
 0x1df   : > { %v12717_v39 = vpop.f32.mrf.mxu1  ;;  %4100 = vst.msk [vmem:[#allocation3 + $0x4d] sm:$0xff] %vm424_vm2, %v4070_v24  ;;  %v4069_v32 = vmul.f32 %v12650_v58, %v3889_v36  ;;  %v8596_v54 = vadd.f32 -1.0, %v10860_v20  ;;  %10871 = vpow2.f32 %v3823_v43  ;;  %10200 = vmatmul.mubr.msk.f32.gmra.mxu0 %vm424_vm2, %v4126_v31  ;;  %v12729_v1 = vadd.f32 %v12494_v15, %v3683_v56  ;;  %v12746_v21 = vpop.permute.xlu1 %3980 }
 0x1e0   : > { %v10090_v11 = vpop.f32.mrf.mxu0  ;;  %v10862_v19 = vpop.eup %10861  ;;  %v3682_v28 = vadd.f32 %v3597_v52, %v3316_v0  ;;  %v3685_v14 = vadd.f32 %v10087_v29, %v3319_v53  ;;  %v3821_v7 = vmul.f32 1.442695, %v3777_v2  ;;  %v3318_v55 = vadd.f32 %v3241_v27, %v12551_v18 }
 0x1e1   : > { %v12731_v48 = vpop.f32.mrf.mxu1  ;;  %v10864_v34 = vpop.eup %10863  ;;  %4099 = vst.msk [vmem:[#allocation3 + $0x45] sm:$0xff] %vm424_vm2, %v4069_v32  ;;  %v3892_v26 = vsel %vm3742_vm12, %v12619_v47, %v8596_v54  ;;  %v8595_v58 = vadd.f32 -1.0, %v10862_v19  ;;  %v4169_v42 = vld [vmem:[#allocation3 + $0x21] sm:$0xff]  ;;  %v4170_v46 = vld [vmem:[#allocation3 + $0x29] sm:$0xff]  ;;  %v3780_v50 = vmin.f32 %v12729_v1, 0.0  ;;  %vm3743_vm15 = vcmp.gt.f32.partialorder %v12644_v60, 0.0 }
 0x1e2   : > { %v12738_v37 = vpop.f32.mrf.mxu0  ;;  %v4127_v33 = vld [vmem:[#allocation3 + $0x20] sm:$0xff]  ;;  %v4072_v52 = vmul.f32 %v12667_v51, %v3892_v26  ;;  %v8598_v30 = vadd.f32 -1.0, %v10864_v34  ;;  %10133 = vmatprep.mubr.msk.f32.mxu1 %vm424_vm2, %v4169_v42  ;;  %v4128_v47 = vld [vmem:[#allocation3 + $0x28] sm:$0xff]  ;;  %v12753_v51 = vadd.f32 %v12494_v15, %v3682_v28  ;;  %v12756_v18 = vadd.f32 %v12494_v15, %v3685_v14  ;;  %v12767_v20 = vpop.permute.xlu0 %3975 }
 0x1e3   : > { %v12742_v5 = vpop.f32.mrf.mxu1  ;;  %10202 = vmatprep.mubr.msk.f32.mxu0 %vm424_vm2, %v4127_v33  ;;  %v3891_v29 = vsel %vm3741_vm13, %v12628_v38, %v8595_v58  ;;  %10134 = vmatmul.mubr.msk.f32.gmra.mxu1 %vm424_vm2, %v4170_v46  ;;  %10873 = vpow2.f32 %v3821_v7  ;;  %v3684_v59 = vadd.f32 %v3607_v40, %v3318_v55  ;;  %v3827_v56 = vmul.f32 1.442695, %v3780_v50  ;;  %v3991_v42 = vpop.permute.xlu1 %3990 }
 0x1e4   : > { %10203 = vmatmul.mubr.msk.f32.gmra.mxu0 %vm424_vm2, %v4128_v47  ;;  %v10093_v27 = vpop.f32.mrf.mxu0  ;;  %v10866_v45 = vpop.eup %10865  ;;  %4102 = vst.msk [vmem:[#allocation3 + $0x5d] sm:$0xff] %vm424_vm2, %v4072_v52  ;;  %v4071_v3 = vmul.f32 %v12679_v49, %v3891_v29  ;;  %v3894_v38 = vsel %vm3744_vm14, %v12631_v17, %v8598_v30  ;;  %v4171_v24 = vld [vmem:[#allocation3 + $0x31] sm:$0xff]  ;;  %v4172_v31 = vld [vmem:[#allocation3 + $0x39] sm:$0xff]  ;;  %v3321_v49 = vadd.f32 %v12701_v8, %v12353_v22  ;;  %v3779_v40 = vmin.f32 %v12753_v51, 0.0 }
 0x1e5   : > { %v12765_v63 = vpop.f32.mrf.mxu1  ;;  %v4129_v43 = vld [vmem:[#allocation3 + $0x30] sm:$0xff]  ;;  %v4074_v36 = vmul.f32 %v12703_v6, %v3894_v38  ;;  %v8597_v0 = vadd.f32 -1.0, %v10866_v45  ;;  %10136 = vmatprep.mubr.msk.f32.mxu1 %vm424_vm2, %v4171_v24  ;;  %v4130_v17 = vld [vmem:[#allocation3 + $0x38] sm:$0xff]  ;;  %v3782_v6 = vmin.f32 %v12756_v18, 0.0  ;;  %v12781_v54 = vadd.f32 %v12494_v15, %v3684_v59 }
 0x1e6   : > { %v12772_v32 = vpop.f32.mrf.mxu0  ;;  %10205 = vmatprep.mubr.msk.f32.mxu0 %vm424_vm2, %v4129_v43  ;;  %4101 = vst.msk [vmem:[#allocation3 + $0x55] sm:$0xff] %vm424_vm2, %v4071_v3  ;;  %10875 = vpow2.f32 %v3827_v56  ;;  %v3320_v8 = vadd.f32 %v12717_v39, %v12567_v9  ;;  %v3687_v19 = vadd.f32 %v10090_v11, %v3321_v49  ;;  %v3825_v34 = vmul.f32 1.442695, %v3779_v40  ;;  %v12806_v55 = vpop.permute.xlu0 %3985 }
 0x1e7   : > { %v12783_v53 = vpop.f32.mrf.mxu1  ;;  %4104 = vst.msk [vmem:[#allocation3 + $0x6d] sm:$0xff] %vm424_vm2, %v4074_v36  ;;  %v3893_v22 = vsel %vm3743_vm15, %v12644_v60, %v8597_v0  ;;  %10137 = vmatmul.mubr.msk.f32.gmra.mxu1 %vm424_vm2, %v4172_v31  ;;  %v3831_v26 = vmul.f32 1.442695, %v3782_v6  ;;  %v3323_v58 = vadd.f32 %v12731_v48, %v12583_v35  ;;  %vm3746_vm0 = vcmp.gt.f32.partialorder %v12664_v10, 0.0 }
 0x1e8   : > { %10206 = vmatmul.mubr.msk.f32.gmra.mxu0 %vm424_vm2, %v4130_v17  ;;  %v12791_v2 = vpop.f32.mrf.mxu0  ;;  %v4073_v28 = vmul.f32 %v12720_v25, %v3893_v22  ;;  %v4173_v14 = vld [vmem:[#allocation3 + $0x41] sm:$0xff]  ;;  %v10868_v60 = vpop.eup %10867  ;;  %v3781_v9 = vmin.f32 %v12781_v54, 0.0  ;;  %v12799_v39 = vadd.f32 %v12494_v15, %v3687_v19  ;;  %v3686_v11 = vadd.f32 %v12738_v37, %v3320_v8  ;;  %v4174_v33 = vld [vmem:[#allocation3 + $0x49] sm:$0xff] }
 0x1e9   : > { %10139 = vmatprep.mubr.msk.f32.mxu1 %vm424_vm2, %v4173_v14  ;;  %v4131_v25 = vld [vmem:[#allocation3 + $0x40] sm:$0xff]  ;;  %v4132_v46 = vld [vmem:[#allocation3 + $0x48] sm:$0xff]  ;;  %v10870_v52 = vpop.eup %10869  ;;  %v8600_v35 = vadd.f32 -1.0, %v10868_v60  ;;  %vm3745_vm1 = vcmp.gt.f32.partialorder %v12674_v41, 0.0  ;;  %10877 = vpow2.f32 %v3825_v34  ;;  %v3689_v48 = vadd.f32 %v10093_v27, %v3323_v58  ;;  %v10052_v30 = vpop.f32.mrf.mxu1 }
 0x1ea   : > { %4103 = vst.msk [vmem:[#allocation3 + $0x65] sm:$0xff] %vm424_vm2, %v4073_v28  ;;  %v3637_v7 = vpop.f32.mrf.mxu0  ;;  %10208 = vmatprep.mubr.msk.f32.mxu0 %vm424_vm2, %v4131_v25  ;;  %v8599_v37 = vadd.f32 -1.0, %v10870_v52  ;;  %vm3748_vm3 = vcmp.gt.f32.partialorder %v12686_v16, 0.0  ;;  %10879 = vpow2.f32 %v3831_v26  ;;  %v3829_v47 = vmul.f32 1.442695, %v3781_v9  ;;  %v12846_v28 = vpop.permute.xlu0 %3995 }
 0x1eb   : > { %10140 = vmatmul.mubr.msk.f32.gmra.mxu1 %vm424_vm2, %v4174_v33  ;;  %v3896_v50 = vsel %vm3746_vm0, %v12664_v10, %v8600_v35  ;;  %v3784_v27 = vmin.f32 %v12799_v39, 0.0  ;;  %v12816_v45 = vadd.f32 %v12494_v15, %v3686_v11  ;;  %v12819_v3 = vadd.f32 %v12494_v15, %v3689_v48  ;;  %v3281_v17 = vpop.f32.mrf.mxu1 }
 0x1ec   : > { %10209 = vmatmul.mubr.msk.f32.gmra.mxu0 %vm424_vm2, %v4132_v46  ;;  %v10872_v29 = vpop.eup %10871  ;;  %v4076_v38 = vmul.f32 %v12746_v21, %v3896_v50  ;;  %v3895_v59 = vsel %vm3745_vm1, %v12674_v41, %v8599_v37  ;;  %10881 = vpow2.f32 %v3829_v47  ;;  %v3322_v56 = vadd.f32 %v12742_v5, %v12589_v44  ;;  %v10099_v40 = vpop.f32.mrf.mxu0 }
 0x1ed   : > { %v8602_v24 = vadd.f32 -1.0, %v10872_v29  ;;  %v4175_v43 = vld [vmem:[#allocation3 + $0x51] sm:$0xff]  ;;  %v4176_v36 = vld [vmem:[#allocation3 + $0x59] sm:$0xff]  ;;  %v4075_v10 = vmul.f32 %v12767_v20, %v3895_v59  ;;  %v3835_v0 = vmul.f32 1.442695, %v3784_v27  ;;  %v3783_v49 = vmin.f32 %v12816_v45, 0.0  ;;  %v12831_v21 = vpop.permute.xlu1 %4000  ;;  %v10055_v60 = vpop.f32.mrf.mxu1 }
 0x1ee   : > { %v4133_v31 = vld [vmem:[#allocation3 + $0x50] sm:$0xff]  ;;  %10142 = vmatprep.mubr.msk.f32.mxu1 %vm424_vm2, %v4175_v43  ;;  %v4134_v41 = vld [vmem:[#allocation3 + $0x58] sm:$0xff]  ;;  %4106 = vst.msk [vmem:[#allocation3 + $0x7d] sm:$0xff] %vm424_vm2, %v4076_v38  ;;  %v3325_v44 = vadd.f32 %v12765_v63, %v12406_v13  ;;  %v3786_v5 = vmin.f32 %v12819_v3, 0.0  ;;  %v3324_v6 = vadd.f32 %v12783_v53, %v12596_v23  ;;  %v3688_v19 = vadd.f32 %v12772_v32, %v3322_v56 }
 0x1ef   : > { %10211 = vmatprep.mubr.msk.f32.mxu0 %vm424_vm2, %v4133_v31  ;;  %v3898_v20 = vsel %vm3748_vm3, %v12686_v16, %v8602_v24  ;;  %10143 = vmatmul.mubr.msk.f32.gmra.mxu1 %vm424_vm2, %v4176_v36  ;;  %4105 = vst.msk [vmem:[#allocation3 + $0x75] sm:$0xff] %vm424_vm2, %v4075_v10  ;;  %10883 = vpow2.f32 %v3835_v0  ;;  %v3833_v8 = vmul.f32 1.442695, %v3783_v49  ;;  %vm3747_vm4 = vcmp.gt.f32.partialorder %v12708_v12, 0.0  ;;  %v3291_v29 = vpop.f32.mrf.mxu1  ;;  %v4006_v10 = vpop.permute.xlu0 %4005 }
 0x1f0   : > { %10212 = vmatmul.mubr.msk.f32.gmra.mxu0 %vm424_vm2, %v4134_v41  ;;  %v4078_v22 = vmul.f32 %v3991_v42, %v3898_v20  ;;  %v10874_v16 = vpop.eup %10873  ;;  %v3839_v13 = vmul.f32 1.442695, %v3786_v5  ;;  %v3327_v63 = vadd.f32 %v10052_v30, %v12435_v4  ;;  %v3691_v23 = vadd.f32 %v12791_v2, %v3325_v44  ;;  %v3647_v42 = vpop.f32.mrf.mxu0 }
 0x1f1   : > { %v4177_v53 = vld [vmem:[#allocation3 + $0x61] sm:$0xff]  ;;  %v4178_v26 = vld [vmem:[#allocation3 + $0x69] sm:$0xff]  ;;  %v8601_v58 = vadd.f32 -1.0, %v10874_v16  ;;  %10885 = vpow2.f32 %v3833_v8  ;;  %v12853_v14 = vadd.f32 %v12494_v15, %v3688_v19  ;;  %v3690_v32 = vadd.f32 %v3637_v7, %v3324_v6  ;;  %v4011_v52 = vpop.permute.xlu1 %4010 }
 0x1f2   : > { %v4135_v34 = vld [vmem:[#allocation3 + $0x60] sm:$0xff]  ;;  %4108 = vst.msk [vmem:[#allocation3 + $0x8d] sm:$0xff] %vm424_vm2, %v4078_v22  ;;  %10145 = vmatprep.mubr.msk.f32.mxu1 %vm424_vm2, %v4177_v53  ;;  %v4136_v4 = vld [vmem:[#allocation3 + $0x68] sm:$0xff]  ;;  %vm3750_vm5 = vcmp.gt.f32.partialorder %v12729_v1, 0.0  ;;  %10887 = vpow2.f32 %v3839_v13  ;;  %v12859_v2 = vadd.f32 %v12494_v15, %v3691_v23  ;;  %v3693_v9 = vadd.f32 %v10099_v40, %v3327_v63  ;;  %v10102_v50 = vpop.f32.mrf.mxu0 }
 0x1f3   : > { %10214 = vmatprep.mubr.msk.f32.mxu0 %vm424_vm2, %v4135_v34  ;;  %10146 = vmatmul.mubr.msk.f32.gmra.mxu1 %vm424_vm2, %v4178_v26  ;;  %v10876_v11 = vpop.eup %10875  ;;  %v3897_v25 = vsel %vm3747_vm4, %v12708_v12, %v8601_v58  ;;  %vm3749_vm6 = vcmp.gt.f32.partialorder %v12753_v51, 0.0  ;;  %v3785_v33 = vmin.f32 %v12853_v14, 0.0  ;;  %v12869_v46 = vadd.f32 %v12494_v15, %v3690_v32  ;;  %v4016_v53 = vpop.permute.xlu0 %4015 }
 0x1f4   : > { %10215 = vmatmul.mubr.msk.f32.gmra.mxu0 %vm424_vm2, %v4136_v4  ;;  %v4077_v35 = vmul.f32 %v12806_v55, %v3897_v25  ;;  %v8604_v48 = vadd.f32 -1.0, %v10876_v11  ;;  %v3788_v30 = vmin.f32 %v12859_v2, 0.0  ;;  %v3326_v7 = vadd.f32 %v3281_v17, %v12613_v57  ;;  %v3657_v5 = vpop.f32.mrf.mxu0 }
 0x1f5   : > { %vm3752_vm7 = vcmp.gt.f32.partialorder %v12756_v18, 0.0  ;;  %v3837_v37 = vmul.f32 1.442695, %v3785_v33  ;;  %v3787_v12 = vmin.f32 %v12869_v46, 0.0  ;;  %v12877_v47 = vadd.f32 %v12494_v15, %v3693_v9  ;;  %v4021_v6 = vpop.permute.xlu1 %4020 }
 0x1f6   : > { %v10878_v27 = vpop.eup %10877  ;;  %4107 = vst.msk [vmem:[#allocation3 + $0x85] sm:$0xff] %vm424_vm2, %v4077_v35  ;;  %v3900_v55 = vsel %vm3750_vm5, %v12729_v1, %v8604_v48  ;;  %v3843_v38 = vmul.f32 1.442695, %v3788_v30  ;;  %v3329_v57 = vadd.f32 %v10055_v60, %v12466_v61  ;;  %v3692_v59 = vadd.f32 %v3647_v42, %v3326_v7  ;;  %v4179_v24 = vld [vmem:[#allocation3 + $0x71] sm:$0xff]  ;;  %v4180_v31 = vld [vmem:[#allocation3 + $0x79] sm:$0xff] }
 0x1f7   : > { %v4137_v43 = vld [vmem:[#allocation3 + $0x70] sm:$0xff]  ;;  %v10880_v36 = vpop.eup %10879  ;;  %v4080_v0 = vmul.f32 %v12831_v21, %v3900_v55  ;;  %v8603_v56 = vadd.f32 -1.0, %v10878_v27  ;;  %10889 = vpow2.f32 %v3837_v37  ;;  %v3841_v49 = vmul.f32 1.442695, %v3787_v12  ;;  %10148 = vmatprep.mubr.msk.f32.mxu1 %vm424_vm2, %v4179_v24  ;;  %v4138_v17 = vld [vmem:[#allocation3 + $0x78] sm:$0xff]  ;;  %v4026_v12 = vpop.permute.xlu0 %4025 }
 0x1f8   : > { %10217 = vmatprep.mubr.msk.f32.mxu0 %vm424_vm2, %v4137_v43  ;;  %v8606_v1 = vadd.f32 -1.0, %v10880_v36  ;;  %10891 = vpow2.f32 %v3843_v38  ;;  %v3790_v61 = vmin.f32 %v12877_v47, 0.0  ;;  %v3328_v40 = vadd.f32 %v3291_v29, %v12616_v62  ;;  %10149 = vmatmul.mubr.msk.f32.gmra.mxu1 %vm424_vm2, %v4180_v31 }
 0x1f9   : > { %10218 = vmatmul.mubr.msk.f32.gmra.mxu0 %vm424_vm2, %v4138_v17  ;;  %v10882_v41 = vpop.eup %10881  ;;  %4110 = vst.msk [vmem:[#allocation3 + $0x9d] sm:$0xff] %vm424_vm2, %v4080_v0  ;;  %v3899_v21 = vsel %vm3749_vm6, %v12753_v51, %v8603_v56  ;;  %10893 = vpow2.f32 %v3841_v49  ;;  %v12896_v20 = vadd.f32 %v12494_v15, %v3692_v59  ;;  %v3695_v44 = vadd.f32 %v10102_v50, %v3329_v57 }
 0x1fa   : > { %v4079_v62 = vmul.f32 %v12846_v28, %v3899_v21  ;;  %v3902_v22 = vsel %vm3752_vm7, %v12756_v18, %v8606_v1  ;;  %v8605_v8 = vadd.f32 -1.0, %v10882_v41  ;;  %v3847_v19 = vmul.f32 1.442695, %v3790_v61 }
 0x1fb   : > { %v4082_v16 = vmul.f32 %v4011_v52, %v3902_v22  ;;  %vm3751_vm8 = vcmp.gt.f32.partialorder %v12781_v54, 0.0  ;;  %v3789_v51 = vmin.f32 %v12896_v20, 0.0  ;;  %v12905_v13 = vadd.f32 %v12494_v15, %v3695_v44  ;;  %v4031_v52 = vpop.permute.xlu1 %4030  ;;  %v4036_v41 = vpop.permute.xlu0 %4035 }
 0x1fc   : > { %v10884_v63 = vpop.eup %10883  ;;  %4109 = vst.msk [vmem:[#allocation3 + $0x95] sm:$0xff] %vm424_vm2, %v4079_v62  ;;  %v3901_v23 = vsel %vm3751_vm8, %v12781_v54, %v8605_v8  ;;  %10895 = vpow2.f32 %v3847_v19  ;;  %v3694_v28 = vadd.f32 %v3657_v5, %v3328_v40  ;;  %vm3754_vm9 = vcmp.gt.f32.partialorder %v12799_v39, 0.0 }
 0x1fd   : > { %4112 = vst.msk [vmem:[#allocation3 + $0xad] sm:$0xff] %vm424_vm2, %v4082_v16  ;;  %v4081_v18 = vmul.f32 %v4006_v10, %v3901_v23  ;;  %v8608_v34 = vadd.f32 -1.0, %v10884_v63  ;;  %v3845_v26 = vmul.f32 1.442695, %v3789_v51  ;;  %v4181_v58 = vld [vmem:[#allocation3 + $0x81] sm:$0xff]  ;;  %v3792_v42 = vmin.f32 %v12905_v13, 0.0 }
 0x1fe   : > { %v4139_v32 = vld [vmem:[#allocation3 + $0x80] sm:$0xff]  ;;  %v10886_v60 = vpop.eup %10885  ;;  %v12913_v4 = vadd.f32 %v12494_v15, %v3694_v28  ;;  %10151 = vmatprep.mubr.msk.f32.mxu1 %vm424_vm2, %v4181_v58  ;;  %v4182_v54 = vld [vmem:[#allocation3 + $0x89] sm:$0xff]  ;;  %vm3753_vm10 = vcmp.gt.f32.partialorder %v12816_v45, 0.0  ;;  %vm3756_vm11 = vcmp.gt.f32.partialorder %v12819_v3, 0.0  ;;  %vm3755_vm12 = vcmp.gt.f32.partialorder %v12853_v14, 0.0 }
 0x1ff   : > { %10220 = vmatprep.mubr.msk.f32.mxu0 %vm424_vm2, %v4139_v32  ;;  %v4140_v9 = vld [vmem:[#allocation3 + $0x88] sm:$0xff]  ;;  %v10888_v11 = vpop.eup %10887  ;;  %4111 = vst.msk [vmem:[#allocation3 + $0xa5] sm:$0xff] %vm424_vm2, %v4081_v18  ;;  %v3904_v25 = vsel %vm3754_vm9, %v12799_v39, %v8608_v34  ;;  %v8607_v33 = vadd.f32 -1.0, %v10886_v60  ;;  %10897 = vpow2.f32 %v3845_v26  ;;  %10152 = vmatmul.mubr.msk.f32.gmra.mxu1 %vm424_vm2, %v4182_v54  ;;  %v3851_v48 = vmul.f32 1.442695, %v3792_v42  ;;  %v4041_v43 = vpop.permute.xlu1 %4040 }
 0x200   : > { %10221 = vmatmul.mubr.msk.f32.gmra.mxu0 %vm424_vm2, %v4140_v9  ;;  %v4084_v15 = vmul.f32 %v4021_v6, %v3904_v25  ;;  %v8610_v35 = vadd.f32 -1.0, %v10888_v11  ;;  %v3791_v7 = vmin.f32 %v12913_v4, 0.0  ;;  %vm3758_vm13 = vcmp.gt.f32.partialorder %v12859_v2, 0.0  ;;  %v4046_v23 = vpop.permute.xlu0 %4045 }
 0x201   : > { %v3903_v30 = vsel %vm3753_vm10, %v12816_v45, %v8607_v33  ;;  %10899 = vpow2.f32 %v3851_v48  ;;  %vm3757_vm14 = vcmp.gt.f32.partialorder %v12869_v46, 0.0  ;;  %vm3760_vm15 = vcmp.gt.f32.partialorder %v12877_v47, 0.0 }
 0x202   : > { %4114 = vst.msk [vmem:[#allocation3 + $0xbd] sm:$0xff] %vm424_vm2, %v4084_v15  ;;  %v4083_v39 = vmul.f32 %v4016_v53, %v3903_v30  ;;  %v3906_v37 = vsel %vm3756_vm11, %v12819_v3, %v8610_v35  ;;  %v3849_v50 = vmul.f32 1.442695, %v3791_v7  ;;  %vm3759_vm0 = vcmp.gt.f32.partialorder %v12896_v20, 0.0  ;;  %v4817_v35 = vld [vmem:[#allocation3 + $0x2] sm:$0xff] }
 0x203   : > { %v4086_v29 = vmul.f32 %v4031_v52, %v3906_v37  ;;  %v4183_v27 = vld [vmem:[#allocation3 + $0x91] sm:$0xff]  ;;  %v4184_v38 = vld [vmem:[#allocation3 + $0x99] sm:$0xff]  ;;  %v4051_v8 = vpop.permute.xlu1 %4050  ;;  %vm3762_vm1 = vcmp.gt.f32.partialorder %v12905_v13, 0.0  ;;  %vm3761_vm3 = vcmp.gt.f32.partialorder %v12913_v4, 0.0 }
 0x204   : > { %v4141_v55 = vld [vmem:[#allocation3 + $0x90] sm:$0xff]  ;;  %v10890_v57 = vpop.eup %10889  ;;  %4113 = vst.msk [vmem:[#allocation3 + $0xb5] sm:$0xff] %vm424_vm2, %v4083_v39  ;;  %10154 = vmatprep.mubr.msk.f32.mxu1 %vm424_vm2, %v4183_v27  ;;  %v4142_v45 = vld [vmem:[#allocation3 + $0x98] sm:$0xff]  ;;  %10901 = vpow2.f32 %v3849_v50  ;;  %v4056_v33 = vpop.permute.xlu0 %4055 }
 0x205   : > { %10223 = vmatprep.mubr.msk.f32.mxu0 %vm424_vm2, %v4141_v55  ;;  %v10892_v59 = vpop.eup %10891  ;;  %4116 = vst.msk [vmem:[#allocation3 + $0xcd] sm:$0xff] %vm424_vm2, %v4086_v29  ;;  %v8609_v24 = vadd.f32 -1.0, %v10890_v57  ;;  %10155 = vmatmul.mubr.msk.f32.gmra.mxu1 %vm424_vm2, %v4184_v38  ;;  %v4818_v37 = vld [vmem:[#allocation3 + $0xa] sm:$0xff]  ;;  %v4819_v50 = vld [vmem:[#allocation3 + $0x12] sm:$0xff] }
 0x206   : > { %10224 = vmatmul.mubr.msk.f32.gmra.mxu0 %vm424_vm2, %v4142_v45  ;;  %v10894_v3 = vpop.eup %10893  ;;  %v8612_v31 = vadd.f32 -1.0, %v10892_v59  ;;  %v4185_v36 = vld [vmem:[#allocation3 + $0xa1] sm:$0xff]  ;;  %v4186_v0 = vld [vmem:[#allocation3 + $0xa9] sm:$0xff]  ;;  %v11023_v27 = vld [vmem:[%s14575_s4 + $0x1d8] sm:$0xff] }
 0x207   : > { %v4143_v10 = vld [vmem:[#allocation3 + $0xa0] sm:$0xff]  ;;  %v3905_v56 = vsel %vm3755_vm12, %v12853_v14, %v8609_v24  ;;  %v8611_v49 = vadd.f32 -1.0, %v10894_v3  ;;  %10157 = vmatprep.mubr.msk.f32.mxu1 %vm424_vm2, %v4185_v36  ;;  %v4144_v17 = vld [vmem:[#allocation3 + $0xa8] sm:$0xff]  ;;  %v4061_v32 = vpop.permute.xlu1 %4060  ;;  %v5611_v29 = vld [vmem:[%s14575_s4 + $0x1d0] sm:$0xff] }
 0x208   : > { %10226 = vmatprep.mubr.msk.f32.mxu0 %vm424_vm2, %v4143_v10  ;;  %v4085_v1 = vmul.f32 %v4026_v12, %v3905_v56  ;;  %v3908_v61 = vsel %vm3758_vm13, %v12859_v2, %v8612_v31  ;;  %v5195_v12 = vld [vmem:[#allocation3 + $0x1c] sm:$0xff]  ;;  %v5196_v55 = vld [vmem:[#allocation3 + $0x24] sm:$0xff]  ;;  %v5197_v3 = vld [vmem:[#allocation3 + $0x2c] sm:$0xff] }
 0x209   : > { %v10896_v40 = vpop.eup %10895  ;;  %v4088_v21 = vmul.f32 %v4041_v43, %v3908_v61  ;;  %v3907_v44 = vsel %vm3757_vm14, %v12869_v46, %v8611_v49  ;;  %10158 = vmatmul.mubr.msk.f32.gmra.mxu1 %vm424_vm2, %v4186_v0  ;;  %v5610_v45 = vld [vmem:[%s14575_s4 + $0x1c8] sm:$0xff]  ;;  %v4820_v24 = vld [vmem:[#allocation3 + $0x1a] sm:$0xff]  ;;  %v5988_v31 = vld [vmem:[%s14575_s4 + $0x230] sm:$0xff] }
 0x20a   : > { %10227 = vmatmul.mubr.msk.f32.gmra.mxu0 %vm424_vm2, %v4144_v17  ;;  %4115 = vst.msk [vmem:[#allocation3 + $0xc5] sm:$0xff] %vm424_vm2, %v4085_v1  ;;  %v4087_v14 = vmul.f32 %v4036_v41, %v3907_v44  ;;  %v8614_v5 = vadd.f32 -1.0, %v10896_v40  ;;  %v11024_v43 = vld [vmem:[%s14575_s4 + $0x238] sm:$0xff]  ;;  %v4821_v36 = vld [vmem:[#allocation3 + $0x22] sm:$0xff]  ;;  %v4822_v56 = vld [vmem:[#allocation3 + $0x2a] sm:$0xff] }
 0x20b   : > { %4118 = vst.msk [vmem:[#allocation3 + $0xdd] sm:$0xff] %vm424_vm2, %v4088_v21  ;;  %v4187_v2 = vld [vmem:[#allocation3 + $0xb1] sm:$0xff]  ;;  %v4188_v62 = vld [vmem:[#allocation3 + $0xb9] sm:$0xff]  ;;  %v5987_v17 = vld [vmem:[%s14575_s4 + $0x228] sm:$0xff] }
 0x20c   : > { %v4145_v6 = vld [vmem:[#allocation3 + $0xb0] sm:$0xff]  ;;  %v10898_v22 = vpop.eup %10897  ;;  %4117 = vst.msk [vmem:[#allocation3 + $0xd5] sm:$0xff] %vm424_vm2, %v4087_v14  ;;  %v3910_v46 = vsel %vm3760_vm15, %v12877_v47, %v8614_v5  ;;  %10160 = vmatprep.mubr.msk.f32.mxu1 %vm424_vm2, %v4187_v2  ;;  %v4146_v19 = vld [vmem:[#allocation3 + $0xb8] sm:$0xff]  ;;  %v5609_v0 = vld [vmem:[%s14575_s4 + $0x1c0] sm:$0xff] }
 0x20d   : > { %10229 = vmatprep.mubr.msk.f32.mxu0 %vm424_vm2, %v4145_v6  ;;  %v4090_v16 = vmul.f32 %v4051_v8, %v3910_v46  ;;  %v8613_v51 = vadd.f32 -1.0, %v10898_v22  ;;  %10161 = vmatmul.mubr.msk.f32.gmra.mxu1 %vm424_vm2, %v4188_v62  ;;  %v5198_v10 = vld [vmem:[#allocation3 + $0x34] sm:$0xff]  ;;  %v5199_v49 = vld [vmem:[#allocation3 + $0x3c] sm:$0xff]  ;;  %v5200_v61 = vld [vmem:[#allocation3 + $0x44] sm:$0xff] }
 0x20e   : > { %10230 = vmatmul.mubr.msk.f32.gmra.mxu0 %vm424_vm2, %v4146_v19  ;;  %v10900_v63 = vpop.eup %10899  ;;  %v4823_v1 = vld [vmem:[#allocation3 + $0x32] sm:$0xff]  ;;  %v4824_v41 = vld [vmem:[#allocation3 + $0x3a] sm:$0xff]  ;;  %v4825_v14 = vld [vmem:[#allocation3 + $0x42] sm:$0xff] }
 0x20f   : > { %4120 = vst.msk [vmem:[#allocation3 + $0xed] sm:$0xff] %vm424_vm2, %v4090_v16  ;;  %v3909_v28 = vsel %vm3759_vm0, %v12896_v20, %v8613_v51  ;;  %v8616_v53 = vadd.f32 -1.0, %v10900_v63  ;;  %v5608_v40 = vld [vmem:[%s14575_s4 + $0x1b8] sm:$0xff]  ;;  %v5201_v21 = vld [vmem:[#allocation3 + $0x4c] sm:$0xff]  ;;  %v5986_v44 = vld [vmem:[%s14575_s4 + $0x220] sm:$0xff] }
 0x210   : > { %v4089_v47 = vmul.f32 %v4046_v23, %v3909_v28  ;;  %v5202_v5 = vld [vmem:[#allocation3 + $0x54] sm:$0xff]  ;;  %v4826_v6 = vld [vmem:[#allocation3 + $0x4a] sm:$0xff]  ;;  %v5203_v62 = vld [vmem:[#allocation3 + $0x5c] sm:$0xff] }
 0x211   : > { %v4189_v18 = vld [vmem:[#allocation3 + $0xc1] sm:$0xff]  ;;  %v4190_v26 = vld [vmem:[#allocation3 + $0xc9] sm:$0xff]  ;;  %v10902_v58 = vpop.eup %10901  ;;  %v3912_v60 = vsel %vm3762_vm1, %v12905_v13, %v8616_v53  ;;  %v5985_v22 = vld [vmem:[%s14575_s4 + $0x218] sm:$0xff] }
 0x212   : > { %v4147_v34 = vld [vmem:[#allocation3 + $0xc0] sm:$0xff]  ;;  %4119 = vst.msk [vmem:[#allocation3 + $0xe5] sm:$0xff] %vm424_vm2, %v4089_v47  ;;  %10163 = vmatprep.mubr.msk.f32.mxu1 %vm424_vm2, %v4189_v18  ;;  %v4148_v42 = vld [vmem:[#allocation3 + $0xc8] sm:$0xff]  ;;  %v4092_v54 = vmul.f32 %v4061_v32, %v3912_v60  ;;  %v8615_v20 = vadd.f32 -1.0, %v10902_v58  ;;  %v5607_v2 = vld [vmem:[%s14575_s4 + $0x1b0] sm:$0xff] }
 0x213   : > { %10232 = vmatprep.mubr.msk.f32.mxu0 %vm424_vm2, %v4147_v34  ;;  %10164 = vmatmul.mubr.msk.f32.gmra.mxu1 %vm424_vm2, %v4190_v26  ;;  %v4191_v9 = vld [vmem:[#allocation3 + $0xd1] sm:$0xff]  ;;  %v4192_v13 = vld [vmem:[#allocation3 + $0xd9] sm:$0xff]  ;;  %v5204_v46 = vld [vmem:[#allocation3 + $0x64] sm:$0xff] }
 0x214   : > { %10233 = vmatmul.mubr.msk.f32.gmra.mxu0 %vm424_vm2, %v4148_v42  ;;  %v4149_v11 = vld [vmem:[#allocation3 + $0xd0] sm:$0xff]  ;;  %10166 = vmatprep.mubr.msk.f32.mxu1 %vm424_vm2, %v4191_v9  ;;  %v4150_v25 = vld [vmem:[#allocation3 + $0xd8] sm:$0xff]  ;;  %4122 = vst.msk [vmem:[#allocation3 + $0xfd] sm:$0xff] %vm424_vm2, %v4092_v54  ;;  %v3911_v52 = vsel %vm3761_vm3, %v12913_v4, %v8615_v20  ;;  %v5606_v19 = vld [vmem:[%s14575_s4 + $0x1a8] sm:$0xff] }
 0x215   : > { %10235 = vmatprep.mubr.msk.f32.mxu0 %vm424_vm2, %v4149_v11  ;;  %v4091_v15 = vmul.f32 %v4056_v33, %v3911_v52  ;;  %v5194_v4 = vld [vmem:[#allocation3 + $0x14] sm:$0xff]  ;;  %v5205_v51 = vld [vmem:[#allocation3 + $0x6c] sm:$0xff]  ;;  %v4829_v23 = vld [vmem:[#allocation3 + $0x62] sm:$0xff] }
 0x216   : > { %v4827_v8 = vld [vmem:[#allocation3 + $0x52] sm:$0xff]  ;;  %v4828_v16 = vld [vmem:[#allocation3 + $0x5a] sm:$0xff]  ;;  %v4830_v53 = vld [vmem:[#allocation3 + $0x6a] sm:$0xff] }
 0x217   : > { %10167 = vmatmul.mubr.msk.f32.gmra.mxu1 %vm424_vm2, %v4192_v13  ;;  %4121 = vst.msk [vmem:[#allocation3 + $0xf5] sm:$0xff] %vm424_vm2, %v4091_v15  ;;  %v5984_v63 = vld [vmem:[%s14575_s4 + $0x210] sm:$0xff]  ;;  %v5605_v47 = vld [vmem:[%s14575_s4 + $0x1a0] sm:$0xff]  ;;  %v5983_v34 = vld [vmem:[%s14575_s4 + $0x208] sm:$0xff] }
 0x218   : > { %10236 = vmatmul.mubr.msk.f32.gmra.mxu0 %vm424_vm2, %v4150_v25  ;;  %v5206_v28 = vld [vmem:[#allocation3 + $0x74] sm:$0xff]  ;;  %v5207_v18 = vld [vmem:[#allocation3 + $0x7c] sm:$0xff]  ;;  %v5208_v58 = vld [vmem:[#allocation3 + $0x84] sm:$0xff] }
 0x219   : > { %v4193_v48 = vld [vmem:[#allocation3 + $0xe1] sm:$0xff]  ;;  %v4194_v7 = vld [vmem:[#allocation3 + $0xe9] sm:$0xff]  ;;  %v4831_v26 = vld [vmem:[#allocation3 + $0x72] sm:$0xff] }
 0x21a   : > { %v4151_v30 = vld [vmem:[#allocation3 + $0xe0] sm:$0xff]  ;;  %10169 = vmatprep.mubr.msk.f32.mxu1 %vm424_vm2, %v4193_v48  ;;  %v4152_v39 = vld [vmem:[#allocation3 + $0xe8] sm:$0xff]  ;;  %v5604_v32 = vld [vmem:[%s14575_s4 + $0x198] sm:$0xff] }
 0x21b   : > { %10238 = vmatprep.mubr.msk.f32.mxu0 %vm424_vm2, %v4151_v30  ;;  %10170 = vmatmul.mubr.msk.f32.gmra.mxu1 %vm424_vm2, %v4194_v7  ;;  %v4832_v60 = vld [vmem:[#allocation3 + $0x7a] sm:$0xff]  ;;  %v5209_v42 = vld [vmem:[#allocation3 + $0x8c] sm:$0xff]  ;;  %v4833_v20 = vld [vmem:[#allocation3 + $0x82] sm:$0xff] }
 0x21c   : > { %10239 = vmatmul.mubr.msk.f32.gmra.mxu0 %vm424_vm2, %v4152_v39  ;;  %10265 = vmatprep.mubr.msk.f32.mxu1 %vm424_vm2, %v4817_v35  ;;  %v5982_v54 = vld [vmem:[%s14575_s4 + $0x200] sm:$0xff]  ;;  %v5210_v9 = vld [vmem:[#allocation3 + $0x94] sm:$0xff]  ;;  %v4834_v13 = vld [vmem:[#allocation3 + $0x8a] sm:$0xff] }
 0x21d   : > { %10334 = vmatprep.mubr.msk.f32.mxu0 %vm424_vm2, %v5194_v4  ;;  %v10198_v57 = vpop.f32.mrf.mxu0  ;;  %v5603_v11 = vld [vmem:[%s14575_s4 + $0x190] sm:$0xff]  ;;  %v5211_v25 = vld [vmem:[#allocation3 + $0x9c] sm:$0xff]  ;;  %v5212_v15 = vld [vmem:[#allocation3 + $0xa4] sm:$0xff] }
 0x21e   : > { %v5981_v33 = vld [vmem:[%s14575_s4 + $0x1f8] sm:$0xff]  ;;  %v5602_v35 = vld [vmem:[%s14575_s4 + $0x188] sm:$0xff]  ;;  %v5980_v7 = vld [vmem:[%s14575_s4 + $0x1f0] sm:$0xff] }
 0x21f   : > { %10266 = vmatmul.mubr.msk.f32.vlgmr.msra.gmra.mxu1 %vm424_vm2, %v4818_v37  ;;  %v10129_v38 = vpop.f32.mrf.mxu1  ;;  %v4835_v52 = vld [vmem:[#allocation3 + $0x92] sm:$0xff]  ;;  %v4836_v48 = vld [vmem:[#allocation3 + $0x9a] sm:$0xff]  ;;  %v4837_v39 = vld [vmem:[#allocation3 + $0xa2] sm:$0xff] }
 0x220   : > { %10335 = vmatmul.mubr.msk.f32.vlgmr.msra.gmra.mxu0 %vm424_vm2, %v5195_v12  ;;  %10380 = vmatpush3.msra.mxu1 %v11023_v27  ;;  %v12989_v59 = vadd.f32 %v10198_v57, %v10129_v38  ;;  %v5213_v30 = vld [vmem:[#allocation3 + $0xac] sm:$0xff]  ;;  %v5214_v4 = vld [vmem:[#allocation3 + $0xb4] sm:$0xff]  ;;  %v5601_v37 = vld [vmem:[%s14575_s4 + $0x180] sm:$0xff] }
 0x221   : > { %10268 = vmatprep.mubr.msk.f32.mxu1 %vm424_vm2, %v4819_v50  ;;  %10337 = vmatprep.mubr.msk.f32.mxu0 %vm424_vm2, %v5196_v55  ;;  %v4838_v12 = vld [vmem:[#allocation3 + $0xaa] sm:$0xff]  ;;  %v4839_v27 = vld [vmem:[#allocation3 + $0xb2] sm:$0xff]  ;;  %v5978_v38 = vld [vmem:[%s14575_s4 + $0x1e0] sm:$0xff] }
 0x222   : > { %10381 = vmatprep.subr.mxu1 %v5611_v29  ;;  %10449 = vmatpush3.msra.mxu0 %v11024_v43  ;;  %v5979_v50 = vld [vmem:[%s14575_s4 + $0x1e8] sm:$0xff]  ;;  %v4840_v57 = vld [vmem:[#allocation3 + $0xba] sm:$0xff] }
 0x223   : > { %10382 = vmatpush3.msra.mxu1 %v5611_v29  ;;  %10450 = vmatprep.subr.mxu0 %v5988_v31  ;;  %v5215_v29 = vld [vmem:[#allocation3 + $0xbc] sm:$0xff]  ;;  %v5216_v55 = vld [vmem:[#allocation3 + $0xc4] sm:$0xff]  ;;  %v5218_v43 = vld [vmem:[#allocation3 + $0xd4] sm:$0xff] }
 0x224   : > { %10269 = vmatmul.mubr.msk.f32.gmra.mxu1 %vm424_vm2, %v4820_v24  ;;  %10338 = vmatmul.mubr.msk.f32.gmra.mxu0 %vm424_vm2, %v5197_v3  ;;  %v6366_v24 = vld [vmem:[%s14575_s4 + $0x298] sm:$0xff]  ;;  %v4841_v3 = vld [vmem:[#allocation3 + $0xc2] sm:$0xff] }
 0x225   : > { %10271 = vmatprep.mubr.msk.f32.mxu1 %vm424_vm2, %v4821_v36  ;;  %10340 = vmatprep.mubr.msk.f32.mxu0 %vm424_vm2, %v5198_v10  ;;  %v5219_v36 = vld [vmem:[#allocation3 + $0xdc] sm:$0xff] }
 0x226   : > { %10383 = vmatprep.subr.mxu1 %v5610_v45  ;;  %10451 = vmatpush3.msra.mxu0 %v5988_v31  ;;  %v4842_v31 = vld [vmem:[#allocation3 + $0xca] sm:$0xff]  ;;  %v6743_v10 = vld [vmem:[%s14575_s4 + $0x2f8] sm:$0xff] }
 0x227   : > { %10384 = vmatpush3.msra.mxu1 %v5610_v45  ;;  %10452 = vmatprep.subr.mxu0 %v5987_v17  ;;  %v5217_v45 = vld [vmem:[#allocation3 + $0xcc] sm:$0xff] }
 0x228   : > { %10272 = vmatmul.mubr.msk.f32.gmra.mxu1 %vm424_vm2, %v4822_v56  ;;  %10341 = vmatmul.mubr.msk.f32.gmra.mxu0 %vm424_vm2, %v5199_v49  ;;  %v5220_v56 = vld [vmem:[#allocation3 + $0xe4] sm:$0xff]  ;;  %v4844_v49 = vld [vmem:[#allocation3 + $0xda] sm:$0xff] }
 0x229   : > { %10274 = vmatprep.mubr.msk.f32.mxu1 %vm424_vm2, %v4823_v1  ;;  %10343 = vmatprep.mubr.msk.f32.mxu0 %vm424_vm2, %v5200_v61  ;;  %v4845_v1 = vld [vmem:[#allocation3 + $0xe2] sm:$0xff]  ;;  %v5222_v61 = vld [vmem:[#allocation3 + $0xf4] sm:$0xff] }
 0x22a   : > { %10385 = vmatprep.subr.mxu1 %v5609_v0  ;;  %10453 = vmatpush3.msra.mxu0 %v5987_v17  ;;  %v5221_v17 = vld [vmem:[#allocation3 + $0xec] sm:$0xff] }
 0x22b   : > { %10386 = vmatpush3.msra.mxu1 %v5609_v0  ;;  %10454 = vmatprep.subr.mxu0 %v5986_v44  ;;  %v4843_v0 = vld [vmem:[#allocation3 + $0xd2] sm:$0xff] }
 0x22c   : > { %10275 = vmatmul.mubr.msk.f32.gmra.mxu1 %vm424_vm2, %v4824_v41  ;;  %10344 = vmatmul.mubr.msk.f32.gmra.mxu0 %vm424_vm2, %v5201_v21  ;;  %v5223_v41 = vld [vmem:[#allocation3 + $0xfc] sm:$0xff] }
 0x22d   : > { %10277 = vmatprep.mubr.msk.f32.mxu1 %vm424_vm2, %v4825_v14  ;;  %10346 = vmatprep.mubr.msk.f32.mxu0 %vm424_vm2, %v5202_v5  ;;  %v5571_v21 = vld [vmem:[#allocation3 + $0x15] sm:$0xff]  ;;  %v5572_v14 = vld [vmem:[#allocation3 + $0x1d] sm:$0xff] }
 0x22e   : > { %10387 = vmatprep.subr.mxu1 %v5608_v40  ;;  %10455 = vmatpush3.msra.mxu0 %v5986_v44  ;;  %v5948_v44 = vld [vmem:[#allocation3 + $0x16] sm:$0xff]  ;;  %v5949_v5 = vld [vmem:[#allocation3 + $0x1e] sm:$0xff] }
 0x22f   : > { %10388 = vmatpush3.msra.mxu1 %v5608_v40  ;;  %10456 = vmatprep.subr.mxu0 %v5985_v22  ;;  %v4846_v40 = vld [vmem:[#allocation3 + $0xea] sm:$0xff] }
 0x230   : > { %10278 = vmatmul.mubr.msk.f32.gmra.mxu1 %vm424_vm2, %v4826_v6  ;;  %10347 = vmatmul.mubr.msk.f32.gmra.mxu0 %vm424_vm2, %v5203_v62  ;;  %v5573_v6 = vld [vmem:[#allocation3 + $0x25] sm:$0xff] }
 0x231   : > { %10280 = vmatprep.mubr.msk.f32.mxu1 %vm424_vm2, %v4827_v8  ;;  %10349 = vmatprep.mubr.msk.f32.mxu0 %vm424_vm2, %v5204_v46  ;;  %v5950_v62 = vld [vmem:[#allocation3 + $0x26] sm:$0xff]  ;;  %v5951_v8 = vld [vmem:[#allocation3 + $0x2e] sm:$0xff] }
 0x232   : > { %10389 = vmatprep.subr.mxu1 %v5607_v2  ;;  %10457 = vmatpush3.msra.mxu0 %v5985_v22  ;;  %v5574_v22 = vld [vmem:[#allocation3 + $0x2d] sm:$0xff] }
 0x233   : > { %10390 = vmatpush3.msra.mxu1 %v5607_v2  ;;  %10458 = vmatprep.subr.mxu0 %v5984_v63  ;;  %v6365_v2 = vld [vmem:[%s14575_s4 + $0x290] sm:$0xff]  ;;  %v6364_v46 = vld [vmem:[%s14575_s4 + $0x288] sm:$0xff] }
 0x234   : > { %10281 = vmatmul.mubr.msk.f32.gmra.mxu1 %vm424_vm2, %v4828_v16  ;;  %10350 = vmatmul.mubr.msk.f32.gmra.mxu0 %vm424_vm2, %v5205_v51  ;;  %v5575_v16 = vld [vmem:[#allocation3 + $0x35] sm:$0xff] }
 0x235   : > { %10283 = vmatprep.mubr.msk.f32.mxu1 %vm424_vm2, %v4829_v23  ;;  %10352 = vmatprep.mubr.msk.f32.mxu0 %vm424_vm2, %v5206_v28  ;;  %v5952_v51 = vld [vmem:[#allocation3 + $0x36] sm:$0xff]  ;;  %v5953_v23 = vld [vmem:[#allocation3 + $0x3e] sm:$0xff] }
 0x236   : > { %10391 = vmatprep.subr.mxu1 %v5606_v19  ;;  %10459 = vmatpush3.msra.mxu0 %v5984_v63  ;;  %v5576_v63 = vld [vmem:[#allocation3 + $0x3d] sm:$0xff] }
 0x237   : > { %10392 = vmatpush3.msra.mxu1 %v5606_v19  ;;  %10460 = vmatprep.subr.mxu0 %v5983_v34  ;;  %v6742_v19 = vld [vmem:[%s14575_s4 + $0x2f0] sm:$0xff]  ;;  %v6363_v28 = vld [vmem:[%s14575_s4 + $0x280] sm:$0xff] }
 0x238   : > { %10284 = vmatmul.mubr.msk.f32.gmra.mxu1 %vm424_vm2, %v4830_v53  ;;  %10353 = vmatmul.mubr.msk.f32.gmra.mxu0 %vm424_vm2, %v5207_v18  ;;  %v5577_v53 = vld [vmem:[#allocation3 + $0x45] sm:$0xff] }
 0x239   : > { %10286 = vmatprep.mubr.msk.f32.mxu1 %vm424_vm2, %v4831_v26  ;;  %10355 = vmatprep.mubr.msk.f32.mxu0 %vm424_vm2, %v5208_v58  ;;  %v5954_v18 = vld [vmem:[#allocation3 + $0x46] sm:$0xff]  ;;  %v5955_v26 = vld [vmem:[#allocation3 + $0x4e] sm:$0xff]  ;;  %v6362_v58 = vld [vmem:[%s14575_s4 + $0x278] sm:$0xff] }
 0x23a   : > { %10393 = vmatprep.subr.mxu1 %v5605_v47  ;;  %10461 = vmatpush3.msra.mxu0 %v5983_v34  ;;  %v5578_v34 = vld [vmem:[#allocation3 + $0x4d] sm:$0xff] }
 0x23b   : > { %10394 = vmatpush3.msra.mxu1 %v5605_v47  ;;  %10462 = vmatprep.subr.mxu0 %v5982_v54  ;;  %v6741_v47 = vld [vmem:[%s14575_s4 + $0x2e8] sm:$0xff] }
 0x23c   : > { %10287 = vmatmul.mubr.msk.f32.gmra.mxu1 %vm424_vm2, %v4832_v60  ;;  %10356 = vmatmul.mubr.msk.f32.gmra.mxu0 %vm424_vm2, %v5209_v42  ;;  %v5579_v60 = vld [vmem:[#allocation3 + $0x55] sm:$0xff] }
 0x23d   : > { %10289 = vmatprep.mubr.msk.f32.mxu1 %vm424_vm2, %v4833_v20  ;;  %10358 = vmatprep.mubr.msk.f32.mxu0 %vm424_vm2, %v5210_v9  ;;  %v5956_v42 = vld [vmem:[#allocation3 + $0x56] sm:$0xff]  ;;  %v5957_v20 = vld [vmem:[#allocation3 + $0x5e] sm:$0xff] }
 0x23e   : > { %10395 = vmatprep.subr.mxu1 %v5604_v32  ;;  %10463 = vmatpush3.msra.mxu0 %v5982_v54  ;;  %v5580_v54 = vld [vmem:[#allocation3 + $0x5d] sm:$0xff]  ;;  %v6361_v9 = vld [vmem:[%s14575_s4 + $0x270] sm:$0xff] }
 0x23f   : > { %10396 = vmatpush3.msra.mxu1 %v5604_v32  ;;  %10464 = vmatprep.subr.mxu0 %v5981_v33  ;;  %v6740_v32 = vld [vmem:[%s14575_s4 + $0x2e0] sm:$0xff] }
 0x240   : > { %10290 = vmatmul.mubr.msk.f32.gmra.mxu1 %vm424_vm2, %v4834_v13  ;;  %10359 = vmatmul.mubr.msk.f32.gmra.mxu0 %vm424_vm2, %v5211_v25  ;;  %v5581_v13 = vld [vmem:[#allocation3 + $0x65] sm:$0xff] }
 0x241   : > { %10292 = vmatprep.mubr.msk.f32.mxu1 %vm424_vm2, %v4835_v52  ;;  %10361 = vmatprep.mubr.msk.f32.mxu0 %vm424_vm2, %v5212_v15  ;;  %v5958_v25 = vld [vmem:[#allocation3 + $0x66] sm:$0xff]  ;;  %v5959_v52 = vld [vmem:[#allocation3 + $0x6e] sm:$0xff] }
 0x242   : > { %10397 = vmatprep.subr.mxu1 %v5603_v11  ;;  %10465 = vmatpush3.msra.mxu0 %v5981_v33  ;;  %v5582_v33 = vld [vmem:[#allocation3 + $0x6d] sm:$0xff] }
 0x243   : > { %10398 = vmatpush3.msra.mxu1 %v5603_v11  ;;  %10466 = vmatprep.subr.mxu0 %v5980_v7  ;;  %v6739_v11 = vld [vmem:[%s14575_s4 + $0x2d8] sm:$0xff]  ;;  %v6360_v15 = vld [vmem:[%s14575_s4 + $0x268] sm:$0xff] }
 0x244   : > { %10293 = vmatmul.mubr.msk.f32.gmra.mxu1 %vm424_vm2, %v4836_v48  ;;  %10362 = vmatmul.mubr.msk.f32.gmra.mxu0 %vm424_vm2, %v5213_v30  ;;  %v5583_v48 = vld [vmem:[#allocation3 + $0x75] sm:$0xff] }
 0x245   : > { %10295 = vmatprep.mubr.msk.f32.mxu1 %vm424_vm2, %v4837_v39  ;;  %10364 = vmatprep.mubr.msk.f32.mxu0 %vm424_vm2, %v5214_v4  ;;  %v5960_v30 = vld [vmem:[#allocation3 + $0x76] sm:$0xff]  ;;  %v5961_v39 = vld [vmem:[#allocation3 + $0x7e] sm:$0xff] }
 0x246   : > { %10399 = vmatprep.subr.mxu1 %v5602_v35  ;;  %10467 = vmatpush3.msra.mxu0 %v5980_v7  ;;  %v5584_v7 = vld [vmem:[#allocation3 + $0x7d] sm:$0xff] }
 0x247   : > { %10400 = vmatpush3.msra.mxu1 %v5602_v35  ;;  %10468 = vmatprep.subr.mxu0 %v5979_v50  ;;  %v6738_v35 = vld [vmem:[%s14575_s4 + $0x2d0] sm:$0xff]  ;;  %v6359_v4 = vld [vmem:[%s14575_s4 + $0x260] sm:$0xff] }
 0x248   : > { %10296 = vmatmul.mubr.msk.f32.gmra.mxu1 %vm424_vm2, %v4838_v12  ;;  %10365 = vmatmul.mubr.msk.f32.gmra.mxu0 %vm424_vm2, %v5215_v29  ;;  %v5585_v12 = vld [vmem:[#allocation3 + $0x85] sm:$0xff] }
 0x249   : > { %10298 = vmatprep.mubr.msk.f32.mxu1 %vm424_vm2, %v4839_v27  ;;  %10367 = vmatprep.mubr.msk.f32.mxu0 %vm424_vm2, %v5216_v55  ;;  %v5962_v29 = vld [vmem:[#allocation3 + $0x86] sm:$0xff]  ;;  %v5963_v27 = vld [vmem:[#allocation3 + $0x8e] sm:$0xff]  ;;  %v6358_v55 = vld [vmem:[%s14575_s4 + $0x258] sm:$0xff] }
 0x24a   : > { %10401 = vmatprep.subr.mxu1 %v5601_v37  ;;  %10469 = vmatpush3.msra.mxu0 %v5979_v50  ;;  %v5586_v50 = vld [vmem:[#allocation3 + $0x8d] sm:$0xff] }
 0x24b   : > { %10402 = vmatpush3.msra.mxu1 %v5601_v37  ;;  %10470 = vmatprep.subr.mxu0 %v5978_v38  ;;  %v6737_v37 = vld [vmem:[%s14575_s4 + $0x2c8] sm:$0xff] }
 0x24c   : > { %10299 = vmatmul.mubr.msk.f32.gmra.mxu1 %vm424_vm2, %v4840_v57  ;;  %10368 = vmatmul.mubr.msk.f32.gmra.mxu0 %vm424_vm2, %v5217_v45  ;;  %v5587_v57 = vld [vmem:[#allocation3 + $0x95] sm:$0xff] }
 0x24d   : > { %10301 = vmatprep.mubr.msk.f32.mxu1 %vm424_vm2, %v4841_v3  ;;  %10370 = vmatprep.mubr.msk.f32.mxu0 %vm424_vm2, %v5218_v43  ;;  %v5964_v45 = vld [vmem:[#allocation3 + $0x96] sm:$0xff]  ;;  %v5965_v3 = vld [vmem:[#allocation3 + $0x9e] sm:$0xff] }
 0x24e   : > { %10517 = vmatprep.subr.mxu1 %v6366_v24  ;;  %10471 = vmatpush3.msra.mxu0 %v5978_v38  ;;  %v6736_v38 = vld [vmem:[%s14575_s4 + $0x2c0] sm:$0xff]  ;;  %v6357_v43 = vld [vmem:[%s14575_s4 + $0x250] sm:$0xff] }
 0x24f   : > { %10586 = vmatprep.subr.mxu0 %v6743_v10 }
 0x250   : > { %10302 = vmatmul.mubr.msk.f32.gmra.mxu1 %vm424_vm2, %v4842_v31  ;;  %10371 = vmatmul.mubr.msk.f32.gmra.mxu0 %vm424_vm2, %v5219_v36  ;;  %v6735_v31 = vld [vmem:[%s14575_s4 + $0x2b8] sm:$0xff]  ;;  %v5589_v36 = vld [vmem:[#allocation3 + $0xa5] sm:$0xff] }
 0x251   : > { %10304 = vmatprep.mubr.msk.f32.mxu1 %vm424_vm2, %v4843_v0  ;;  %10373 = vmatprep.mubr.msk.f32.mxu0 %vm424_vm2, %v5220_v56  ;;  %v5590_v0 = vld [vmem:[#allocation3 + $0xad] sm:$0xff] }
 0x252   : > { %v5967_v56 = vld [vmem:[#allocation3 + $0xae] sm:$0xff] }
 0x254   : > { %10305 = vmatmul.mubr.msk.f32.gmra.mxu1 %vm424_vm2, %v4844_v49  ;;  %10374 = vmatmul.mubr.msk.f32.gmra.mxu0 %vm424_vm2, %v5221_v17  ;;  %v6356_v49 = vld [vmem:[%s14575_s4 + $0x248] sm:$0xff]  ;;  %v6734_v17 = vld [vmem:[%s14575_s4 + $0x2b0] sm:$0xff] }
 0x255   : > { %10307 = vmatprep.mubr.msk.f32.mxu1 %vm424_vm2, %v4845_v1  ;;  %10376 = vmatprep.mubr.msk.f32.mxu0 %vm424_vm2, %v5222_v61  ;;  %v5591_v1 = vld [vmem:[#allocation3 + $0xb5] sm:$0xff] }
 0x256   : > { %v5968_v61 = vld [vmem:[#allocation3 + $0xb6] sm:$0xff] }
 0x258   : > { %10308 = vmatmul.mubr.msk.f32.gmra.mxu1 %vm424_vm2, %v4846_v40  ;;  %10377 = vmatmul.mubr.msk.f32.gmra.mxu0 %vm424_vm2, %v5223_v41  ;;  %v5592_v40 = vld [vmem:[#allocation3 + $0xbd] sm:$0xff] }
 0x259   : > { %10403 = vmatprep.mubr.msk.f32.mxu1 %vm424_vm2, %v5571_v21  ;;  %10472 = vmatprep.mubr.msk.f32.mxu0 %vm424_vm2, %v5948_v44  ;;  %v5969_v41 = vld [vmem:[#allocation3 + $0xbe] sm:$0xff]  ;;  %v6733_v44 = vld [vmem:[%s14575_s4 + $0x2a8] sm:$0xff] }
 0x25a   : > { %v6355_v21 = vld [vmem:[%s14575_s4 + $0x240] sm:$0xff] }
 0x25c   : > { %10404 = vmatmul.mubr.msk.f32.vlgmr.msra.gmra.mxu1 %vm424_vm2, %v5572_v14  ;;  %10473 = vmatmul.mubr.msk.f32.vlgmr.msra.gmra.mxu0 %vm424_vm2, %v5949_v5  ;;  %v5593_v14 = vld [vmem:[#allocation3 + $0xc5] sm:$0xff] }
 0x25d   : > { %10518 = vmatpush3.msra.mxu1 %v6366_v24  ;;  %10406 = vmatprep.mubr.msk.f32.mxu1 %vm424_vm2, %v5573_v6  ;;  %v5588_v24 = vld [vmem:[#allocation3 + $0x9d] sm:$0xff]  ;;  %v5970_v5 = vld [vmem:[#allocation3 + $0xc6] sm:$0xff]  ;;  %v5971_v6 = vld [vmem:[#allocation3 + $0xce] sm:$0xff] }
 0x25e   : > { %10475 = vmatprep.mubr.msk.f32.mxu0 %vm424_vm2, %v5950_v62  ;;  %10519 = vmatprep.subr.mxu1 %v6365_v2  ;;  %v6732_v62 = vld [vmem:[%s14575_s4 + $0x2a0] sm:$0xff] }
 0x25f   : > { %10520 = vmatpush3.msra.mxu1 %v6365_v2  ;;  %10587 = vmatpush3.msra.mxu0 %v6743_v10  ;;  %v5966_v10 = vld [vmem:[#allocation3 + $0xa6] sm:$0xff] }
 0x260   : > { %10407 = vmatmul.mubr.msk.f32.gmra.mxu1 %vm424_vm2, %v5574_v22  ;;  %10476 = vmatmul.mubr.msk.f32.gmra.mxu0 %vm424_vm2, %v5951_v8  ;;  %v5594_v2 = vld [vmem:[#allocation3 + $0xcd] sm:$0xff]  ;;  %v7120_v22 = vld [vmem:[%s14575_s4 + $0x358] sm:$0xff] }
 0x261   : > { %10409 = vmatprep.mubr.msk.f32.mxu1 %vm424_vm2, %v5575_v16  ;;  %10478 = vmatprep.mubr.msk.f32.mxu0 %vm424_vm2, %v5952_v51  ;;  %v5595_v8 = vld [vmem:[#allocation3 + $0xd5] sm:$0xff]  ;;  %v5973_v16 = vld [vmem:[#allocation3 + $0xde] sm:$0xff] }
 0x262   : > { %10521 = vmatprep.subr.mxu1 %v6364_v46  ;;  %10588 = vmatprep.subr.mxu0 %v6742_v19  ;;  %v5597_v51 = vld [vmem:[#allocation3 + $0xe5] sm:$0xff] }
 0x263   : > { %10522 = vmatpush3.msra.mxu1 %v6364_v46  ;;  %10589 = vmatpush3.msra.mxu0 %v6742_v19  ;;  %v5972_v46 = vld [vmem:[#allocation3 + $0xd6] sm:$0xff] }
 0x264   : > { %10410 = vmatmul.mubr.msk.f32.gmra.mxu1 %vm424_vm2, %v5576_v63  ;;  %10479 = vmatmul.mubr.msk.f32.gmra.mxu0 %vm424_vm2, %v5953_v23  ;;  %v5596_v19 = vld [vmem:[#allocation3 + $0xdd] sm:$0xff]  ;;  %v5974_v63 = vld [vmem:[#allocation3 + $0xe6] sm:$0xff] }
 0x265   : > { %10412 = vmatprep.mubr.msk.f32.mxu1 %vm424_vm2, %v5577_v53  ;;  %10481 = vmatprep.mubr.msk.f32.mxu0 %vm424_vm2, %v5954_v18  ;;  %v5598_v23 = vld [vmem:[#allocation3 + $0xed] sm:$0xff]  ;;  %v5976_v53 = vld [vmem:[#allocation3 + $0xf6] sm:$0xff] }
 0x266   : > { %10523 = vmatprep.subr.mxu1 %v6363_v28  ;;  %10590 = vmatprep.subr.mxu0 %v6741_v47  ;;  %v5600_v18 = vld [vmem:[#allocation3 + $0xfd] sm:$0xff] }
 0x267   : > { %10524 = vmatpush3.msra.mxu1 %v6363_v28  ;;  %10591 = vmatpush3.msra.mxu0 %v6741_v47  ;;  %v5975_v28 = vld [vmem:[#allocation3 + $0xee] sm:$0xff] }
 0x268   : > { %10413 = vmatmul.mubr.msk.f32.gmra.mxu1 %vm424_vm2, %v5578_v34  ;;  %10482 = vmatmul.mubr.msk.f32.gmra.mxu0 %vm424_vm2, %v5955_v26  ;;  %v5599_v47 = vld [vmem:[#allocation3 + $0xf5] sm:$0xff]  ;;  %v5977_v34 = vld [vmem:[#allocation3 + $0xfe] sm:$0xff]  ;;  %v6325_v26 = vld [vmem:[#allocation3 + $0x28] sm:$0xff] }
 0x269   : > { %10415 = vmatprep.mubr.msk.f32.mxu1 %vm424_vm2, %v5579_v60  ;;  %10484 = vmatprep.mubr.msk.f32.mxu0 %vm424_vm2, %v5956_v42  ;;  %v6703_v60 = vld [vmem:[#allocation3 + $0x31] sm:$0xff] }
 0x26a   : > { %10525 = vmatprep.subr.mxu1 %v6362_v58  ;;  %10592 = vmatprep.subr.mxu0 %v6740_v32  ;;  %v7119_v42 = vld [vmem:[%s14575_s4 + $0x350] sm:$0xff] }
 0x26b   : > { %10526 = vmatpush3.msra.mxu1 %v6362_v58  ;;  %10593 = vmatpush3.msra.mxu0 %v6740_v32  ;;  %v6702_v58 = vld [vmem:[#allocation3 + $0x29] sm:$0xff] }
 0x26c   : > { %10416 = vmatmul.mubr.msk.f32.gmra.mxu1 %vm424_vm2, %v5580_v54  ;;  %10485 = vmatmul.mubr.msk.f32.gmra.mxu0 %vm424_vm2, %v5957_v20  ;;  %v6326_v32 = vld [vmem:[#allocation3 + $0x30] sm:$0xff]  ;;  %v6327_v54 = vld [vmem:[#allocation3 + $0x38] sm:$0xff] }
 0x26d   : > { %10418 = vmatprep.mubr.msk.f32.mxu1 %vm424_vm2, %v5581_v13  ;;  %10487 = vmatprep.mubr.msk.f32.mxu0 %vm424_vm2, %v5958_v25  ;;  %v6704_v20 = vld [vmem:[#allocation3 + $0x39] sm:$0xff]  ;;  %v7118_v13 = vld [vmem:[%s14575_s4 + $0x348] sm:$0xff] }
 0x26e   : > { %10527 = vmatprep.subr.mxu1 %v6361_v9  ;;  %10594 = vmatprep.subr.mxu0 %v6739_v11  ;;  %v6329_v25 = vld [vmem:[#allocation3 + $0x48] sm:$0xff] }
 0x26f   : > { %10528 = vmatpush3.msra.mxu1 %v6361_v9  ;;  %10595 = vmatpush3.msra.mxu0 %v6739_v11  ;;  %v6328_v9 = vld [vmem:[#allocation3 + $0x40] sm:$0xff] }
 0x270   : > { %10419 = vmatmul.mubr.msk.f32.gmra.mxu1 %vm424_vm2, %v5582_v33  ;;  %10488 = vmatmul.mubr.msk.f32.gmra.mxu0 %vm424_vm2, %v5959_v52  ;;  %v6705_v11 = vld [vmem:[#allocation3 + $0x41] sm:$0xff]  ;;  %v6706_v33 = vld [vmem:[#allocation3 + $0x49] sm:$0xff]  ;;  %v13257_v52 = vpop.f32.mrf.mxu1 }
 0x271   : > { %10421 = vmatprep.mubr.msk.f32.mxu1 %vm424_vm2, %v5583_v48  ;;  %10490 = vmatprep.mubr.msk.f32.mxu0 %vm424_vm2, %v5960_v30  ;;  %v6330_v48 = vld [vmem:[#allocation3 + $0x50] sm:$0xff] }
 0x272   : > { %10529 = vmatprep.subr.mxu1 %v6360_v15  ;;  %10596 = vmatprep.subr.mxu0 %v6738_v35  ;;  %v6707_v30 = vld [vmem:[#allocation3 + $0x51] sm:$0xff] }
 0x273   : > { %10530 = vmatpush3.msra.mxu1 %v6360_v15  ;;  %10597 = vmatpush3.msra.mxu0 %v6738_v35  ;;  %v13261_v15 = vpop.f32.mrf.mxu0 }
 0x274   : > { %10422 = vmatmul.mubr.msk.f32.gmra.mxu1 %vm424_vm2, %v5584_v7  ;;  %10491 = vmatmul.mubr.msk.f32.gmra.mxu0 %vm424_vm2, %v5961_v39  ;;  %v7117_v7 = vld [vmem:[%s14575_s4 + $0x340] sm:$0xff] }
 0x275   : > { %10424 = vmatprep.mubr.msk.f32.mxu1 %vm424_vm2, %v5585_v12  ;;  %10493 = vmatprep.mubr.msk.f32.mxu0 %vm424_vm2, %v5962_v29 }
 0x276   : > { %10531 = vmatprep.subr.mxu1 %v6359_v4  ;;  %10598 = vmatprep.subr.mxu0 %v6737_v37 }
 0x277   : > { %10532 = vmatpush3.msra.mxu1 %v6359_v4  ;;  %10599 = vmatpush3.msra.mxu0 %v6737_v37  ;;  %v6331_v4 = vld [vmem:[#allocation3 + $0x58] sm:$0xff] }
 0x278   : > { %10425 = vmatmul.mubr.msk.f32.gmra.mxu1 %vm424_vm2, %v5586_v50  ;;  %10494 = vmatmul.mubr.msk.f32.gmra.mxu0 %vm424_vm2, %v5963_v27  ;;  %v6708_v37 = vld [vmem:[#allocation3 + $0x59] sm:$0xff] }
 0x279   : > { %10427 = vmatprep.mubr.msk.f32.mxu1 %vm424_vm2, %v5587_v57  ;;  %10496 = vmatprep.mubr.msk.f32.mxu0 %vm424_vm2, %v5964_v45  ;;  %v7116_v57 = vld [vmem:[%s14575_s4 + $0x338] sm:$0xff] }
 0x27a   : > { %10533 = vmatprep.subr.mxu1 %v6358_v55  ;;  %10600 = vmatprep.subr.mxu0 %v6736_v38 }
 0x27b   : > { %10534 = vmatpush3.msra.mxu1 %v6358_v55  ;;  %10601 = vmatpush3.msra.mxu0 %v6736_v38  ;;  %v6332_v55 = vld [vmem:[#allocation3 + $0x60] sm:$0xff] }
 0x27c   : > { %10428 = vmatmul.mubr.msk.f32.gmra.mxu1 %vm424_vm2, %v5588_v24  ;;  %10497 = vmatmul.mubr.msk.f32.gmra.mxu0 %vm424_vm2, %v5965_v3  ;;  %v6709_v38 = vld [vmem:[#allocation3 + $0x61] sm:$0xff] }
 0x27d   : > { %10430 = vmatprep.mubr.msk.f32.mxu1 %vm424_vm2, %v5589_v36  ;;  %10499 = vmatprep.mubr.msk.f32.mxu0 %vm424_vm2, %v5966_v10  ;;  %v6333_v3 = vld [vmem:[#allocation3 + $0x68] sm:$0xff] }
 0x27e   : > { %10535 = vmatprep.subr.mxu1 %v6357_v43  ;;  %10602 = vmatprep.subr.mxu0 %v6735_v31 }
 0x27f   : > { %10536 = vmatpush3.msra.mxu1 %v6357_v43  ;;  %10603 = vmatpush3.msra.mxu0 %v6735_v31  ;;  %v6710_v43 = vld [vmem:[#allocation3 + $0x69] sm:$0xff] }
 0x280   : > { %10431 = vmatmul.mubr.msk.f32.gmra.mxu1 %vm424_vm2, %v5590_v0  ;;  %10500 = vmatmul.mubr.msk.f32.gmra.mxu0 %vm424_vm2, %v5967_v56  ;;  %v6334_v56 = vld [vmem:[#allocation3 + $0x70] sm:$0xff] }
 0x281   : > { %10433 = vmatprep.mubr.msk.f32.mxu1 %vm424_vm2, %v5591_v1  ;;  %10502 = vmatprep.mubr.msk.f32.mxu0 %vm424_vm2, %v5968_v61  ;;  %v7115_v61 = vld [vmem:[%s14575_s4 + $0x330] sm:$0xff] }
 0x282   : > { %10537 = vmatprep.subr.mxu1 %v6356_v49  ;;  %10604 = vmatprep.subr.mxu0 %v6734_v17 }
 0x283   : > { %10538 = vmatpush3.msra.mxu1 %v6356_v49  ;;  %10605 = vmatpush3.msra.mxu0 %v6734_v17  ;;  %v6711_v49 = vld [vmem:[#allocation3 + $0x71] sm:$0xff] }
 0x284   : > { %10434 = vmatmul.mubr.msk.f32.gmra.mxu1 %vm424_vm2, %v5592_v40  ;;  %10503 = vmatmul.mubr.msk.f32.gmra.mxu0 %vm424_vm2, %v5969_v41  ;;  %v6335_v40 = vld [vmem:[#allocation3 + $0x78] sm:$0xff] }
 0x285   : > { %10436 = vmatprep.mubr.msk.f32.mxu1 %vm424_vm2, %v5593_v14  ;;  %10505 = vmatprep.mubr.msk.f32.mxu0 %vm424_vm2, %v5970_v5  ;;  %v6712_v41 = vld [vmem:[#allocation3 + $0x79] sm:$0xff] }
 0x286   : > { %10539 = vmatprep.subr.mxu1 %v6355_v21  ;;  %10606 = vmatprep.subr.mxu0 %v6733_v44 }
 0x287   : > { %10540 = vmatpush3.msra.mxu1 %v6355_v21  ;;  %10607 = vmatpush3.msra.mxu0 %v6733_v44 }
 0x288   : > { %10437 = vmatmul.mubr.msk.f32.gmra.mxu1 %vm424_vm2, %v5594_v2  ;;  %10506 = vmatmul.mubr.msk.f32.gmra.mxu0 %vm424_vm2, %v5971_v6  ;;  %v6336_v2 = vld [vmem:[#allocation3 + $0x80] sm:$0xff] }
 0x289   : > { %10439 = vmatprep.mubr.msk.f32.mxu1 %vm424_vm2, %v5595_v8  ;;  %10508 = vmatprep.mubr.msk.f32.mxu0 %vm424_vm2, %v5972_v46  ;;  %v6713_v6 = vld [vmem:[#allocation3 + $0x81] sm:$0xff] }
 0x28a   : > { %10608 = vmatprep.subr.mxu0 %v6732_v62  ;;  %10655 = vmatprep.subr.mxu1 %v7120_v22  ;;  %v7114_v8 = vld [vmem:[%s14575_s4 + $0x328] sm:$0xff] }
 0x28b   : > { %10609 = vmatpush3.msra.mxu0 %v6732_v62  ;;  %v6337_v46 = vld [vmem:[#allocation3 + $0x88] sm:$0xff] }
 0x28c   : > { %10440 = vmatmul.mubr.msk.f32.gmra.mxu1 %vm424_vm2, %v5596_v19  ;;  %10509 = vmatmul.mubr.msk.f32.gmra.mxu0 %vm424_vm2, %v5973_v16  ;;  %v6714_v19 = vld [vmem:[#allocation3 + $0x89] sm:$0xff] }
 0x28d   : > { %10442 = vmatprep.mubr.msk.f32.mxu1 %vm424_vm2, %v5597_v51  ;;  %10511 = vmatprep.mubr.msk.f32.mxu0 %vm424_vm2, %v5974_v63 }
 0x290   : > { %10443 = vmatmul.mubr.msk.f32.gmra.mxu1 %vm424_vm2, %v5598_v23  ;;  %10512 = vmatmul.mubr.msk.f32.gmra.mxu0 %vm424_vm2, %v5975_v28  ;;  %v6338_v23 = vld [vmem:[#allocation3 + $0x90] sm:$0xff] }
 0x291   : > { %10445 = vmatprep.mubr.msk.f32.mxu1 %vm424_vm2, %v5599_v47  ;;  %10514 = vmatprep.mubr.msk.f32.mxu0 %vm424_vm2, %v5976_v53  ;;  %v6715_v28 = vld [vmem:[#allocation3 + $0x91] sm:$0xff] }
 0x294   : > { %10446 = vmatmul.mubr.msk.f32.gmra.mxu1 %vm424_vm2, %v5600_v18  ;;  %10515 = vmatmul.mubr.msk.f32.gmra.mxu0 %vm424_vm2, %v5977_v34  ;;  %v7113_v18 = vld [vmem:[%s14575_s4 + $0x320] sm:$0xff]  ;;  %v6339_v34 = vld [vmem:[#allocation3 + $0x98] sm:$0xff] }
 0x295   : > { %10541 = vmatprep.mubr.msk.f32.mxu1 %vm424_vm2, %v6325_v26  ;;  %10610 = vmatprep.mubr.msk.f32.mxu0 %vm424_vm2, %v6702_v58  ;;  %v6716_v26 = vld [vmem:[#allocation3 + $0x99] sm:$0xff] }
 0x298   : > { %10542 = vmatmul.mubr.msk.f32.vlgmr.msra.gmra.mxu1 %vm424_vm2, %v6326_v32  ;;  %10611 = vmatmul.mubr.msk.f32.vlgmr.msra.gmra.mxu0 %vm424_vm2, %v6703_v60 }
 0x299   : > { %10656 = vmatpush3.msra.mxu1 %v7120_v22  ;;  %10544 = vmatprep.mubr.msk.f32.mxu1 %vm424_vm2, %v6327_v54  ;;  %v6717_v54 = vld [vmem:[#allocation3 + $0xa1] sm:$0xff] }
 0x29a   : > { %10613 = vmatprep.mubr.msk.f32.mxu0 %vm424_vm2, %v6704_v20  ;;  %10657 = vmatprep.subr.mxu1 %v7119_v42 }
 0x29b   : > { %10658 = vmatpush3.msra.mxu1 %v7119_v42  ;;  %v6340_v42 = vld [vmem:[#allocation3 + $0xa0] sm:$0xff] }
 0x29c   : > { %10545 = vmatmul.mubr.msk.f32.gmra.mxu1 %vm424_vm2, %v6328_v9  ;;  %10614 = vmatmul.mubr.msk.f32.gmra.mxu0 %vm424_vm2, %v6705_v11  ;;  %v7112_v11 = vld [vmem:[%s14575_s4 + $0x318] sm:$0xff] }
 0x29d   : > { %10547 = vmatprep.mubr.msk.f32.mxu1 %vm424_vm2, %v6329_v25  ;;  %10616 = vmatprep.mubr.msk.f32.mxu0 %vm424_vm2, %v6706_v33  ;;  %v6718_v25 = vld [vmem:[#allocation3 + $0xa9] sm:$0xff] }
 0x29e   : > { %10659 = vmatprep.subr.mxu1 %v7118_v13  ;;  %v10132_v35 = vpop.f32.mrf.mxu1 }
 0x29f   : > { %10660 = vmatpush3.msra.mxu1 %v7118_v13  ;;  %v10201_v39 = vpop.f32.mrf.mxu0  ;;  %v6341_v13 = vld [vmem:[#allocation3 + $0xa8] sm:$0xff] }
 0x2a0   : > { %10548 = vmatmul.mubr.msk.f32.gmra.mxu1 %vm424_vm2, %v6330_v48  ;;  %10617 = vmatmul.mubr.msk.f32.gmra.mxu0 %vm424_vm2, %v6707_v30  ;;  %v13268_v12 = vadd.f32 %v10201_v39, %v10132_v35  ;;  %v4373_v29 = vpop.f32.mrf.mxu1  ;;  %v6342_v30 = vld [vmem:[#allocation3 + $0xb0] sm:$0xff] }
 0x2a1   : > { %10550 = vmatprep.mubr.msk.f32.mxu1 %vm424_vm2, %v6331_v4  ;;  %10619 = vmatprep.mubr.msk.f32.mxu0 %vm424_vm2, %v6708_v37  ;;  %v4678_v50 = vpop.f32.mrf.mxu0  ;;  %v7111_v39 = vld [vmem:[%s14575_s4 + $0x310] sm:$0xff]  ;;  %v6343_v4 = vld [vmem:[#allocation3 + $0xb8] sm:$0xff] }
 0x2a2   : > { %10661 = vmatprep.subr.mxu1 %v7117_v7  ;;  %v13272_v27 = vadd.f32 %v4678_v50, %v4373_v29  ;;  %v6720_v37 = vld [vmem:[#allocation3 + $0xb9] sm:$0xff] }
 0x2a3   : > { %10662 = vmatpush3.msra.mxu1 %v7117_v7  ;;  %v10135_v45 = vpop.f32.mrf.mxu1  ;;  %v6719_v7 = vld [vmem:[#allocation3 + $0xb1] sm:$0xff] }
 0x2a4   : > { %v10204_v24 = vpop.f32.mrf.mxu0  ;;  %10551 = vmatmul.mubr.msk.f32.gmra.mxu1 %vm424_vm2, %v6332_v55  ;;  %10620 = vmatmul.mubr.msk.f32.gmra.mxu0 %vm424_vm2, %v6709_v38  ;;  %v6344_v38 = vld [vmem:[#allocation3 + $0xc0] sm:$0xff] }
 0x2a5   : > { %v13279_v31 = vadd.f32 %v10204_v24, %v10135_v45  ;;  %10553 = vmatprep.mubr.msk.f32.mxu1 %vm424_vm2, %v6333_v3  ;;  %10622 = vmatprep.mubr.msk.f32.mxu0 %vm424_vm2, %v6710_v43  ;;  %v4383_v36 = vpop.f32.mrf.mxu1  ;;  %v7110_v45 = vld [vmem:[%s14575_s4 + $0x308] sm:$0xff] }
 0x2a6   : > { %v4688_v10 = vpop.f32.mrf.mxu0  ;;  %10663 = vmatprep.subr.mxu1 %v7116_v57  ;;  %v6345_v24 = vld [vmem:[#allocation3 + $0xc8] sm:$0xff] }
 0x2a7   : > { %v13283_v0 = vadd.f32 %v4688_v10, %v4383_v36  ;;  %10664 = vmatpush3.msra.mxu1 %v7116_v57  ;;  %v10138_v17 = vpop.f32.mrf.mxu1  ;;  %v6721_v57 = vld [vmem:[#allocation3 + $0xc1] sm:$0xff]  ;;  %v6722_v3 = vld [vmem:[#allocation3 + $0xc9] sm:$0xff] }
 0x2a8   : > { %v10207_v1 = vpop.f32.mrf.mxu0  ;;  %10554 = vmatmul.mubr.msk.f32.gmra.mxu1 %vm424_vm2, %v6334_v56  ;;  %10623 = vmatmul.mubr.msk.f32.gmra.mxu0 %vm424_vm2, %v6711_v49  ;;  %v6346_v10 = vld [vmem:[#allocation3 + $0xd0] sm:$0xff]  ;;  %v7109_v49 = vld [vmem:[%s14575_s4 + $0x300] sm:$0xff] }
 0x2a9   : > { %v13290_v21 = vadd.f32 %v10207_v1, %v10138_v17  ;;  %10556 = vmatprep.mubr.msk.f32.mxu1 %vm424_vm2, %v6335_v40  ;;  %10625 = vmatprep.mubr.msk.f32.mxu0 %vm424_vm2, %v6712_v41  ;;  %v4393_v44 = vpop.f32.mrf.mxu1  ;;  %v6723_v56 = vld [vmem:[#allocation3 + $0xd1] sm:$0xff]  ;;  %v6724_v1 = vld [vmem:[#allocation3 + $0xd9] sm:$0xff] }
 0x2aa   : > { %v4698_v14 = vpop.f32.mrf.mxu0  ;;  %10665 = vmatprep.subr.mxu1 %v7115_v61  ;;  %v6347_v17 = vld [vmem:[#allocation3 + $0xd8] sm:$0xff] }
 0x2ab   : > { %v13294_v5 = vadd.f32 %v4698_v14, %v4393_v44  ;;  %10666 = vmatpush3.msra.mxu1 %v7115_v61  ;;  %v10141_v62 = vpop.f32.mrf.mxu1 }
 0x2ac   : > { %v10210_v22 = vpop.f32.mrf.mxu0  ;;  %10557 = vmatmul.mubr.msk.f32.gmra.mxu1 %vm424_vm2, %v6336_v2  ;;  %10626 = vmatmul.mubr.msk.f32.gmra.mxu0 %vm424_vm2, %v6713_v6  ;;  %v6348_v2 = vld [vmem:[#allocation3 + $0xe0] sm:$0xff] }
 0x2ad   : > { %v13301_v16 = vadd.f32 %v10210_v22, %v10141_v62  ;;  %10559 = vmatprep.mubr.msk.f32.mxu1 %vm424_vm2, %v6337_v46  ;;  %10628 = vmatprep.mubr.msk.f32.mxu0 %vm424_vm2, %v6714_v19  ;;  %v13305_v51 = vpop.f32.mrf.mxu1  ;;  %v6725_v6 = vld [vmem:[#allocation3 + $0xe1] sm:$0xff]  ;;  %v6726_v22 = vld [vmem:[#allocation3 + $0xe9] sm:$0xff] }
 0x2ae   : > { %v13307_v63 = vpop.f32.mrf.mxu0  ;;  %10667 = vmatprep.subr.mxu1 %v7114_v8  ;;  %v6349_v62 = vld [vmem:[#allocation3 + $0xe8] sm:$0xff] }
 0x2af   : > { %10668 = vmatpush3.msra.mxu1 %v7114_v8  ;;  %v10144_v47 = vpop.f32.mrf.mxu1 }
 0x2b0   : > { %v10213_v53 = vpop.f32.mrf.mxu0  ;;  %10560 = vmatmul.mubr.msk.f32.gmra.mxu1 %vm424_vm2, %v6338_v23  ;;  %10629 = vmatmul.mubr.msk.f32.gmra.mxu0 %vm424_vm2, %v6715_v28  ;;  %v6350_v23 = vld [vmem:[#allocation3 + $0xf0] sm:$0xff] }
 0x2b1   : > { %v13314_v58 = vadd.f32 %v10213_v53, %v10144_v47  ;;  %10562 = vmatprep.mubr.msk.f32.mxu1 %vm424_vm2, %v6339_v34  ;;  %10631 = vmatprep.mubr.msk.f32.mxu0 %vm424_vm2, %v6716_v26  ;;  %v13318_v32 = vpop.f32.mrf.mxu1  ;;  %v6727_v28 = vld [vmem:[#allocation3 + $0xf1] sm:$0xff]  ;;  %v6728_v53 = vld [vmem:[#allocation3 + $0xf9] sm:$0xff] }
 0x2b2   : > { %v13320_v60 = vpop.f32.mrf.mxu0  ;;  %10669 = vmatprep.subr.mxu1 %v7113_v18  ;;  %v6351_v47 = vld [vmem:[#allocation3 + $0xf8] sm:$0xff] }
 0x2b3   : > { %10670 = vmatpush3.msra.mxu1 %v7113_v18  ;;  %v10147_v20 = vpop.f32.mrf.mxu1 }
 0x2b4   : > { %v10216_v9 = vpop.f32.mrf.mxu0  ;;  %10563 = vmatmul.mubr.msk.f32.gmra.mxu1 %vm424_vm2, %v6340_v42  ;;  %10632 = vmatmul.mubr.msk.f32.gmra.mxu0 %vm424_vm2, %v6717_v54  ;;  %v6353_v54 = vld [vmem:[#allocation3 + $0x108] sm:$0xff] }
 0x2b5   : > { %v13327_v33 = vadd.f32 %v10216_v9, %v10147_v20  ;;  %10565 = vmatprep.mubr.msk.f32.mxu1 %vm424_vm2, %v6341_v13  ;;  %10634 = vmatprep.mubr.msk.f32.mxu0 %vm424_vm2, %v6718_v25  ;;  %v13331_v35 = vpop.f32.mrf.mxu1  ;;  %v6730_v20 = vld [vmem:[#allocation3 + $0x109] sm:$0xff]  ;;  %v6729_v13 = vld [vmem:[#allocation3 + $0x101] sm:$0xff] }
 0x2b6   : > { %v13333_v48 = vpop.f32.mrf.mxu0  ;;  %10671 = vmatprep.subr.mxu1 %v7112_v11 }
 0x2b7   : > { %10672 = vmatpush3.msra.mxu1 %v7112_v11  ;;  %v6352_v11 = vld [vmem:[#allocation3 + $0x100] sm:$0xff] }
 0x2b8   : > { %10566 = vmatmul.mubr.msk.f32.gmra.mxu1 %vm424_vm2, %v6342_v30  ;;  %10635 = vmatmul.mubr.msk.f32.gmra.mxu0 %vm424_vm2, %v6719_v7  ;;  %v10150_v29 = vpop.f32.mrf.mxu1  ;;  %v6354_v7 = vld [vmem:[#allocation3 + $0x110] sm:$0xff] }
 0x2b9   : > { %10568 = vmatprep.mubr.msk.f32.mxu1 %vm424_vm2, %v6343_v4  ;;  %10637 = vmatprep.mubr.msk.f32.mxu0 %vm424_vm2, %v6720_v37  ;;  %v10219_v50 = vpop.f32.mrf.mxu0 }
 0x2ba   : > { %v13342_v55 = vadd.f32 %v10219_v50, %v10150_v29  ;;  %10673 = vmatprep.subr.mxu1 %v7111_v39  ;;  %v13349_v43 = vpop.f32.mrf.mxu1  ;;  %v7079_v50 = vld [vmem:[#allocation3 + $0x2a] sm:$0xff] }
 0x2bb   : > { %10674 = vmatpush3.msra.mxu1 %v7111_v39  ;;  %v13351_v36 = vpop.f32.mrf.mxu0  ;;  %v6731_v39 = vld [vmem:[#allocation3 + $0x111] sm:$0xff] }
 0x2bc   : > { %10569 = vmatmul.mubr.msk.f32.gmra.mxu1 %vm424_vm2, %v6344_v38  ;;  %10638 = vmatmul.mubr.msk.f32.gmra.mxu0 %vm424_vm2, %v6721_v57 }
 0x2bd   : > { %10571 = vmatprep.mubr.msk.f32.mxu1 %vm424_vm2, %v6345_v24  ;;  %10640 = vmatprep.mubr.msk.f32.mxu0 %vm424_vm2, %v6722_v3 }
 0x2be   : > { %10675 = vmatprep.subr.mxu1 %v7110_v45 }
 0x2bf   : > { %10676 = vmatpush3.msra.mxu1 %v7110_v45  ;;  %v10153_v61 = vpop.f32.mrf.mxu1  ;;  %v7080_v45 = vld [vmem:[#allocation3 + $0x32] sm:$0xff] }
 0x2c0   : > { %10572 = vmatmul.mubr.msk.f32.gmra.mxu1 %vm424_vm2, %v6346_v10  ;;  %10641 = vmatmul.mubr.msk.f32.gmra.mxu0 %vm424_vm2, %v6723_v56  ;;  %v10222_v40 = vpop.f32.mrf.mxu0  ;;  %v7081_v10 = vld [vmem:[#allocation3 + $0x3a] sm:$0xff] }
 0x2c1   : > { %10574 = vmatprep.mubr.msk.f32.mxu1 %vm424_vm2, %v6347_v17  ;;  %10643 = vmatprep.mubr.msk.f32.mxu0 %vm424_vm2, %v6724_v1  ;;  %v13362_v41 = vadd.f32 %v10222_v40, %v10153_v61  ;;  %v13364_v44 = vpop.f32.mrf.mxu1  ;;  %v7082_v1 = vld [vmem:[#allocation3 + $0x42] sm:$0xff] }
 0x2c2   : > { %v13366_v14 = vpop.f32.mrf.mxu0  ;;  %10677 = vmatprep.subr.mxu1 %v7109_v49 }
 0x2c3   : > { %10678 = vmatpush3.msra.mxu1 %v7109_v49 }
 0x2c4   : > { %10575 = vmatmul.mubr.msk.f32.gmra.mxu1 %vm424_vm2, %v6348_v2  ;;  %10644 = vmatmul.mubr.msk.f32.gmra.mxu0 %vm424_vm2, %v6725_v6  ;;  %v7083_v2 = vld [vmem:[#allocation3 + $0x4a] sm:$0xff] }
 0x2c5   : > { %10577 = vmatprep.mubr.msk.f32.mxu1 %vm424_vm2, %v6349_v62  ;;  %10646 = vmatprep.mubr.msk.f32.mxu0 %vm424_vm2, %v6726_v22  ;;  %v10156_v8 = vpop.f32.mrf.mxu1 }
 0x2c6   : > { %v10225_v46 = vpop.f32.mrf.mxu0 }
 0x2c7   : > { %v13372_v19 = vadd.f32 %v10225_v46, %v10156_v8  ;;  %v13376_v18 = vpop.f32.mrf.mxu1  ;;  %v7084_v8 = vld [vmem:[#allocation3 + $0x52] sm:$0xff] }
 0x2c8   : > { %10578 = vmatmul.mubr.msk.f32.gmra.mxu1 %vm424_vm2, %v6350_v23  ;;  %10647 = vmatmul.mubr.msk.f32.gmra.mxu0 %vm424_vm2, %v6727_v28  ;;  %v13378_v34 = vpop.f32.mrf.mxu0  ;;  %v7085_v28 = vld [vmem:[#allocation3 + $0x5a] sm:$0xff] }
 0x2c9   : > { %10580 = vmatprep.mubr.msk.f32.mxu1 %vm424_vm2, %v6351_v47  ;;  %10649 = vmatprep.mubr.msk.f32.mxu0 %vm424_vm2, %v6728_v53  ;;  %v10159_v26 = vpop.f32.mrf.mxu1 }
 0x2ca   : > { %v10228_v42 = vpop.f32.mrf.mxu0 }
 0x2cb   : > { %v13382_v9 = vadd.f32 %v10228_v42, %v10159_v26  ;;  %v13386_v25 = vpop.f32.mrf.mxu1  ;;  %v7086_v42 = vld [vmem:[#allocation3 + $0x62] sm:$0xff] }
 0x2cc   : > { %10581 = vmatmul.mubr.msk.f32.gmra.mxu1 %vm424_vm2, %v6352_v11  ;;  %10650 = vmatmul.mubr.msk.f32.gmra.mxu0 %vm424_vm2, %v6729_v13  ;;  %v13388_v30 = vpop.f32.mrf.mxu0  ;;  %v7087_v11 = vld [vmem:[#allocation3 + $0x6a] sm:$0xff] }
 0x2cd   : > { %10583 = vmatprep.mubr.msk.f32.mxu1 %vm424_vm2, %v6353_v54  ;;  %10652 = vmatprep.mubr.msk.f32.mxu0 %vm424_vm2, %v6730_v20  ;;  %v10162_v4 = vpop.f32.mrf.mxu1 }
 0x2ce   : > { %v10231_v37 = vpop.f32.mrf.mxu0 }
 0x2cf   : > { %v13392_v29 = vadd.f32 %v10231_v37, %v10162_v4  ;;  %v13395_v38 = vpop.f32.mrf.mxu1  ;;  %v7088_v37 = vld [vmem:[#allocation3 + $0x72] sm:$0xff] }
 0x2d0   : > { %10584 = vmatmul.mubr.msk.f32.gmra.mxu1 %vm424_vm2, %v6354_v7  ;;  %v13397_v57 = vpop.f32.mrf.mxu0  ;;  %10653 = vmatmul.mubr.msk.f32.gmra.mxu0 %vm424_vm2, %v6731_v39 }
 0x2d1   : > { %10679 = vmatprep.mubr.msk.f32.mxu1 %vm424_vm2, %v7079_v50 }
 0x2d3   : > { %v10165_v24 = vpop.f32.mrf.mxu1 }
 0x2d4   : > { %v10234_v3 = vpop.f32.mrf.mxu0  ;;  %10680 = vmatmul.mubr.msk.f32.vlgmr.msra.gmra.mxu1 %vm424_vm2, %v7080_v45 }
 0x2d5   : > { %v13402_v56 = vadd.f32 %v10234_v3, %v10165_v24  ;;  %10682 = vmatprep.mubr.msk.f32.mxu1 %vm424_vm2, %v7081_v10  ;;  %v13405_v49 = vpop.f32.mrf.mxu1  ;;  %v7089_v24 = vld [vmem:[#allocation3 + $0x7a] sm:$0xff] }
 0x2d6   : > { %v13407_v17 = vpop.f32.mrf.mxu0 }
 0x2d7   : > { %v10168_v61 = vpop.f32.mrf.mxu1 }
 0x2d8   : > { %v10237_v40 = vpop.f32.mrf.mxu0  ;;  %10683 = vmatmul.mubr.msk.f32.gmra.mxu1 %vm424_vm2, %v7082_v1 }
 0x2d9   : > { %v13410_v6 = vadd.f32 %v10237_v40, %v10168_v61  ;;  %10685 = vmatprep.mubr.msk.f32.mxu1 %vm424_vm2, %v7083_v2  ;;  %v13413_v62 = vpop.f32.mrf.mxu1  ;;  %v7090_v40 = vld [vmem:[#allocation3 + $0x82] sm:$0xff] }
 0x2da   : > { %v13415_v22 = vpop.f32.mrf.mxu0 }
 0x2db   : > { %v10171_v46 = vpop.f32.mrf.mxu1 }
 0x2dc   : > { %v10240_v23 = vpop.f32.mrf.mxu0  ;;  %10686 = vmatmul.mubr.msk.f32.gmra.mxu1 %vm424_vm2, %v7084_v8 }
 0x2dd   : > { %v13418_v47 = vadd.f32 %v10240_v23, %v10171_v46  ;;  %10688 = vmatprep.mubr.msk.f32.mxu1 %vm424_vm2, %v7085_v28  ;;  %v13421_v53 = vpop.f32.mrf.mxu1  ;;  %v7091_v46 = vld [vmem:[#allocation3 + $0x8a] sm:$0xff] }
 0x2de   : > { %v13423_v26 = vpop.f32.mrf.mxu0 }
 0x2df   : > { %v10267_v54 = vpop.f32.mrf.mxu1 }
 0x2e0   : > { %v10336_v20 = vpop.f32.mrf.mxu0  ;;  %10689 = vmatmul.mubr.msk.f32.gmra.mxu1 %vm424_vm2, %v7086_v42  ;;  %v5165_v13 = vadd.f32 %v10267_v54, %v12989_v59 }
 0x2e1   : > { %10691 = vmatprep.mubr.msk.f32.mxu1 %vm424_vm2, %v7087_v11  ;;  %v13428_v7 = vpop.f32.mrf.mxu1 }
 0x2e2   : > { %v13430_v39 = vpop.f32.mrf.mxu0  ;;  %v13432_v4 = vadd.f32 %v10336_v20, %v5165_v13  ;;  %v7093_v13 = vld [vmem:[#allocation3 + $0x9a] sm:$0xff] }
 0x2e4   : > { %v10270_v50 = vpop.f32.mrf.mxu1  ;;  %v10339_v45 = vpop.f32.mrf.mxu0  ;;  %10692 = vmatmul.mubr.msk.f32.gmra.mxu1 %vm424_vm2, %v7088_v37 }
 0x2e5   : > { %v5167_v3 = vadd.f32 %v10270_v50, %v13268_v12  ;;  %10694 = vmatprep.mubr.msk.f32.mxu1 %vm424_vm2, %v7089_v24 }
 0x2e6   : > { %v5025_v10 = vpop.f32.mrf.mxu1  ;;  %v13437_v59 = vpop.f32.mrf.mxu0 }
 0x2e7   : > { %v13439_v1 = vadd.f32 %v10339_v45, %v5167_v3  ;;  %v13442_v61 = vadd.f32 %v5025_v10, %v13272_v27  ;;  %v7092_v27 = vld [vmem:[#allocation3 + $0x92] sm:$0xff] }
 0x2e8   : > { %v10273_v2 = vpop.f32.mrf.mxu1  ;;  %v10342_v8 = vpop.f32.mrf.mxu0  ;;  %10695 = vmatmul.mubr.msk.f32.gmra.mxu1 %vm424_vm2, %v7090_v40  ;;  %v7095_v40 = vld [vmem:[#allocation3 + $0xaa] sm:$0xff] }
 0x2e9   : > { %v5169_v23 = vadd.f32 %v10273_v2, %v13279_v31  ;;  %10697 = vmatprep.mubr.msk.f32.mxu1 %vm424_vm2, %v7091_v46  ;;  %v4709_v2 = vadd.f32 %v13307_v63, %v13305_v51 }
 0x2ea   : > { %v5035_v12 = vpop.f32.mrf.mxu1  ;;  %v13447_v28 = vpop.f32.mrf.mxu0 }
 0x2eb   : > { %v13449_v42 = vadd.f32 %v10342_v8, %v5169_v23  ;;  %v13452_v54 = vadd.f32 %v5035_v12, %v13283_v0  ;;  %v7094_v0 = vld [vmem:[#allocation3 + $0xa2] sm:$0xff] }
 0x2ec   : > { %v10276_v20 = vpop.f32.mrf.mxu1  ;;  %v10345_v11 = vpop.f32.mrf.mxu0  ;;  %10698 = vmatmul.mubr.msk.f32.gmra.mxu1 %vm424_vm2, %v7092_v27 }
 0x2ed   : > { %v5171_v37 = vadd.f32 %v10276_v20, %v13290_v21  ;;  %10700 = vmatprep.mubr.msk.f32.mxu1 %vm424_vm2, %v7093_v13  ;;  %v4719_v13 = vadd.f32 %v13320_v60, %v13318_v32  ;;  %v7099_v32 = vld [vmem:[#allocation3 + $0xca] sm:$0xff] }
 0x2ee   : > { %v5045_v31 = vpop.f32.mrf.mxu1  ;;  %v13457_v50 = vpop.f32.mrf.mxu0 }
 0x2ef   : > { %v13459_v45 = vadd.f32 %v10345_v11, %v5171_v37  ;;  %v13462_v24 = vadd.f32 %v5045_v31, %v13294_v5  ;;  %v7096_v5 = vld [vmem:[#allocation3 + $0xb2] sm:$0xff]  ;;  %v7097_v11 = vld [vmem:[#allocation3 + $0xba] sm:$0xff] }
 0x2f0   : > { %v10279_v3 = vpop.f32.mrf.mxu1  ;;  %v10348_v10 = vpop.f32.mrf.mxu0  ;;  %10701 = vmatmul.mubr.msk.f32.gmra.mxu1 %vm424_vm2, %v7094_v0 }
 0x2f1   : > { %v5173_v21 = vadd.f32 %v10279_v3, %v13301_v16  ;;  %10703 = vmatprep.mubr.msk.f32.mxu1 %vm424_vm2, %v7095_v40  ;;  %v7098_v3 = vld [vmem:[#allocation3 + $0xc2] sm:$0xff] }
 0x2f2   : > { %v5055_v8 = vpop.f32.mrf.mxu1  ;;  %v5432_v46 = vpop.f32.mrf.mxu0 }
 0x2f3   : > { %v13469_v23 = vadd.f32 %v10348_v10, %v5173_v21  ;;  %v5172_v12 = vadd.f32 %v5055_v8, %v4709_v2  ;;  %v7684_v10 = vld [vmem:[%s14577_s6 + $0x58] sm:$0xff] }
 0x2f4   : > { %v10282_v27 = vpop.f32.mrf.mxu1  ;;  %v10351_v20 = vpop.f32.mrf.mxu0  ;;  %10704 = vmatmul.mubr.msk.f32.gmra.mxu1 %vm424_vm2, %v7096_v5  ;;  %10724 = vmatprep.subr.mxu0 %v7684_v10 }
 0x2f5   : > { %v13474_v37 = vadd.f32 %v5432_v46, %v5172_v12  ;;  %v5175_v16 = vadd.f32 %v10282_v27, %v13314_v58  ;;  %10706 = vmatprep.mubr.msk.f32.mxu1 %vm424_vm2, %v7097_v11  ;;  %v4729_v58 = vadd.f32 %v13333_v48, %v13331_v35  ;;  %10725 = vmatpush3.msra.mxu0 %v7684_v10  ;;  %v7100_v27 = vld [vmem:[#allocation3 + $0xd2] sm:$0xff]  ;;  %v7101_v35 = vld [vmem:[#allocation3 + $0xda] sm:$0xff]  ;;  %v7102_v10 = vld [vmem:[#allocation3 + $0xe2] sm:$0xff] }
 0x2f6   : > { %v5065_v51 = vpop.f32.mrf.mxu1  ;;  %v5442_v63 = vpop.f32.mrf.mxu0 }
 0x2f7   : > { %v13478_v31 = vadd.f32 %v10351_v20, %v5175_v16  ;;  %v5174_v0 = vadd.f32 %v5065_v51, %v4719_v13  ;;  %v7683_v20 = vld [vmem:[%s14577_s6 + $0x50] sm:$0xff] }
 0x2f8   : > { %v10285_v40 = vpop.f32.mrf.mxu1  ;;  %v10354_v2 = vpop.f32.mrf.mxu0  ;;  %10707 = vmatmul.mubr.msk.f32.gmra.mxu1 %vm424_vm2, %v7098_v3  ;;  %10726 = vmatprep.subr.mxu0 %v7683_v20 }
 0x2f9   : > { %v13486_v60 = vadd.f32 %v5442_v63, %v5174_v0  ;;  %v5177_v21 = vadd.f32 %v10285_v40, %v13327_v33  ;;  %10709 = vmatprep.mubr.msk.f32.mxu1 %vm424_vm2, %v7099_v32  ;;  %v4739_v33 = vadd.f32 %v13351_v36, %v13349_v43  ;;  %10727 = vmatpush3.msra.mxu0 %v7683_v20  ;;  %v7103_v32 = vld [vmem:[#allocation3 + $0xea] sm:$0xff] }
 0x2fa   : > { %v5075_v8 = vpop.f32.mrf.mxu1  ;;  %v5452_v46 = vpop.f32.mrf.mxu0  ;;  %v4749_v43 = vadd.f32 %v13366_v14, %v13364_v44  ;;  %v7105_v14 = vld [vmem:[#allocation3 + $0xfa] sm:$0xff] }
 0x2fb   : > { %v13490_v12 = vadd.f32 %v10354_v2, %v5177_v21  ;;  %v5176_v5 = vadd.f32 %v5075_v8, %v4729_v58  ;;  %v7682_v58 = vld [vmem:[%s14577_s6 + $0x48] sm:$0xff] }
 0x2fc   : > { %v10288_v11 = vpop.f32.mrf.mxu1  ;;  %v10357_v13 = vpop.f32.mrf.mxu0  ;;  %10710 = vmatmul.mubr.msk.f32.gmra.mxu1 %vm424_vm2, %v7100_v27  ;;  %10728 = vmatprep.subr.mxu0 %v7682_v58  ;;  %v7104_v27 = vld [vmem:[#allocation3 + $0xf2] sm:$0xff] }
 0x2fd   : > { %v13498_v48 = vadd.f32 %v5452_v46, %v5176_v5  ;;  %v5179_v16 = vadd.f32 %v10288_v11, %v13342_v55  ;;  %10712 = vmatprep.mubr.msk.f32.mxu1 %vm424_vm2, %v7101_v35  ;;  %10729 = vmatpush3.msra.mxu0 %v7682_v58  ;;  %v7681_v35 = vld [vmem:[%s14577_s6 + $0x40] sm:$0xff] }
 0x2fe   : > { %v5085_v51 = vpop.f32.mrf.mxu1  ;;  %v5462_v63 = vpop.f32.mrf.mxu0  ;;  %10730 = vmatprep.subr.mxu0 %v7681_v35 }
 0x2ff   : > { %v13502_v0 = vadd.f32 %v10357_v13, %v5179_v16  ;;  %v5178_v3 = vadd.f32 %v5085_v51, %v4739_v33  ;;  %v7107_v51 = vld [vmem:[#allocation3 + $0x10a] sm:$0xff]  ;;  %10731 = vmatpush3.msra.mxu0 %v7681_v35 }
 0x300   : > { %v10291_v40 = vpop.f32.mrf.mxu1  ;;  %v10360_v2 = vpop.f32.mrf.mxu0  ;;  %10713 = vmatmul.mubr.msk.f32.gmra.mxu1 %vm424_vm2, %v7102_v10  ;;  %v7106_v10 = vld [vmem:[#allocation3 + $0x102] sm:$0xff] }
 0x301   : > { %v13507_v36 = vadd.f32 %v5462_v63, %v5178_v3  ;;  %v5181_v55 = vadd.f32 %v10291_v40, %v13362_v41  ;;  %10715 = vmatprep.mubr.msk.f32.mxu1 %vm424_vm2, %v7103_v32  ;;  %v4759_v41 = vadd.f32 %v13378_v34, %v13376_v18  ;;  %v7108_v32 = vld [vmem:[#allocation3 + $0x112] sm:$0xff] }
 0x302   : > { %v5095_v21 = vpop.f32.mrf.mxu1  ;;  %v5472_v8 = vpop.f32.mrf.mxu0 }
 0x303   : > { %v13514_v46 = vadd.f32 %v10360_v2, %v5181_v55  ;;  %v5180_v5 = vadd.f32 %v5095_v21, %v4749_v43 }
 0x304   : > { %v10294_v20 = vpop.f32.mrf.mxu1  ;;  %v10363_v44 = vpop.f32.mrf.mxu0  ;;  %10716 = vmatmul.mubr.msk.f32.gmra.mxu1 %vm424_vm2, %v7104_v27 }
 0x305   : > { %v13519_v11 = vadd.f32 %v5472_v8, %v5180_v5  ;;  %v5183_v13 = vadd.f32 %v10294_v20, %v13372_v19  ;;  %10718 = vmatprep.mubr.msk.f32.mxu1 %vm424_vm2, %v7105_v14  ;;  %v4769_v19 = vadd.f32 %v13388_v30, %v13386_v25  ;;  %v7680_v8 = vld [vmem:[%s14577_s6 + $0x38] sm:$0xff] }
 0x306   : > { %v5105_v33 = vpop.f32.mrf.mxu1  ;;  %v5482_v16 = vpop.f32.mrf.mxu0  ;;  %10732 = vmatprep.subr.mxu0 %v7680_v8 }
 0x307   : > { %v13526_v63 = vadd.f32 %v10363_v44, %v5183_v13  ;;  %v5182_v3 = vadd.f32 %v5105_v33, %v4759_v41  ;;  %10733 = vmatpush3.msra.mxu0 %v7680_v8  ;;  %v7679_v13 = vld [vmem:[%s14577_s6 + $0x30] sm:$0xff] }
 0x308   : > { %v10297_v18 = vpop.f32.mrf.mxu1  ;;  %v10366_v34 = vpop.f32.mrf.mxu0  ;;  %10719 = vmatmul.mubr.msk.f32.gmra.mxu1 %vm424_vm2, %v7106_v10  ;;  %10734 = vmatprep.subr.mxu0 %v7679_v13 }
 0x309   : > { %v13531_v40 = vadd.f32 %v5482_v16, %v5182_v3  ;;  %v5185_v2 = vadd.f32 %v10297_v18, %v13382_v9  ;;  %10721 = vmatprep.mubr.msk.f32.mxu1 %vm424_vm2, %v7107_v51  ;;  %v4779_v9 = vadd.f32 %v13397_v57, %v13395_v38  ;;  %v4789_v38 = vadd.f32 %v13407_v17, %v13405_v49  ;;  %v7678_v18 = vld [vmem:[%s14577_s6 + $0x28] sm:$0xff] }
 0x30a   : > { %v5115_v43 = vpop.f32.mrf.mxu1  ;;  %v5492_v55 = vpop.f32.mrf.mxu0  ;;  %10735 = vmatpush3.msra.mxu0 %v7679_v13  ;;  %v4799_v49 = vadd.f32 %v13415_v22, %v13413_v62 }
 0x30b   : > { %v13535_v58 = vadd.f32 %v10366_v34, %v5185_v2  ;;  %v5184_v21 = vadd.f32 %v5115_v43, %v4769_v19  ;;  %10736 = vmatprep.subr.mxu0 %v7678_v18  ;;  %v4669_v43 = vadd.f32 %v13261_v15, %v13257_v52 }
 0x30c   : > { %v10300_v5 = vpop.f32.mrf.mxu1  ;;  %v10369_v27 = vpop.f32.mrf.mxu0  ;;  %10722 = vmatmul.mubr.msk.f32.gmra.mxu1 %vm424_vm2, %v7108_v32  ;;  %10737 = vmatpush3.msra.mxu0 %v7678_v18  ;;  %v5545_v18 = vadd.f32 %v13447_v28, %v13452_v54 }
 0x30d   : > { %v13543_v25 = vadd.f32 %v5492_v55, %v5184_v21  ;;  %v5187_v30 = vadd.f32 %v10300_v5, %v13392_v29  ;;  %v5164_v62 = vadd.f32 %v13428_v7, %v4669_v43 }
 0x30e   : > { %v5125_v20 = vpop.f32.mrf.mxu1  ;;  %v5502_v44 = vpop.f32.mrf.mxu0 }
 0x30f   : > { %v13546_v14 = vadd.f32 %v10369_v27, %v5187_v30  ;;  %v5186_v41 = vadd.f32 %v5125_v20, %v4779_v9  ;;  %v4809_v27 = vadd.f32 %v13423_v26, %v13421_v53 }
 0x310   : > { %v10303_v35 = vpop.f32.mrf.mxu1  ;;  %v10372_v33 = vpop.f32.mrf.mxu0 }
 0x311   : > { %v13553_v57 = vadd.f32 %v5502_v44, %v5186_v41  ;;  %v5189_v29 = vadd.f32 %v10303_v35, %v13402_v56  ;;  %v5541_v41 = vadd.f32 %v13430_v39, %v5164_v62 }
 0x312   : > { %v5135_v16 = vpop.f32.mrf.mxu1  ;;  %v5512_v51 = vpop.f32.mrf.mxu0 }
 0x313   : > { %v13556_v3 = vadd.f32 %v10372_v33, %v5189_v29  ;;  %v5188_v10 = vadd.f32 %v5135_v16, %v4789_v38  ;;  %v5543_v38 = vadd.f32 %v13437_v59, %v13442_v61 }
 0x314   : > { %v10306_v34 = vpop.f32.mrf.mxu1  ;;  %v10375_v19 = vpop.f32.mrf.mxu0 }
 0x315   : > { %v13563_v17 = vadd.f32 %v5512_v51, %v5188_v10  ;;  %v5191_v56 = vadd.f32 %v10306_v34, %v13410_v6 }
 0x316   : > { %v5145_v2 = vpop.f32.mrf.mxu1  ;;  %v5522_v32 = vpop.f32.mrf.mxu0 }
 0x317   : > { %v13568_v55 = vadd.f32 %v10375_v19, %v5191_v56  ;;  %v5190_v21 = vadd.f32 %v5145_v2, %v4799_v49  ;;  %v5547_v56 = vadd.f32 %v13457_v50, %v13462_v24  ;;  %v7676_v50 = vld [vmem:[%s14577_s6 + $0x18] sm:$0xff] }
 0x318   : > { %v10309_v8 = vpop.f32.mrf.mxu1  ;;  %v10378_v5 = vpop.f32.mrf.mxu0 }
 0x319   : > { %v13573_v22 = vadd.f32 %v5522_v32, %v5190_v21  ;;  %v5193_v6 = vadd.f32 %v10309_v8, %v13418_v47  ;;  %v7677_v8 = vld [vmem:[%s14577_s6 + $0x20] sm:$0xff] }
 0x31a   : > { %v5155_v9 = vpop.f32.mrf.mxu1  ;;  %v5532_v30 = vpop.f32.mrf.mxu0  ;;  %10738 = vmatprep.subr.mxu0 %v7677_v8 }
 0x31b   : > { %v13576_v20 = vadd.f32 %v10378_v5, %v5193_v6  ;;  %v5192_v44 = vadd.f32 %v5155_v9, %v4809_v27  ;;  %10739 = vmatpush3.msra.mxu0 %v7677_v8  ;;  %v7674_v9 = vld [vmem:[%s14577_s6 + $0x8] sm:$0xff] }
 0x31c   : > { %v10405_v52 = vpop.f32.mrf.mxu1  ;;  %v13578_v15 = vpop.f32.mrf.mxu0  ;;  %10740 = vmatprep.subr.mxu0 %v7676_v50 }
 0x31d   : > { %v13581_v13 = vadd.f32 %v5532_v30, %v5192_v44  ;;  %v13584_v53 = vadd.f32 %v10405_v52, %v13432_v4  ;;  %10741 = vmatpush3.msra.mxu0 %v7676_v50 }
 0x31e   : > { %v5769_v26 = vpop.f32.mrf.mxu1  ;;  %v13586_v7 = vpop.f32.mrf.mxu0 }
 0x31f   : > { %v13588_v35 = vadd.f32 %v5769_v26, %v5541_v41 }
 0x320   : > { %v10408_v47 = vpop.f32.mrf.mxu1  ;;  %v13590_v33 = vpop.f32.mrf.mxu0 }
 0x321   : > { %v13595_v29 = vadd.f32 %v10408_v47, %v13439_v1 }
 0x322   : > { %v5779_v39 = vpop.f32.mrf.mxu1  ;;  %v13597_v16 = vpop.f32.mrf.mxu0 }
 0x323   : > { %v13599_v51 = vadd.f32 %v5779_v39, %v5543_v38 }
 0x324   : > { %v10411_v4 = vpop.f32.mrf.mxu1  ;;  %v13601_v10 = vpop.f32.mrf.mxu0 }
 0x325   : > { %v13606_v34 = vadd.f32 %v10411_v4, %v13449_v42 }
 0x326   : > { %v5789_v19 = vpop.f32.mrf.mxu1  ;;  %v13608_v49 = vpop.f32.mrf.mxu0 }
 0x327   : > { %v13610_v59 = vadd.f32 %v5789_v19, %v5545_v18 }
 0x328   : > { %v10414_v1 = vpop.f32.mrf.mxu1  ;;  %v13612_v61 = vpop.f32.mrf.mxu0 }
 0x329   : > { %v13617_v2 = vadd.f32 %v10414_v1, %v13459_v45 }
 0x32a   : > { %v5799_v32 = vpop.f32.mrf.mxu1  ;;  %v13619_v43 = vpop.f32.mrf.mxu0 }
 0x32b   : > { %v13621_v28 = vadd.f32 %v5799_v32, %v5547_v56 }
 0x32c   : > { %v10417_v42 = vpop.f32.mrf.mxu1  ;;  %v13623_v54 = vpop.f32.mrf.mxu0 }
 0x32d   : > { %v13626_v21 = vadd.f32 %v10417_v42, %v13469_v23  ;;  %v7675_v23 = vld [vmem:[%s14577_s6 + $0x10] sm:$0xff] }
 0x32e   : > { %v5809_v45 = vpop.f32.mrf.mxu1  ;;  %v13634_v24 = vpop.f32.mrf.mxu0  ;;  %10742 = vmatprep.subr.mxu0 %v7675_v23 }
 0x32f   : > { %v13637_v5 = vadd.f32 %v5809_v45, %v13474_v37  ;;  %10743 = vmatpush3.msra.mxu0 %v7675_v23 }
 0x330   : > { %v10420_v27 = vpop.f32.mrf.mxu1  ;;  %v13642_v62 = vpop.f32.mrf.mxu0  ;;  %10744 = vmatprep.subr.mxu0 %v7674_v9 }
 0x331   : > { %v13645_v6 = vadd.f32 %v10420_v27, %v13478_v31  ;;  %v7673_v31 = vld [vmem:[%s14577_s6] sm:$0xff]  ;;  %10745 = vmatpush3.msra.mxu0 %v7674_v9 }
 0x332   : > { %v5819_v30 = vpop.f32.mrf.mxu1  ;;  %v13650_v37 = vpop.f32.mrf.mxu0  ;;  %10746 = vmatprep.subr.mxu0 %v7673_v31 }
 0x333   : > { %v13653_v44 = vadd.f32 %v5819_v30, %v13486_v60  ;;  %10747 = vmatpush3.msra.mxu0 %v7673_v31 }
 0x334   : > { %v10423_v52 = vpop.f32.mrf.mxu1  ;;  %v13655_v41 = vpop.f32.mrf.mxu0 }
 0x335   : > { %v13661_v26 = vadd.f32 %v10423_v52, %v13490_v12 }
 0x336   : > { %v5829_v47 = vpop.f32.mrf.mxu1  ;;  %v13663_v38 = vpop.f32.mrf.mxu0 }
 0x337   : > { %v13666_v60 = vadd.f32 %v5829_v47, %v13498_v48 }
 0x338   : > { %v10426_v39 = vpop.f32.mrf.mxu1  ;;  %v13668_v4 = vpop.f32.mrf.mxu0 }
 0x339   : > { %v13671_v18 = vadd.f32 %v10426_v39, %v13502_v0 }
 0x33a   : > { %v5839_v19 = vpop.f32.mrf.mxu1  ;;  %v13673_v1 = vpop.f32.mrf.mxu0 }
 0x33b   : > { %v13676_v12 = vadd.f32 %v5839_v19, %v13507_v36 }
 0x33c   : > { %v10429_v56 = vpop.f32.mrf.mxu1  ;;  %v13678_v32 = vpop.f32.mrf.mxu0 }
 0x33d   : > { %v13681_v42 = vadd.f32 %v10429_v56, %v13514_v46 }
 0x33e   : > { %v5849_v48 = vpop.f32.mrf.mxu1  ;;  %v13683_v8 = vpop.f32.mrf.mxu0 }
 0x33f   : > { %v13686_v50 = vadd.f32 %v5849_v48, %v13519_v11 }
 0x340   : > { %v10432_v0 = vpop.f32.mrf.mxu1  ;;  %v13688_v45 = vpop.f32.mrf.mxu0 }
 0x341   : > { %v13691_v23 = vadd.f32 %v10432_v0, %v13526_v63 }
 0x342   : > { %v5859_v36 = vpop.f32.mrf.mxu1  ;;  %v13693_v27 = vpop.f32.mrf.mxu0 }
 0x343   : > { %v13696_v9 = vadd.f32 %v5859_v36, %v13531_v40 }
 0x344   : > { %v10435_v46 = vpop.f32.mrf.mxu1  ;;  %v13698_v30 = vpop.f32.mrf.mxu0 }
 0x345   : > { %v13701_v52 = vadd.f32 %v10435_v46, %v13535_v58 }
 0x346   : > { %v5869_v11 = vpop.f32.mrf.mxu1  ;;  %v13703_v31 = vpop.f32.mrf.mxu0 }
 0x347   : > { %v13706_v47 = vadd.f32 %v5869_v11, %v13543_v25 }
 0x348   : > { %v10438_v63 = vpop.f32.mrf.mxu1  ;;  %v13708_v39 = vpop.f32.mrf.mxu0 }
 0x349   : > { %v13711_v19 = vadd.f32 %v10438_v63, %v13546_v14 }
 0x34a   : > { %v5879_v40 = vpop.f32.mrf.mxu1  ;;  %v13713_v56 = vpop.f32.mrf.mxu0 }
 0x34b   : > { %14749 = vst [vmem:[#allocation6_spill] sm:$0xff] %v13713_v56  ;;  %v13716_v48 = vadd.f32 %v5879_v40, %v13553_v57 }
 0x34c   : > { %v10441_v58 = vpop.f32.mrf.mxu1  ;;  %v13718_v0 = vpop.f32.mrf.mxu0 }
 0x34d   : > { %14750 = vst [vmem:[#allocation10_spill] sm:$0xff] %v13718_v0  ;;  %v13721_v36 = vadd.f32 %v10441_v58, %v13556_v3 }
 0x34e   : > { %v5889_v25 = vpop.f32.mrf.mxu1  ;;  %v13723_v46 = vpop.f32.mrf.mxu0 }
 0x34f   : > { %14751 = vst [vmem:[#allocation9_spill] sm:$0xff] %v13723_v46  ;;  %v13726_v11 = vadd.f32 %v5889_v25, %v13563_v17 }
 0x350   : > { %v10444_v14 = vpop.f32.mrf.mxu1  ;;  %v13728_v63 = vpop.f32.mrf.mxu0 }
 0x351   : > { %14752 = vst [vmem:[#allocation13_spill] sm:$0xff] %v13728_v63  ;;  %v13731_v56 = vadd.f32 %v10444_v14, %v13568_v55 }
 0x352   : > { %v5899_v57 = vpop.f32.mrf.mxu1  ;;  %v13733_v40 = vpop.f32.mrf.mxu0 }
 0x353   : > { %14753 = vst [vmem:[#allocation16_spill] sm:$0xff] %v13731_v56  ;;  %14754 = vst [vmem:[#allocation19_spill] sm:$0xff] %v13733_v40  ;;  %v13736_v0 = vadd.f32 %v5899_v57, %v13573_v22 }
 0x354   : > { %v10447_v3 = vpop.f32.mrf.mxu1  ;;  %v13738_v58 = vpop.f32.mrf.mxu0 }
 0x355   : > { %14755 = vst [vmem:[#allocation22_spill] sm:$0xff] %v13736_v0  ;;  %14756 = vst [vmem:[#allocation28_spill] sm:$0xff] %v13738_v58  ;;  %v13741_v46 = vadd.f32 %v10447_v3, %v13576_v20 }
 0x356   : > { %v5909_v17 = vpop.f32.mrf.mxu1  ;;  %v13743_v25 = vpop.f32.mrf.mxu0 }
 0x357   : > { %14757 = vst [vmem:[#allocation12_spill] sm:$0xff] %v13741_v46  ;;  %14758 = vst [vmem:[#allocation15_spill] sm:$0xff] %v13743_v25  ;;  %v13746_v63 = vadd.f32 %v5909_v17, %v13581_v13 }
 0x358   : > { %v13748_v55 = vpop.f32.mrf.mxu1  ;;  %v13750_v14 = vpop.f32.mrf.mxu0 }
 0x359   : > { %14759 = vst [vmem:[#allocation18_spill] sm:$0xff] %v13746_v63  ;;  %14760 = vst [vmem:[#allocation21_spill] sm:$0xff] %v13750_v14 }
 0x35a   : > { %v13752_v40 = vpop.f32.mrf.mxu1  ;;  %v13754_v22 = vpop.f32.mrf.mxu0 }
 0x35b   : > { %14761 = vst [vmem:[#allocation24_spill] sm:$0xff] %v13754_v22 }
 0x35c   : > { %v13756_v57 = vpop.f32.mrf.mxu1  ;;  %v13758_v58 = vpop.f32.mrf.mxu0 }
 0x35d   : > { %14762 = vst [vmem:[#allocation26_spill] sm:$0xff] %v13758_v58 }
 0x35e   : > { %v13760_v20 = vpop.f32.mrf.mxu1  ;;  %v13762_v3 = vpop.f32.mrf.mxu0 }
 0x35f   : > { %14763 = vst [vmem:[#allocation27_spill] sm:$0xff] %v13762_v3 }
 0x360   : > { %v13764_v25 = vpop.f32.mrf.mxu1  ;;  %v13766_v13 = vpop.f32.mrf.mxu0 }
 0x361   : > { %14764 = vst [vmem:[#allocation30_spill] sm:$0xff] %v13764_v25  ;;  %14765 = vst [vmem:[#allocation4_spill] sm:$0xff] %v13766_v13 }
 0x362   : > { %v13768_v17 = vpop.f32.mrf.mxu1  ;;  %v13770_v63 = vpop.f32.mrf.mxu0 }
 0x363   : > { %14766 = vst [vmem:[#allocation5_spill] sm:$0xff] %v13768_v17  ;;  %14767 = vst [vmem:[#allocation36_spill] sm:$0xff] %v13770_v63 }
 0x364   : > { %v13772_v14 = vpop.f32.mrf.mxu1  ;;  %v13774_v46 = vpop.f32.mrf.mxu0 }
 0x365   : > { %14768 = vst [vmem:[#allocation33_spill] sm:$0xff] %v13772_v14  ;;  %14769 = vst [vmem:[#allocation31_spill] sm:$0xff] %v13774_v46 }
 0x366   : > { %v13776_v22 = vpop.f32.mrf.mxu1  ;;  %v13778_v0 = vpop.f32.mrf.mxu0 }
 0x367   : > { %14770 = vst [vmem:[#allocation32_spill] sm:$0xff] %v13776_v22  ;;  %14771 = vst [vmem:[#allocation34_spill] sm:$0xff] %v13778_v0 }
 0x368   : > { %v13780_v58 = vpop.f32.mrf.mxu1  ;;  %v13782_v56 = vpop.f32.mrf.mxu0 }
 0x369   : > { %14772 = vst [vmem:[#allocation38_spill] sm:$0xff] %v13780_v58  ;;  %14773 = vst [vmem:[#allocation35_spill] sm:$0xff] %v13782_v56 }
 0x36a   : > { %v13784_v3 = vpop.f32.mrf.mxu1  ;;  %v13786_v25 = vpop.f32.mrf.mxu0 }
 0x36b   : > { %14774 = vst [vmem:[#allocation37_spill] sm:$0xff] %v13784_v3  ;;  %14775 = vst [vmem:[#allocation7_spill] sm:$0xff] %v13786_v25 }
 0x36c   : > { %v13788_v13 = vpop.f32.mrf.mxu1  ;;  %v13790_v17 = vpop.f32.mrf.mxu0 }
 0x36d   : > { %14776 = vst [vmem:[#allocation40_spill] sm:$0xff] %v13788_v13  ;;  %14777 = vst [vmem:[#allocation39_spill] sm:$0xff] %v13790_v17 }
 0x36e   : > { %v13792_v63 = vpop.f32.mrf.mxu1  ;;  %v13794_v14 = vpop.f32.mrf.mxu0 }
 0x36f   : > { %14778 = vst [vmem:[#allocation42_spill] sm:$0xff] %v13792_v63  ;;  %14779 = vst [vmem:[#allocation41_spill] sm:$0xff] %v13794_v14 }
 0x370   : > { %v13796_v46 = vpop.f32.mrf.mxu1  ;;  %v13798_v22 = vpop.f32.mrf.mxu0 }
 0x371   : > { %14780 = vst [vmem:[#allocation8_spill] sm:$0xff] %v13796_v46  ;;  %14781 = vst [vmem:[#allocation44_spill] sm:$0xff] %v13798_v22 }
 0x372   : > { %v13800_v0 = vpop.f32.mrf.mxu1  ;;  %v13802_v58 = vpop.f32.mrf.mxu0 }
 0x373   : > { %14782 = vst [vmem:[#allocation43_spill] sm:$0xff] %v13800_v0  ;;  %14783 = vst [vmem:[#allocation46_spill] sm:$0xff] %v13802_v58 }
 0x374   : > { %v13804_v56 = vpop.f32.mrf.mxu1  ;;  %v13806_v3 = vpop.f32.mrf.mxu0 }
 0x375   : > { %14784 = vst [vmem:[#allocation11_spill] sm:$0xff] %v13804_v56  ;;  %14785 = vst [vmem:[#allocation48_spill] sm:$0xff] %v13806_v3 }
 0x376   : > { %v13808_v25 = vpop.f32.mrf.mxu1  ;;  %v13810_v13 = vpop.f32.mrf.mxu0 }
 0x377   : > { %14786 = vst [vmem:[#allocation50_spill] sm:$0xff] %v13808_v25  ;;  %14787 = vst [vmem:[#allocation45_spill] sm:$0xff] %v13810_v13 }
 0x378   : > { %v13812_v17 = vpop.f32.mrf.mxu1  ;;  %v13814_v63 = vpop.f32.mrf.mxu0 }
 0x379   : > { %14788 = vst [vmem:[#allocation47_spill] sm:$0xff] %v13812_v17  ;;  %14789 = vst [vmem:[#allocation14_spill] sm:$0xff] %v13814_v63 }
 0x37a   : > { %v13816_v14 = vpop.f32.mrf.mxu1  ;;  %v13818_v46 = vpop.f32.mrf.mxu0 }
 0x37b   : > { %14790 = vst [vmem:[#allocation52_spill] sm:$0xff] %v13816_v14  ;;  %14791 = vst [vmem:[#allocation49_spill] sm:$0xff] %v13818_v46  ;;  %v6296_v46 = vadd.f32 %v13578_v15, %v13584_v53  ;;  %v6302_v15 = vadd.f32 %v13612_v61, %v13617_v2  ;;  %v6301_v53 = vadd.f32 %v13619_v43, %v13621_v28 }
 0x37c   : > { %v13820_v22 = vpop.f32.mrf.mxu1  ;;  %v13824_v58 = vpop.f32.mrf.mxu0  ;;  %v6312_v61 = vadd.f32 %v13678_v32, %v13681_v42  ;;  %v6311_v2 = vadd.f32 %v13683_v8, %v13686_v50  ;;  %v13884_v43 = vadd.f32 %v13688_v45, %v13691_v23  ;;  %v13888_v28 = vadd.f32 %v13693_v27, %v13696_v9  ;;  %v14801_v32 = vld [vmem:[#allocation16_spill] sm:$0xff]  ;;  %v14802_v42 = vld [vmem:[#allocation13_spill] sm:$0xff]  ;;  %v14803_v50 = vld [vmem:[#allocation30_spill] sm:$0xff] }
 0x37d   : > { %14792 = vst [vmem:[#allocation51_spill] sm:$0xff] %v13824_v58  ;;  %v6295_v58 = vadd.f32 %v13586_v7, %v13588_v35  ;;  %v6304_v7 = vadd.f32 %v13623_v54, %v13626_v21  ;;  %v13892_v54 = vadd.f32 %v13698_v30, %v13701_v52  ;;  %v13926_v8 = vadd.f32 %v14802_v42, %v14801_v32  ;;  %v14804_v23 = vld [vmem:[#allocation5_spill] sm:$0xff]  ;;  %v14805_v9 = vld [vmem:[#allocation22_spill] sm:$0xff]  ;;  %v14806_v30 = vld [vmem:[#allocation19_spill] sm:$0xff] }
 0x37e   : > { %v13822_v0 = vpop.f32.mrf.mxu1  ;;  %v13830_v25 = vpop.f32.mrf.mxu0  ;;  %v13932_v52 = vadd.f32 %v14806_v30, %v14805_v9  ;;  %v14817_v32 = vld [vmem:[#allocation27_spill] sm:$0xff]  ;;  %v14819_v9 = vld [vmem:[#allocation40_spill] sm:$0xff] }
 0x37f   : > { %14794 = vst [vmem:[#allocation53_spill] sm:$0xff] %v13830_v25  ;;  %v6297_v25 = vadd.f32 %v13597_v16, %v13599_v51  ;;  %v6305_v16 = vadd.f32 %v13650_v37, %v13653_v44  ;;  %v6308_v51 = vadd.f32 %v13655_v41, %v13661_v26  ;;  %v14798_v44 = vld [vmem:[#allocation6_spill] sm:$0xff] }
 0x380   : > { %v13826_v56 = vpop.f32.mrf.mxu1  ;;  %v13836_v63 = vpop.f32.mrf.mxu0  ;;  %v13910_v41 = vadd.f32 %v14798_v44, %v13716_v48  ;;  %v14799_v26 = vld [vmem:[#allocation10_spill] sm:$0xff] }
 0x381   : > { %14793 = vst [vmem:[#allocation54_spill] sm:$0xff] %v13826_v56  ;;  %v6298_v56 = vadd.f32 %v13590_v33, %v13595_v29  ;;  %v6303_v33 = vadd.f32 %v13634_v24, %v13637_v5  ;;  %v6306_v29 = vadd.f32 %v13642_v62, %v13645_v6  ;;  %v13898_v24 = vadd.f32 %v13703_v31, %v13706_v47  ;;  %v14807_v31 = vld [vmem:[#allocation12_spill] sm:$0xff] }
 0x382   : > { %v13828_v3 = vpop.f32.mrf.mxu1  ;;  %v13860_v35 = vpop.f32.mrf.mxu0  ;;  %v13902_v5 = vadd.f32 %v13708_v39, %v13711_v19  ;;  %v6673_v62 = vadd.f32 %v13748_v55, %v6296_v46  ;;  %v6672_v6 = vadd.f32 %v13752_v40, %v6295_v58  ;;  %v14808_v47 = vld [vmem:[#allocation28_spill] sm:$0xff]  ;;  %v14809_v19 = vld [vmem:[#allocation18_spill] sm:$0xff]  ;;  %v14812_v40 = vld [vmem:[#allocation21_spill] sm:$0xff] }
 0x383   : > { %v13936_v39 = vadd.f32 %v14808_v47, %v14807_v31  ;;  %v14821_v31 = vld [vmem:[#allocation36_spill] sm:$0xff]  ;;  %v14822_v47 = vld [vmem:[#allocation42_spill] sm:$0xff] }
 0x384   : > { %v13832_v13 = vpop.f32.mrf.mxu1  ;;  %v13906_v37 = vpop.f32.mrf.mxu0  ;;  %v7050_v58 = vadd.f32 %v14812_v40, %v6673_v62  ;;  %v13958_v62 = vld [vmem:[%s14576_s5] ss:$0 sm:$0xff] }
 0x385   : > { %14795 = vst [vmem:[#allocation17_spill] sm:$0xff] %v13832_v13  ;;  %v6300_v13 = vadd.f32 %v13601_v10, %v13606_v34  ;;  %v6307_v34 = vadd.f32 %v13663_v38, %v13666_v60  ;;  %v13914_v38 = vadd.f32 %v14799_v26, %v13721_v36  ;;  %v6675_v60 = vadd.f32 %v13756_v57, %v6298_v56  ;;  %v14810_v56 = vld [vmem:[#allocation15_spill] sm:$0xff]  ;;  %v14811_v36 = vld [vmem:[#allocation33_spill] sm:$0xff]  ;;  %v14816_v26 = vld [vmem:[#allocation26_spill] sm:$0xff] }
 0x386   : > { %v13834_v17 = vpop.f32.mrf.mxu1  ;;  %v13940_v48 = vadd.f32 %v14810_v56, %v14809_v19  ;;  %v6679_v46 = vadd.f32 %v14811_v36, %v6302_v15  ;;  %v13949_v44 = vpop.f32.mrf.mxu0  ;;  %v6683_v15 = vadd.f32 %v14819_v9, %v6306_v29  ;;  %v6682_v19 = vadd.f32 %v14822_v47, %v6305_v16  ;;  %v14826_v29 = vld [vmem:[#allocation11_spill] sm:$0xff]  ;;  %v14833_v47 = vld [vmem:[#allocation41_spill] sm:$0xff] }
 0x387   : > { %14796 = vst [vmem:[#allocation56_spill] sm:$0xff] %v13834_v17  ;;  %v6677_v45 = vadd.f32 %v14803_v50, %v6300_v13  ;;  %v14818_v50 = vld [vmem:[#allocation37_spill] sm:$0xff] }
 0x388   : > { %v13838_v14 = vpop.f32.mrf.mxu1 }
 0x389   : > { %14797 = vst [vmem:[#allocation55_spill] sm:$0xff] %v13838_v14  ;;  %v6299_v14 = vadd.f32 %v13608_v49, %v13610_v59  ;;  %v6310_v49 = vadd.f32 %v13668_v4, %v13671_v18  ;;  %v6309_v59 = vadd.f32 %v13673_v1, %v13676_v12  ;;  %v6674_v4 = vadd.f32 %v13760_v20, %v6297_v25  ;;  %v14800_v1 = vld [vmem:[#allocation9_spill] sm:$0xff]  ;;  %v14813_v25 = vld [vmem:[#allocation24_spill] sm:$0xff]  ;;  %v14815_v20 = vld [vmem:[#allocation38_spill] sm:$0xff] }
 0x38a   : > { %v13850_v17 = vpop.f32.mrf.mxu1  ;;  %v13922_v12 = vadd.f32 %v14800_v1, %v13726_v11  ;;  %v7049_v55 = vadd.f32 %v14813_v25, %v6672_v6  ;;  %v6681_v13 = vadd.f32 %v14815_v20, %v6304_v7  ;;  %v7052_v1 = vadd.f32 %v14816_v26, %v6675_v60  ;;  %v14820_v6 = vld [vmem:[#allocation4_spill] sm:$0xff]  ;;  %v14823_v60 = vld [vmem:[#allocation31_spill] sm:$0xff]  ;;  %v14827_v26 = vld [vmem:[#allocation34_spill] sm:$0xff] }
 0x38b   : > { %v6676_v27 = vadd.f32 %v14804_v23, %v6299_v14  ;;  %v14814_v14 = vld [vmem:[#allocation32_spill] sm:$0xff]  ;;  %v7051_v42 = vadd.f32 %v14817_v32, %v6674_v4  ;;  %v6680_v23 = vadd.f32 %v14818_v50, %v6303_v33  ;;  %v7056_v36 = vadd.f32 %v14823_v60, %v6679_v46  ;;  %v14825_v33 = vld [vmem:[#allocation43_spill] sm:$0xff] }
 0x38c   : > { %v13870_v10 = vpop.f32.mrf.mxu1  ;;  %v6678_v57 = vadd.f32 %v14814_v14, %v6301_v53  ;;  %v7054_v53 = vadd.f32 %v14820_v6, %v6677_v45  ;;  %v14824_v4 = vld [vmem:[#allocation8_spill] sm:$0xff]  ;;  %v6684_v25 = vadd.f32 %v14825_v33, %v6307_v34  ;;  %v6687_v14 = vadd.f32 %v14826_v29, %v6310_v49  ;;  %v14828_v50 = vld [vmem:[#allocation35_spill] sm:$0xff]  ;;  %v13971_v45 = vpop.f32.mrf.mxu0  ;;  %v14831_v34 = vld [vmem:[#allocation50_spill] sm:$0xff] }
 0x38d   : > { %v7053_v7 = vadd.f32 %v14821_v31, %v6676_v27  ;;  %v6685_v40 = vadd.f32 %v14824_v4, %v6308_v51  ;;  %v13969_v9 = vadd.f32 %v14828_v50, %v6681_v13  ;;  %v14830_v51 = vld [vmem:[#allocation39_spill] sm:$0xff]  ;;  %v6686_v49 = vadd.f32 %v14831_v34, %v6309_v59  ;;  %v14834_v4 = vld [vmem:[#allocation44_spill] sm:$0xff]  ;;  %v14835_v33 = vld [vmem:[#allocation46_spill] sm:$0xff] }
 0x38e   : > { %v13894_v21 = vpop.f32.mrf.mxu1  ;;  %v7055_v32 = vadd.f32 %v14827_v26, %v6678_v57  ;;  %v14832_v6 = vld [vmem:[#allocation47_spill] sm:$0xff]  ;;  %v13985_v13 = vadd.f32 %v14833_v47, %v6682_v19  ;;  %v14836_v29 = vld [vmem:[#allocation48_spill] sm:$0xff]  ;;  %v14001_v19 = vpop.f32.mrf.mxu0 }
 0x38f   : > { %v6689_v31 = vadd.f32 %v14832_v6, %v6312_v61  ;;  %v13998_v59 = vadd.f32 %v14836_v29, %v6687_v14  ;;  %v14837_v61 = vld [vmem:[#allocation52_spill] sm:$0xff]  ;;  %v6691_v14 = vadd.f32 %v13820_v22, %v13884_v43 }
 0x390   : > { %v13918_v18 = vpop.f32.mrf.mxu1 }
 0x392   : > { %v13943_v11 = vpop.f32.mrf.mxu1 }
 0x394   : > { %v10681_v30 = vpop.f32.mrf.mxu1 }
 0x395   : > { %v7427_v56 = vadd.f32 %v10681_v30, %v7050_v58  ;;  %v14829_v58 = vld [vmem:[#allocation7_spill] sm:$0xff]  ;;  %v13980_v30 = vadd.f32 %v14830_v51, %v6683_v15  ;;  %v13995_v15 = vadd.f32 %v14835_v33, %v6684_v25  ;;  %v14839_v25 = vld [vmem:[#allocation14_spill] sm:$0xff]  ;;  %v10651_v33 = vpop.f32.mrf.mxu0 }
 0x396   : > { %v7277_v20 = vpop.f32.mrf.mxu1  ;;  %v13977_v46 = vadd.f32 %v14829_v58, %v6680_v23  ;;  %v13992_v23 = vadd.f32 %v14834_v4, %v6685_v40  ;;  %v14838_v40 = vld [vmem:[#allocation45_spill] sm:$0xff]  ;;  %v14011_v34 = vadd.f32 %v14839_v25, %v6689_v31 }
 0x397   : > { %v13974_v27 = vadd.f32 %v13958_v62, %v7427_v56  ;;  %v7426_v16 = vadd.f32 %v7277_v20, %v7049_v55  ;;  %v6688_v20 = vadd.f32 %v14837_v61, %v6311_v2  ;;  %v14008_v51 = vadd.f32 %v14838_v40, %v6686_v49  ;;  %v14841_v31 = vld [vmem:[#allocation17_spill] sm:$0xff]  ;;  %v14843_v61 = vld [vmem:[#allocation51_spill] sm:$0xff] }
 0x398   : > { %v10684_v57 = vpop.f32.mrf.mxu1  ;;  %v6690_v2 = vadd.f32 %v13822_v0, %v13888_v28  ;;  %v6692_v49 = vadd.f32 %v13828_v3, %v13898_v24  ;;  %v14842_v0 = vld [vmem:[#allocation49_spill] sm:$0xff] }
 0x399   : > { %v7524_v60 = vmin.f32 %v13974_v27, 0.0  ;;  %v13989_v56 = vadd.f32 %v13958_v62, %v7426_v16  ;;  %v7429_v55 = vadd.f32 %v10684_v57, %v7052_v1  ;;  %v14840_v57 = vld [vmem:[#allocation54_spill] sm:$0xff]  ;;  %v14028_v28 = vadd.f32 %v14842_v0, %v6688_v20 }
 0x39a   : > { %v7287_v26 = vpop.f32.mrf.mxu1  ;;  %v6693_v47 = vadd.f32 %v14840_v57, %v13892_v54  ;;  %vm7494_vm4 = vcmp.gt.f32.partialorder %v13974_v27, 0.0 }
 0x39b   : > { %v7555_v50 = vmul.f32 1.442695, %v7524_v60  ;;  %v7523_v58 = vmin.f32 %v13989_v56, 0.0  ;;  %v14005_v16 = vadd.f32 %v13958_v62, %v7429_v55  ;;  %v7428_v1 = vadd.f32 %v7287_v26, %v7051_v42 }
 0x39c   : > { %v10687_v6 = vpop.f32.mrf.mxu1  ;;  %v6695_v55 = vadd.f32 %v14841_v31, %v13902_v5  ;;  %v14031_v26 = vadd.f32 %v14843_v61, %v6691_v14  ;;  %vm7493_vm5 = vcmp.gt.f32.partialorder %v13989_v56, 0.0 }
 0x39d   : > { %10903 = vpow2.f32 %v7555_v50  ;;  %v7553_v60 = vmul.f32 1.442695, %v7523_v58  ;;  %v7526_v42 = vmin.f32 %v14005_v16, 0.0  ;;  %v14025_v4 = vadd.f32 %v13958_v62, %v7428_v1  ;;  %v14844_v50 = vld [vmem:[#allocation53_spill] sm:$0xff] }
 0x39e   : > { %v7431_v22 = vadd.f32 %v10687_v6, %v7054_v53  ;;  %v7297_v43 = vpop.f32.mrf.mxu1  ;;  %v14034_v3 = vadd.f32 %v14844_v50, %v6690_v2  ;;  %v14041_v58 = vadd.f32 %v13836_v63, %v6693_v47  ;;  %v14047_v1 = vadd.f32 %v13860_v35, %v6692_v49  ;;  %v14845_v6 = vld [vmem:[#allocation56_spill] sm:$0xff]  ;;  %v7030_v63 = vpop.f32.mrf.mxu0  ;;  %v14846_v35 = vld [vmem:[#allocation55_spill] sm:$0xff] }
 0x39f   : > { %10905 = vpow2.f32 %v7553_v60  ;;  %v7559_v54 = vmul.f32 1.442695, %v7526_v42  ;;  %v7430_v29 = vadd.f32 %v7297_v43, %v7053_v7  ;;  %v7525_v24 = vmin.f32 %v14025_v4, 0.0 }
 0x3a0   : > { %v14038_v5 = vadd.f32 %v13958_v62, %v7431_v22  ;;  %v10690_v53 = vpop.f32.mrf.mxu1  ;;  %v14050_v40 = vadd.f32 %v13906_v37, %v6695_v55  ;;  %v6694_v57 = vadd.f32 %v14845_v6, %v13910_v41  ;;  %v6697_v42 = vadd.f32 %v14846_v35, %v13914_v38  ;;  %v10654_v41 = vpop.f32.mrf.mxu0 }
 0x3a1   : > { %10907 = vpow2.f32 %v7559_v54  ;;  %v14044_v20 = vadd.f32 %v13958_v62, %v7430_v29  ;;  %v7433_v7 = vadd.f32 %v10690_v53, %v7056_v36  ;;  %v7557_v25 = vmul.f32 1.442695, %v7525_v24 }
 0x3a2   : > { %v7528_v14 = vmin.f32 %v14038_v5, 0.0  ;;  %v7307_v2 = vpop.f32.mrf.mxu1  ;;  %v6696_v37 = vadd.f32 %v13850_v17, %v13922_v12  ;;  %v6699_v55 = vadd.f32 %v13870_v10, %v13926_v8  ;;  %v6701_v38 = vadd.f32 %v13918_v18, %v13936_v39  ;;  %v7040_v39 = vpop.f32.mrf.mxu0 }
 0x3a3   : > { %v7527_v47 = vmin.f32 %v14044_v20, 0.0  ;;  %v14057_v60 = vadd.f32 %v13958_v62, %v7433_v7  ;;  %v7432_v36 = vadd.f32 %v7307_v2, %v7055_v32  ;;  %10909 = vpow2.f32 %v7557_v25 }
 0x3a4   : > { %v7563_v49 = vmul.f32 1.442695, %v7528_v14  ;;  %v10693_v31 = vpop.f32.mrf.mxu1  ;;  %v6698_v32 = vadd.f32 %v13894_v21, %v13932_v52  ;;  %v14077_v29 = vadd.f32 %v13949_v44, %v6694_v57  ;;  %v14080_v61 = vadd.f32 %v13971_v45, %v6697_v42 }
 0x3a5   : > { %v7561_v22 = vmul.f32 1.442695, %v7527_v47  ;;  %v7530_v43 = vmin.f32 %v14057_v60, 0.0  ;;  %v14067_v0 = vadd.f32 %v13958_v62, %v7432_v36  ;;  %v7435_v17 = vadd.f32 %v10693_v31, %v13969_v9 }
 0x3a6   : > { %10911 = vpow2.f32 %v7563_v49  ;;  %v7317_v12 = vpop.f32.mrf.mxu1  ;;  %v6700_v21 = vadd.f32 %v13943_v11, %v13940_v48  ;;  %v14092_v24 = vadd.f32 %v14001_v19, %v6696_v37  ;;  %v14094_v45 = vadd.f32 %v10651_v33, %v6699_v55 }
 0x3a7   : > { %10913 = vpow2.f32 %v7561_v22  ;;  %v7567_v54 = vmul.f32 1.442695, %v7530_v43  ;;  %v7529_v10 = vmin.f32 %v14067_v0, 0.0  ;;  %v7434_v8 = vadd.f32 %v7317_v12, %v13977_v46 }
 0x3a8   : > { %v14085_v18 = vadd.f32 %v13958_v62, %v7435_v17  ;;  %v10696_v52 = vpop.f32.mrf.mxu1  ;;  %v14096_v53 = vadd.f32 %v7030_v63, %v6698_v32  ;;  %v14099_v7 = vadd.f32 %v10654_v41, %v6701_v38  ;;  %v14105_v2 = vadd.f32 %v7040_v39, %v6700_v21 }
 0x3a9   : > { %10915 = vpow2.f32 %v7567_v54  ;;  %v7565_v9 = vmul.f32 1.442695, %v7529_v10  ;;  %v14088_v50 = vadd.f32 %v13958_v62, %v7434_v8  ;;  %v7437_v46 = vadd.f32 %v10696_v52, %v13980_v30 }
 0x3aa   : > { %v10904_v44 = vpop.eup %10903  ;;  %v7532_v48 = vmin.f32 %v14085_v18, 0.0  ;;  %v7327_v11 = vpop.f32.mrf.mxu1  ;;  %vm7496_vm6 = vcmp.gt.f32.partialorder %v14005_v16, 0.0  ;;  %vm7495_vm7 = vcmp.gt.f32.partialorder %v14025_v4, 0.0  ;;  %vm7498_vm8 = vcmp.gt.f32.partialorder %v14038_v5, 0.0 }
 0x3ab   : > { %10917 = vpow2.f32 %v7565_v9  ;;  %v7531_v25 = vmin.f32 %v14088_v50, 0.0  ;;  %v14103_v14 = vadd.f32 %v13958_v62, %v7437_v46  ;;  %v8889_v19 = vadd.f32 -1.0, %v10904_v44 }
 0x3ac   : > { %v10906_v30 = vpop.eup %10905  ;;  %v7571_v6 = vmul.f32 1.442695, %v7532_v48  ;;  %v7436_v33 = vadd.f32 %v7327_v11, %v13985_v13  ;;  %v10699_v57 = vpop.f32.mrf.mxu1  ;;  %vm7497_vm9 = vcmp.gt.f32.partialorder %v14044_v20, 0.0  ;;  %vm7500_vm10 = vcmp.gt.f32.partialorder %v14057_v60, 0.0 }
 0x3ad   : > { %v7569_v63 = vmul.f32 1.442695, %v7531_v25  ;;  %v7534_v47 = vmin.f32 %v14103_v14, 0.0  ;;  %v7439_v42 = vadd.f32 %v10699_v57, %v13992_v23  ;;  %v8888_v49 = vadd.f32 -1.0, %v10906_v30 }
 0x3ae   : > { %v10908_v36 = vpop.eup %10907  ;;  %10919 = vpow2.f32 %v7571_v6  ;;  %v14112_v35 = vadd.f32 %v13958_v62, %v7436_v33  ;;  %v7337_v37 = vpop.f32.mrf.mxu1  ;;  %v7644_v55 = vsel %vm7494_vm4, %v13974_v27, %v8889_v19  ;;  %vm7499_vm11 = vcmp.gt.f32.partialorder %v14067_v0, 0.0 }
 0x3af   : > { %10921 = vpow2.f32 %v7569_v63  ;;  %v7575_v13 = vmul.f32 1.442695, %v7534_v47  ;;  %v7438_v31 = vadd.f32 %v7337_v37, %v13995_v15  ;;  %v14120_v22 = vadd.f32 %v13958_v62, %v7439_v42 }
 0x3b0   : > { %v7533_v41 = vmin.f32 %v14112_v35, 0.0  ;;  %v10702_v43 = vpop.f32.mrf.mxu1  ;;  %v7643_v32 = vsel %vm7493_vm5, %v13989_v56, %v8888_v49  ;;  %v10910_v38 = vpop.eup %10909  ;;  %v8891_v15 = vadd.f32 -1.0, %v10908_v36  ;;  %vm7502_vm12 = vcmp.gt.f32.partialorder %v14085_v18, 0.0 }
 0x3b1   : > { %10923 = vpow2.f32 %v7575_v13  ;;  %v14124_v23 = vadd.f32 %v13958_v62, %v7438_v31  ;;  %v7441_v17 = vadd.f32 %v10702_v43, %v13998_v59  ;;  %10748 = vmatprep.mubr.msk.f32.mxu0 %vm424_vm2, %v7643_v32  ;;  %v7536_v27 = vmin.f32 %v14120_v22, 0.0 }
 0x3b2   : > { %v7573_v12 = vmul.f32 1.442695, %v7533_v41  ;;  %10749 = vmatmul.mubr.msk.f32.vlgmr.msra.gmra.mxu0 %vm424_vm2, %v7644_v55  ;;  %v7347_v54 = vpop.f32.mrf.mxu1  ;;  %v8890_v10 = vadd.f32 -1.0, %v10910_v38  ;;  %v7646_v30 = vsel %vm7496_vm6, %v14005_v16, %v8891_v15  ;;  %vm7501_vm13 = vcmp.gt.f32.partialorder %v14088_v50, 0.0 }
 0x3b3   : > { %v10912_v56 = vpop.eup %10911  ;;  %v7535_v8 = vmin.f32 %v14124_v23, 0.0  ;;  %v14134_v21 = vadd.f32 %v13958_v62, %v7441_v17  ;;  %v7440_v59 = vadd.f32 %v7347_v54, %v14008_v51  ;;  %v7579_v39 = vmul.f32 1.442695, %v7536_v27 }
 0x3b4   : > { %v10914_v52 = vpop.eup %10913  ;;  %10925 = vpow2.f32 %v7573_v12  ;;  %v10705_v9 = vpop.f32.mrf.mxu1  ;;  %v7645_v46 = vsel %vm7495_vm7, %v14025_v4, %v8890_v10  ;;  %v8893_v44 = vadd.f32 -1.0, %v10912_v56  ;;  %vm7504_vm14 = vcmp.gt.f32.partialorder %v14103_v14, 0.0 }
 0x3b5   : > { %v7577_v48 = vmul.f32 1.442695, %v7535_v8  ;;  %v7538_v11 = vmin.f32 %v14134_v21, 0.0  ;;  %v14140_v25 = vadd.f32 %v13958_v62, %v7440_v59  ;;  %10751 = vmatprep.mubr.msk.f32.mxu0 %vm424_vm2, %v7645_v46  ;;  %10927 = vpow2.f32 %v7579_v39 }
 0x3b6   : > { %v10916_v51 = vpop.eup %10915  ;;  %v7443_v19 = vadd.f32 %v10705_v9, %v14011_v34  ;;  %10752 = vmatmul.mubr.msk.f32.gmra.mxu0 %vm424_vm2, %v7646_v30  ;;  %v7357_v4 = vpop.f32.mrf.mxu1  ;;  %v8892_v6 = vadd.f32 -1.0, %v10914_v52  ;;  %v7648_v34 = vsel %vm7498_vm8, %v14038_v5, %v8893_v44  ;;  %vm7503_vm15 = vcmp.gt.f32.partialorder %v14112_v35, 0.0 }
 0x3b7   : > { %10929 = vpow2.f32 %v7577_v48  ;;  %v7583_v33 = vmul.f32 1.442695, %v7538_v11  ;;  %v7537_v57 = vmin.f32 %v14140_v25, 0.0  ;;  %v7442_v63 = vadd.f32 %v7357_v4, %v14028_v28 }
 0x3b8   : > { %v10918_v47 = vpop.eup %10917  ;;  %v14152_v36 = vadd.f32 %v13958_v62, %v7443_v19  ;;  %v10708_v16 = vpop.f32.mrf.mxu1  ;;  %v7647_v42 = vsel %vm7497_vm9, %v14044_v20, %v8892_v6  ;;  %v8895_v37 = vadd.f32 -1.0, %v10916_v51  ;;  %vm7506_vm0 = vcmp.gt.f32.partialorder %v14120_v22, 0.0 }
 0x3b9   : > { %10931 = vpow2.f32 %v7583_v33  ;;  %v7581_v49 = vmul.f32 1.442695, %v7537_v57  ;;  %v14159_v13 = vadd.f32 %v13958_v62, %v7442_v63  ;;  %v7445_v31 = vadd.f32 %v10708_v16, %v14031_v26  ;;  %10754 = vmatprep.mubr.msk.f32.mxu0 %vm424_vm2, %v7647_v42 }
 0x3ba   : > { %v7540_v28 = vmin.f32 %v14152_v36, 0.0  ;;  %10755 = vmatmul.mubr.msk.f32.gmra.mxu0 %vm424_vm2, %v7648_v34  ;;  %v7367_v20 = vpop.f32.mrf.mxu1  ;;  %v8894_v5 = vadd.f32 -1.0, %v10918_v47  ;;  %vm7505_vm1 = vcmp.gt.f32.partialorder %v14124_v23, 0.0  ;;  %vm7508_vm3 = vcmp.gt.f32.partialorder %v14134_v21, 0.0 }
 0x3bb   : > { %v10920_v55 = vpop.eup %10919  ;;  %10933 = vpow2.f32 %v7581_v49  ;;  %v7539_v41 = vmin.f32 %v14159_v13, 0.0  ;;  %v14169_v43 = vadd.f32 %v13958_v62, %v7445_v31  ;;  %v7444_v26 = vadd.f32 %v7367_v20, %v14034_v3 }
 0x3bc   : > { %v10922_v32 = vpop.eup %10921  ;;  %v7587_v38 = vmul.f32 1.442695, %v7540_v28  ;;  %v10711_v17 = vpop.f32.mrf.mxu1  ;;  %v7649_v15 = vsel %vm7499_vm11, %v14067_v0, %v8894_v5  ;;  %v8897_v12 = vadd.f32 -1.0, %v10920_v55  ;;  %v7650_v3 = vsel %vm7500_vm10, %v14057_v60, %v8895_v37 }
 0x3bd   : > { %v7585_v27 = vmul.f32 1.442695, %v7539_v41  ;;  %v7542_v54 = vmin.f32 %v14169_v43, 0.0  ;;  %v14176_v10 = vadd.f32 %v13958_v62, %v7444_v26  ;;  %10757 = vmatprep.mubr.msk.f32.mxu0 %vm424_vm2, %v7649_v15  ;;  %v7447_v8 = vadd.f32 %v10711_v17, %v14041_v58 }
 0x3be   : > { %v10924_v56 = vpop.eup %10923  ;;  %10935 = vpow2.f32 %v7587_v38  ;;  %10758 = vmatmul.mubr.msk.f32.gmra.mxu0 %vm424_vm2, %v7650_v3  ;;  %v7377_v0 = vpop.f32.mrf.mxu1  ;;  %v8896_v59 = vadd.f32 -1.0, %v10922_v32  ;;  %v7652_v58 = vsel %vm7502_vm12, %v14085_v18, %v8897_v12  ;;  %vm7507_vm4 = vcmp.gt.f32.partialorder %v14140_v25, 0.0 }
 0x3bf   : > { %10937 = vpow2.f32 %v7585_v27  ;;  %v7591_v52 = vmul.f32 1.442695, %v7542_v54  ;;  %v7541_v39 = vmin.f32 %v14176_v10, 0.0  ;;  %v7446_v9 = vadd.f32 %v7377_v0, %v14047_v1 }
 0x3c0   : > { %v14188_v46 = vadd.f32 %v13958_v62, %v7447_v8  ;;  %v10714_v60 = vpop.f32.mrf.mxu1  ;;  %v7651_v44 = vsel %vm7501_vm13, %v14088_v50, %v8896_v59  ;;  %v8899_v48 = vadd.f32 -1.0, %v10924_v56  ;;  %vm7510_vm5 = vcmp.gt.f32.partialorder %v14152_v36, 0.0 }
 0x3c1   : > { %v10926_v11 = vpop.eup %10925  ;;  %10939 = vpow2.f32 %v7591_v52  ;;  %v7589_v30 = vmul.f32 1.442695, %v7541_v39  ;;  %v14195_v51 = vadd.f32 %v13958_v62, %v7446_v9  ;;  %v7449_v19 = vadd.f32 %v10714_v60, %v14050_v40  ;;  %10760 = vmatprep.mubr.msk.f32.mxu0 %vm424_vm2, %v7651_v44 }
 0x3c2   : > { %v7544_v1 = vmin.f32 %v14188_v46, 0.0  ;;  %10761 = vmatmul.mubr.msk.f32.gmra.mxu0 %vm424_vm2, %v7652_v58  ;;  %v7387_v50 = vpop.f32.mrf.mxu1  ;;  %v8898_v18 = vadd.f32 -1.0, %v10926_v11  ;;  %v10928_v4 = vpop.eup %10927  ;;  %vm7509_vm6 = vcmp.gt.f32.partialorder %v14159_v13, 0.0  ;;  %vm7511_vm7 = vcmp.gt.f32.partialorder %v14176_v10, 0.0 }
 0x3c3   : > { %10941 = vpow2.f32 %v7589_v30  ;;  %v7543_v6 = vmin.f32 %v14195_v51, 0.0  ;;  %v14205_v33 = vadd.f32 %v13958_v62, %v7449_v19  ;;  %v7448_v40 = vadd.f32 %v7387_v50, %v14077_v29 }
 0x3c4   : > { %v10930_v57 = vpop.eup %10929  ;;  %v7595_v63 = vmul.f32 1.442695, %v7544_v1  ;;  %v10717_v47 = vpop.f32.mrf.mxu1  ;;  %v7653_v16 = vsel %vm7503_vm15, %v14112_v35, %v8898_v18  ;;  %v8901_v42 = vadd.f32 -1.0, %v10928_v4  ;;  %v7654_v29 = vsel %vm7504_vm14, %v14103_v14, %v8899_v48 }
 0x3c5   : > { %v7593_v34 = vmul.f32 1.442695, %v7543_v6  ;;  %v7546_v37 = vmin.f32 %v14205_v33, 0.0  ;;  %v14212_v49 = vadd.f32 %v13958_v62, %v7448_v40  ;;  %10763 = vmatprep.mubr.msk.f32.mxu0 %vm424_vm2, %v7653_v16  ;;  %v7451_v28 = vadd.f32 %v10717_v47, %v14080_v61 }
 0x3c6   : > { %v10932_v31 = vpop.eup %10931  ;;  %10943 = vpow2.f32 %v7595_v63  ;;  %10764 = vmatmul.mubr.msk.f32.gmra.mxu0 %vm424_vm2, %v7654_v29  ;;  %v7397_v35 = vpop.f32.mrf.mxu1  ;;  %v8900_v20 = vadd.f32 -1.0, %v10930_v57  ;;  %v7656_v61 = vsel %vm7506_vm0, %v14120_v22, %v8901_v42  ;;  %vm7512_vm8 = vcmp.gt.f32.partialorder %v14169_v43, 0.0 }
 0x3c7   : > { %10945 = vpow2.f32 %v7593_v34  ;;  %v7599_v5 = vmul.f32 1.442695, %v7546_v37  ;;  %v7545_v55 = vmin.f32 %v14212_v49, 0.0  ;;  %v7450_v41 = vadd.f32 %v7397_v35, %v14092_v24 }
 0x3c8   : > { %v10934_v26 = vpop.eup %10933  ;;  %v14224_v32 = vadd.f32 %v13958_v62, %v7451_v28  ;;  %v10720_v14 = vpop.f32.mrf.mxu1  ;;  %v7655_v38 = vsel %vm7505_vm1, %v14124_v23, %v8900_v20  ;;  %v8903_v17 = vadd.f32 -1.0, %v10932_v31  ;;  %vm7513_vm9 = vcmp.gt.f32.partialorder %v14195_v51, 0.0 }
 0x3c9   : > { %10947 = vpow2.f32 %v7599_v5  ;;  %v7597_v15 = vmul.f32 1.442695, %v7545_v55  ;;  %v14231_v12 = vadd.f32 %v13958_v62, %v7450_v41  ;;  %v7453_v27 = vadd.f32 %v10720_v14, %v14094_v45  ;;  %10766 = vmatprep.mubr.msk.f32.mxu0 %vm424_vm2, %v7655_v38 }
 0x3ca   : > { %v7548_v24 = vmin.f32 %v14224_v32, 0.0  ;;  %10767 = vmatmul.mubr.msk.f32.gmra.mxu0 %vm424_vm2, %v7656_v61  ;;  %v7407_v23 = vpop.f32.mrf.mxu1  ;;  %v8902_v22 = vadd.f32 -1.0, %v10934_v26  ;;  %vm7514_vm10 = vcmp.gt.f32.partialorder %v14188_v46, 0.0  ;;  %vm7515_vm11 = vcmp.gt.f32.partialorder %v14212_v49, 0.0 }
 0x3cb   : > { %v10936_v54 = vpop.eup %10935  ;;  %10949 = vpow2.f32 %v7597_v15  ;;  %v7547_v3 = vmin.f32 %v14231_v12, 0.0  ;;  %v14241_v56 = vadd.f32 %v13958_v62, %v7453_v27  ;;  %v7452_v45 = vadd.f32 %v7407_v23, %v14096_v53 }
 0x3cc   : > { %v10938_v8 = vpop.eup %10937  ;;  %v7603_v0 = vmul.f32 1.442695, %v7548_v24  ;;  %v10723_v59 = vpop.f32.mrf.mxu1  ;;  %v7657_v52 = vsel %vm7507_vm4, %v14140_v25, %v8902_v22  ;;  %v8905_v39 = vadd.f32 -1.0, %v10936_v54  ;;  %v7658_v53 = vsel %vm7508_vm3, %v14134_v21, %v8903_v17  ;;  %v14312_v54 = vld [vmem:[%s14578_s7] ss:$0 sm:$0xff] }
 0x3cd   : > { %v7601_v9 = vmul.f32 1.442695, %v7547_v3  ;;  %v7550_v60 = vmin.f32 %v14241_v56, 0.0  ;;  %v14248_v44 = vadd.f32 %v13958_v62, %v7452_v45  ;;  %10769 = vmatprep.mubr.msk.f32.mxu0 %vm424_vm2, %v7657_v52  ;;  %v7455_v48 = vadd.f32 %v10723_v59, %v14099_v7 }
 0x3ce   : > { %v10940_v58 = vpop.eup %10939  ;;  %10951 = vpow2.f32 %v7603_v0  ;;  %10770 = vmatmul.mubr.msk.f32.gmra.mxu0 %vm424_vm2, %v7658_v53  ;;  %v7417_v25 = vpop.f32.mrf.mxu1  ;;  %v8904_v11 = vadd.f32 -1.0, %v10938_v8  ;;  %v7660_v7 = vsel %vm7510_vm5, %v14152_v36, %v8905_v39  ;;  %vm7516_vm12 = vcmp.gt.f32.partialorder %v14205_v33, 0.0 }
 0x3cf   : > { %10953 = vpow2.f32 %v7601_v9  ;;  %v7607_v30 = vmul.f32 1.442695, %v7550_v60  ;;  %v7549_v19 = vmin.f32 %v14248_v44, 0.0  ;;  %v7454_v1 = vadd.f32 %v7417_v25, %v14105_v2 }
 0x3d0   : > { %v10942_v50 = vpop.eup %10941  ;;  %v14260_v18 = vadd.f32 %v13958_v62, %v7455_v48  ;;  %v7659_v21 = vsel %vm7509_vm6, %v14159_v13, %v8904_v11  ;;  %v8907_v4 = vadd.f32 -1.0, %v10940_v58  ;;  %vm7517_vm13 = vcmp.gt.f32.partialorder %v14231_v12, 0.0 }
 0x3d1   : > { %10955 = vpow2.f32 %v7607_v30  ;;  %v7605_v6 = vmul.f32 1.442695, %v7549_v19  ;;  %v14267_v40 = vadd.f32 %v13958_v62, %v7454_v1  ;;  %10772 = vmatprep.mubr.msk.f32.mxu0 %vm424_vm2, %v7659_v21  ;;  %v8906_v57 = vadd.f32 -1.0, %v10942_v50 }
 0x3d2   : > { %v7552_v2 = vmin.f32 %v14260_v18, 0.0  ;;  %10773 = vmatmul.mubr.msk.f32.gmra.mxu0 %vm424_vm2, %v7660_v7  ;;  %v7662_v42 = vsel %vm7512_vm8, %v14169_v43, %v8907_v4  ;;  %vm7518_vm14 = vcmp.gt.f32.partialorder %v14224_v32, 0.0  ;;  %vm7519_vm15 = vcmp.gt.f32.partialorder %v14248_v44, 0.0 }
 0x3d3   : > { %v10944_v13 = vpop.eup %10943  ;;  %10957 = vpow2.f32 %v7605_v6  ;;  %v7551_v63 = vmin.f32 %v14267_v40, 0.0  ;;  %v7661_v36 = vsel %vm7511_vm7, %v14176_v10, %v8906_v57  ;;  %vm7520_vm0 = vcmp.gt.f32.partialorder %v14241_v56, 0.0 }
 0x3d4   : > { %v10946_v47 = vpop.eup %10945  ;;  %v7611_v62 = vmul.f32 1.442695, %v7552_v2  ;;  %10775 = vmatprep.mubr.msk.f32.mxu0 %vm424_vm2, %v7661_v36  ;;  %v8909_v37 = vadd.f32 -1.0, %v10944_v13  ;;  %vm7521_vm1 = vcmp.gt.f32.partialorder %v14267_v40, 0.0  ;;  %vm7522_vm3 = vcmp.gt.f32.partialorder %v14260_v18, 0.0 }
 0x3d5   : > { %v7609_v16 = vmul.f32 1.442695, %v7551_v63  ;;  %v8908_v34 = vadd.f32 -1.0, %v10946_v47 }
 0x3d6   : > { %v10948_v29 = vpop.eup %10947  ;;  %10959 = vpow2.f32 %v7611_v62  ;;  %10776 = vmatmul.mubr.msk.f32.gmra.mxu0 %vm424_vm2, %v7662_v42  ;;  %v7664_v28 = vsel %vm7514_vm10, %v14188_v46, %v8909_v37 }
 0x3d7   : > { %10961 = vpow2.f32 %v7609_v16  ;;  %v7663_v10 = vsel %vm7513_vm9, %v14195_v51, %v8908_v34  ;;  %v8911_v43 = vadd.f32 -1.0, %v10948_v29 }
 0x3d8   : > { %v10950_v31 = vpop.eup %10949  ;;  %10778 = vmatprep.mubr.msk.f32.mxu0 %vm424_vm2, %v7663_v10 }
 0x3d9   : > { %v8910_v35 = vadd.f32 -1.0, %v10950_v31  ;;  %v7666_v51 = vsel %vm7516_vm12, %v14205_v33, %v8911_v43 }
 0x3da   : > { %10779 = vmatmul.mubr.msk.f32.gmra.mxu0 %vm424_vm2, %v7664_v28 }
 0x3db   : > { %v10952_v20 = vpop.eup %10951  ;;  %v7665_v5 = vsel %vm7515_vm11, %v14212_v49, %v8910_v35 }
 0x3dc   : > { %v10954_v55 = vpop.eup %10953  ;;  %10781 = vmatprep.mubr.msk.f32.mxu0 %vm424_vm2, %v7665_v5  ;;  %v8913_v26 = vadd.f32 -1.0, %v10952_v20 }
 0x3dd   : > { %v8912_v41 = vadd.f32 -1.0, %v10954_v55 }
 0x3de   : > { %v10956_v14 = vpop.eup %10955  ;;  %10782 = vmatmul.mubr.msk.f32.gmra.mxu0 %vm424_vm2, %v7666_v51  ;;  %v7668_v49 = vsel %vm7518_vm14, %v14224_v32, %v8913_v26 }
 0x3df   : > { %v7667_v46 = vsel %vm7517_vm13, %v14231_v12, %v8912_v41  ;;  %v8915_v17 = vadd.f32 -1.0, %v10956_v14 }
 0x3e0   : > { %v10958_v38 = vpop.eup %10957  ;;  %10784 = vmatprep.mubr.msk.f32.mxu0 %vm424_vm2, %v7667_v46 }
 0x3e1   : > { %v8914_v61 = vadd.f32 -1.0, %v10958_v38  ;;  %v7670_v12 = vsel %vm7520_vm0, %v14241_v56, %v8915_v17 }
 0x3e2   : > { %10785 = vmatmul.mubr.msk.f32.gmra.mxu0 %vm424_vm2, %v7668_v49 }
 0x3e3   : > { %v10960_v33 = vpop.eup %10959  ;;  %v7669_v15 = vsel %vm7519_vm15, %v14248_v44, %v8914_v61 }
 0x3e4   : > { %v10962_v27 = vpop.eup %10961  ;;  %10787 = vmatprep.mubr.msk.f32.mxu0 %vm424_vm2, %v7669_v15  ;;  %v8917_v23 = vadd.f32 -1.0, %v10960_v33 }
 0x3e5   : > { %v8916_v24 = vadd.f32 -1.0, %v10962_v27 }
 0x3e6   : > { %10788 = vmatmul.mubr.msk.f32.gmra.mxu0 %vm424_vm2, %v7670_v12  ;;  %v7672_v22 = vsel %vm7522_vm3, %v14260_v18, %v8917_v23 }
 0x3e7   : > { %v7671_v32 = vsel %vm7521_vm1, %v14267_v40, %v8916_v24 }
 0x3e8   : > { %10790 = vmatprep.mubr.msk.f32.mxu0 %vm424_vm2, %v7671_v32 }
 0x3ea   : > { %10791 = vmatmul.mubr.msk.f32.gmra.mxu0 %vm424_vm2, %v7672_v22  ;;  %vm8177_vm2 = vcmask 23552  }
 0x472   : > { %v10750_v3 = vpop.f32.mrf.mxu0 }
 0x473   : > { %v7854_v56 = vadd.f32 %v10750_v3, %v14312_v54 }
 0x474   : > { %v7848_v45 = vpop.f32.mrf.mxu0 }
 0x475   : > { %v8028_v8 = vmin.f32 %v7854_v56, 0.0  ;;  %v14316_v0 = vadd.f32 %v14312_v54, %v7848_v45  ;;  %vm7998_vm4 = vcmp.gt.f32.partialorder %v7854_v56, 0.0 }
 0x476   : > { %v10753_v59 = vpop.f32.mrf.mxu0 }
 0x477   : > { %v8059_v52 = vmul.f32 1.442695, %v8028_v8  ;;  %v8027_v39 = vmin.f32 %v14316_v0, 0.0  ;;  %v14320_v9 = vadd.f32 %v10753_v59, %v14312_v54  ;;  %vm7997_vm5 = vcmp.gt.f32.partialorder %v14316_v0, 0.0 }
 0x478   : > { %v7858_v60 = vpop.f32.mrf.mxu0 }
 0x479   : > { %10963 = vpow2.f32 %v8059_v52  ;;  %v8057_v44 = vmul.f32 1.442695, %v8027_v39  ;;  %v8030_v53 = vmin.f32 %v14320_v9, 0.0  ;;  %v14324_v58 = vadd.f32 %v14312_v54, %v7858_v60 }
 0x47a   : > { %v10756_v48 = vpop.f32.mrf.mxu0  ;;  %vm8000_vm6 = vcmp.gt.f32.partialorder %v14320_v9, 0.0 }
 0x47b   : > { %10965 = vpow2.f32 %v8057_v44  ;;  %v8063_v25 = vmul.f32 1.442695, %v8030_v53  ;;  %v14327_v11 = vadd.f32 %v10756_v48, %v14312_v54  ;;  %v8029_v30 = vmin.f32 %v14324_v58, 0.0 }
 0x47c   : > { %v7868_v19 = vpop.f32.mrf.mxu0  ;;  %vm7999_vm7 = vcmp.gt.f32.partialorder %v14324_v58, 0.0 }
 0x47d   : > { %10967 = vpow2.f32 %v8063_v25  ;;  %v8032_v1 = vmin.f32 %v14327_v11, 0.0  ;;  %v14334_v50 = vadd.f32 %v14312_v54, %v7868_v19  ;;  %v8061_v18 = vmul.f32 1.442695, %v8029_v30 }
 0x47e   : > { %v10759_v21 = vpop.f32.mrf.mxu0  ;;  %vm8002_vm8 = vcmp.gt.f32.partialorder %v14327_v11, 0.0 }
 0x47f   : > { %v8067_v7 = vmul.f32 1.442695, %v8032_v1  ;;  %v8031_v4 = vmin.f32 %v14334_v50, 0.0  ;;  %v14338_v6 = vadd.f32 %v10759_v21, %v14312_v54  ;;  %10969 = vpow2.f32 %v8061_v18 }
 0x480   : > { %v7878_v40 = vpop.f32.mrf.mxu0  ;;  %vm8001_vm9 = vcmp.gt.f32.partialorder %v14334_v50, 0.0 }
 0x481   : > { %10971 = vpow2.f32 %v8067_v7  ;;  %v8065_v57 = vmul.f32 1.442695, %v8031_v4  ;;  %v8034_v2 = vmin.f32 %v14338_v6, 0.0  ;;  %v14342_v13 = vadd.f32 %v14312_v54, %v7878_v40 }
 0x482   : > { %v10762_v63 = vpop.f32.mrf.mxu0  ;;  %vm8004_vm10 = vcmp.gt.f32.partialorder %v14338_v6, 0.0 }
 0x483   : > { %10973 = vpow2.f32 %v8065_v57  ;;  %v8071_v36 = vmul.f32 1.442695, %v8034_v2  ;;  %v14345_v47 = vadd.f32 %v10762_v63, %v14312_v54  ;;  %v8033_v62 = vmin.f32 %v14342_v13, 0.0 }
 0x484   : > { %v7888_v16 = vpop.f32.mrf.mxu0  ;;  %vm8003_vm11 = vcmp.gt.f32.partialorder %v14342_v13, 0.0 }
 0x485   : > { %10975 = vpow2.f32 %v8071_v36  ;;  %v8036_v42 = vmin.f32 %v14345_v47, 0.0  ;;  %v14350_v34 = vadd.f32 %v14312_v54, %v7888_v16  ;;  %v8069_v29 = vmul.f32 1.442695, %v8033_v62 }
 0x486   : > { %v10964_v37 = vpop.eup %10963  ;;  %v10765_v10 = vpop.f32.mrf.mxu0  ;;  %vm8006_vm12 = vcmp.gt.f32.partialorder %v14345_v47, 0.0 }
 0x487   : > { %v8950_v31 = vadd.f32 -1.0, %v10964_v37  ;;  %v8075_v28 = vmul.f32 1.442695, %v8036_v42  ;;  %v8035_v35 = vmin.f32 %v14350_v34, 0.0  ;;  %10977 = vpow2.f32 %v8069_v29 }
 0x488   : > { %v10966_v43 = vpop.eup %10965  ;;  %v14359_v20 = vadd.f32 %v10765_v10, %v14312_v54  ;;  %v7898_v5 = vpop.f32.mrf.mxu0  ;;  %vm8005_vm13 = vcmp.gt.f32.partialorder %v14350_v34, 0.0 }
 0x489   : > { %v8148_v55 = vsel %vm7998_vm4, %v7854_v56, %v8950_v31  ;;  %v8949_v51 = vadd.f32 -1.0, %v10966_v43  ;;  %10979 = vpow2.f32 %v8075_v28  ;;  %v8073_v41 = vmul.f32 1.442695, %v8035_v35 }
 0x48a   : > { %v10968_v26 = vpop.eup %10967  ;;  %8179 = vst.msk [vmem:[%s14355_s25 + $0x8] sm:$0xff] %vm8177_vm2, %v8148_v55  ;;  %v8038_v14 = vmin.f32 %v14359_v20, 0.0  ;;  %v14366_v46 = vadd.f32 %v14312_v54, %v7898_v5  ;;  %v10768_v38 = vpop.f32.mrf.mxu0  ;;  %vm8008_vm14 = vcmp.gt.f32.partialorder %v14359_v20, 0.0 }
 0x48b   : > { %v8147_v49 = vsel %vm7997_vm5, %v14316_v0, %v8949_v51  ;;  %v8952_v61 = vadd.f32 -1.0, %v10968_v26  ;;  %10981 = vpow2.f32 %v8073_v41  ;;  %v14370_v17 = vadd.f32 %v10768_v38, %v14312_v54 }
 0x48c   : > { %8178 = vst.msk [vmem:[%s14355_s25] sm:$0xff] %vm8177_vm2, %v8147_v49  ;;  %v8079_v33 = vmul.f32 1.442695, %v8038_v14  ;;  %v8037_v15 = vmin.f32 %v14366_v46, 0.0  ;;  %v7908_v27 = vpop.f32.mrf.mxu0  ;;  %v10970_v12 = vpop.eup %10969  ;;  %vm8007_vm15 = vcmp.gt.f32.partialorder %v14366_v46, 0.0 }
 0x48d   : > { %v8150_v24 = vsel %vm8000_vm6, %v14320_v9, %v8952_v61  ;;  %v8040_v23 = vmin.f32 %v14370_v17, 0.0  ;;  %v14379_v32 = vadd.f32 %v14312_v54, %v7908_v27  ;;  %v8951_v3 = vadd.f32 -1.0, %v10970_v12 }
 0x48e   : > { %v10972_v22 = vpop.eup %10971  ;;  %8181 = vst.msk [vmem:[%s14355_s25 + $0x18] sm:$0xff] %vm8177_vm2, %v8150_v24  ;;  %10983 = vpow2.f32 %v8079_v33  ;;  %v8077_v56 = vmul.f32 1.442695, %v8037_v15  ;;  %v10771_v45 = vpop.f32.mrf.mxu0  ;;  %vm8010_vm0 = vcmp.gt.f32.partialorder %v14370_v17, 0.0 }
 0x48f   : > { %v8954_v8 = vadd.f32 -1.0, %v10972_v22  ;;  %v8083_v0 = vmul.f32 1.442695, %v8040_v23  ;;  %v8039_v59 = vmin.f32 %v14379_v32, 0.0  ;;  %v8149_v39 = vsel %vm7999_vm7, %v14324_v58, %v8951_v3 }
 0x490   : > { %v10974_v52 = vpop.eup %10973  ;;  %10985 = vpow2.f32 %v8077_v56  ;;  %v14388_v9 = vadd.f32 %v10771_v45, %v14312_v54  ;;  %v7918_v60 = vpop.f32.mrf.mxu0  ;;  %8180 = vst.msk [vmem:[%s14355_s25 + $0x10] sm:$0xff] %vm8177_vm2, %v8149_v39  ;;  %vm8009_vm1 = vcmp.gt.f32.partialorder %v14379_v32, 0.0 }
 0x491   : > { %v8152_v44 = vsel %vm8002_vm8, %v14327_v11, %v8954_v8  ;;  %v8953_v53 = vadd.f32 -1.0, %v10974_v52  ;;  %10987 = vpow2.f32 %v8083_v0  ;;  %v8081_v48 = vmul.f32 1.442695, %v8039_v59 }
 0x492   : > { %v10976_v25 = vpop.eup %10975  ;;  %8183 = vst.msk [vmem:[%s14355_s25 + $0x28] sm:$0xff] %vm8177_vm2, %v8152_v44  ;;  %v8042_v58 = vmin.f32 %v14388_v9, 0.0  ;;  %v14398_v30 = vadd.f32 %v14312_v54, %v7918_v60  ;;  %v10774_v19 = vpop.f32.mrf.mxu0  ;;  %vm8012_vm3 = vcmp.gt.f32.partialorder %v14388_v9, 0.0 }
 0x493   : > { %v8151_v1 = vsel %vm8001_vm9, %v14334_v50, %v8953_v53  ;;  %v8956_v18 = vadd.f32 -1.0, %v10976_v25  ;;  %10989 = vpow2.f32 %v8081_v48  ;;  %v14402_v11 = vadd.f32 %v10774_v19, %v14312_v54 }
 0x494   : > { %8182 = vst.msk [vmem:[%s14355_s25 + $0x20] sm:$0xff] %vm8177_vm2, %v8151_v1  ;;  %v8087_v21 = vmul.f32 1.442695, %v8042_v58  ;;  %v8041_v7 = vmin.f32 %v14398_v30, 0.0  ;;  %v7928_v4 = vpop.f32.mrf.mxu0  ;;  %v10978_v40 = vpop.eup %10977  ;;  %vm8011_vm4 = vcmp.gt.f32.partialorder %v14398_v30, 0.0 }
 0x495   : > { %v8154_v57 = vsel %vm8004_vm10, %v14338_v6, %v8956_v18  ;;  %v8044_v2 = vmin.f32 %v14402_v11, 0.0  ;;  %v14411_v50 = vadd.f32 %v14312_v54, %v7928_v4  ;;  %v8955_v36 = vadd.f32 -1.0, %v10978_v40 }
 0x496   : > { %v10980_v63 = vpop.eup %10979  ;;  %8185 = vst.msk [vmem:[%s14355_s25 + $0x38] sm:$0xff] %vm8177_vm2, %v8154_v57  ;;  %10991 = vpow2.f32 %v8087_v21  ;;  %v8085_v62 = vmul.f32 1.442695, %v8041_v7  ;;  %v10777_v16 = vpop.f32.mrf.mxu0  ;;  %vm8014_vm5 = vcmp.gt.f32.partialorder %v14402_v11, 0.0 }
 0x497   : > { %v8958_v42 = vadd.f32 -1.0, %v10980_v63  ;;  %v8091_v37 = vmul.f32 1.442695, %v8044_v2  ;;  %v8043_v6 = vmin.f32 %v14411_v50, 0.0  ;;  %v8153_v10 = vsel %vm8003_vm11, %v14342_v13, %v8955_v36 }
 0x498   : > { %v10982_v29 = vpop.eup %10981  ;;  %10993 = vpow2.f32 %v8085_v62  ;;  %v14420_v31 = vadd.f32 %v10777_v16, %v14312_v54  ;;  %v7938_v28 = vpop.f32.mrf.mxu0  ;;  %8184 = vst.msk [vmem:[%s14355_s25 + $0x30] sm:$0xff] %vm8177_vm2, %v8153_v10  ;;  %vm8013_vm6 = vcmp.gt.f32.partialorder %v14411_v50, 0.0 }
 0x499   : > { %v8156_v35 = vsel %vm8006_vm12, %v14345_v47, %v8958_v42  ;;  %v8957_v43 = vadd.f32 -1.0, %v10982_v29  ;;  %10995 = vpow2.f32 %v8091_v37  ;;  %v8089_v5 = vmul.f32 1.442695, %v8043_v6 }
 0x49a   : > { %8187 = vst.msk [vmem:[%s14355_s25 + $0x48] sm:$0xff] %vm8177_vm2, %v8156_v35  ;;  %v8046_v13 = vmin.f32 %v14420_v31, 0.0  ;;  %v14430_v55 = vadd.f32 %v14312_v54, %v7938_v28  ;;  %v10780_v51 = vpop.f32.mrf.mxu0  ;;  %vm8016_vm7 = vcmp.gt.f32.partialorder %v14420_v31, 0.0 }
 0x49b   : > { %v10984_v41 = vpop.eup %10983  ;;  %v8155_v26 = vsel %vm8005_vm13, %v14350_v34, %v8957_v43  ;;  %10997 = vpow2.f32 %v8089_v5  ;;  %v14434_v14 = vadd.f32 %v10780_v51, %v14312_v54 }
 0x49c   : > { %8186 = vst.msk [vmem:[%s14355_s25 + $0x40] sm:$0xff] %vm8177_vm2, %v8155_v26  ;;  %v8960_v47 = vadd.f32 -1.0, %v10984_v41  ;;  %v8095_v38 = vmul.f32 1.442695, %v8046_v13  ;;  %v8045_v49 = vmin.f32 %v14430_v55, 0.0  ;;  %v7948_v61 = vpop.f32.mrf.mxu0  ;;  %vm8015_vm8 = vcmp.gt.f32.partialorder %v14430_v55, 0.0 }
 0x49d   : > { %v10986_v33 = vpop.eup %10985  ;;  %v8048_v15 = vmin.f32 %v14434_v14, 0.0  ;;  %v14442_v27 = vadd.f32 %v14312_v54, %v7948_v61  ;;  %vm8018_vm9 = vcmp.gt.f32.partialorder %v14434_v14, 0.0 }
 0x49e   : > { %v10988_v34 = vpop.eup %10987  ;;  %v8158_v12 = vsel %vm8008_vm14, %v14359_v20, %v8960_v47  ;;  %v8959_v24 = vadd.f32 -1.0, %v10986_v33  ;;  %10999 = vpow2.f32 %v8095_v38  ;;  %v8093_v23 = vmul.f32 1.442695, %v8045_v49  ;;  %v10783_v22 = vpop.f32.mrf.mxu0 }
 0x49f   : > { %8189 = vst.msk [vmem:[%s14355_s25 + $0x58] sm:$0xff] %vm8177_vm2, %v8158_v12  ;;  %v8962_v3 = vadd.f32 -1.0, %v10988_v34  ;;  %v8099_v56 = vmul.f32 1.442695, %v8048_v15  ;;  %v8047_v45 = vmin.f32 %v14442_v27, 0.0  ;;  %v14452_v20 = vadd.f32 %v10783_v22, %v14312_v54 }
 0x4a0   : > { %v10990_v8 = vpop.eup %10989  ;;  %v8157_v0 = vsel %vm8007_vm15, %v14366_v46, %v8959_v24  ;;  %11001 = vpow2.f32 %v8093_v23  ;;  %v7958_v59 = vpop.f32.mrf.mxu0  ;;  %vm8017_vm10 = vcmp.gt.f32.partialorder %v14442_v27, 0.0 }
 0x4a1   : > { %8188 = vst.msk [vmem:[%s14355_s25 + $0x50] sm:$0xff] %vm8177_vm2, %v8157_v0  ;;  %v8160_v52 = vsel %vm8010_vm0, %v14370_v17, %v8962_v3  ;;  %v8961_v39 = vadd.f32 -1.0, %v10990_v8  ;;  %11003 = vpow2.f32 %v8099_v56  ;;  %v8097_v60 = vmul.f32 1.442695, %v8047_v45 }
 0x4a2   : > { %8191 = vst.msk [vmem:[%s14355_s25 + $0x68] sm:$0xff] %vm8177_vm2, %v8160_v52  ;;  %v8050_v46 = vmin.f32 %v14452_v20, 0.0  ;;  %v14462_v44 = vadd.f32 %v14312_v54, %v7958_v59  ;;  %v10786_v53 = vpop.f32.mrf.mxu0  ;;  %vm8020_vm11 = vcmp.gt.f32.partialorder %v14452_v20, 0.0 }
 0x4a3   : > { %v10992_v48 = vpop.eup %10991  ;;  %v8159_v25 = vsel %vm8009_vm1, %v14379_v32, %v8961_v39  ;;  %11005 = vpow2.f32 %v8097_v60  ;;  %v14466_v58 = vadd.f32 %v10786_v53, %v14312_v54 }
 0x4a4   : > { %8190 = vst.msk [vmem:[%s14355_s25 + $0x60] sm:$0xff] %vm8177_vm2, %v8159_v25  ;;  %v8964_v17 = vadd.f32 -1.0, %v10992_v48  ;;  %v8103_v19 = vmul.f32 1.442695, %v8050_v46  ;;  %v8049_v1 = vmin.f32 %v14462_v44, 0.0  ;;  %v7968_v18 = vpop.f32.mrf.mxu0  ;;  %vm8019_vm12 = vcmp.gt.f32.partialorder %v14462_v44, 0.0 }
 0x4a5   : > { %v10994_v21 = vpop.eup %10993  ;;  %v8052_v7 = vmin.f32 %v14466_v58, 0.0  ;;  %v14474_v4 = vadd.f32 %v14312_v54, %v7968_v18  ;;  %vm8022_vm13 = vcmp.gt.f32.partialorder %v14466_v58, 0.0 }
 0x4a6   : > { %v10996_v32 = vpop.eup %10995  ;;  %v8162_v40 = vsel %vm8012_vm3, %v14388_v9, %v8964_v17  ;;  %v8963_v57 = vadd.f32 -1.0, %v10994_v21  ;;  %11007 = vpow2.f32 %v8103_v19  ;;  %v8101_v2 = vmul.f32 1.442695, %v8049_v1  ;;  %v10789_v63 = vpop.f32.mrf.mxu0 }
 0x4a7   : > { %8193 = vst.msk [vmem:[%s14355_s25 + $0x78] sm:$0xff] %vm8177_vm2, %v8162_v40  ;;  %v8966_v36 = vadd.f32 -1.0, %v10996_v32  ;;  %v8107_v62 = vmul.f32 1.442695, %v8052_v7  ;;  %v8051_v16 = vmin.f32 %v14474_v4, 0.0  ;;  %v14484_v9 = vadd.f32 %v10789_v63, %v14312_v54 }
 0x4a8   : > { %v10998_v42 = vpop.eup %10997  ;;  %v8161_v37 = vsel %vm8011_vm4, %v14398_v30, %v8963_v57  ;;  %11009 = vpow2.f32 %v8101_v2  ;;  %v7978_v6 = vpop.f32.mrf.mxu0  ;;  %vm8021_vm14 = vcmp.gt.f32.partialorder %v14474_v4, 0.0 }
 0x4a9   : > { %8192 = vst.msk [vmem:[%s14355_s25 + $0x70] sm:$0xff] %vm8177_vm2, %v8161_v37  ;;  %v8164_v29 = vsel %vm8014_vm5, %v14402_v11, %v8966_v36  ;;  %v8965_v10 = vadd.f32 -1.0, %v10998_v42  ;;  %11011 = vpow2.f32 %v8107_v62  ;;  %v8105_v28 = vmul.f32 1.442695, %v8051_v16 }
 0x4aa   : > { %8195 = vst.msk [vmem:[%s14355_s25 + $0x88] sm:$0xff] %vm8177_vm2, %v8164_v29  ;;  %v8054_v30 = vmin.f32 %v14484_v9, 0.0  ;;  %v14494_v35 = vadd.f32 %v14312_v54, %v7978_v6  ;;  %v10792_v43 = vpop.f32.mrf.mxu0  ;;  %vm8024_vm15 = vcmp.gt.f32.partialorder %v14484_v9, 0.0 }
 0x4ab   : > { %v11000_v5 = vpop.eup %10999  ;;  %v8163_v13 = vsel %vm8013_vm6, %v14411_v50, %v8965_v10  ;;  %11013 = vpow2.f32 %v8105_v28  ;;  %v14498_v11 = vadd.f32 %v10792_v43, %v14312_v54 }
 0x4ac   : > { %8194 = vst.msk [vmem:[%s14355_s25 + $0x80] sm:$0xff] %vm8177_vm2, %v8163_v13  ;;  %v8968_v51 = vadd.f32 -1.0, %v11000_v5  ;;  %v8111_v41 = vmul.f32 1.442695, %v8054_v30  ;;  %v8053_v26 = vmin.f32 %v14494_v35, 0.0  ;;  %v7988_v47 = vpop.f32.mrf.mxu0  ;;  %vm8023_vm0 = vcmp.gt.f32.partialorder %v14494_v35, 0.0 }
 0x4ad   : > { %v11002_v38 = vpop.eup %11001  ;;  %v8056_v49 = vmin.f32 %v14498_v11, 0.0  ;;  %v14506_v50 = vadd.f32 %v14312_v54, %v7988_v47  ;;  %vm8026_vm1 = vcmp.gt.f32.partialorder %v14498_v11, 0.0 }
 0x4ae   : > { %v11004_v61 = vpop.eup %11003  ;;  %v8166_v33 = vsel %vm8016_vm7, %v14420_v31, %v8968_v51  ;;  %v8967_v15 = vadd.f32 -1.0, %v11002_v38  ;;  %11015 = vpow2.f32 %v8111_v41  ;;  %v8109_v34 = vmul.f32 1.442695, %v8053_v26 }
 0x4af   : > { %8197 = vst.msk [vmem:[%s14355_s25 + $0x98] sm:$0xff] %vm8177_vm2, %v8166_v33  ;;  %v8970_v12 = vadd.f32 -1.0, %v11004_v61  ;;  %v8115_v24 = vmul.f32 1.442695, %v8056_v49  ;;  %v8055_v23 = vmin.f32 %v14506_v50, 0.0  ;;  %vm8025_vm3 = vcmp.gt.f32.partialorder %v14506_v50, 0.0 }
 0x4b0   : > { %v11006_v22 = vpop.eup %11005  ;;  %v8165_v54 = vsel %vm8015_vm8, %v14430_v55, %v8967_v15  ;;  %11017 = vpow2.f32 %v8109_v34 }
 0x4b1   : > { %8196 = vst.msk [vmem:[%s14355_s25 + $0x90] sm:$0xff] %vm8177_vm2, %v8165_v54  ;;  %v8168_v31 = vsel %vm8018_vm9, %v14434_v14, %v8970_v12  ;;  %v8969_v3 = vadd.f32 -1.0, %v11006_v22  ;;  %11019 = vpow2.f32 %v8115_v24  ;;  %v8113_v56 = vmul.f32 1.442695, %v8055_v23 }
 0x4b2   : > { %8199 = vst.msk [vmem:[%s14355_s25 + $0xa8] sm:$0xff] %vm8177_vm2, %v8168_v31 }
 0x4b3   : > { %v11008_v45 = vpop.eup %11007  ;;  %v8167_v8 = vsel %vm8017_vm10, %v14442_v27, %v8969_v3  ;;  %11021 = vpow2.f32 %v8113_v56 }
 0x4b4   : > { %8198 = vst.msk [vmem:[%s14355_s25 + $0xa0] sm:$0xff] %vm8177_vm2, %v8167_v8  ;;  %v8972_v55 = vadd.f32 -1.0, %v11008_v45 }
 0x4b5   : > { %v11010_v0 = vpop.eup %11009 }
 0x4b6   : > { %v11012_v14 = vpop.eup %11011  ;;  %v8170_v59 = vsel %vm8020_vm11, %v14452_v20, %v8972_v55  ;;  %v8971_v52 = vadd.f32 -1.0, %v11010_v0 }
 0x4b7   : > { %8201 = vst.msk [vmem:[%s14355_s25 + $0xb8] sm:$0xff] %vm8177_vm2, %v8170_v59  ;;  %v8974_v39 = vadd.f32 -1.0, %v11012_v14 }
 0x4b8   : > { %v11014_v60 = vpop.eup %11013  ;;  %v8169_v27 = vsel %vm8019_vm12, %v14462_v44, %v8971_v52 }
 0x4b9   : > { %8200 = vst.msk [vmem:[%s14355_s25 + $0xb0] sm:$0xff] %vm8177_vm2, %v8169_v27  ;;  %v8172_v46 = vsel %vm8022_vm13, %v14466_v58, %v8974_v39  ;;  %v8973_v53 = vadd.f32 -1.0, %v11014_v60 }
 0x4ba   : > { %8203 = vst.msk [vmem:[%s14355_s25 + $0xc8] sm:$0xff] %vm8177_vm2, %v8172_v46 }
 0x4bb   : > { %v11016_v20 = vpop.eup %11015  ;;  %v8171_v48 = vsel %vm8021_vm14, %v14474_v4, %v8973_v53 }
 0x4bc   : > { %8202 = vst.msk [vmem:[%s14355_s25 + $0xc0] sm:$0xff] %vm8177_vm2, %v8171_v48  ;;  %v8976_v44 = vadd.f32 -1.0, %v11016_v20 }
 0x4bd   : > { %v11018_v25 = vpop.eup %11017 }
 0x4be   : > { %v11020_v17 = vpop.eup %11019  ;;  %v8174_v58 = vsel %vm8024_vm15, %v14484_v9, %v8976_v44  ;;  %v8975_v19 = vadd.f32 -1.0, %v11018_v25 }
 0x4bf   : > { %8205 = vst.msk [vmem:[%s14355_s25 + $0xd8] sm:$0xff] %vm8177_vm2, %v8174_v58  ;;  %v8978_v1 = vadd.f32 -1.0, %v11020_v17 }
 0x4c0   : > { %v11022_v18 = vpop.eup %11021  ;;  %v8173_v21 = vsel %vm8023_vm0, %v14494_v35, %v8975_v19 }
 0x4c1   : > { %8204 = vst.msk [vmem:[%s14355_s25 + $0xd0] sm:$0xff] %vm8177_vm2, %v8173_v21  ;;  %v8176_v7 = vsel %vm8026_vm1, %v14498_v11, %v8978_v1  ;;  %v8977_v4 = vadd.f32 -1.0, %v11022_v18 }
 0x4c2   : > { %8207 = vst.msk [vmem:[%s14355_s25 + $0xe8] sm:$0xff] %vm8177_vm2, %v8176_v7 }
 0x4c3   : > { %v8175_v32 = vsel %vm8025_vm3, %v14506_v50, %v8977_v4 }
 0x4c4   : > { %8206 = vst.msk [vmem:[%s14355_s25 + $0xe0] sm:$0xff] %vm8177_vm2, %v8175_v32 }
 0x4c5 PF: > { %s18_s9 = sadd.s32 1, %s11063_s9   ;;  %s14847_s27 = smov %s11055_s29 }
 0x4c6   : > { %p15_p7 = scmp.ge.s32.totalorder %s18_s9, 6   ;;  %s14848_s28 = smov %s11059_s30 }
 0x4c7   : > { %s14849_s29 = smov %s14852_s10  ;;  %s14850_s30 = smov %s14856_s11 }
 0x4c8   :  { %17 = sbr.rel (!%p15_p7) target bundleno = 3 (0x3), region = 86 }

</bundles_post_ra>
